<compile_context>
chip_gen: v5e
topology: v5e:2x2
jax: 0.10.0
libtpu: 0.0.40
codegen_flags: <defaults>
</compile_context>

<pallas_src>
import math

import jax
import jax.numpy as jnp
from jax.experimental import pallas as pl
from jax.experimental.pallas import tpu as pltpu

MODEL_DIM = 32     # model_dimension (entity feature size)
PROJ_DIM = 512     # hard-coded 512 inside MultiHeadedAttention
SEQ = 8            # entities per sample
BATCH = 2          # number of (content, image) pairs
D_FF = 512         # FFN hidden width
OUT_DIM = 32       # FFN pre_dim
BN_EPS = 1e-5


def _km_kernel(xc_ref, xi_ref,                      # (B*S, D) bf16 activations
               wq_ref, bq_ref,                      # (D, 512) bf16 / (1, 512) f32
               wkv_ref, bkv_ref,                    # (D, 1024) bf16 / (1, 1024) f32
               w1m_ref, w1d_ref, b1_ref,            # (3072,512) bf16 / (2,512) f32 / (1,512) f32
               w2_ref, b2_ref,                      # (512, 32) bf16 / (1, 32) f32
               gamma_ref, beta_ref, rmean_ref, rvar_ref,   # (1, 32) f32 each
               out_ref):                            # (B, 32) f32
    n_rows = xc_ref.shape[0]
    batch = out_ref.shape[0]
    seq = n_rows // batch
    proj = wq_ref.shape[1]
    scale = 1.0 / math.sqrt(float(proj))

    # --- projections: flattened (B*S, D) matmuls, Wk|Wv packed -------------
    q_all = jnp.dot(xc_ref[...], wq_ref[...],
                    preferred_element_type=jnp.float32) + bq_ref[...]      # (B*S, 512)
    kv_all = jnp.dot(xi_ref[...], wkv_ref[...],
                     preferred_element_type=jnp.float32) + bkv_ref[...]    # (B*S, 1024)

    pooled_rows = []
    dot_rows = []
    for b in range(batch):          # B == 2: fully unrolled inside one step
        r0 = b * seq
        q = q_all[r0:r0 + seq, :]                          # (S, 512) f32
        k = kv_all[r0:r0 + seq, 0:proj]                    # (S, 512) f32
        v = kv_all[r0:r0 + seq, proj:2 * proj]             # (S, 512) f32

        # scores = q k^T / sqrt(512): contract last dims, no explicit k.T.
        scores = jax.lax.dot_general(
            q.astype(jnp.bfloat16), k.astype(jnp.bfloat16),
            dimension_numbers=(((1,), (1,)), ((), ())),
            preferred_element_type=jnp.float32) * scale    # (S, S)

        # softmax in f32; attention dropout is identity in eval mode.
        m = jnp.max(scores, axis=-1, keepdims=True)
        e = jnp.exp(scores - m)
        denom = jnp.sum(e, axis=-1, keepdims=True)
        attn = e * pl.reciprocal(denom, approx=True)

        align = jnp.dot(attn.astype(jnp.bfloat16), v.astype(jnp.bfloat16),
                        preferred_element_type=jnp.float32)               # (S, 512)

        sub = q - align
        dotp = jnp.sum(q * align, axis=-1, keepdims=True)                 # (S, 1)

        # avg/max pooling over the S rows == avg_pool1d / max_pool1d with
        # kernel_size = num_rows on the transposed feature matrix.
        pooled_rows.append(jnp.concatenate(
            [jnp.mean(q, axis=0, keepdims=True),
             jnp.mean(align, axis=0, keepdims=True),
             jnp.mean(sub, axis=0, keepdims=True),
             jnp.max(q, axis=0, keepdims=True),
             jnp.max(align, axis=0, keepdims=True),
             jnp.max(sub, axis=0, keepdims=True)], axis=-1))              # (1, 3072)
        dot_rows.append(jnp.concatenate(
            [jnp.mean(dotp, axis=0, keepdims=True),
             jnp.max(dotp, axis=0, keepdims=True)], axis=-1))             # (1, 2)

    pooled = jnp.concatenate(pooled_rows, axis=0)                         # (B, 3072) f32
    dots = jnp.concatenate(dot_rows, axis=0)                              # (B, 2)    f32

    # --- FFN: Linear(3074->512) + ReLU + dropout(id) + Linear(512->32) -----
    h = jnp.dot(pooled.astype(jnp.bfloat16), w1m_ref[...],
                preferred_element_type=jnp.float32) + b1_ref[...]         # (B, 512)
    h = h + dots[:, 0:1] * w1d_ref[0:1, :]      # W1 row for the "avg dot" feature
    h = h + dots[:, 1:2] * w1d_ref[1:2, :]      # W1 row for the "max dot" feature
    h = jnp.maximum(h, 0.0)
    # TODO(synk): dropout layers are identity here (inference); training-mode
    # dropout would need a pltpu.prng-based mask.
    h2 = jnp.dot(h.astype(jnp.bfloat16), w2_ref[...],
                 preferred_element_type=jnp.float32) + b2_ref[...]        # (B, 32)

    # --- BatchNorm1d, eval mode (running statistics) ------------------------
    # TODO(synk): training-mode BatchNorm (batch statistics + running-stat
    # updates) is not implemented.
    inv = jax.lax.rsqrt(rvar_ref[...] + BN_EPS)
    y = (h2 - rmean_ref[...]) * inv * gamma_ref[...] + beta_ref[...]
    out_ref[...] = y.astype(out_ref.dtype)


def _full_block(shape):
    ndim = len(shape)

    def idx(i):
        return (0,) * ndim

    return pl.BlockSpec(shape, idx)


@jax.jit
def km_model_forward(content, image, params):
    B, S, D = content.shape
    P = params["wq"].shape[1]

    # Flatten the per-sample entity matrices; cast MXU operands to bf16.
    xc = content.reshape(B * S, D).astype(jnp.bfloat16)
    xi = image.reshape(B * S, D).astype(jnp.bfloat16)

    wq = params["wq"].astype(jnp.bfloat16)                                  # (D, 512)
    bq = params["bq"].reshape(1, P)
    wkv = jnp.concatenate([params["wk"], params["wv"]],
                          axis=1).astype(jnp.bfloat16)                      # (D, 1024)
    bkv = jnp.concatenate([params["bk"], params["bv"]], axis=0).reshape(1, 2 * P)

    # Split / permute W1 so all in-kernel operands stay (8,128)-aligned.
    # pool_fea feature order: [q_avg | align_avg | sub_avg | dot_avg |
    #                          q_max | align_max | sub_max | dot_max]
    w1 = params["w1"]                                                       # (3074, 512)
    w1_main = jnp.concatenate(
        [w1[0:P], w1[P:2 * P], w1[2 * P:3 * P],
         w1[3 * P + 1:4 * P + 1], w1[4 * P + 1:5 * P + 1], w1[5 * P + 1:6 * P + 1]],
        axis=0).astype(jnp.bfloat16)                                        # (3072, 512)
    w1_dot = jnp.concatenate([w1[3 * P:3 * P + 1], w1[6 * P + 1:6 * P + 2]],
                             axis=0)                                        # (2, 512)
    b1 = params["b1"].reshape(1, -1)
    w2 = params["w2"].astype(jnp.bfloat16)                                  # (512, 32)
    b2 = params["b2"].reshape(1, -1)
    gamma = params["bn_gamma"].reshape(1, -1)
    beta = params["bn_beta"].reshape(1, -1)
    rmean = params["bn_mean"].reshape(1, -1)
    rvar = params["bn_var"].reshape(1, -1)

    out_dim = params["w2"].shape[1]
    inputs = (xc, xi, wq, bq, wkv, bkv, w1_main, w1_dot, b1, w2, b2,
              gamma, beta, rmean, rvar)

    return pl.pallas_call(
        _km_kernel,
        out_shape=jax.ShapeDtypeStruct((B, out_dim), jnp.float32),
        grid_spec=pltpu.PrefetchScalarGridSpec(
            num_scalar_prefetch=0,
            grid=(1,),                       # single step: whole batch fused
            in_specs=[_full_block(x.shape) for x in inputs],
            out_specs=_full_block((B, out_dim)),
        ),
        compiler_params=pltpu.CompilerParams(
            dimension_semantics=("arbitrary",)),
    )(*inputs)


# ----------------------------- init & reference ------------------------------

def _xavier_uniform(key, d_in, d_out):
    # xavier_uniform_ on the PyTorch (d_out, d_in) weight; stored pre-transposed.
    bound = math.sqrt(6.0 / (d_in + d_out))
    return jax.random.uniform(key, (d_in, d_out), jnp.float32, -bound, bound)


def _default_linear(key, d_in, d_out):
    # PyTorch nn.Linear default-ish init: U(-1/sqrt(fan_in), 1/sqrt(fan_in)).
    kw, kb = jax.random.split(key)
    bound = 1.0 / math.sqrt(d_in)
    w = jax.random.uniform(kw, (d_in, d_out), jnp.float32, -bound, bound)
    b = jax.random.uniform(kb, (d_out,), jnp.float32, -bound, bound)
    return w, b


def _reference(content, image, p):
    q = content @ p["wq"] + p["bq"]
    k = image @ p["wk"] + p["bk"]
    v = image @ p["wv"] + p["bv"]
    scores = jnp.einsum("bsd,btd->bst", q, k) / math.sqrt(float(q.shape[-1]))
    attn = jax.nn.softmax(scores, axis=-1)
    align = jnp.einsum("bst,btd->bsd", attn, v)
    sub = q - align
    dotp = jnp.sum(q * align, axis=-1, keepdims=True)
    final = jnp.concatenate([q, align, sub, dotp], axis=-1)             # (B, S, 1537)
    pool = jnp.concatenate([jnp.mean(final, axis=1),
                            jnp.max(final, axis=1)], axis=-1)           # (B, 3074)
    h = jnp.maximum(pool @ p["w1"] + p["b1"], 0.0)
    h2 = h @ p["w2"] + p["b2"]
    return ((h2 - p["bn_mean"]) / jnp.sqrt(p["bn_var"] + BN_EPS)
            * p["bn_gamma"] + p["bn_beta"])


if __name__ == "__main__":
    root = jax.random.PRNGKey(0)
    (k_c, k_i, k_wq, k_bq, k_wk, k_bk, k_wv, k_bv,
     k_ff1, k_ff2) = jax.random.split(root, 10)

    content = jax.random.normal(k_c, (BATCH, SEQ, MODEL_DIM), jnp.float32)
    image = jax.random.normal(k_i, (BATCH, SEQ, MODEL_DIM), jnp.float32)

    def _bias(key, d_in, d_out):
        bound = 1.0 / math.sqrt(d_in)
        return jax.random.uniform(key, (d_out,), jnp.float32, -bound, bound)

    w1, b1 = _default_linear(k_ff1, 6 * PROJ_DIM + 2, D_FF)   # (3074, 512)
    w2, b2 = _default_linear(k_ff2, D_FF, OUT_DIM)            # (512, 32)

    params = {
        # MHA q/k/v nets: xavier_uniform_ weights (init_params), default biases.
        "wq": _xavier_uniform(k_wq, MODEL_DIM, PROJ_DIM), "bq": _bias(k_bq, MODEL_DIM, PROJ_DIM),
        "wk": _xavier_uniform(k_wk, MODEL_DIM, PROJ_DIM), "bk": _bias(k_bk, MODEL_DIM, PROJ_DIM),
        "wv": _xavier_uniform(k_wv, MODEL_DIM, PROJ_DIM), "bv": _bias(k_bv, MODEL_DIM, PROJ_DIM),
        # FFN (constructed after init_params in the PyTorch module -> default init).
        "w1": w1, "b1": b1, "w2": w2, "b2": b2,
        # BatchNorm1d(32), eval mode with default running stats / affine params.
        "bn_gamma": jnp.ones((OUT_DIM,), jnp.float32),
        "bn_beta": jnp.zeros((OUT_DIM,), jnp.float32),
        "bn_mean": jnp.zeros((OUT_DIM,), jnp.float32),
        "bn_var": jnp.ones((OUT_DIM,), jnp.float32),
    }

    out = km_model_forward(content, image, params)
    out = jax.block_until_ready(out)

    ref = _reference(content, image, params)
    assert out.shape == (BATCH, OUT_DIM)
    assert bool(jnp.all(jnp.isfinite(out)))
    # bf16 MXU operands with f32 accumulation -> loosened tolerance vs the
    # pure-f32 reference (as sanctioned by the perf review).
    assert jnp.allclose(out, ref, atol=2e-2, rtol=2e-2), (
        "max abs err = %e" % float(jnp.max(jnp.abs(out - ref))))

    print("KERNEL_OK")
</pallas_src>

<mosaic_0001>
module attributes {stable_mosaic.version = 11 : i64} {
  func.func @_km_kernel(%arg0: i32, %arg1: memref<16x32xbf16, #tpu.memory_space<vmem>>, %arg2: memref<16x32xbf16, #tpu.memory_space<vmem>>, %arg3: memref<32x512xbf16, #tpu.memory_space<vmem>>, %arg4: memref<1x512xf32, #tpu.memory_space<vmem>>, %arg5: memref<32x1024xbf16, #tpu.memory_space<vmem>>, %arg6: memref<1x1024xf32, #tpu.memory_space<vmem>>, %arg7: memref<3072x512xbf16, #tpu.memory_space<vmem>>, %arg8: memref<2x512xf32, #tpu.memory_space<vmem>>, %arg9: memref<1x512xf32, #tpu.memory_space<vmem>>, %arg10: memref<512x32xbf16, #tpu.memory_space<vmem>>, %arg11: memref<1x32xf32, #tpu.memory_space<vmem>>, %arg12: memref<1x32xf32, #tpu.memory_space<vmem>>, %arg13: memref<1x32xf32, #tpu.memory_space<vmem>>, %arg14: memref<1x32xf32, #tpu.memory_space<vmem>>, %arg15: memref<1x32xf32, #tpu.memory_space<vmem>>, %arg16: memref<2x32xf32, #tpu.memory_space<vmem>>) attributes {dimension_semantics = [#tpu.dimension_semantics<arbitrary>], iteration_bounds = array<i64: 1>, scalar_prefetch = 0 : i64, scratch_operands = 0 : i64, tpu.core_type = #tpu.core_type<tc>, window_params = [{pipeline_mode = #tpu.pipeline_mode<synchronous>, transform_indices = @transform_0, window_bounds = array<i64: 16, 32>}, {pipeline_mode = #tpu.pipeline_mode<synchronous>, transform_indices = @transform_1, window_bounds = array<i64: 16, 32>}, {pipeline_mode = #tpu.pipeline_mode<synchronous>, transform_indices = @transform_2, window_bounds = array<i64: 32, 512>}, {pipeline_mode = #tpu.pipeline_mode<synchronous>, transform_indices = @transform_3, window_bounds = array<i64: 1, 512>}, {pipeline_mode = #tpu.pipeline_mode<synchronous>, transform_indices = @transform_4, window_bounds = array<i64: 32, 1024>}, {pipeline_mode = #tpu.pipeline_mode<synchronous>, transform_indices = @transform_5, window_bounds = array<i64: 1, 1024>}, {pipeline_mode = #tpu.pipeline_mode<synchronous>, transform_indices = @transform_6, window_bounds = array<i64: 3072, 512>}, {pipeline_mode = #tpu.pipeline_mode<synchronous>, transform_indices = @transform_7, window_bounds = array<i64: 2, 512>}, {pipeline_mode = #tpu.pipeline_mode<synchronous>, transform_indices = @transform_8, window_bounds = array<i64: 1, 512>}, {pipeline_mode = #tpu.pipeline_mode<synchronous>, transform_indices = @transform_9, window_bounds = array<i64: 512, 32>}, {pipeline_mode = #tpu.pipeline_mode<synchronous>, transform_indices = @transform_10, window_bounds = array<i64: 1, 32>}, {pipeline_mode = #tpu.pipeline_mode<synchronous>, transform_indices = @transform_11, window_bounds = array<i64: 1, 32>}, {pipeline_mode = #tpu.pipeline_mode<synchronous>, transform_indices = @transform_12, window_bounds = array<i64: 1, 32>}, {pipeline_mode = #tpu.pipeline_mode<synchronous>, transform_indices = @transform_13, window_bounds = array<i64: 1, 32>}, {pipeline_mode = #tpu.pipeline_mode<synchronous>, transform_indices = @transform_14, window_bounds = array<i64: 1, 32>}, {pipeline_mode = #tpu.pipeline_mode<synchronous>, transform_indices = @transform_15, window_bounds = array<i64: 2, 32>}]} {
    %c0 = arith.constant 0 : index
    %c0_0 = arith.constant 0 : index
    %0 = vector.load %arg1[%c0, %c0_0] : memref<16x32xbf16, #tpu.memory_space<vmem>>, vector<16x32xbf16>
    %c0_1 = arith.constant 0 : index
    %c0_2 = arith.constant 0 : index
    %1 = vector.load %arg3[%c0_1, %c0_2] : memref<32x512xbf16, #tpu.memory_space<vmem>>, vector<32x512xbf16>
    %cst = arith.constant dense<0.000000e+00> : vector<16x512xf32>
    %2 = tpu.matmul %0, %1, %cst {dimension_numbers = #tpu.dot_dimension_numbers<[1], [0], [0], [1], [0, 0, 1, 1], [], []>} : vector<16x32xbf16>, vector<32x512xbf16>, vector<16x512xf32> -> vector<16x512xf32>
    %c0_3 = arith.constant 0 : index
    %c0_4 = arith.constant 0 : index
    %3 = vector.load %arg4[%c0_3, %c0_4] : memref<1x512xf32, #tpu.memory_space<vmem>>, vector<1x512xf32>
    %4 = vector.broadcast %3 : vector<1x512xf32> to vector<16x512xf32>
    %5 = arith.addf %2, %4 : vector<16x512xf32>
    %c0_5 = arith.constant 0 : index
    %c0_6 = arith.constant 0 : index
    %6 = vector.load %arg2[%c0_5, %c0_6] : memref<16x32xbf16, #tpu.memory_space<vmem>>, vector<16x32xbf16>
    %c0_7 = arith.constant 0 : index
    %c0_8 = arith.constant 0 : index
    %7 = vector.load %arg5[%c0_7, %c0_8] : memref<32x1024xbf16, #tpu.memory_space<vmem>>, vector<32x1024xbf16>
    %cst_9 = arith.constant dense<0.000000e+00> : vector<16x1024xf32>
    %8 = tpu.matmul %6, %7, %cst_9 {dimension_numbers = #tpu.dot_dimension_numbers<[1], [0], [0], [1], [0, 0, 1, 1], [], []>} : vector<16x32xbf16>, vector<32x1024xbf16>, vector<16x1024xf32> -> vector<16x1024xf32>
    %c0_10 = arith.constant 0 : index
    %c0_11 = arith.constant 0 : index
    %9 = vector.load %arg6[%c0_10, %c0_11] : memref<1x1024xf32, #tpu.memory_space<vmem>>, vector<1x1024xf32>
    %10 = vector.broadcast %9 : vector<1x1024xf32> to vector<16x1024xf32>
    %11 = arith.addf %8, %10 : vector<16x1024xf32>
    %12 = vector.extract_strided_slice %5 {offsets = [0, 0], sizes = [8, 512], strides = [1, 1]} : vector<16x512xf32> to vector<8x512xf32>
    %13 = vector.extract_strided_slice %11 {offsets = [0, 0], sizes = [8, 512], strides = [1, 1]} : vector<16x1024xf32> to vector<8x512xf32>
    %14 = vector.extract_strided_slice %11 {offsets = [0, 512], sizes = [8, 512], strides = [1, 1]} : vector<16x1024xf32> to vector<8x512xf32>
    %15 = arith.truncf %12 : vector<8x512xf32> to vector<8x512xbf16>
    %16 = arith.truncf %13 : vector<8x512xf32> to vector<8x512xbf16>
    %cst_12 = arith.constant dense<0.000000e+00> : vector<8x8xf32>
    %17 = tpu.matmul %15, %16, %cst_12 {dimension_numbers = #tpu.dot_dimension_numbers<[1], [1], [0], [0], [0, 0, 1, 0], [], []>} : vector<8x512xbf16>, vector<8x512xbf16>, vector<8x8xf32> -> vector<8x8xf32>
    %cst_13 = arith.constant 0.0441941731 : f32
    %18 = vector.broadcast %cst_13 : f32 to vector<8x8xf32>
    %19 = arith.mulf %17, %18 : vector<8x8xf32>
    %cst_14 = arith.constant dense<0xFF800000> : vector<8xf32>
    %20 = vector.multi_reduction <maximumf>, %19, %cst_14 [1] : vector<8x8xf32> to vector<8xf32>
    %21 = vector.shape_cast %20 : vector<8xf32> to vector<8x1xf32>
    %22 = vector.broadcast %21 : vector<8x1xf32> to vector<8x8xf32>
    %23 = arith.subf %19, %22 : vector<8x8xf32>
    %24 = math.exp %23 : vector<8x8xf32>
    %cst_15 = arith.constant dense<0.000000e+00> : vector<8xf32>
    %25 = vector.multi_reduction <add>, %24, %cst_15 [1] : vector<8x8xf32> to vector<8xf32>
    %26 = vector.shape_cast %25 : vector<8xf32> to vector<8x1xf32>
    %27 = tpu.reciprocal %26 {approx = true} : vector<8x1xf32> -> vector<8x1xf32>
    %28 = vector.broadcast %27 : vector<8x1xf32> to vector<8x8xf32>
    %29 = arith.mulf %24, %28 : vector<8x8xf32>
    %30 = arith.truncf %29 : vector<8x8xf32> to vector<8x8xbf16>
    %31 = arith.truncf %14 : vector<8x512xf32> to vector<8x512xbf16>
    %cst_16 = arith.constant dense<0.000000e+00> : vector<8x512xf32>
    %32 = tpu.matmul %30, %31, %cst_16 {dimension_numbers = #tpu.dot_dimension_numbers<[1], [0], [0], [1], [0, 0, 1, 1], [], []>} : vector<8x8xbf16>, vector<8x512xbf16>, vector<8x512xf32> -> vector<8x512xf32>
    %33 = arith.subf %12, %32 : vector<8x512xf32>
    %34 = arith.mulf %12, %32 : vector<8x512xf32>
    %cst_17 = arith.constant dense<0.000000e+00> : vector<8xf32>
    %35 = vector.multi_reduction <add>, %34, %cst_17 [1] : vector<8x512xf32> to vector<8xf32>
    %36 = vector.shape_cast %35 : vector<8xf32> to vector<8x1xf32>
    %cst_18 = arith.constant dense<0.000000e+00> : vector<512xf32>
    %37 = vector.multi_reduction <add>, %12, %cst_18 [0] : vector<8x512xf32> to vector<512xf32>
    %38 = vector.shape_cast %37 : vector<512xf32> to vector<1x512xf32>
    %cst_19 = arith.constant 8.000000e+00 : f32
    %39 = vector.broadcast %cst_19 : f32 to vector<1x512xf32>
    %40 = arith.divf %38, %39 : vector<1x512xf32>
    %cst_20 = arith.constant dense<0.000000e+00> : vector<512xf32>
    %41 = vector.multi_reduction <add>, %32, %cst_20 [0] : vector<8x512xf32> to vector<512xf32>
    %42 = vector.shape_cast %41 : vector<512xf32> to vector<1x512xf32>
    %cst_21 = arith.constant 8.000000e+00 : f32
    %43 = vector.broadcast %cst_21 : f32 to vector<1x512xf32>
    %44 = arith.divf %42, %43 : vector<1x512xf32>
    %cst_22 = arith.constant dense<0.000000e+00> : vector<512xf32>
    %45 = vector.multi_reduction <add>, %33, %cst_22 [0] : vector<8x512xf32> to vector<512xf32>
    %46 = vector.shape_cast %45 : vector<512xf32> to vector<1x512xf32>
    %cst_23 = arith.constant 8.000000e+00 : f32
    %47 = vector.broadcast %cst_23 : f32 to vector<1x512xf32>
    %48 = arith.divf %46, %47 : vector<1x512xf32>
    %cst_24 = arith.constant dense<0xFF800000> : vector<512xf32>
    %49 = vector.multi_reduction <maximumf>, %12, %cst_24 [0] : vector<8x512xf32> to vector<512xf32>
    %50 = vector.shape_cast %49 : vector<512xf32> to vector<1x512xf32>
    %cst_25 = arith.constant dense<0xFF800000> : vector<512xf32>
    %51 = vector.multi_reduction <maximumf>, %32, %cst_25 [0] : vector<8x512xf32> to vector<512xf32>
    %52 = vector.shape_cast %51 : vector<512xf32> to vector<1x512xf32>
    %cst_26 = arith.constant dense<0xFF800000> : vector<512xf32>
    %53 = vector.multi_reduction <maximumf>, %33, %cst_26 [0] : vector<8x512xf32> to vector<512xf32>
    %54 = vector.shape_cast %53 : vector<512xf32> to vector<1x512xf32>
    %55 = tpu.concatenate %40, %44, %48, %50, %52, %54 in 1 : vector<1x512xf32>, vector<1x512xf32>, vector<1x512xf32>, vector<1x512xf32>, vector<1x512xf32>, vector<1x512xf32> -> vector<1x3072xf32>
    %cst_27 = arith.constant dense<0.000000e+00> : vector<1xf32>
    %56 = vector.multi_reduction <add>, %36, %cst_27 [0] : vector<8x1xf32> to vector<1xf32>
    %57 = vector.shape_cast %56 : vector<1xf32> to vector<1x1xf32>
    %cst_28 = arith.constant 8.000000e+00 : f32
    %58 = vector.broadcast %cst_28 : f32 to vector<1x1xf32>
    %59 = arith.divf %57, %58 : vector<1x1xf32>
    %cst_29 = arith.constant dense<0xFF800000> : vector<1xf32>
    %60 = vector.multi_reduction <maximumf>, %36, %cst_29 [0] : vector<8x1xf32> to vector<1xf32>
    %61 = vector.shape_cast %60 : vector<1xf32> to vector<1x1xf32>
    %62 = tpu.concatenate %59, %61 in 1 : vector<1x1xf32>, vector<1x1xf32> -> vector<1x2xf32>
    %63 = vector.extract_strided_slice %5 {offsets = [8, 0], sizes = [8, 512], strides = [1, 1]} : vector<16x512xf32> to vector<8x512xf32>
    %64 = vector.extract_strided_slice %11 {offsets = [8, 0], sizes = [8, 512], strides = [1, 1]} : vector<16x1024xf32> to vector<8x512xf32>
    %65 = vector.extract_strided_slice %11 {offsets = [8, 512], sizes = [8, 512], strides = [1, 1]} : vector<16x1024xf32> to vector<8x512xf32>
    %66 = arith.truncf %63 : vector<8x512xf32> to vector<8x512xbf16>
    %67 = arith.truncf %64 : vector<8x512xf32> to vector<8x512xbf16>
    %cst_30 = arith.constant dense<0.000000e+00> : vector<8x8xf32>
    %68 = tpu.matmul %66, %67, %cst_30 {dimension_numbers = #tpu.dot_dimension_numbers<[1], [1], [0], [0], [0, 0, 1, 0], [], []>} : vector<8x512xbf16>, vector<8x512xbf16>, vector<8x8xf32> -> vector<8x8xf32>
    %cst_31 = arith.constant 0.0441941731 : f32
    %69 = vector.broadcast %cst_31 : f32 to vector<8x8xf32>
    %70 = arith.mulf %68, %69 : vector<8x8xf32>
    %cst_32 = arith.constant dense<0xFF800000> : vector<8xf32>
    %71 = vector.multi_reduction <maximumf>, %70, %cst_32 [1] : vector<8x8xf32> to vector<8xf32>
    %72 = vector.shape_cast %71 : vector<8xf32> to vector<8x1xf32>
    %73 = vector.broadcast %72 : vector<8x1xf32> to vector<8x8xf32>
    %74 = arith.subf %70, %73 : vector<8x8xf32>
    %75 = math.exp %74 : vector<8x8xf32>
    %cst_33 = arith.constant dense<0.000000e+00> : vector<8xf32>
    %76 = vector.multi_reduction <add>, %75, %cst_33 [1] : vector<8x8xf32> to vector<8xf32>
    %77 = vector.shape_cast %76 : vector<8xf32> to vector<8x1xf32>
    %78 = tpu.reciprocal %77 {approx = true} : vector<8x1xf32> -> vector<8x1xf32>
    %79 = vector.broadcast %78 : vector<8x1xf32> to vector<8x8xf32>
    %80 = arith.mulf %75, %79 : vector<8x8xf32>
    %81 = arith.truncf %80 : vector<8x8xf32> to vector<8x8xbf16>
    %82 = arith.truncf %65 : vector<8x512xf32> to vector<8x512xbf16>
    %cst_34 = arith.constant dense<0.000000e+00> : vector<8x512xf32>
    %83 = tpu.matmul %81, %82, %cst_34 {dimension_numbers = #tpu.dot_dimension_numbers<[1], [0], [0], [1], [0, 0, 1, 1], [], []>} : vector<8x8xbf16>, vector<8x512xbf16>, vector<8x512xf32> -> vector<8x512xf32>
    %84 = arith.subf %63, %83 : vector<8x512xf32>
    %85 = arith.mulf %63, %83 : vector<8x512xf32>
    %cst_35 = arith.constant dense<0.000000e+00> : vector<8xf32>
    %86 = vector.multi_reduction <add>, %85, %cst_35 [1] : vector<8x512xf32> to vector<8xf32>
    %87 = vector.shape_cast %86 : vector<8xf32> to vector<8x1xf32>
    %cst_36 = arith.constant dense<0.000000e+00> : vector<512xf32>
    %88 = vector.multi_reduction <add>, %63, %cst_36 [0] : vector<8x512xf32> to vector<512xf32>
    %89 = vector.shape_cast %88 : vector<512xf32> to vector<1x512xf32>
    %cst_37 = arith.constant 8.000000e+00 : f32
    %90 = vector.broadcast %cst_37 : f32 to vector<1x512xf32>
    %91 = arith.divf %89, %90 : vector<1x512xf32>
    %cst_38 = arith.constant dense<0.000000e+00> : vector<512xf32>
    %92 = vector.multi_reduction <add>, %83, %cst_38 [0] : vector<8x512xf32> to vector<512xf32>
    %93 = vector.shape_cast %92 : vector<512xf32> to vector<1x512xf32>
    %cst_39 = arith.constant 8.000000e+00 : f32
    %94 = vector.broadcast %cst_39 : f32 to vector<1x512xf32>
    %95 = arith.divf %93, %94 : vector<1x512xf32>
    %cst_40 = arith.constant dense<0.000000e+00> : vector<512xf32>
    %96 = vector.multi_reduction <add>, %84, %cst_40 [0] : vector<8x512xf32> to vector<512xf32>
    %97 = vector.shape_cast %96 : vector<512xf32> to vector<1x512xf32>
    %cst_41 = arith.constant 8.000000e+00 : f32
    %98 = vector.broadcast %cst_41 : f32 to vector<1x512xf32>
    %99 = arith.divf %97, %98 : vector<1x512xf32>
    %cst_42 = arith.constant dense<0xFF800000> : vector<512xf32>
    %100 = vector.multi_reduction <maximumf>, %63, %cst_42 [0] : vector<8x512xf32> to vector<512xf32>
    %101 = vector.shape_cast %100 : vector<512xf32> to vector<1x512xf32>
    %cst_43 = arith.constant dense<0xFF800000> : vector<512xf32>
    %102 = vector.multi_reduction <maximumf>, %83, %cst_43 [0] : vector<8x512xf32> to vector<512xf32>
    %103 = vector.shape_cast %102 : vector<512xf32> to vector<1x512xf32>
    %cst_44 = arith.constant dense<0xFF800000> : vector<512xf32>
    %104 = vector.multi_reduction <maximumf>, %84, %cst_44 [0] : vector<8x512xf32> to vector<512xf32>
    %105 = vector.shape_cast %104 : vector<512xf32> to vector<1x512xf32>
    %106 = tpu.concatenate %91, %95, %99, %101, %103, %105 in 1 : vector<1x512xf32>, vector<1x512xf32>, vector<1x512xf32>, vector<1x512xf32>, vector<1x512xf32>, vector<1x512xf32> -> vector<1x3072xf32>
    %cst_45 = arith.constant dense<0.000000e+00> : vector<1xf32>
    %107 = vector.multi_reduction <add>, %87, %cst_45 [0] : vector<8x1xf32> to vector<1xf32>
    %108 = vector.shape_cast %107 : vector<1xf32> to vector<1x1xf32>
    %cst_46 = arith.constant 8.000000e+00 : f32
    %109 = vector.broadcast %cst_46 : f32 to vector<1x1xf32>
    %110 = arith.divf %108, %109 : vector<1x1xf32>
    %cst_47 = arith.constant dense<0xFF800000> : vector<1xf32>
    %111 = vector.multi_reduction <maximumf>, %87, %cst_47 [0] : vector<8x1xf32> to vector<1xf32>
    %112 = vector.shape_cast %111 : vector<1xf32> to vector<1x1xf32>
    %113 = tpu.concatenate %110, %112 in 1 : vector<1x1xf32>, vector<1x1xf32> -> vector<1x2xf32>
    %114 = tpu.concatenate %55, %106 in 0 : vector<1x3072xf32>, vector<1x3072xf32> -> vector<2x3072xf32>
    %115 = tpu.concatenate %62, %113 in 0 : vector<1x2xf32>, vector<1x2xf32> -> vector<2x2xf32>
    %116 = arith.truncf %114 : vector<2x3072xf32> to vector<2x3072xbf16>
    %c0_48 = arith.constant 0 : index
    %c0_49 = arith.constant 0 : index
    %117 = vector.load %arg7[%c0_48, %c0_49] : memref<3072x512xbf16, #tpu.memory_space<vmem>>, vector<3072x512xbf16>
    %cst_50 = arith.constant dense<0.000000e+00> : vector<2x512xf32>
    %118 = tpu.matmul %116, %117, %cst_50 {dimension_numbers = #tpu.dot_dimension_numbers<[1], [0], [0], [1], [0, 0, 1, 1], [], []>} : vector<2x3072xbf16>, vector<3072x512xbf16>, vector<2x512xf32> -> vector<2x512xf32>
    %c0_51 = arith.constant 0 : index
    %c0_52 = arith.constant 0 : index
    %119 = vector.load %arg9[%c0_51, %c0_52] : memref<1x512xf32, #tpu.memory_space<vmem>>, vector<1x512xf32>
    %120 = vector.broadcast %119 : vector<1x512xf32> to vector<2x512xf32>
    %121 = arith.addf %118, %120 : vector<2x512xf32>
    %122 = vector.extract_strided_slice %115 {offsets = [0, 0], sizes = [2, 1], strides = [1, 1]} : vector<2x2xf32> to vector<2x1xf32>
    %c0_53 = arith.constant 0 : index
    %c0_54 = arith.constant 0 : index
    %123 = vector.load %arg8[%c0_53, %c0_54] : memref<2x512xf32, #tpu.memory_space<vmem>>, vector<1x512xf32>
    %124 = vector.broadcast %122 : vector<2x1xf32> to vector<2x512xf32>
    %125 = vector.broadcast %123 : vector<1x512xf32> to vector<2x512xf32>
    %126 = arith.mulf %124, %125 : vector<2x512xf32>
    %127 = arith.addf %121, %126 : vector<2x512xf32>
    %128 = vector.extract_strided_slice %115 {offsets = [0, 1], sizes = [2, 1], strides = [1, 1]} : vector<2x2xf32> to vector<2x1xf32>
    %c1 = arith.constant 1 : index
    %c0_55 = arith.constant 0 : index
    %129 = vector.load %arg8[%c1, %c0_55] : memref<2x512xf32, #tpu.memory_space<vmem>>, vector<1x512xf32>
    %130 = vector.broadcast %128 : vector<2x1xf32> to vector<2x512xf32>
    %131 = vector.broadcast %129 : vector<1x512xf32> to vector<2x512xf32>
    %132 = arith.mulf %130, %131 : vector<2x512xf32>
    %133 = arith.addf %127, %132 : vector<2x512xf32>
    %cst_56 = arith.constant 0.000000e+00 : f32
    %134 = vector.broadcast %cst_56 : f32 to vector<2x512xf32>
    %135 = arith.maximumf %133, %134 : vector<2x512xf32>
    %136 = arith.truncf %135 : vector<2x512xf32> to vector<2x512xbf16>
    %c0_57 = arith.constant 0 : index
    %c0_58 = arith.constant 0 : index
    %137 = vector.load %arg10[%c0_57, %c0_58] : memref<512x32xbf16, #tpu.memory_space<vmem>>, vector<512x32xbf16>
    %cst_59 = arith.constant dense<0.000000e+00> : vector<2x32xf32>
    %138 = tpu.matmul %136, %137, %cst_59 {dimension_numbers = #tpu.dot_dimension_numbers<[1], [0], [0], [1], [0, 0, 1, 1], [], []>} : vector<2x512xbf16>, vector<512x32xbf16>, vector<2x32xf32> -> vector<2x32xf32>
    %c0_60 = arith.constant 0 : index
    %c0_61 = arith.constant 0 : index
    %139 = vector.load %arg11[%c0_60, %c0_61] : memref<1x32xf32, #tpu.memory_space<vmem>>, vector<1x32xf32>
    %140 = vector.broadcast %139 : vector<1x32xf32> to vector<2x32xf32>
    %141 = arith.addf %138, %140 : vector<2x32xf32>
    %c0_62 = arith.constant 0 : index
    %c0_63 = arith.constant 0 : index
    %142 = vector.load %arg15[%c0_62, %c0_63] : memref<1x32xf32, #tpu.memory_space<vmem>>, vector<1x32xf32>
    %cst_64 = arith.constant 9.99999974E-6 : f32
    %143 = vector.broadcast %cst_64 : f32 to vector<1x32xf32>
    %144 = arith.addf %142, %143 : vector<1x32xf32>
    %145 = math.rsqrt %144 : vector<1x32xf32>
    %c0_65 = arith.constant 0 : index
    %c0_66 = arith.constant 0 : index
    %146 = vector.load %arg14[%c0_65, %c0_66] : memref<1x32xf32, #tpu.memory_space<vmem>>, vector<1x32xf32>
    %147 = vector.broadcast %146 : vector<1x32xf32> to vector<2x32xf32>
    %148 = arith.subf %141, %147 : vector<2x32xf32>
    %149 = vector.broadcast %145 : vector<1x32xf32> to vector<2x32xf32>
    %150 = arith.mulf %148, %149 : vector<2x32xf32>
    %c0_67 = arith.constant 0 : index
    %c0_68 = arith.constant 0 : index
    %151 = vector.load %arg12[%c0_67, %c0_68] : memref<1x32xf32, #tpu.memory_space<vmem>>, vector<1x32xf32>
    %152 = vector.broadcast %151 : vector<1x32xf32> to vector<2x32xf32>
    %153 = arith.mulf %150, %152 : vector<2x32xf32>
    %c0_69 = arith.constant 0 : index
    %c0_70 = arith.constant 0 : index
    %154 = vector.load %arg13[%c0_69, %c0_70] : memref<1x32xf32, #tpu.memory_space<vmem>>, vector<1x32xf32>
    %155 = vector.broadcast %154 : vector<1x32xf32> to vector<2x32xf32>
    %156 = arith.addf %153, %155 : vector<2x32xf32>
    %c0_71 = arith.constant 0 : index
    %c0_72 = arith.constant 0 : index
    %157 = vector.load %arg16[%c0_71, %c0_72] : memref<2x32xf32, #tpu.memory_space<vmem>>, vector<2x32xf32>
    tpu.vector_store %arg16[%c0_71, %c0_72], %156 {strides = array<i32>} : memref<2x32xf32, #tpu.memory_space<vmem>>, vector<2x32xf32>,
    return
  }
  func.func @transform_0(%arg0: i32) -> (i32, i32) {
    %c0_i32 = arith.constant 0 : i32
    %c0_i32_0 = arith.constant 0 : i32
    %c0_i32_1 = arith.constant 0 : i32
    return %c0_i32, %c0_i32_0 : i32, i32
  }
  func.func @transform_1(%arg0: i32) -> (i32, i32) {
    %c0_i32 = arith.constant 0 : i32
    %c0_i32_0 = arith.constant 0 : i32
    %c0_i32_1 = arith.constant 0 : i32
    return %c0_i32, %c0_i32_0 : i32, i32
  }
  func.func @transform_2(%arg0: i32) -> (i32, i32) {
    %c0_i32 = arith.constant 0 : i32
    %c0_i32_0 = arith.constant 0 : i32
    %c0_i32_1 = arith.constant 0 : i32
    return %c0_i32, %c0_i32_0 : i32, i32
  }
  func.func @transform_3(%arg0: i32) -> (i32, i32) {
    %c0_i32 = arith.constant 0 : i32
    %c0_i32_0 = arith.constant 0 : i32
    %c0_i32_1 = arith.constant 0 : i32
    return %c0_i32, %c0_i32_0 : i32, i32
  }
  func.func @transform_4(%arg0: i32) -> (i32, i32) {
    %c0_i32 = arith.constant 0 : i32
    %c0_i32_0 = arith.constant 0 : i32
    %c0_i32_1 = arith.constant 0 : i32
    return %c0_i32, %c0_i32_0 : i32, i32
  }
  func.func @transform_5(%arg0: i32) -> (i32, i32) {
    %c0_i32 = arith.constant 0 : i32
    %c0_i32_0 = arith.constant 0 : i32
    %c0_i32_1 = arith.constant 0 : i32
    return %c0_i32, %c0_i32_0 : i32, i32
  }
  func.func @transform_6(%arg0: i32) -> (i32, i32) {
    %c0_i32 = arith.constant 0 : i32
    %c0_i32_0 = arith.constant 0 : i32
    %c0_i32_1 = arith.constant 0 : i32
    return %c0_i32, %c0_i32_0 : i32, i32
  }
  func.func @transform_7(%arg0: i32) -> (i32, i32) {
    %c0_i32 = arith.constant 0 : i32
    %c0_i32_0 = arith.constant 0 : i32
    %c0_i32_1 = arith.constant 0 : i32
    return %c0_i32, %c0_i32_0 : i32, i32
  }
  func.func @transform_8(%arg0: i32) -> (i32, i32) {
    %c0_i32 = arith.constant 0 : i32
    %c0_i32_0 = arith.constant 0 : i32
    %c0_i32_1 = arith.constant 0 : i32
    return %c0_i32, %c0_i32_0 : i32, i32
  }
  func.func @transform_9(%arg0: i32) -> (i32, i32) {
    %c0_i32 = arith.constant 0 : i32
    %c0_i32_0 = arith.constant 0 : i32
    %c0_i32_1 = arith.constant 0 : i32
    return %c0_i32, %c0_i32_0 : i32, i32
  }
  func.func @transform_10(%arg0: i32) -> (i32, i32) {
    %c0_i32 = arith.constant 0 : i32
    %c0_i32_0 = arith.constant 0 : i32
    %c0_i32_1 = arith.constant 0 : i32
    return %c0_i32, %c0_i32_0 : i32, i32
  }
  func.func @transform_11(%arg0: i32) -> (i32, i32) {
    %c0_i32 = arith.constant 0 : i32
    %c0_i32_0 = arith.constant 0 : i32
    %c0_i32_1 = arith.constant 0 : i32
    return %c0_i32, %c0_i32_0 : i32, i32
  }
  func.func @transform_12(%arg0: i32) -> (i32, i32) {
    %c0_i32 = arith.constant 0 : i32
    %c0_i32_0 = arith.constant 0 : i32
    %c0_i32_1 = arith.constant 0 : i32
    return %c0_i32, %c0_i32_0 : i32, i32
  }
  func.func @transform_13(%arg0: i32) -> (i32, i32) {
    %c0_i32 = arith.constant 0 : i32
    %c0_i32_0 = arith.constant 0 : i32
    %c0_i32_1 = arith.constant 0 : i32
    return %c0_i32, %c0_i32_0 : i32, i32
  }
  func.func @transform_14(%arg0: i32) -> (i32, i32) {
    %c0_i32 = arith.constant 0 : i32
    %c0_i32_0 = arith.constant 0 : i32
    %c0_i32_1 = arith.constant 0 : i32
    return %c0_i32, %c0_i32_0 : i32, i32
  }
  func.func @transform_15(%arg0: i32) -> (i32, i32) {
    %c0_i32 = arith.constant 0 : i32
    %c0_i32_0 = arith.constant 0 : i32
    %c0_i32_1 = arith.constant 0 : i32
    return %c0_i32, %c0_i32_0 : i32, i32
  }
}

</mosaic_0001>

<bundles_post_ra>
// kernel: km_model_forward.1
= control target key start
LH: loop header
LB: loop body
LE: loop exit
PB: predicated region body
PF: predicated region fallthrough
CT: control target
= control target key end

     0   :  { %vm117_vm0 = vcmask 261120   ;;  %s17537_s0 = inlined_call_operand.vmem [shape: bf16[16,32], index: 0, kind: input, shape index: {}]   ;;  %s17538_s1 = inlined_call_operand.vmem [shape: bf16[16,32], index: 1, kind: input, shape index: {}]   ;;  %s17539_s2 = inlined_call_operand.vmem [shape: bf16[32,512], index: 2, kind: input, shape index: {}]   ;;  %s17540_s3 = inlined_call_operand.vmem [shape: f32[1,512], index: 3, kind: input, shape index: {}]   ;;  %s17541_s4 = inlined_call_operand.vmem [shape: bf16[32,1024], index: 4, kind: input, shape index: {}]   ;;  %s17542_s5 = inlined_call_operand.vmem [shape: f32[1,1024], index: 5, kind: input, shape index: {}]   ;;  %s17543_s6 = inlined_call_operand.vmem [shape: bf16[3072,512], index: 6, kind: input, shape index: {}]   ;;  %s17544_s7 = inlined_call_operand.vmem [shape: f32[2,512], index: 7, kind: input, shape index: {}]   ;;  %s17545_s8 = inlined_call_operand.vmem [shape: f32[1,512], index: 8, kind: input, shape index: {}]   ;;  %s17546_s9 = inlined_call_operand.vmem [shape: bf16[512,32], index: 9, kind: input, shape index: {}]   ;;  %s17547_s10 = inlined_call_operand.vmem [shape: f32[1,32], index: 10, kind: input, shape index: {}]   ;;  %s17548_s11 = inlined_call_operand.vmem [shape: f32[1,32], index: 11, kind: input, shape index: {}]   ;;  %s17549_s12 = inlined_call_operand.vmem [shape: f32[1,32], index: 12, kind: input, shape index: {}]   ;;  %s17550_s13 = inlined_call_operand.vmem [shape: f32[1,32], index: 13, kind: input, shape index: {}]   ;;  %s17551_s14 = inlined_call_operand.vmem [shape: f32[1,32], index: 14, kind: input, shape index: {}]   ;;  %s17552_s15 = inlined_call_operand.hbm [shape: f32[2,32], index: 15, kind: output, shape index: {}]  }
   0x1   :  { %v7505_v0 = vld [vmem:[%s17539_s2 + $0x20] sm:$0xf]  ;;  %v10815_v1 = vld [vmem:[%s17539_s2 + $0x2c] sm:$0xf0]  ;;  %v10813_v2 = vld [vmem:[%s17539_s2 + $0x24] sm:$0xf] }
   0x2   :  { %v7506_v3 = vor.u32 %v10815_v1, %v7505_v0  ;;  %v7507_v4 = vld [vmem:[%s17539_s2 + $0x30] sm:$0xf0]  ;;  %v7513_v5 = vld [vmem:[%s17539_s2 + $0x28] sm:$0xf]  ;;  %v10816_v6 = vld [vmem:[%s17539_s2 + $0x34] sm:$0xf0] }
   0x3   :  { %v7510_v7 = vor.u32 %v10813_v2, %v7507_v4  ;;  %v7514_v8 = vor.u32 %v10816_v6, %v7513_v5  ;;  %v10814_v9 = vld [vmem:[%s17539_s2 + $0x2c] sm:$0xf]  ;;  %v7515_v10 = vld [vmem:[%s17539_s2 + $0x38] sm:$0xf0]  ;;  %v7489_v11 = vld [vmem:[%s17539_s2] sm:$0xf] }
   0x4   :  { %127 = vmatpush.bf16.msra.mxu0 %v7506_v3  ;;  %v7518_v12 = vor.u32 %v10814_v9, %v7515_v10  ;;  %v10811_v13 = vld [vmem:[%s17539_s2 + $0xc] sm:$0xf0]  ;;  %v10809_v14 = vld [vmem:[%s17539_s2 + $0x4] sm:$0xf]  ;;  %v7491_v15 = vld [vmem:[%s17539_s2 + $0x10] sm:$0xf0] }
   0x5   :  { %141 = vmatpush.bf16.msra.mxu1 %v7510_v7  ;;  %155 = vmatpush.bf16.msra.mxu2 %v7514_v8  ;;  %v7490_v16 = vor.u32 %v10811_v13, %v7489_v11  ;;  %v7494_v17 = vor.u32 %v10809_v14, %v7491_v15  ;;  %v7497_v18 = vld [vmem:[%s17539_s2 + $0x8] sm:$0xf]  ;;  %v10812_v19 = vld [vmem:[%s17539_s2 + $0x14] sm:$0xf0]  ;;  %v10810_v20 = vld [vmem:[%s17539_s2 + $0xc] sm:$0xf] }
   0x6   :  { %169 = vmatpush.bf16.msra.mxu3 %v7518_v12  ;;  %v7498_v21 = vor.u32 %v10812_v19, %v7497_v18  ;;  %v7499_v22 = vld [vmem:[%s17539_s2 + $0x18] sm:$0xf0]  ;;  %v10808_v23 = vld [vmem:[%s17537_s0] sm:$0xff]  ;;  %v7569_v31 = vld [vmem:[%s17541_s4 + $0x48] sm:$0xf] }
   0x7   :  { %v7561_v24 = vld [vmem:[%s17541_s4 + $0x40] sm:$0xf]  ;;  %v7502_v25 = vor.u32 %v10810_v20, %v7499_v22  ;;  %v10826_v27 = vld [vmem:[%s17541_s4 + $0x44] sm:$0xf]  ;;  %v10831_v32 = vld [vmem:[%s17541_s4 + $0x64] sm:$0xf0] }
   0x8   :  { %v10830_v26 = vld [vmem:[%s17541_s4 + $0x5c] sm:$0xf0]  ;;  %v7563_v28 = vld [vmem:[%s17541_s4 + $0x60] sm:$0xf0]  ;;  %128 = vmatpush.bf16.msra.mxu0 %v7490_v16  ;;  %v10827_v33 = vld [vmem:[%s17541_s4 + $0x4c] sm:$0xf]  ;;  %v7570_v34 = vor.u32 %v10831_v32, %v7569_v31 }
   0x9   :  { %v7562_v29 = vor.u32 %v10830_v26, %v7561_v24  ;;  %v7566_v30 = vor.u32 %v10826_v27, %v7563_v28  ;;  %142 = vmatpush.bf16.msra.mxu1 %v7494_v17  ;;  %156 = vmatpush.bf16.msra.mxu2 %v7498_v21  ;;  %v7571_v35 = vld [vmem:[%s17541_s4 + $0x68] sm:$0xf0]  ;;  %v7529_v36 = vld [vmem:[%s17541_s4] sm:$0xf]  ;;  %v10818_v40 = vld [vmem:[%s17541_s4 + $0x4] sm:$0xf] }
   0xa   :  { %v10822_v37 = vld [vmem:[%s17541_s4 + $0x1c] sm:$0xf0]  ;;  %170 = vmatpush.bf16.msra.mxu3 %v7502_v25  ;;  %v7574_v38 = vor.u32 %v10827_v33, %v7571_v35  ;;  %v7531_v41 = vld [vmem:[%s17541_s4 + $0x20] sm:$0xf0]  ;;  %v7537_v42 = vld [vmem:[%s17541_s4 + $0x8] sm:$0xf] }
   0xb   :  { %v7530_v39 = vor.u32 %v10822_v37, %v7529_v36  ;;  %7519 = vmatmul.msk.bf16.vlgmr.msra.gmra.mxu0 %vm117_vm0, %v10808_v23  ;;  %v7534_v43 = vor.u32 %v10818_v40, %v7531_v41  ;;  %v10823_v44 = vld [vmem:[%s17541_s4 + $0x24] sm:$0xf0]  ;;  %v10819_v45 = vld [vmem:[%s17541_s4 + $0xc] sm:$0xf]  ;;  %v7577_v47 = vld [vmem:[%s17541_s4 + $0x50] sm:$0xf] }
   0xc   :  { %307 = vmatpush.bf16.msrb.mxu0 %v7562_v29  ;;  %v7539_v46 = vld [vmem:[%s17541_s4 + $0x28] sm:$0xf0]  ;;  %7520 = vmatmul.msk.bf16.vlgmr.msra.gmra.mxu1 %vm117_vm0, %v10808_v23  ;;  %v10832_v48 = vld [vmem:[%s17541_s4 + $0x6c] sm:$0xf0]  ;;  %v7538_v49 = vor.u32 %v10823_v44, %v7537_v42  ;;  %v10828_v51 = vld [vmem:[%s17541_s4 + $0x54] sm:$0xf] }
   0xd   :  { %321 = vmatpush.bf16.msrb.mxu1 %v7566_v30  ;;  %7521 = vmatmul.msk.bf16.vlgmr.msra.gmra.mxu2 %vm117_vm0, %v10808_v23  ;;  %v7578_v50 = vor.u32 %v10832_v48, %v7577_v47  ;;  %v7579_v52 = vld [vmem:[%s17541_s4 + $0x70] sm:$0xf0]  ;;  %v7585_v53 = vld [vmem:[%s17541_s4 + $0x58] sm:$0xf]  ;;  %v7542_v54 = vor.u32 %v10819_v45, %v7539_v46  ;;  %v10829_v57 = vld [vmem:[%s17541_s4 + $0x5c] sm:$0xf] }
   0xe   :  { %7522 = vmatmul.msk.bf16.vlgmr.msra.gmra.mxu3 %vm117_vm0, %v10808_v23  ;;  %335 = vmatpush.bf16.msrb.mxu2 %v7570_v34  ;;  %v7582_v55 = vor.u32 %v10828_v51, %v7579_v52  ;;  %v10833_v56 = vld [vmem:[%s17541_s4 + $0x74] sm:$0xf0]  ;;  %v7587_v58 = vld [vmem:[%s17541_s4 + $0x78] sm:$0xf0]  ;;  %v7545_v61 = vld [vmem:[%s17541_s4 + $0x10] sm:$0xf] }
   0xf   :  { %349 = vmatpush.bf16.msrb.mxu3 %v7574_v38  ;;  %v7586_v59 = vor.u32 %v10833_v56, %v7585_v53  ;;  %v7590_v60 = vor.u32 %v10829_v57, %v7587_v58  ;;  %v10824_v62 = vld [vmem:[%s17541_s4 + $0x2c] sm:$0xf0]  ;;  %v10820_v63 = vld [vmem:[%s17541_s4 + $0x14] sm:$0xf]  ;;  %v7553_v2 = vld [vmem:[%s17541_s4 + $0x18] sm:$0xf] }
  0x10   :  { %308 = vmatpush.bf16.msrb.mxu0 %v7530_v39  ;;  %v7546_v0 = vor.u32 %v10824_v62, %v7545_v61  ;;  %v7547_v1 = vld [vmem:[%s17541_s4 + $0x30] sm:$0xf0]  ;;  %v10825_v3 = vld [vmem:[%s17541_s4 + $0x34] sm:$0xf0]  ;;  %v10821_v5 = vld [vmem:[%s17541_s4 + $0x1c] sm:$0xf] }
  0x11   :  { %322 = vmatpush.bf16.msrb.mxu1 %v7534_v43  ;;  %v7550_v4 = vor.u32 %v10820_v63, %v7547_v1  ;;  %v7555_v6 = vld [vmem:[%s17541_s4 + $0x38] sm:$0xf0]  ;;  %v7554_v7 = vor.u32 %v10825_v3, %v7553_v2 }
  0x12   :  { %336 = vmatpush.bf16.msrb.mxu2 %v7538_v49  ;;  %v7558_v8 = vor.u32 %v10821_v5, %v7555_v6 }
  0x13   :  { %350 = vmatpush.bf16.msrb.mxu3 %v7542_v54 }
  0x14   :  { %363 = vmatpush.bf16.msra.mxu0 %v7578_v50 }
  0x15   :  { %377 = vmatpush.bf16.msra.mxu1 %v7582_v55 }
  0x16   :  { %391 = vmatpush.bf16.msra.mxu2 %v7586_v59 }
  0x17   :  { %405 = vmatpush.bf16.msra.mxu3 %v7590_v60 }
  0x18   :  { %364 = vmatpush.bf16.msra.mxu0 %v7546_v0 }
  0x19   :  { %20 = vsyncpa [#allocation3], 0  ;;  %378 = vmatpush.bf16.msra.mxu1 %v7550_v4  ;;  %v10817_v9 = vld [vmem:[%s17538_s1] sm:$0xff]  ;;  %vm1149_vm1 = vcmask 1040384   ;;  %vm494_vm2 = vcmask 1043456   ;;  %vm474_vm3 = vcmask 64512  }
  0x1a   :  { %392 = vmatpush.bf16.msra.mxu2 %v7554_v7  ;;  %v11937_v11 = vld [vmem:[%s17540_s3] sm:$0xf]  ;;  %vm748_vm5 = vcmask 7168   ;;  %s11691_s1 = smov [#allocation2]   ;;  %vm7465_vm9 = vcmask 254976  }
  0x1b   :  { %406 = vmatpush.bf16.msra.mxu3 %v7558_v8  ;;  %7591 = vmatmul.msk.bf16.vlgmr.msrb.gmra.mxu0 %vm117_vm0, %v10817_v9  ;;  %v64_v13 = vperm.slane %v11937_v11, 0  ;;  %v11947_v20 = vld [vmem:[%s17542_s5] sm:$0xff]  ;;  %v65_v21 = vperm.slane %v11937_v11, 1  ;;  %v66_v34 = vperm.slane %v11937_v11, 2  ;;  %v67_v45 = vperm.slane %v11937_v11, 3  ;;  %s7472_s20 = sshll.u32 %s11691_s1, 4  ;;  %s7473_s20 = int_to_ptr.vmem [resolvable:$true] %s7472_s20 }
  0x1c   :  { %7592 = vmatmul.msk.bf16.vlgmr.msrb.gmra.mxu1 %vm117_vm0, %v10817_v9  ;;  %v197_v24 = vperm.slane %v11947_v20, 0  ;;  %v198_v25 = vperm.slane %v11947_v20, 1  ;;  %v199_v39 = vperm.slane %v11947_v20, 2  ;;  %v200_v41 = vperm.slane %v11947_v20, 3  ;;  %s7474_s5 = sshll.u32 %s17552_s15, 4  ;;  %s7475_s5 = int_to_ptr.hbm [resolvable:$true] %s7474_s5 }
  0x1d   :  { %7593 = vmatmul.msk.bf16.vlgmr.msrb.gmra.mxu2 %vm117_vm0, %v10817_v9  ;;  %v201_v3 = vperm.slane %v11947_v20, 4  ;;  %v202_v4 = vperm.slane %v11947_v20, 5 }
  0x1e   :  { %7594 = vmatmul.msk.bf16.vlgmr.msrb.gmra.mxu3 %vm117_vm0, %v10817_v9 }
  0x2b   :  { %7595 = vmatmul.msk.bf16.vlgmr.msra.gmra.mxu0 %vm117_vm0, %v10817_v9 }
  0x2c   :  { %7596 = vmatmul.msk.bf16.vlgmr.msra.gmra.mxu1 %vm117_vm0, %v10817_v9 }
  0x2d   :  { %7597 = vmatmul.msk.bf16.vlgmr.msra.gmra.mxu2 %vm117_vm0, %v10817_v9 }
  0x2e   :  { %7598 = vmatmul.msk.bf16.vlgmr.msra.gmra.mxu3 %vm117_vm0, %v10817_v9 }
  0x88   :  { %v130_v10 = vpop.f32.mrf.mxu0 }
  0x89   :  { %v144_v12 = vpop.f32.mrf.mxu1  ;;  %v11940_v15 = vadd.f32 %v130_v10, %v64_v13 }
  0x8a   :  { %v11954_v26 = vadd.f32 %v144_v12, %v65_v21 }
  0x8b   :  { %v572_v22 = vrot.slane %v11940_v15, 4  ;;  %v413_v59 = vpack.c.bf16 %v11940_v15, %v11940_v15 }
  0x8c   :  { %v578_v36 = vrot.slane %v11954_v26, 4  ;;  %v414_v62 = vpack.c.bf16 %v11954_v26, %v11954_v26 }
  0x8d   :  { %v664_v30 = vmax.f32 %v11940_v15, %v572_v22 }
  0x8e   :  { %v670_v47 = vmax.f32 %v11954_v26, %v578_v36 }
  0x8f   :  { %v665_v40 = vrot.slane %v664_v30, 2 }
  0x90   :  { %v158_v14 = vpop.f32.mrf.mxu2  ;;  %v132_v17 = vpop.f32.mrf.mxu0  ;;  %v671_v63 = vrot.slane %v670_v47, 2 }
  0x91   :  { %v172_v16 = vpop.f32.mrf.mxu3  ;;  %v11942_v18 = vadd.f32 %v132_v17, %v64_v13  ;;  %v146_v19 = vpop.f32.mrf.mxu1  ;;  %v11970_v43 = vadd.f32 %v158_v14, %v66_v34  ;;  %v666_v51 = vmax.f32 %v664_v30, %v665_v40 }
  0x92   :  { %v11972_v44 = vadd.f32 %v146_v19, %v65_v21  ;;  %v11988_v60 = vadd.f32 %v172_v16, %v67_v45  ;;  %v672_v12 = vmax.f32 %v670_v47, %v671_v63 }
  0x93   :  { %v907_v23 = vrot.slane %v11942_v18, 4  ;;  %v584_v56 = vrot.slane %v11970_v43, 4  ;;  %v667_v0 = vrot.slane %v666_v51, 1  ;;  %v415_v10 = vpack.c.bf16 %v11970_v43, %v11970_v43 }
  0x94   :  { %v913_v57 = vrot.slane %v11972_v44, 4  ;;  %v590_v8 = vrot.slane %v11988_v60, 4  ;;  %v416_v11 = vpack.c.bf16 %v11988_v60, %v11988_v60  ;;  %v673_v40 = vrot.slane %v672_v12, 1 }
  0x95   :  { %v992_v33 = vmax.f32 %v11942_v18, %v907_v23  ;;  %v676_v7 = vmax.f32 %v11970_v43, %v584_v56  ;;  %v668_v17 = vmax.f32 %v666_v51, %v667_v0 }
  0x96   :  { %v998_v6 = vmax.f32 %v11972_v44, %v913_v57 }
  0x97   :  { %v993_v42 = vrot.slane %v992_v33, 2 }
  0x98   :  { %v160_v27 = vpop.f32.mrf.mxu2  ;;  %v310_v29 = vpop.f32.mrf.mxu0  ;;  %v999_v21 = vrot.slane %v998_v6, 2 }
  0x99   :  { %v174_v28 = vpop.f32.mrf.mxu3  ;;  %v311_v31 = vadd.f32 %v310_v29, %v197_v24  ;;  %v324_v32 = vpop.f32.mrf.mxu1  ;;  %v994_v52 = vmax.f32 %v992_v33, %v993_v42  ;;  %v11980_v53 = vadd.f32 %v160_v27, %v66_v34 }
  0x9a   :  { %v325_v35 = vadd.f32 %v324_v32, %v198_v25  ;;  %v12006_v13 = vadd.f32 %v174_v28, %v67_v45 }
  0x9b   :  { %v417_v37 = vpack.c.bf16 %v311_v31, %v311_v31  ;;  %v995_v1 = vrot.slane %v994_v52, 1  ;;  %v919_v2 = vrot.slane %v11980_v53, 4  ;;  %v677_v31 = vrot.slane %v676_v7, 2 }
  0x9c   :  { %v418_v38 = vpack.c.bf16 %v325_v35, %v325_v35  ;;  %v1000_v35 = vmax.f32 %v998_v6, %v999_v21  ;;  %v925_v42 = vrot.slane %v12006_v13, 4 }
  0x9d   :  { %428 = vmatpush.bf16.xpose.msrb.mxu0 %v417_v37  ;;  %v996_v5 = vmax.f32 %v994_v52, %v995_v1  ;;  %v1004_v32 = vmax.f32 %v11980_v53, %v919_v2  ;;  %v203_v37 = vperm.slane %v11947_v20, 6 }
  0x9e   :  { %441 = vmatpush.bf16.xpose.msrb.mxu1 %v418_v38  ;;  %v204_v38 = vperm.slane %v11947_v20, 7 }
  0x9f   :  { %v1113_v19 = vrot.slane %v996_v5, 7  ;;  %v1010_v5 = vmax.f32 %v12006_v13, %v925_v42 }
  0xa0   :  { %v338_v46 = vpop.f32.mrf.mxu2  ;;  %v312_v50 = vpop.f32.mrf.mxu0 }
  0xa1   :  { %v339_v48 = vadd.f32 %v338_v46, %v199_v39  ;;  %v352_v49 = vpop.f32.mrf.mxu3  ;;  %v326_v55 = vpop.f32.mrf.mxu1  ;;  %v313_v27 = vadd.f32 %v312_v50, %v197_v24  ;;  %v12020_v34 = vsel %vm1149_vm1, %v668_v17, %v1113_v19  ;;  %v1001_v46 = vrot.slane %v1000_v35, 1 }
  0xa2   :  { %v353_v54 = vadd.f32 %v352_v49, %v200_v41  ;;  %v327_v28 = vadd.f32 %v326_v55, %v198_v25  ;;  %17576 = vst [vmem:[#allocation5_spill] sm:$0xff] %v12020_v34  ;;  %v682_v25 = vmax.f32 %v11988_v60, %v590_v8  ;;  %v678_v49 = vmax.f32 %v676_v7, %v677_v31 }
  0xa3   :  { %v419_v58 = vpack.c.bf16 %v339_v48, %v339_v48  ;;  %v754_v47 = vpack.c.bf16 %v313_v27, %v313_v27  ;;  %v1005_v50 = vrot.slane %v1004_v32, 2  ;;  %v1011_v27 = vrot.slane %v1010_v5, 2 }
  0xa4   :  { %v420_v61 = vpack.c.bf16 %v353_v54, %v353_v54  ;;  %429 = vmatmul.bf16.vlgmr.msrb.gmra.mxu0 %v413_v59  ;;  %v755_v51 = vpack.c.bf16 %v327_v28, %v327_v28  ;;  %v1002_v54 = vmax.f32 %v1000_v35, %v1001_v46  ;;  %v674_v59 = vmax.f32 %v672_v12, %v673_v40 }
  0xa5   :  { %454 = vmatpush.bf16.xpose.msrb.mxu2 %v419_v58  ;;  %442 = vmatmul.bf16.vlgmr.msrb.gmra.mxu1 %v414_v62  ;;  %v683_v1 = vrot.slane %v682_v25, 2  ;;  %v679_v7 = vrot.slane %v678_v49, 1  ;;  %v1012_v31 = vmax.f32 %v1010_v5, %v1011_v27 }
  0xa6   :  { %467 = vmatpush.bf16.xpose.msrb.mxu3 %v420_v61  ;;  %v1006_v61 = vmax.f32 %v1004_v32, %v1005_v50  ;;  %v1114_v0 = vrot.slane %v1002_v54, 7 }
  0xa7   :  { %v684_v21 = vmax.f32 %v682_v25, %v683_v1 }
  0xa8   :  { %v340_v9 = vpop.f32.mrf.mxu2  ;;  %v366_v16 = vpop.f32.mrf.mxu0 }
  0xa9   :  { %v354_v14 = vpop.f32.mrf.mxu3  ;;  %v367_v29 = vadd.f32 %v366_v16, %v201_v3  ;;  %v380_v30 = vpop.f32.mrf.mxu1  ;;  %v341_v55 = vadd.f32 %v340_v9, %v199_v39  ;;  %v1007_v9 = vrot.slane %v1006_v61, 1  ;;  %v685_v28 = vrot.slane %v684_v21, 1 }
  0xaa   :  { %v381_v33 = vadd.f32 %v380_v30, %v202_v4  ;;  %v355_v6 = vadd.f32 %v354_v14, %v200_v41  ;;  %v680_v41 = vmax.f32 %v678_v49, %v679_v7 }
  0xab   :  { %v487_v24 = vpack.c.bf16 %v367_v29, %v367_v29  ;;  %v1008_v16 = vmax.f32 %v1006_v61, %v1007_v9  ;;  %v756_v17 = vpack.c.bf16 %v341_v55, %v341_v55 }
  0xac   :  { %455 = vmatmul.bf16.vlgmr.msrb.gmra.mxu2 %v415_v10  ;;  %v488_v45 = vpack.c.bf16 %v381_v33, %v381_v33  ;;  %v757_v29 = vpack.c.bf16 %v355_v6, %v355_v6  ;;  %v1013_v33 = vrot.slane %v1012_v31, 1 }
  0xad   :  { %468 = vmatmul.bf16.vlgmr.msrb.gmra.mxu3 %v416_v11  ;;  %v496_v48 = vsel %vm494_vm2, %v487_v24, 0  ;;  %v12042_v11 = vsel %vm1149_vm1, %v674_v59, %v1114_v0  ;;  %v1115_v14 = vrot.slane %v1008_v16, 7  ;;  %v686_v24 = vmax.f32 %v684_v21, %v685_v28 }
  0xae   :  { %v499_v52 = vsel %vm494_vm2, %v488_v45, 0  ;;  %514 = vmatpush.bf16.msra.mxu0 %v496_v48  ;;  %17577 = vst [vmem:[#allocation6_spill] sm:$0xff] %v12042_v11  ;;  %v1014_v35 = vmax.f32 %v1012_v31, %v1013_v33  ;;  %v751_v28 = vpack.c.bf16 %v11972_v44, %v11972_v44  ;;  %v752_v33 = vpack.c.bf16 %v11980_v53, %v11980_v53 }
  0xaf   :  { %527 = vmatpush.bf16.msra.mxu1 %v499_v52  ;;  %v12047_v32 = vsel %vm1149_vm1, %v680_v41, %v1115_v14 }
  0xb0   :  { %v394_v58 = vpop.f32.mrf.mxu2  ;;  %17578 = vst [vmem:[#allocation7_spill] sm:$0xff] %v12047_v32  ;;  %v1116_v40 = vrot.slane %v1014_v35, 7  ;;  %v368_v46 = vpop.f32.mrf.mxu0  ;;  %v753_v35 = vpack.c.bf16 %v12006_v13, %v12006_v13 }
  0xb1   :  { %v395_v62 = vadd.f32 %v394_v58, %v203_v37  ;;  %v408_v63 = vpop.f32.mrf.mxu3  ;;  %v382_v25 = vpop.f32.mrf.mxu1 }
  0xb2   :  { %765 = vmatpush.bf16.xpose.msrb.mxu0 %v754_v47  ;;  %v409_v39 = vadd.f32 %v408_v63, %v204_v38  ;;  %v12050_v45 = vsel %vm1149_vm1, %v686_v24, %v1116_v40  ;;  %v383_v16 = vadd.f32 %v382_v25, %v202_v4 }
  0xb3   :  { %778 = vmatpush.bf16.xpose.msrb.mxu1 %v755_v51  ;;  %v489_v10 = vpack.c.bf16 %v395_v62, %v395_v62  ;;  %17579 = vst [vmem:[#allocation8_spill] sm:$0xff] %v12050_v45 }
  0xb4   :  { %v490_v12 = vpack.c.bf16 %v409_v39, %v409_v39 }
  0xb5   :  { %v502_v19 = vsel %vm494_vm2, %v489_v10, 0 }
  0xb6   :  { %v505_v30 = vsel %vm494_vm2, %v490_v12, 0  ;;  %540 = vmatpush.bf16.msra.mxu2 %v502_v19  ;;  %v369_v12 = vadd.f32 %v368_v46, %v201_v3 }
  0xb7   :  { %553 = vmatpush.bf16.msra.mxu3 %v505_v30  ;;  %v824_v30 = vpack.c.bf16 %v383_v16, %v383_v16 }
  0xb8   :  { %v396_v49 = vpop.f32.mrf.mxu2 }
  0xb9   :  { %v410_v50 = vpop.f32.mrf.mxu3  ;;  %v834_v20 = vsel %vm494_vm2, %v824_v30, 0 }
  0xba   :  { %791 = vmatpush.bf16.xpose.msrb.mxu2 %v756_v17  ;;  %v397_v17 = vadd.f32 %v396_v49, %v203_v37  ;;  %v411_v19 = vadd.f32 %v410_v50, %v204_v38  ;;  %v750_v38 = vpack.c.bf16 %v11942_v18, %v11942_v18 }
  0xbb   :  { %804 = vmatpush.bf16.xpose.msrb.mxu3 %v757_v29  ;;  %v823_v29 = vpack.c.bf16 %v369_v12, %v369_v12 }
  0xbc   :  { %v825_v41 = vpack.c.bf16 %v397_v17, %v397_v17  ;;  %v826_v14 = vpack.c.bf16 %v411_v19, %v411_v19 }
  0xbd   :  { %v831_v3 = vsel %vm494_vm2, %v823_v29, 0 }
  0xbe   :  { %v837_v4 = vsel %vm494_vm2, %v825_v41, 0  ;;  %v840_v37 = vsel %vm494_vm2, %v826_v14, 0 }
 0x121   :  { %v430_v47 = vpop.f32.mrf.mxu0 }
 0x122   :  { %v443_v48 = vpop.f32.mrf.mxu1 }
 0x123   :  { %v444_v54 = vadd.f32 %v443_v48, %v430_v47 }
 0x129   :  { %v432_v51 = vpop.f32.mrf.mxu0 }
 0x12a   :  { %v445_v52 = vpop.f32.mrf.mxu1 }
 0x12f   :  { %v456_v55 = vpop.f32.mrf.mxu2 }
 0x130   :  { %v457_v58 = vadd.f32 %v456_v55, %v444_v54  ;;  %v469_v59 = vpop.f32.mrf.mxu3 }
 0x132   :  { %v470_v61 = vadd.f32 %v469_v59, %v457_v58 }
 0x134   :  { %v473_v62 = vmul.f32 0.044194173, %v470_v61 }
 0x136   :  { %v475_v63 = vsel %vm474_vm3, %v473_v62, -inf }
 0x137   :  { %v458_v0 = vpop.f32.mrf.mxu2  ;;  %476 = vmax.xlane.f32.xlu0 %v475_v63 }
 0x138   :  { %v471_v1 = vpop.f32.mrf.mxu3 }
 0x1aa   :  { %v477_v5 = vpop.xlane.xlu0 %476 }
 0x1ab   :  { %v478_v6 = vsub.f32 %v473_v62, %v477_v5 }
 0x1ad   :  { %v479_v39 = vmul.f32 1.442695, %v478_v6 }
 0x1af   :  { %11645 = vpow2.f32 %v479_v39 }
 0x1b5   :  { %v11646_v7 = vpop.eup %11645 }
 0x1b6   :  { %v481_v9 = vsel %vm474_vm3, %v11646_v7, 0.0 }
 0x1b7   :  { %482 = vadd.xlane.f32.xlu0 %v481_v9 }
 0x22a   :  { %v483_v10 = vpop.xlane.xlu0 %482 }
 0x22b   :  { %11647 = vrcp.f32 %v483_v10 }
 0x231   :  { %v11648_v21 = vpop.eup %11647 }
 0x232   :  { %v485_v27 = vmul.f32 %v11648_v21, %v11646_v7 }
 0x234   :  { %v486_v31 = vpack.c.bf16 %v485_v27, %v485_v27 }
 0x236   :  { %7599 = vmatmul.msk.bf16.vlgmr.msra.gmra.mxu0 %vm474_vm3, %v486_v31  ;;  %7600 = vmatmul.msk.bf16.vlgmr.msra.gmra.mxu1 %vm474_vm3, %v486_v31 }
 0x237   :  { %7601 = vmatmul.msk.bf16.vlgmr.msra.gmra.mxu2 %vm474_vm3, %v486_v31  ;;  %7602 = vmatmul.msk.bf16.vlgmr.msra.gmra.mxu3 %vm474_vm3, %v486_v31 }
 0x238   :  { %849 = vmatpush.bf16.msra.mxu0 %v831_v3  ;;  %862 = vmatpush.bf16.msra.mxu1 %v834_v20 }
 0x239   :  { %875 = vmatpush.bf16.msra.mxu2 %v837_v4  ;;  %888 = vmatpush.bf16.msra.mxu3 %v840_v37 }
 0x246   :  { %766 = vmatmul.bf16.vlgmr.msrb.gmra.mxu0 %v750_v38  ;;  %779 = vmatmul.bf16.vlgmr.msrb.gmra.mxu1 %v751_v28 }
 0x247   :  { %792 = vmatmul.bf16.vlgmr.msrb.gmra.mxu2 %v752_v33  ;;  %805 = vmatmul.bf16.vlgmr.msrb.gmra.mxu3 %v753_v35 }
 0x2b3   :  { %v12078_v24 = vpop.f32.mrf.mxu0  ;;  %v12080_v40 = vpop.f32.mrf.mxu1 }
 0x2b4   :  { %v12084_v46 = vsub.f32 %v11940_v15, %v12078_v24  ;;  %v607_v25 = vrot.slane %v12078_v24, 4  ;;  %v12089_v47 = vsub.f32 %v11954_v26, %v12080_v40  ;;  %v17559_v48 = vrot.slane %v12080_v40, 4 }
 0x2b5   :  { %v563_v49 = vmul.f32 %v12078_v24, %v11940_v15  ;;  %v564_v50 = vmul.f32 %v12080_v40, %v11954_v26 }
 0x2b6   :  { %v17558_v51 = vrot.slane %v12084_v46, 4  ;;  %v12100_v52 = vmax.f32 %v12078_v24, %v607_v25  ;;  %v17557_v54 = vrot.slane %v12089_v47, 4  ;;  %v12106_v55 = vmax.f32 %v12080_v40, %v17559_v48  ;;  %v8345_v48 = vld [vmem:[%s17543_s6 + $0x5c0] sm:$0xf] }
 0x2b7   :  { %v567_v58 = vadd.f32 %v564_v50, %v563_v49 }
 0x2b8   :  { %v12111_v59 = vmax.f32 %v12084_v46, %v17558_v51  ;;  %v12116_v61 = vmax.f32 %v12089_v47, %v17557_v54  ;;  %v8217_v54 = vld [vmem:[%s17543_s6 + $0x4c0] sm:$0xf]  ;;  %v10988_v51 = vld [vmem:[%s17543_s6 + $0x4cc] sm:$0xf0] }
 0x2ba   :  { %v12118_v62 = vpop.f32.mrf.mxu2  ;;  %v12120_v63 = vpop.f32.mrf.mxu3 }
 0x2bb   :  { %v518_v0 = vpop.f32.mrf.mxu0  ;;  %v531_v1 = vpop.f32.mrf.mxu1  ;;  %v12124_v5 = vsub.f32 %v11970_v43, %v12118_v62  ;;  %v17556_v6 = vrot.slane %v12118_v62, 4  ;;  %v12129_v39 = vsub.f32 %v11988_v60, %v12120_v63  ;;  %v17555_v7 = vrot.slane %v12120_v63, 4 }
 0x2bc   :  { %v565_v41 = vmul.f32 %v12118_v62, %v11970_v43  ;;  %v566_v20 = vmul.f32 %v12120_v63, %v11988_v60 }
 0x2bd   :  { %v17554_v9 = vrot.slane %v12124_v5, 4  ;;  %v12136_v10 = vmax.f32 %v12118_v62, %v17556_v6  ;;  %v17553_v12 = vrot.slane %v12129_v39, 4  ;;  %v12142_v16 = vmax.f32 %v12120_v63, %v17555_v7 }
 0x2be   :  { %v568_v4 = vadd.f32 %v567_v58, %v565_v41  ;;  %v10864_v58 = vld [vmem:[%s17543_s6 + $0xec] sm:$0xf0]  ;;  %v7977_v41 = vld [vmem:[%s17543_s6 + $0x2e0] sm:$0xf] }
 0x2bf   :  { %v12147_v17 = vmax.f32 %v12124_v5, %v17554_v9  ;;  %v12152_v27 = vmax.f32 %v12129_v39, %v17553_v12 }
 0x2c0   :  { %v12158_v33 = vadd.f32 %v568_v4, %v566_v20  ;;  %v8105_v20 = vld [vmem:[%s17543_s6 + $0x3e0] sm:$0xf]  ;;  %v10960_v4 = vld [vmem:[%s17543_s6 + $0x3ec] sm:$0xf0] }
 0x2c2   :  { %v544_v19 = vpop.f32.mrf.mxu2  ;;  %v557_v21 = vpop.f32.mrf.mxu3 }
 0x2c3   :  { %v767_v29 = vpop.f32.mrf.mxu0  ;;  %v780_v30 = vpop.f32.mrf.mxu1  ;;  %v7721_v19 = vld [vmem:[%s17543_s6 + $0xe0] sm:$0xf] }
 0x2c4   :  { %v781_v14 = vadd.f32 %v780_v30, %v767_v29  ;;  %v7849_v21 = vld [vmem:[%s17543_s6 + $0x1e0] sm:$0xf]  ;;  %v7722_v29 = vor.u32 %v10864_v58, %v7721_v19  ;;  %v10896_v30 = vld [vmem:[%s17543_s6 + $0x1ec] sm:$0xf0] }
 0x2c5   :  { %v10860_v19 = vld [vmem:[%s17543_s6 + $0xcc] sm:$0xf0] }
 0x2c6   :  { %5820 = vmatpush.bf16.msrb.mxu0 %v7722_v29  ;;  %v7961_v29 = vld [vmem:[%s17543_s6 + $0x2c0] sm:$0xf] }
 0x2ca   :  { %v793_v31 = vpop.f32.mrf.mxu2  ;;  %v806_v3 = vpop.f32.mrf.mxu3 }
 0x2cb   :  { %v794_v37 = vadd.f32 %v793_v31, %v781_v14  ;;  %v769_v38 = vpop.f32.mrf.mxu0  ;;  %v782_v28 = vpop.f32.mrf.mxu1  ;;  %v10928_v14 = vld [vmem:[%s17543_s6 + $0x2ec] sm:$0xf0]  ;;  %v7850_v31 = vor.u32 %v10896_v30, %v7849_v21 }
 0x2cc   :  { %v10892_v21 = vld [vmem:[%s17543_s6 + $0x1cc] sm:$0xf0] }
 0x2cd   :  { %v807_v35 = vadd.f32 %v806_v3, %v794_v37  ;;  %v7978_v3 = vor.u32 %v10928_v14, %v7977_v41  ;;  %v8106_v37 = vor.u32 %v10960_v4, %v8105_v20  ;;  %5833 = vmatpush.bf16.msrb.mxu1 %v7850_v31  ;;  %v10924_v30 = vld [vmem:[%s17543_s6 + $0x2cc] sm:$0xf0]  ;;  %v8089_v31 = vld [vmem:[%s17543_s6 + $0x3c0] sm:$0xf] }
 0x2ce   :  { %v7962_v14 = vor.u32 %v10924_v30, %v7961_v29  ;;  %v7689_v4 = vld [vmem:[%s17543_s6 + $0xa0] sm:$0xf] }
 0x2cf   :  { %v810_v49 = vmul.f32 0.044194173, %v807_v35  ;;  %5846 = vmatpush.bf16.msrb.mxu2 %v7978_v3  ;;  %5859 = vmatpush.bf16.msrb.mxu3 %v8106_v37  ;;  %v10956_v3 = vld [vmem:[%s17543_s6 + $0x3cc] sm:$0xf0]  ;;  %v7673_v30 = vld [vmem:[%s17543_s6 + $0x80] sm:$0xf] }
 0x2d0   :  { %v8090_v20 = vor.u32 %v10956_v3, %v8089_v31  ;;  %v10856_v37 = vld [vmem:[%s17543_s6 + $0xac] sm:$0xf0] }
 0x2d1   :  { %v811_v50 = vsel %vm474_vm3, %v810_v49, -inf  ;;  %v10884_v3 = vld [vmem:[%s17543_s6 + $0x18c] sm:$0xf0] }
 0x2d2   :  { %v795_v0 = vpop.f32.mrf.mxu2  ;;  %v808_v1 = vpop.f32.mrf.mxu3  ;;  %812 = vmax.xlane.f32.xlu1 %v811_v50 }
 0x2d3   :  { %v7705_v1 = vld [vmem:[%s17543_s6 + $0xc0] sm:$0xf]  ;;  %5847 = vmatpush.bf16.msrb.mxu2 %v7962_v14  ;;  %5860 = vmatpush.bf16.msrb.mxu3 %v8090_v20 }
 0x2d4   :  { %v7706_v58 = vor.u32 %v10860_v19, %v7705_v1  ;;  %v10920_v1 = vld [vmem:[%s17543_s6 + $0x2ac] sm:$0xf0]  ;;  %v7801_v14 = vld [vmem:[%s17543_s6 + $0x180] sm:$0xf] }
 0x2d5   :  { %v7929_v20 = vld [vmem:[%s17543_s6 + $0x280] sm:$0xf] }
 0x2d6   :  { %5821 = vmatpush.bf16.msrb.mxu0 %v7706_v58  ;;  %v8073_v58 = vld [vmem:[%s17543_s6 + $0x3a0] sm:$0xf] }
 0x345   :  { %v813_v38 = vpop.xlane.xlu1 %812 }
 0x346   :  { %v814_v28 = vsub.f32 %v810_v49, %v813_v38  ;;  %v7833_v49 = vld [vmem:[%s17543_s6 + $0x1c0] sm:$0xf] }
 0x347   :  { %v7834_v41 = vor.u32 %v10892_v21, %v7833_v49  ;;  %v7817_v38 = vld [vmem:[%s17543_s6 + $0x1a0] sm:$0xf]  ;;  %v10952_v21 = vld [vmem:[%s17543_s6 + $0x3ac] sm:$0xf0] }
 0x348   :  { %v815_v35 = vmul.f32 1.442695, %v814_v28  ;;  %v7690_v28 = vor.u32 %v10856_v37, %v7689_v4  ;;  %v8074_v29 = vor.u32 %v10952_v21, %v8073_v58  ;;  %v10916_v4 = vld [vmem:[%s17543_s6 + $0x28c] sm:$0xf0]  ;;  %v7802_v37 = vor.u32 %v10884_v3, %v7801_v14 }
 0x349   :  { %5834 = vmatpush.bf16.msrb.mxu1 %v7834_v41  ;;  %v10852_v41 = vld [vmem:[%s17543_s6 + $0x8c] sm:$0xf0] }
 0x34a   :  { %11649 = vpow2.f32 %v815_v35  ;;  %v10888_v35 = vld [vmem:[%s17543_s6 + $0x1ac] sm:$0xf0]  ;;  %5822 = vmatpush.bf16.msrb.mxu0 %v7690_v28  ;;  %5861 = vmatpush.bf16.msrb.mxu3 %v8074_v29  ;;  %v7674_v31 = vor.u32 %v10852_v41, %v7673_v30  ;;  %v8057_v28 = vld [vmem:[%s17543_s6 + $0x380] sm:$0xf] }
 0x34b   :  { %v7818_v19 = vor.u32 %v10888_v35, %v7817_v38  ;;  %v7930_v38 = vor.u32 %v10916_v4, %v7929_v20  ;;  %v10948_v35 = vld [vmem:[%s17543_s6 + $0x38c] sm:$0xf0]  ;;  %v7913_v29 = vld [vmem:[%s17543_s6 + $0x260] sm:$0xf] }
 0x34c   :  { %v10880_v21 = vld [vmem:[%s17543_s6 + $0x16c] sm:$0xf0]  ;;  %v7641_v20 = vld [vmem:[%s17543_s6 + $0x40] sm:$0xf] }
 0x34d   :  { %5835 = vmatpush.bf16.msrb.mxu1 %v7818_v19  ;;  %v10848_v19 = vld [vmem:[%s17543_s6 + $0x6c] sm:$0xf0] }
 0x34e   :  { %5823 = vmatpush.bf16.msrb.mxu0 %v7674_v31  ;;  %v10912_v30 = vld [vmem:[%s17543_s6 + $0x26c] sm:$0xf0]  ;;  %v8041_v31 = vld [vmem:[%s17543_s6 + $0x360] sm:$0xf] }
 0x34f   :  { %v7914_v14 = vor.u32 %v10912_v30, %v7913_v29  ;;  %v10944_v3 = vld [vmem:[%s17543_s6 + $0x36c] sm:$0xf0]  ;;  %v7625_v29 = vld [vmem:[%s17543_s6 + $0x20] sm:$0xf] }
 0x350   :  { %v12185_v50 = vpop.eup %11649  ;;  %v8042_v4 = vor.u32 %v10944_v3, %v8041_v31  ;;  %v10840_v30 = vld [vmem:[%s17543_s6 + $0x2c] sm:$0xf0]  ;;  %v7881_v3 = vld [vmem:[%s17543_s6 + $0x220] sm:$0xf] }
 0x351   :  { %v817_v0 = vsel %vm474_vm3, %v12185_v50, 0.0  ;;  %5836 = vmatpush.bf16.msrb.mxu1 %v7802_v37  ;;  %v10844_v37 = vld [vmem:[%s17543_s6 + $0x4c] sm:$0xf0] }
 0x352   :  { %818 = vadd.xlane.f32.xlu1 %v817_v0  ;;  %v7945_v0 = vld [vmem:[%s17543_s6 + $0x2a0] sm:$0xf] }
 0x353   :  { %v7946_v49 = vor.u32 %v10920_v1, %v7945_v0  ;;  %v8058_v0 = vor.u32 %v10948_v35, %v8057_v28  ;;  %v7657_v1 = vld [vmem:[%s17543_s6 + $0x60] sm:$0xf]  ;;  %v10876_v28 = vld [vmem:[%s17543_s6 + $0x14c] sm:$0xf0]  ;;  %v7642_v35 = vor.u32 %v10844_v37, %v7641_v20  ;;  %v11688_v20 = vmov 8.0  }
 0x354   :  { %v7658_v58 = vor.u32 %v10848_v19, %v7657_v1  ;;  %v10908_v1 = vld [vmem:[%s17543_s6 + $0x24c] sm:$0xf0]  ;;  %v8025_v19 = vld [vmem:[%s17543_s6 + $0x340] sm:$0xf]  ;;  %11651 = vrcp.f32 %v11688_v20 }
 0x355   :  { %5848 = vmatpush.bf16.msrb.mxu2 %v7946_v49  ;;  %v7785_v49 = vld [vmem:[%s17543_s6 + $0x160] sm:$0xf]  ;;  %5862 = vmatpush.bf16.msrb.mxu3 %v8058_v0  ;;  %v10904_v37 = vld [vmem:[%s17543_s6 + $0x22c] sm:$0xf0] }
 0x356   :  { %v7786_v41 = vor.u32 %v10880_v21, %v7785_v49  ;;  %5824 = vmatpush.bf16.msrb.mxu0 %v7658_v58  ;;  %v7897_v0 = vld [vmem:[%s17543_s6 + $0x240] sm:$0xf]  ;;  %v10940_v58 = vld [vmem:[%s17543_s6 + $0x34c] sm:$0xf0] }
 0x357   :  { %v7898_v21 = vor.u32 %v10908_v1, %v7897_v0  ;;  %v8026_v31 = vor.u32 %v10940_v58, %v8025_v19  ;;  %v7882_v1 = vor.u32 %v10904_v37, %v7881_v3  ;;  %v7609_v19 = vld [vmem:[%s17543_s6] sm:$0xf]  ;;  %v10836_v58 = vld [vmem:[%s17543_s6 + $0xc] sm:$0xf0] }
 0x358   :  { %5837 = vmatpush.bf16.msrb.mxu1 %v7786_v41  ;;  %v7753_v41 = vld [vmem:[%s17543_s6 + $0x120] sm:$0xf]  ;;  %v7610_v37 = vor.u32 %v10836_v58, %v7609_v19 }
 0x359   :  { %5849 = vmatpush.bf16.msrb.mxu2 %v7930_v38  ;;  %v7769_v38 = vld [vmem:[%s17543_s6 + $0x140] sm:$0xf]  ;;  %5863 = vmatpush.bf16.msrb.mxu3 %v8042_v4 }
 0x35a   :  { %v7770_v49 = vor.u32 %v10876_v28, %v7769_v38  ;;  %v8009_v4 = vld [vmem:[%s17543_s6 + $0x320] sm:$0xf]  ;;  %v10936_v38 = vld [vmem:[%s17543_s6 + $0x32c] sm:$0xf0]  ;;  %5825 = vmatpush.bf16.msrb.mxu0 %v7642_v35  ;;  %v7626_v28 = vor.u32 %v10840_v30, %v7625_v29  ;;  %v12366_v3 = vpop.eup %11651 }
 0x35b   :  { %v7737_v20 = vld [vmem:[%s17543_s6 + $0x100] sm:$0xf]  ;;  %v8010_v12 = vor.u32 %v10936_v38, %v8009_v4  ;;  %v10868_v35 = vld [vmem:[%s17543_s6 + $0x10c] sm:$0xf0]  ;;  %v914_v4 = vadd.f32 %v913_v57, %v11972_v44  ;;  %v597_v57 = vmul.f32 8.0, %v12366_v3  ;;  %vm601_vm4 = vweird.f32 %v12366_v3 }
 0x35c   :  { %5838 = vmatpush.bf16.msrb.mxu1 %v7770_v49  ;;  %v7865_v49 = vld [vmem:[%s17543_s6 + $0x200] sm:$0xf]  ;;  %v10932_v30 = vld [vmem:[%s17543_s6 + $0x30c] sm:$0xf0] }
 0x35d   :  { %5850 = vmatpush.bf16.msrb.mxu2 %v7914_v14  ;;  %v10872_v14 = vld [vmem:[%s17543_s6 + $0x12c] sm:$0xf0]  ;;  %5864 = vmatpush.bf16.msrb.mxu3 %v8026_v31  ;;  %v7993_v29 = vld [vmem:[%s17543_s6 + $0x300] sm:$0xf]  ;;  %v573_v31 = vadd.f32 %v572_v22, %v11940_v15  ;;  %v585_v15 = vadd.f32 %v584_v56, %v11970_v43  ;;  %v920_v22 = vadd.f32 %v919_v2, %v11980_v53  ;;  %v915_v56 = vrot.slane %v914_v4, 2 }
 0x35e   :  { %v7754_v0 = vor.u32 %v10872_v14, %v7753_v41  ;;  %v908_v41 = vadd.f32 %v907_v23, %v11942_v18  ;;  %v579_v14 = vadd.f32 %v578_v36, %v11954_v26  ;;  %5826 = vmatpush.bf16.msrb.mxu0 %v7626_v28  ;;  %v7738_v23 = vor.u32 %v10868_v35, %v7737_v20 }
 0x35f   :  { %v926_v36 = vadd.f32 %v925_v42, %v12006_v13  ;;  %v7994_v38 = vor.u32 %v10932_v30, %v7993_v29  ;;  %v574_v28 = vrot.slane %v573_v31, 2  ;;  %v921_v58 = vrot.slane %v920_v22, 2 }
 0x360   :  { %5839 = vmatpush.bf16.msrb.mxu1 %v7754_v0  ;;  %v580_v19 = vrot.slane %v579_v14, 2  ;;  %v909_v43 = vrot.slane %v908_v41, 2  ;;  %v586_v2 = vrot.slane %v585_v15, 2  ;;  %v598_v35 = vsub.f32 1.0, %v597_v57 }
 0x361   :  { %5851 = vmatpush.bf16.msrb.mxu2 %v7898_v21  ;;  %v10900_v21 = vld [vmem:[%s17543_s6 + $0x20c] sm:$0xf0]  ;;  %5865 = vmatpush.bf16.msrb.mxu3 %v8010_v12  ;;  %v927_v0 = vrot.slane %v926_v36, 2  ;;  %v12381_v20 = vadd.f32 %v574_v28, %v573_v31  ;;  %v591_v12 = vadd.f32 %v590_v8, %v11988_v60  ;;  %v922_v29 = vadd.f32 %v921_v58, %v920_v22  ;;  %v8233_v8 = vld [vmem:[%s17543_s6 + $0x4e0] sm:$0xf] }
 0x362   :  { %v7866_v26 = vor.u32 %v10900_v21, %v7865_v49  ;;  %5827 = vmatpush.bf16.msrb.mxu0 %v7610_v37  ;;  %v12383_v42 = vadd.f32 %v580_v19, %v579_v14  ;;  %v910_v49 = vadd.f32 %v909_v43, %v908_v41  ;;  %v916_v21 = vadd.f32 %v915_v56, %v914_v4  ;;  %v10992_v41 = vld [vmem:[%s17543_s6 + $0x4ec] sm:$0xf0] }
 0x363   :  { %v12388_v30 = vadd.f32 %v586_v2, %v585_v15  ;;  %v928_v37 = vadd.f32 %v927_v0, %v926_v36  ;;  %v923_v28 = vrot.slane %v922_v29, 1  ;;  %v592_v57 = vrot.slane %v591_v12, 2  ;;  %v8361_v15 = vld [vmem:[%s17543_s6 + $0x5e0] sm:$0xf]  ;;  %v11024_v22 = vld [vmem:[%s17543_s6 + $0x5ec] sm:$0xf0] }
 0x364   :  { %5840 = vmatpush.bf16.msrb.mxu1 %v7738_v23  ;;  %v576_v23 = vrot.slane %v12381_v20, 1  ;;  %v582_v31 = vrot.slane %v12383_v42, 1  ;;  %v917_v14 = vrot.slane %v916_v21, 1  ;;  %v8489_v36 = vld [vmem:[%s17543_s6 + $0x6e0] sm:$0xf]  ;;  %v8234_v7 = vor.u32 %v10992_v41, %v8233_v8 }
 0x365   :  { %5852 = vmatpush.bf16.msrb.mxu2 %v7882_v1  ;;  %5866 = vmatpush.bf16.msrb.mxu3 %v7994_v38  ;;  %v911_v38 = vrot.slane %v910_v49, 1  ;;  %v588_v19 = vrot.slane %v12388_v30, 1  ;;  %v929_v60 = vrot.slane %v928_v37, 1  ;;  %v11056_v58 = vld [vmem:[%s17543_s6 + $0x6ec] sm:$0xf0]  ;;  %v924_v9 = vadd.f32 %v923_v28, %v922_v29 }
 0x366   :  { %v8617_v2 = vld [vmem:[%s17543_s6 + $0x7e0] sm:$0xf]  ;;  %v11088_v0 = vld [vmem:[%s17543_s6 + $0x7ec] sm:$0xf0]  ;;  %v8362_v6 = vor.u32 %v11024_v22, %v8361_v15  ;;  %v8218_v15 = vor.u32 %v10988_v51, %v8217_v54 }
 0x367   :  { %v8473_v29 = vld [vmem:[%s17543_s6 + $0x6c0] sm:$0xf]  ;;  %v11084_v28 = vld [vmem:[%s17543_s6 + $0x7cc] sm:$0xf0] }
 0x369   :  { %5853 = vmatpush.bf16.msrb.mxu2 %v7866_v26  ;;  %v599_v26 = vmul.f32 %v12366_v3, %v598_v35  ;;  %v918_v35 = vadd.f32 %v917_v14, %v916_v21  ;;  %v8618_v21 = vor.u32 %v11088_v0, %v8617_v2  ;;  %v8601_v14 = vld [vmem:[%s17543_s6 + $0x7c0] sm:$0xf] }
 0x36a   :  { %v8602_v54 = vor.u32 %v11084_v28, %v8601_v14  ;;  %v11044_v28 = vld [vmem:[%s17543_s6 + $0x68c] sm:$0xf0] }
 0x36b   :  { %v600_v56 = vadd.f32 %v12366_v3, %v599_v26  ;;  %v930_v26 = vadd.f32 %v929_v60, %v928_v37 }
 0x36d   :  { %v12441_v37 = vsel %vm601_vm4, %v12366_v3, %v600_v56  ;;  %v577_v56 = vadd.f32 %v576_v23, %v12381_v20  ;;  %v11048_v20 = vld [vmem:[%s17543_s6 + $0x6ac] sm:$0xf0]  ;;  %v8585_v23 = vld [vmem:[%s17543_s6 + $0x7a0] sm:$0xf] }
 0x36e   :  { %v932_v3 = vmul.f32 %v918_v35, %v12441_v37  ;;  %v933_v60 = vmul.f32 %v924_v9, %v12441_v37  ;;  %v12458_v41 = vmul.f32 %v930_v26, %v12441_v37  ;;  %v8329_v9 = vld [vmem:[%s17543_s6 + $0x5a0] sm:$0xf] }
 0x370   :  { %v1102_v0 = vrot.slane %v932_v3, 7  ;;  %v11076_v3 = vld [vmem:[%s17543_s6 + $0x78c] sm:$0xf0] }
 0x3c5   :  { %v819_v1 = vpop.xlane.xlu1 %818 }
 0x3c6   :  { %11653 = vrcp.f32 %v819_v1  ;;  %v912_v1 = vadd.f32 %v911_v38, %v910_v49  ;;  %v8490_v49 = vor.u32 %v11056_v58, %v8489_v36  ;;  %v11052_v38 = vld [vmem:[%s17543_s6 + $0x6cc] sm:$0xf0]  ;;  %v8201_v36 = vld [vmem:[%s17543_s6 + $0x4a0] sm:$0xf] }
 0x3c7   :  { %v8474_v51 = vor.u32 %v11052_v38, %v8473_v29  ;;  %v11080_v58 = vld [vmem:[%s17543_s6 + $0x7ac] sm:$0xf0]  ;;  %v8441_v38 = vld [vmem:[%s17543_s6 + $0x680] sm:$0xf] }
 0x3c8   :  { %v8586_v29 = vor.u32 %v11080_v58, %v8585_v23  ;;  %v11040_v23 = vld [vmem:[%s17543_s6 + $0x66c] sm:$0xf0]  ;;  %v8553_v58 = vld [vmem:[%s17543_s6 + $0x760] sm:$0xf] }
 0x3cc   :  { %v11654_v4 = vpop.eup %11653 }
 0x3cd   :  { %v821_v43 = vmul.f32 %v11654_v4, %v12185_v50  ;;  %v593_v50 = vadd.f32 %v592_v57, %v591_v12  ;;  %v11020_v12 = vld [vmem:[%s17543_s6 + $0x5cc] sm:$0xf0]  ;;  %v931_v57 = vmul.f32 %v912_v1, %v12441_v37  ;;  %v589_v1 = vadd.f32 %v588_v19, %v12388_v30  ;;  %v8313_v30 = vld [vmem:[%s17543_s6 + $0x580] sm:$0xf] }
 0x3ce   :  { %v8346_v22 = vor.u32 %v11020_v12, %v8345_v48  ;;  %v11016_v48 = vld [vmem:[%s17543_s6 + $0x5ac] sm:$0xf0]  ;;  %v8185_v12 = vld [vmem:[%s17543_s6 + $0x480] sm:$0xf] }
 0x3cf   :  { %v822_v4 = vpack.c.bf16 %v821_v43, %v821_v43  ;;  %v594_v8 = vrot.slane %v593_v50, 1  ;;  %v10984_v43 = vld [vmem:[%s17543_s6 + $0x4ac] sm:$0xf0]  ;;  %v1101_v2 = vrot.slane %v931_v57, 7  ;;  %v8330_v26 = vor.u32 %v11016_v48, %v8329_v9  ;;  %v8569_v57 = vld [vmem:[%s17543_s6 + $0x780] sm:$0xf] }
 0x3d0   :  { %v11012_v19 = vld [vmem:[%s17543_s6 + $0x58c] sm:$0xf0]  ;;  %v8297_v48 = vld [vmem:[%s17543_s6 + $0x560] sm:$0xf] }
 0x3d1   :  { %7603 = vmatmul.msk.bf16.vlgmr.msra.gmra.mxu0 %vm474_vm3, %v822_v4  ;;  %7604 = vmatmul.msk.bf16.vlgmr.msra.gmra.mxu1 %vm474_vm3, %v822_v4  ;;  %v595_v35 = vadd.f32 %v594_v8, %v593_v50  ;;  %v605_v8 = vmul.f32 %v12441_v37, %v589_v1 }
 0x3d2   :  { %7605 = vmatmul.msk.bf16.vlgmr.msra.gmra.mxu2 %vm474_vm3, %v822_v4  ;;  %7606 = vmatmul.msk.bf16.vlgmr.msra.gmra.mxu3 %vm474_vm3, %v822_v4  ;;  %v1103_v4 = vrot.slane %v933_v60, 7 }
 0x3d3   :  { %5872 = vmatpush.bf16.msra.mxu0 %v8234_v7  ;;  %5885 = vmatpush.bf16.msra.mxu1 %v8362_v6  ;;  %v8457_v6 = vld [vmem:[%s17543_s6 + $0x6a0] sm:$0xf]  ;;  %v583_v7 = vadd.f32 %v582_v31, %v12383_v42  ;;  %v1104_v42 = vrot.slane %v12458_v41, 7  ;;  %v8202_v31 = vor.u32 %v10984_v43, %v8201_v36  ;;  %v606_v41 = vmul.f32 %v12441_v37, %v595_v35 }
 0x3d4   :  { %5898 = vmatpush.bf16.msra.mxu2 %v8490_v49  ;;  %5911 = vmatpush.bf16.msra.mxu3 %v8618_v21  ;;  %v10980_v49 = vld [vmem:[%s17543_s6 + $0x48c] sm:$0xf0]  ;;  %v603_v21 = vmul.f32 %v12441_v37, %v577_v56  ;;  %v8458_v50 = vor.u32 %v11048_v20, %v8457_v6  ;;  %v8314_v36 = vor.u32 %v11012_v19, %v8313_v30  ;;  %v8169_v43 = vld [vmem:[%s17543_s6 + $0x460] sm:$0xf] }
 0x3d5   :  { %v604_v14 = vmul.f32 %v12441_v37, %v583_v7  ;;  %v10976_v56 = vld [vmem:[%s17543_s6 + $0x46c] sm:$0xf0]  ;;  %v1152_v9 = vsel %vm1149_vm1, %v605_v8, %v1103_v4  ;;  %v8570_v6 = vor.u32 %v11076_v3, %v8569_v57  ;;  %v8425_v7 = vld [vmem:[%s17543_s6 + $0x660] sm:$0xf]  ;;  %v1153_v20 = vsel %vm1149_vm1, %v606_v41, %v1104_v42 }
 0x3d6   :  { %v1150_v60 = vsel %vm1149_vm1, %v603_v21, %v1101_v2  ;;  %v11072_v2 = vld [vmem:[%s17543_s6 + $0x76c] sm:$0xf0]  ;;  %v12548_v35 = vpack.c.bf16 %v1152_v9, %v1152_v9  ;;  %v8170_v4 = vor.u32 %v10976_v56, %v8169_v43  ;;  %v8426_v30 = vor.u32 %v11040_v23, %v8425_v7  ;;  %v8137_v3 = vld [vmem:[%s17543_s6 + $0x420] sm:$0xf] }
 0x3d7   :  { %5873 = vmatpush.bf16.msra.mxu0 %v8218_v15  ;;  %5886 = vmatpush.bf16.msra.mxu1 %v8346_v22  ;;  %v1151_v15 = vsel %vm1149_vm1, %v604_v14, %v1102_v0  ;;  %v8186_v22 = vor.u32 %v10980_v49, %v8185_v12  ;;  %v12544_v0 = vpack.c.bf16 %v1150_v60, %v1150_v60  ;;  %v8281_v49 = vld [vmem:[%s17543_s6 + $0x540] sm:$0xf]  ;;  %v11004_v21 = vld [vmem:[%s17543_s6 + $0x54c] sm:$0xf0] }
 0x3d8   :  { %5899 = vmatpush.bf16.msra.mxu2 %v8474_v51  ;;  %5912 = vmatpush.bf16.msra.mxu3 %v8602_v54  ;;  %v11008_v51 = vld [vmem:[%s17543_s6 + $0x56c] sm:$0xf0]  ;;  %v8442_v54 = vor.u32 %v11044_v28, %v8441_v38  ;;  %v12546_v1 = vpack.c.bf16 %v1151_v15, %v1151_v15  ;;  %17582 = vst [vmem:[#allocation11_spill] sm:$0xff] %v12548_v35  ;;  %v8537_v38 = vld [vmem:[%s17543_s6 + $0x740] sm:$0xf] }
 0x3d9   :  { %17580 = vst [vmem:[#allocation9_spill] sm:$0xff] %v12544_v0  ;;  %v8298_v42 = vor.u32 %v11008_v51, %v8297_v48  ;;  %v12556_v12 = vpack.c.bf16 %v1153_v20, %v1153_v20  ;;  %v8554_v19 = vor.u32 %v11072_v2, %v8553_v58  ;;  %v11068_v14 = vld [vmem:[%s17543_s6 + $0x74c] sm:$0xf0]  ;;  %v8282_v57 = vor.u32 %v11004_v21, %v8281_v49  ;;  %v8265_v8 = vld [vmem:[%s17543_s6 + $0x520] sm:$0xf] }
 0x3da   :  { %17581 = vst [vmem:[#allocation10_spill] sm:$0xff] %v12546_v1  ;;  %v10968_v60 = vld [vmem:[%s17543_s6 + $0x42c] sm:$0xf0]  ;;  %v8521_v56 = vld [vmem:[%s17543_s6 + $0x720] sm:$0xf] }
 0x3db   :  { %5874 = vmatpush.bf16.msra.mxu0 %v8202_v31  ;;  %5887 = vmatpush.bf16.msra.mxu1 %v8330_v26  ;;  %v8153_v31 = vld [vmem:[%s17543_s6 + $0x440] sm:$0xf]  ;;  %v10972_v26 = vld [vmem:[%s17543_s6 + $0x44c] sm:$0xf0]  ;;  %17583 = vst [vmem:[#allocation12_spill] sm:$0xff] %v12556_v12  ;;  %v8138_v51 = vor.u32 %v10968_v60, %v8137_v3 }
 0x3dc   :  { %5900 = vmatpush.bf16.msra.mxu2 %v8458_v50  ;;  %5913 = vmatpush.bf16.msra.mxu3 %v8586_v29  ;;  %v8409_v50 = vld [vmem:[%s17543_s6 + $0x640] sm:$0xf]  ;;  %v11036_v29 = vld [vmem:[%s17543_s6 + $0x64c] sm:$0xf0]  ;;  %v8154_v28 = vor.u32 %v10972_v26, %v8153_v31 }
 0x3dd   :  { %v11000_v41 = vld [vmem:[%s17543_s6 + $0x52c] sm:$0xf0]  ;;  %v8410_v15 = vor.u32 %v11036_v29, %v8409_v50  ;;  %v8121_v48 = vld [vmem:[%s17543_s6 + $0x400] sm:$0xf] }
 0x3de   :  { %v11032_v43 = vld [vmem:[%s17543_s6 + $0x62c] sm:$0xf0]  ;;  %v8249_v7 = vld [vmem:[%s17543_s6 + $0x500] sm:$0xf] }
 0x3df   :  { %5875 = vmatpush.bf16.msra.mxu0 %v8186_v22  ;;  %5888 = vmatpush.bf16.msra.mxu1 %v8314_v36  ;;  %v8538_v22 = vor.u32 %v11068_v14, %v8537_v38  ;;  %v8393_v36 = vld [vmem:[%s17543_s6 + $0x620] sm:$0xf]  ;;  %v11064_v9 = vld [vmem:[%s17543_s6 + $0x72c] sm:$0xf0] }
 0x3e0   :  { %5901 = vmatpush.bf16.msra.mxu2 %v8442_v54  ;;  %5914 = vmatpush.bf16.msra.mxu3 %v8570_v6  ;;  %v8266_v54 = vor.u32 %v11000_v41, %v8265_v8  ;;  %v10964_v6 = vld [vmem:[%s17543_s6 + $0x40c] sm:$0xf0]  ;;  %v8745_v23 = vld [vmem:[%s17543_s6 + $0x8e0] sm:$0xf] }
 0x3e1   :  { %5828 = vmatmul.bf16.vlgmr.msrb.gmra.mxu0 %v12544_v0  ;;  %5841 = vmatmul.bf16.vlgmr.msrb.gmra.mxu1 %v12546_v1  ;;  %v10996_v20 = vld [vmem:[%s17543_s6 + $0x50c] sm:$0xf0]  ;;  %v8873_v2 = vld [vmem:[%s17543_s6 + $0x9e0] sm:$0xf]  ;;  %v8122_v50 = vor.u32 %v10964_v6, %v8121_v48 }
 0x3e2   :  { %5854 = vmatmul.bf16.vlgmr.msrb.gmra.mxu2 %v12548_v35  ;;  %5867 = vmatmul.bf16.vlgmr.msrb.gmra.mxu3 %v12556_v12  ;;  %v11120_v58 = vld [vmem:[%s17543_s6 + $0x8ec] sm:$0xf0]  ;;  %v8377_v26 = vld [vmem:[%s17543_s6 + $0x600] sm:$0xf]  ;;  %v8250_v29 = vor.u32 %v10996_v20, %v8249_v7 }
 0x3e3   :  { %5876 = vmatpush.bf16.msra.mxu0 %v8170_v4  ;;  %5889 = vmatpush.bf16.msra.mxu1 %v8298_v42  ;;  %v8394_v4 = vor.u32 %v11032_v43, %v8393_v36  ;;  %v8522_v42 = vor.u32 %v11064_v9, %v8521_v56  ;;  %v11152_v31 = vld [vmem:[%s17543_s6 + $0x9ec] sm:$0xf0]  ;;  %v8505_v21 = vld [vmem:[%s17543_s6 + $0x700] sm:$0xf] }
 0x3e4   :  { %5902 = vmatpush.bf16.msra.mxu2 %v8426_v30  ;;  %5915 = vmatpush.bf16.msra.mxu3 %v8554_v19  ;;  %v11028_v49 = vld [vmem:[%s17543_s6 + $0x60c] sm:$0xf0]  ;;  %v9001_v19 = vld [vmem:[%s17543_s6 + $0xae0] sm:$0xf]  ;;  %v8874_v3 = vor.u32 %v11152_v31, %v8873_v2 }
 0x3e5   :  { %v11060_v30 = vld [vmem:[%s17543_s6 + $0x70c] sm:$0xf0]  ;;  %v9129_v14 = vld [vmem:[%s17543_s6 + $0xbe0] sm:$0xf] }
 0x3e6   :  { %v11184_v38 = vld [vmem:[%s17543_s6 + $0xaec] sm:$0xf0]  ;;  %v8729_v60 = vld [vmem:[%s17543_s6 + $0x8c0] sm:$0xf]  ;;  %v8506_v36 = vor.u32 %v11060_v30, %v8505_v21 }
 0x3e7   :  { %5877 = vmatpush.bf16.msra.mxu0 %v8154_v28  ;;  %5890 = vmatpush.bf16.msra.mxu1 %v8282_v57  ;;  %v11216_v28 = vld [vmem:[%s17543_s6 + $0xbec] sm:$0xf0]  ;;  %v8746_v57 = vor.u32 %v11120_v58, %v8745_v23  ;;  %v8857_v41 = vld [vmem:[%s17543_s6 + $0x9c0] sm:$0xf]  ;;  %v9002_v43 = vor.u32 %v11184_v38, %v9001_v19 }
 0x3e8   :  { %5903 = vmatpush.bf16.msra.mxu2 %v8410_v15  ;;  %5916 = vmatpush.bf16.msra.mxu3 %v8538_v22  ;;  %v11116_v8 = vld [vmem:[%s17543_s6 + $0x8cc] sm:$0xf0]  ;;  %v8378_v22 = vor.u32 %v11028_v49, %v8377_v26  ;;  %v9130_v56 = vor.u32 %v11216_v28, %v9129_v14  ;;  %v8841_v6 = vld [vmem:[%s17543_s6 + $0x9a0] sm:$0xf] }
 0x3e9   :  { %v11148_v15 = vld [vmem:[%s17543_s6 + $0x9cc] sm:$0xf0]  ;;  %v8730_v9 = vor.u32 %v11116_v8, %v8729_v60  ;;  %v8985_v58 = vld [vmem:[%s17543_s6 + $0xac0] sm:$0xf]  ;;  %v608_v8 = vadd.f32 %v607_v25, %v12078_v24 }
 0x3ea   :  { %v8858_v48 = vor.u32 %v11148_v15, %v8857_v41  ;;  %v11144_v7 = vld [vmem:[%s17543_s6 + $0x9ac] sm:$0xf0]  ;;  %v8697_v49 = vld [vmem:[%s17543_s6 + $0x880] sm:$0xf] }
 0x3eb   :  { %5878 = vmatpush.bf16.msra.mxu0 %v8138_v51  ;;  %5891 = vmatpush.bf16.msra.mxu1 %v8266_v54  ;;  %v8713_v51 = vld [vmem:[%s17543_s6 + $0x8a0] sm:$0xf]  ;;  %v11112_v54 = vld [vmem:[%s17543_s6 + $0x8ac] sm:$0xf0]  ;;  %v8842_v23 = vor.u32 %v11144_v7, %v8841_v6 }
 0x3ec   :  { %5904 = vmatpush.bf16.msra.mxu2 %v8394_v4  ;;  %5917 = vmatpush.bf16.msra.mxu3 %v8522_v42  ;;  %v8714_v20 = vor.u32 %v11112_v54, %v8713_v51  ;;  %v11180_v2 = vld [vmem:[%s17543_s6 + $0xacc] sm:$0xf0]  ;;  %v9113_v4 = vld [vmem:[%s17543_s6 + $0xbc0] sm:$0xf]  ;;  %v609_v54 = vrot.slane %v608_v8, 2 }
 0x3ed   :  { %v8986_v42 = vor.u32 %v11180_v2, %v8985_v58  ;;  %v11212_v31 = vld [vmem:[%s17543_s6 + $0xbcc] sm:$0xf0]  ;;  %v8825_v30 = vld [vmem:[%s17543_s6 + $0x980] sm:$0xf] }
 0x3ee   :  { %v9114_v26 = vor.u32 %v11212_v31, %v9113_v4  ;;  %v11108_v21 = vld [vmem:[%s17543_s6 + $0x88c] sm:$0xf0]  ;;  %v8969_v38 = vld [vmem:[%s17543_s6 + $0xaa0] sm:$0xf] }
 0x3ef   :  { %5879 = vmatpush.bf16.msra.mxu0 %v8122_v50  ;;  %5892 = vmatpush.bf16.msra.mxu1 %v8250_v29  ;;  %v8698_v19 = vor.u32 %v11108_v21, %v8697_v49  ;;  %v11140_v50 = vld [vmem:[%s17543_s6 + $0x98c] sm:$0xf0]  ;;  %v9097_v28 = vld [vmem:[%s17543_s6 + $0xba0] sm:$0xf] }
 0x3f0   :  { %5905 = vmatpush.bf16.msra.mxu2 %v8378_v22  ;;  %5918 = vmatpush.bf16.msra.mxu3 %v8506_v36  ;;  %v8826_v29 = vor.u32 %v11140_v50, %v8825_v30  ;;  %v11176_v14 = vld [vmem:[%s17543_s6 + $0xaac] sm:$0xf0]  ;;  %v8681_v41 = vld [vmem:[%s17543_s6 + $0x860] sm:$0xf]  ;;  %v17584_v36 = vrot.slane %v12080_v40, 4 }
 0x3f1   :  { %v11104_v15 = vld [vmem:[%s17543_s6 + $0x86c] sm:$0xf0]  ;;  %v8809_v22 = vld [vmem:[%s17543_s6 + $0x960] sm:$0xf] }
 0x3f2   :  { %v11136_v24 = vld [vmem:[%s17543_s6 + $0x96c] sm:$0xf0]  ;;  %v9081_v51 = vld [vmem:[%s17543_s6 + $0xb80] sm:$0xf] }
 0x3f3   :  { %5924 = vmatpush.bf16.msrb.mxu0 %v8746_v57  ;;  %5937 = vmatpush.bf16.msrb.mxu1 %v8874_v3  ;;  %v8970_v57 = vor.u32 %v11176_v14, %v8969_v38  ;;  %v11208_v3 = vld [vmem:[%s17543_s6 + $0xbac] sm:$0xf0]  ;;  %v8810_v25 = vor.u32 %v11136_v24, %v8809_v22  ;;  %v8793_v2 = vld [vmem:[%s17543_s6 + $0x940] sm:$0xf]  ;;  %v17587_v14 = vrot.slane %v12118_v62, 4  ;;  %v695_v22 = vrot.slane %v12106_v55, 2 }
 0x3f4   :  { %5950 = vmatpush.bf16.msrb.mxu2 %v9002_v43  ;;  %5963 = vmatpush.bf16.msrb.mxu3 %v9130_v56  ;;  %v9098_v60 = vor.u32 %v11208_v3, %v9097_v28  ;;  %v614_v43 = vadd.f32 %v17584_v36, %v12080_v40  ;;  %v8682_v56 = vor.u32 %v11104_v15, %v8681_v41  ;;  %v689_v40 = vrot.slane %v12100_v52, 2  ;;  %v11204_v7 = vld [vmem:[%s17543_s6 + $0xb8c] sm:$0xf0]  ;;  %v8937_v49 = vld [vmem:[%s17543_s6 + $0xa60] sm:$0xf] }
 0x3f5   :  { %v11100_v58 = vld [vmem:[%s17543_s6 + $0x84c] sm:$0xf0]  ;;  %v9065_v30 = vld [vmem:[%s17543_s6 + $0xb60] sm:$0xf]  ;;  %v620_v28 = vadd.f32 %v17587_v14, %v12118_v62  ;;  %v713_v62 = vrot.slane %v12111_v59, 2 }
 0x3f6   :  { %v615_v4 = vrot.slane %v614_v43, 2  ;;  %v11132_v31 = vld [vmem:[%s17543_s6 + $0x94c] sm:$0xf0]  ;;  %v12777_v41 = vmax.f32 %v12100_v52, %v689_v40 }
 0x3f7   :  { %5925 = vmatpush.bf16.msrb.mxu0 %v8730_v9  ;;  %5938 = vmatpush.bf16.msrb.mxu1 %v8858_v48  ;;  %v8953_v9 = vld [vmem:[%s17543_s6 + $0xa80] sm:$0xf]  ;;  %v11172_v48 = vld [vmem:[%s17543_s6 + $0xa8c] sm:$0xf0] }
 0x3f8   :  { %5951 = vmatpush.bf16.msrb.mxu2 %v8986_v42  ;;  %5964 = vmatpush.bf16.msrb.mxu3 %v9114_v26  ;;  %v8954_v6 = vor.u32 %v11172_v48, %v8953_v9  ;;  %v8794_v26 = vor.u32 %v11132_v31, %v8793_v2  ;;  %v11168_v21 = vld [vmem:[%s17543_s6 + $0xa6c] sm:$0xf0]  ;;  %v616_v36 = vadd.f32 %v615_v4, %v614_v43  ;;  %v691_v9 = vrot.slane %v12777_v41, 1  ;;  %v8649_v43 = vld [vmem:[%s17543_s6 + $0x820] sm:$0xf] }
 0x3f9   :  { %v11200_v3 = vld [vmem:[%s17543_s6 + $0xb6c] sm:$0xf0]  ;;  %v701_v2 = vrot.slane %v12136_v10, 2  ;;  %v17592_v4 = vrot.slane %v12129_v39, 4 }
 0x3fa   :  { %v11096_v40 = vld [vmem:[%s17543_s6 + $0x82c] sm:$0xf0] }
 0x3fb   :  { %5926 = vmatpush.bf16.msrb.mxu0 %v8714_v20  ;;  %5939 = vmatpush.bf16.msrb.mxu1 %v8842_v23  ;;  %v9082_v20 = vor.u32 %v11204_v7, %v9081_v51  ;;  %v8665_v23 = vld [vmem:[%s17543_s6 + $0x840] sm:$0xf]  ;;  %v12802_v7 = vmax.f32 %v12111_v59, %v713_v62 }
 0x3fc   :  { %5952 = vmatpush.bf16.msrb.mxu2 %v8970_v57  ;;  %5965 = vmatpush.bf16.msrb.mxu3 %v9098_v60  ;;  %v8666_v42 = vor.u32 %v11100_v58, %v8665_v23  ;;  %v8938_v57 = vor.u32 %v11168_v21, %v8937_v49  ;;  %v610_v60 = vadd.f32 %v609_v54, %v608_v8  ;;  %v11128_v23 = vld [vmem:[%s17543_s6 + $0x92c] sm:$0xf0]  ;;  %v8921_v59 = vld [vmem:[%s17543_s6 + $0xa40] sm:$0xf]  ;;  %v707_v49 = vrot.slane %v12142_v16, 2 }
 0x3fd   :  { %v12790_v54 = vmax.f32 %v12106_v55, %v695_v22  ;;  %17590 = vst [vmem:[#allocation13_spill] sm:$0xff] %v12802_v7  ;;  %v8650_v55 = vor.u32 %v11096_v40, %v8649_v43  ;;  %v11124_v22 = vld [vmem:[%s17543_s6 + $0x90c] sm:$0xf0]  ;;  %v12850_v43 = vmax.f32 %v12136_v10, %v701_v2 }
 0x3fe   :  { %v611_v52 = vrot.slane %v610_v60, 1  ;;  %v12853_v40 = vmax.f32 %v12142_v16, %v707_v49  ;;  %v731_v49 = vrot.slane %v12152_v27, 2 }
 0x3ff   :  { %5927 = vmatpush.bf16.msrb.mxu0 %v8698_v19  ;;  %5940 = vmatpush.bf16.msrb.mxu1 %v8826_v29  ;;  %v17585_v19 = vrot.slane %v12084_v46, 4  ;;  %v17586_v29 = vrot.slane %v12089_v47, 4 }
 0x400   :  { %5953 = vmatpush.bf16.msrb.mxu2 %v8954_v6  ;;  %5966 = vmatpush.bf16.msrb.mxu3 %v9082_v20  ;;  %v8777_v6 = vld [vmem:[%s17543_s6 + $0x920] sm:$0xf]  ;;  %17593 = vst [vmem:[#allocation15_spill] sm:$0xff] %v12853_v40 }
 0x401   :  { %v636_v50 = vadd.f32 %v17585_v19, %v12084_v46  ;;  %v642_v38 = vadd.f32 %v17586_v29, %v12089_v47  ;;  %v17588_v46 = vrot.slane %v12120_v63, 4  ;;  %v9066_v47 = vor.u32 %v11200_v3, %v9065_v30  ;;  %v9049_v30 = vld [vmem:[%s17543_s6 + $0xb40] sm:$0xf]  ;;  %v11092_v3 = vld [vmem:[%s17543_s6 + $0x80c] sm:$0xf0] }
 0x402   :  { %v8778_v31 = vor.u32 %v11128_v23, %v8777_v6  ;;  %v11160_v6 = vld [vmem:[%s17543_s6 + $0xa2c] sm:$0xf0] }
 0x403   :  { %5928 = vmatpush.bf16.msrb.mxu0 %v8682_v56  ;;  %5941 = vmatpush.bf16.msrb.mxu1 %v8810_v25  ;;  %v626_v15 = vadd.f32 %v17588_v46, %v12120_v63  ;;  %v719_v56 = vrot.slane %v12116_v61, 2  ;;  %v637_v24 = vrot.slane %v636_v50, 2  ;;  %v643_v8 = vrot.slane %v642_v38, 2  ;;  %v8761_v46 = vld [vmem:[%s17543_s6 + $0x900] sm:$0xf] }
 0x404   :  { %5954 = vmatpush.bf16.msrb.mxu2 %v8938_v57  ;;  %5967 = vmatpush.bf16.msrb.mxu3 %v9066_v47  ;;  %v621_v25 = vrot.slane %v620_v28, 2  ;;  %v17589_v63 = vrot.slane %v12124_v5, 4  ;;  %v8633_v57 = vld [vmem:[%s17543_s6 + $0x800] sm:$0xf] }
 0x405   :  { %v627_v51 = vrot.slane %v626_v15, 2  ;;  %v12805_v20 = vmax.f32 %v12116_v61, %v719_v56  ;;  %v11164_v61 = vld [vmem:[%s17543_s6 + $0xa4c] sm:$0xf0]  ;;  %v638_v19 = vadd.f32 %v637_v24, %v636_v50  ;;  %v644_v29 = vadd.f32 %v643_v8, %v642_v38 }
 0x406   :  { %v648_v48 = vadd.f32 %v17589_v63, %v12124_v5  ;;  %v617_v5 = vrot.slane %v616_v36, 1  ;;  %v12810_v58 = vadd.f32 %v621_v25, %v620_v28  ;;  %v8922_v21 = vor.u32 %v11164_v61, %v8921_v59  ;;  %v8905_v25 = vld [vmem:[%s17543_s6 + $0xa20] sm:$0xf]  ;;  %v12925_v38 = vld [vmem:[%s17543_s6 + $0xdec] sm:$0xf0] }
 0x407   :  { %5929 = vmatpush.bf16.msrb.mxu0 %v8666_v42  ;;  %5942 = vmatpush.bf16.msrb.mxu1 %v8794_v26  ;;  %17591 = vst [vmem:[#allocation14_spill] sm:$0xff] %v12805_v20  ;;  %v654_v42 = vadd.f32 %v17592_v4, %v12129_v39  ;;  %v11196_v39 = vld [vmem:[%s17543_s6 + $0xb4c] sm:$0xf0]  ;;  %v628_v14 = vadd.f32 %v627_v51, %v626_v15  ;;  %v697_v50 = vrot.slane %v12790_v54, 1  ;;  %v725_v56 = vrot.slane %v12147_v17, 2 }
 0x408   :  { %v649_v26 = vrot.slane %v648_v48, 2  ;;  %v9050_v28 = vor.u32 %v11196_v39, %v9049_v30  ;;  %5955 = vmatpush.bf16.msrb.mxu2 %v8922_v21  ;;  %v8634_v15 = vor.u32 %v11092_v3, %v8633_v57  ;;  %v623_v62 = vrot.slane %v12810_v58, 1 }
 0x409   :  { %v655_v24 = vrot.slane %v654_v42, 2  ;;  %v8762_v8 = vor.u32 %v11124_v22, %v8761_v46  ;;  %v612_v63 = vadd.f32 %v611_v52, %v610_v60  ;;  %v618_v51 = vadd.f32 %v617_v5, %v616_v36  ;;  %v11192_v60 = vld [vmem:[%s17543_s6 + $0xb2c] sm:$0xf0] }
 0x40a   :  { %5968 = vmatpush.bf16.msrb.mxu3 %v9050_v28  ;;  %v650_v36 = vadd.f32 %v649_v26, %v648_v48  ;;  %v629_v52 = vrot.slane %v628_v14, 1  ;;  %v8906_v16 = vor.u32 %v11160_v6, %v8905_v25  ;;  %v639_v48 = vrot.slane %v638_v19, 1 }
 0x40b   :  { %5930 = vmatpush.bf16.msrb.mxu0 %v8650_v55  ;;  %5943 = vmatpush.bf16.msrb.mxu1 %v8778_v31  ;;  %v9033_v55 = vld [vmem:[%s17543_s6 + $0xb20] sm:$0xf]  ;;  %v656_v61 = vadd.f32 %v655_v24, %v654_v42  ;;  %v645_v26 = vrot.slane %v644_v29, 1 }
 0x40c   :  { %v9034_v23 = vor.u32 %v11192_v60, %v9033_v55  ;;  %5956 = vmatpush.bf16.msrb.mxu2 %v8906_v16  ;;  %v630_v22 = vadd.f32 %v629_v52, %v628_v14  ;;  %v640_v6 = vadd.f32 %v639_v48, %v638_v19  ;;  %v12899_v14 = vmul.f32 %v618_v51, %v12441_v37  ;;  %v12904_v19 = vld [vmem:[%s17543_s6 + $0xce0] sm:$0xf] }
 0x40d   :  { %v646_v55 = vadd.f32 %v645_v26, %v644_v29  ;;  %v657_v60 = vrot.slane %v656_v61, 1  ;;  %v12909_v29 = vld [vmem:[%s17543_s6 + $0xcec] sm:$0xf0]  ;;  %v12915_v52 = vmax.f32 %v12152_v27, %v731_v49  ;;  %v12920_v26 = vld [vmem:[%s17543_s6 + $0xde0] sm:$0xf]  ;;  %v12938_v49 = vmax.f32 %v12777_v41, %v691_v9 }
 0x40e   :  { %5969 = vmatpush.bf16.msrb.mxu3 %v9034_v23  ;;  %v12931_v27 = vmul.f32 %v630_v22, %v12441_v37 }
 0x40f   :  { %5931 = vmatpush.bf16.msrb.mxu0 %v8634_v15  ;;  %5944 = vmatpush.bf16.msrb.mxu1 %v8762_v8  ;;  %v624_v15 = vadd.f32 %v623_v62, %v12810_v58  ;;  %v651_v8 = vrot.slane %v650_v36, 1  ;;  %v12896_v58 = vmul.f32 %v612_v63, %v12441_v37  ;;  %v12912_v62 = vmax.f32 %v12147_v17, %v725_v56 }
 0x410   :  { %17595 = vst [vmem:[#allocation17_spill] sm:$0xff] %v12915_v52  ;;  %v12946_v47 = vadd.f32 %v657_v60, %v656_v61 }
 0x411   :  { %17594 = vst [vmem:[#allocation16_spill] sm:$0xff] %v12912_v62  ;;  %v12928_v17 = vmul.f32 %v624_v15, %v12441_v37  ;;  %v12933_v56 = vadd.f32 %v651_v8, %v650_v36  ;;  %v12951_v15 = vmax.f32 %v12790_v54, %v697_v50 }
 0x413   :  { %17596 = vst [vmem:[#allocation18_spill] sm:$0xff] %v12951_v15 }
 0x44e   :  { %v851_v10 = vpop.f32.mrf.mxu0  ;;  %v12864_v5 = vpop.f32.mrf.mxu1 }
 0x44f   :  { %v894_v2 = vsub.f32 %v11942_v18, %v851_v10  ;;  %v935_v4 = vrot.slane %v851_v10, 4  ;;  %v12869_v31 = vsub.f32 %v11972_v44, %v12864_v5  ;;  %v941_v59 = vrot.slane %v12864_v5, 4 }
 0x450   :  { %v898_v61 = vmul.f32 %v851_v10, %v11942_v18  ;;  %v12976_v18 = vld [vmem:[%s17543_s6 + $0xccc] sm:$0xf0] }
 0x451   :  { %v963_v39 = vrot.slane %v894_v2, 4  ;;  %v12875_v28 = vmax.f32 %v851_v10, %v935_v4  ;;  %v936_v57 = vadd.f32 %v935_v4, %v851_v10  ;;  %v942_v3 = vadd.f32 %v941_v59, %v12864_v5  ;;  %v12893_v4 = vld [vmem:[%s17545_s8] sm:$0xf] }
 0x452   :  { %v969_v46 = vrot.slane %v12869_v31, 4  ;;  %v12880_v42 = vmax.f32 %v12864_v5, %v941_v59  ;;  %v1972_v22 = vperm.slane %v12893_v4, 0  ;;  %v899_v4 = vmul.f32 %v12864_v5, %v11972_v44 }
 0x453   :  { %v12883_v24 = vmax.f32 %v894_v2, %v963_v39  ;;  %v937_v63 = vrot.slane %v936_v57, 2  ;;  %v943_v59 = vrot.slane %v942_v3, 2  ;;  %v964_v30 = vadd.f32 %v963_v39, %v894_v2 }
 0x454   :  { %v12886_v25 = vmax.f32 %v12869_v31, %v969_v46  ;;  %v1017_v21 = vrot.slane %v12875_v28, 2  ;;  %v970_v10 = vadd.f32 %v969_v46, %v12869_v31  ;;  %v1023_v0 = vrot.slane %v12880_v42, 2 }
 0x455   :  { %v877_v16 = vpop.f32.mrf.mxu2  ;;  %v12888_v23 = vpop.f32.mrf.mxu3  ;;  %v938_v8 = vadd.f32 %v937_v63, %v936_v57  ;;  %v12971_v57 = vld [vmem:[%s17543_s6 + $0xcc0] sm:$0xf]  ;;  %v965_v32 = vrot.slane %v964_v30, 2 }
 0x456   :  { %v853_v51 = vpop.f32.mrf.mxu0  ;;  %v866_v48 = vpop.f32.mrf.mxu1  ;;  %v896_v36 = vsub.f32 %v11980_v53, %v877_v16  ;;  %v897_v54 = vsub.f32 %v12006_v13, %v12888_v23  ;;  %v953_v50 = vrot.slane %v12888_v23, 4  ;;  %v900_v31 = vmul.f32 %v877_v16, %v11980_v53 }
 0x457   :  { %v12941_v51 = vmul.f32 %v640_v6, %v12441_v37  ;;  %v12944_v48 = vmul.f32 %v646_v55, %v12441_v37  ;;  %v944_v6 = vadd.f32 %v943_v59, %v942_v3  ;;  %v947_v55 = vrot.slane %v877_v16, 4 }
 0x458   :  { %v975_v60 = vrot.slane %v896_v36, 4  ;;  %v954_v44 = vadd.f32 %v953_v50, %v12888_v23  ;;  %v981_v5 = vrot.slane %v897_v54, 4  ;;  %v939_v63 = vrot.slane %v938_v8, 1 }
 0x459   :  { %v948_v41 = vadd.f32 %v947_v55, %v877_v16  ;;  %v12966_v12 = vmax.f32 %v877_v16, %v947_v55  ;;  %v945_v59 = vrot.slane %v944_v6, 1  ;;  %v12983_v9 = vmax.f32 %v12888_v23, %v953_v50 }
 0x45a   :  { %v12979_v3 = vmax.f32 %v896_v36, %v975_v60  ;;  %v955_v45 = vrot.slane %v954_v44, 2  ;;  %v9242_v46 = vor.u32 %v12976_v18, %v12971_v57  ;;  %v12992_v34 = vmax.f32 %v12875_v28, %v1017_v21  ;;  %v8889_v21 = vld [vmem:[%s17543_s6 + $0xa00] sm:$0xf] }
 0x45b   :  { %v949_v55 = vrot.slane %v948_v41, 2  ;;  %v1041_v50 = vrot.slane %v12883_v24, 2  ;;  %v971_v20 = vrot.slane %v970_v10, 2  ;;  %v940_v52 = vadd.f32 %v939_v63, %v938_v8 }
 0x45c   :  { %v956_v7 = vadd.f32 %v955_v45, %v954_v44  ;;  %v946_v40 = vadd.f32 %v945_v59, %v944_v6  ;;  %v976_v62 = vadd.f32 %v975_v60, %v896_v36  ;;  %v12996_v53 = vmax.f32 %v12880_v42, %v1023_v0  ;;  %v11156_v45 = vld [vmem:[%s17543_s6 + $0xa0c] sm:$0xf0]  ;;  %v9017_v42 = vld [vmem:[%s17543_s6 + $0xb00] sm:$0xf] }
 0x45d   :  { %v879_v2 = vpop.f32.mrf.mxu2  ;;  %v892_v39 = vpop.f32.mrf.mxu3  ;;  %v950_v11 = vadd.f32 %v949_v55, %v948_v41  ;;  %v901_v41 = vmul.f32 %v12888_v23, %v12006_v13  ;;  %v13006_v28 = vadd.f32 %v965_v32, %v964_v30  ;;  %v1047_v36 = vrot.slane %v12886_v25, 2  ;;  %v11188_v13 = vld [vmem:[%s17543_s6 + $0xb0c] sm:$0xf0] }
 0x45e   :  { %v5829_v35 = vpop.f32.mrf.mxu0  ;;  %v5842_v1 = vpop.f32.mrf.mxu1  ;;  %v12989_v2 = vmax.f32 %v897_v54, %v981_v5  ;;  %v902_v39 = vadd.f32 %v899_v4, %v898_v61  ;;  %v957_v16 = vrot.slane %v956_v7, 1  ;;  %v982_v0 = vadd.f32 %v981_v5, %v897_v54 }
 0x45f   :  { %v951_v15 = vrot.slane %v950_v11, 1  ;;  %v1019_v23 = vrot.slane %v12992_v34, 1  ;;  %v5830_v60 = vadd.f32 %v5829_v35, %v1972_v22  ;;  %v13017_v30 = vmax.f32 %v12883_v24, %v1041_v50 }
 0x460   :  { %v903_v55 = vadd.f32 %v902_v39, %v900_v31  ;;  %v958_v6 = vadd.f32 %v957_v16, %v956_v7  ;;  %v960_v54 = vmul.f32 %v946_v40, %v12441_v37  ;;  %v8890_v59 = vor.u32 %v11156_v45, %v8889_v21  ;;  %v9641_v45 = vld [vmem:[%s17543_s6 + $0xfe0] sm:$0xf] }
 0x461   :  { %v952_v8 = vadd.f32 %v951_v15, %v950_v11  ;;  %v977_v11 = vrot.slane %v976_v62, 2  ;;  %v959_v15 = vmul.f32 %v940_v52, %v12441_v37  ;;  %v5843_v63 = vadd.f32 %v5842_v1, %v5830_v60  ;;  %v9513_v1 = vld [vmem:[%s17543_s6 + $0xee0] sm:$0xf]  ;;  %v11312_v52 = vld [vmem:[%s17543_s6 + $0xeec] sm:$0xf0] }
 0x462   :  { %v904_v61 = vadd.f32 %v903_v55, %v901_v41  ;;  %v9018_v31 = vor.u32 %v11188_v13, %v9017_v42  ;;  %v983_v39 = vrot.slane %v982_v0, 2  ;;  %v1106_v22 = vrot.slane %v960_v54, 7  ;;  %5957 = vmatpush.bf16.msrb.mxu2 %v8890_v59  ;;  %v11308_v59 = vld [vmem:[%s17543_s6 + $0xecc] sm:$0xf0] }
 0x463   :  { %v961_v7 = vmul.f32 %v952_v8, %v12441_v37  ;;  %v1105_v35 = vrot.slane %v959_v15, 7  ;;  %v962_v16 = vmul.f32 %v958_v6, %v12441_v37  ;;  %v972_v24 = vadd.f32 %v971_v20, %v970_v10  ;;  %v11344_v8 = vld [vmem:[%s17543_s6 + $0xfec] sm:$0xf0] }
 0x464   :  { %905 = vadd.xlane.f32.xlu2 %v904_v61  ;;  %v1029_v50 = vrot.slane %v12966_v12, 2  ;;  %5970 = vmatpush.bf16.msrb.mxu3 %v9018_v31  ;;  %v978_v55 = vadd.f32 %v977_v11, %v976_v62  ;;  %v1155_v20 = vsel %vm1149_vm1, %v12899_v14, %v1106_v22  ;;  %v11276_v14 = vld [vmem:[%s17543_s6 + $0xdcc] sm:$0xf0]  ;;  %v984_v61 = vadd.f32 %v983_v39, %v982_v0  ;;  %v13076_v0 = vld [vmem:[%s17543_s6 + $0xda0] sm:$0xf] }
 0x465   :  { %v5855_v4 = vpop.f32.mrf.mxu2  ;;  %v5868_v32 = vpop.f32.mrf.mxu3  ;;  %v1107_v40 = vrot.slane %v961_v7, 7  ;;  %v1154_v21 = vsel %vm1149_vm1, %v12896_v58, %v1105_v35  ;;  %v1108_v10 = vrot.slane %v962_v16, 7  ;;  %v13042_v13 = vpack.c.bf16 %v1155_v20, %v1155_v20  ;;  %v9369_v58 = vld [vmem:[%s17543_s6 + $0xdc0] sm:$0xf]  ;;  %v13066_v15 = vld [vmem:[%s17543_s6 + $0xcac] sm:$0xf0] }
 0x466   :  { %v5831_v44 = vpop.f32.mrf.mxu0  ;;  %v5844_v5 = vpop.f32.mrf.mxu1  ;;  %v5856_v41 = vadd.f32 %v5855_v4, %v5843_v63  ;;  %v13040_v42 = vpack.c.bf16 %v1154_v21, %v1154_v21  ;;  %v9514_v11 = vor.u32 %v11312_v52, %v9513_v1  ;;  %v1025_v54 = vrot.slane %v12996_v53, 1  ;;  %v9497_v63 = vld [vmem:[%s17543_s6 + $0xec0] sm:$0xf] }
 0x467   :  { %v1156_v6 = vsel %vm1149_vm1, %v12928_v17, %v1107_v40  ;;  %v1157_v4 = vsel %vm1149_vm1, %v12931_v27, %v1108_v10  ;;  %5893 = vmatmul.bf16.vlgmr.msra.gmra.mxu1 %v13042_v13  ;;  %v9642_v27 = vor.u32 %v11344_v8, %v9641_v45  ;;  %v967_v31 = vrot.slane %v13006_v28, 1  ;;  %v11340_v40 = vld [vmem:[%s17543_s6 + $0xfcc] sm:$0xf0]  ;;  %v9481_v45 = vld [vmem:[%s17543_s6 + $0xea0] sm:$0xf] }
 0x468   :  { %v13044_v62 = vadd.f32 %v5868_v32, %v5856_v41  ;;  %v13054_v60 = vpack.c.bf16 %v1156_v6, %v1156_v6  ;;  %v13061_v32 = vld [vmem:[%s17543_s6 + $0xca0] sm:$0xf]  ;;  %5880 = vmatmul.bf16.vlgmr.msra.gmra.mxu0 %v13040_v42  ;;  %v13071_v17 = vpack.c.bf16 %v1157_v4, %v1157_v4  ;;  %v1043_v7 = vrot.slane %v13017_v30, 1 }
 0x469   :  { %v13089_v39 = vmax.f32 %v12886_v25, %v1047_v36  ;;  %v17597_v35 = vor.u32 %v12909_v29, %v12904_v19  ;;  %v17598_v22 = vor.u32 %v12925_v38, %v12920_v26  ;;  %v9370_v16 = vor.u32 %v11276_v14, %v9369_v58  ;;  %v9625_v41 = vld [vmem:[%s17543_s6 + $0xfc0] sm:$0xf]  ;;  %v11272_v38 = vld [vmem:[%s17543_s6 + $0xdac] sm:$0xf0] }
 0x46a   :  { %v973_v1 = vrot.slane %v972_v24, 1  ;;  %v1053_v25 = vrot.slane %v12979_v3, 2  ;;  %v1035_v36 = vrot.slane %v12983_v9, 2  ;;  %5906 = vmatmul.bf16.vlgmr.msra.gmra.mxu2 %v13054_v60  ;;  %v968_v19 = vadd.f32 %v967_v31, %v13006_v28  ;;  %5919 = vmatmul.bf16.vlgmr.msra.gmra.mxu3 %v13071_v17  ;;  %v9209_v8 = vld [vmem:[%s17543_s6 + $0xc80] sm:$0xf] }
 0x46b   :  { %5976 = vmatpush.bf16.msra.mxu0 %v17597_v35  ;;  %5989 = vmatpush.bf16.msra.mxu1 %v17598_v22  ;;  %v979_v29 = vrot.slane %v978_v55, 1  ;;  %v13112_v26 = vmax.f32 %v12966_v12, %v1029_v50  ;;  %v9498_v52 = vor.u32 %v11308_v59, %v9497_v63  ;;  %v985_v20 = vrot.slane %v984_v61, 1  ;;  %v11304_v12 = vld [vmem:[%s17543_s6 + $0xeac] sm:$0xf0]  ;;  %v9609_v58 = vld [vmem:[%s17543_s6 + $0xfa0] sm:$0xf] }
 0x46c   :  { %570 = vadd.xlane.f32.xlu2 %v12158_v33  ;;  %6002 = vmatpush.bf16.msra.mxu2 %v9514_v11  ;;  %v974_v21 = vadd.f32 %v973_v1, %v972_v24  ;;  %v9226_v33 = vor.u32 %v13066_v15, %v13061_v32  ;;  %v9626_v10 = vor.u32 %v11340_v40, %v9625_v41  ;;  %v11336_v14 = vld [vmem:[%s17543_s6 + $0xfac] sm:$0xf0]  ;;  %v9337_v4 = vld [vmem:[%s17543_s6 + $0xd80] sm:$0xf]  ;;  %v1049_v31 = vrot.slane %v13089_v39, 1 }
 0x46d   :  { %v5857_v44 = vpop.f32.mrf.mxu2  ;;  %v5870_v5 = vpop.f32.mrf.mxu3  ;;  %6015 = vmatpush.bf16.msra.mxu3 %v9642_v27  ;;  %v987_v28 = vmul.f32 %v968_v19, %v12441_v37  ;;  %v980_v50 = vadd.f32 %v979_v29, %v978_v55  ;;  %v9354_v24 = vor.u32 %v11272_v38, %v13076_v0  ;;  %v986_v6 = vadd.f32 %v985_v20, %v984_v61  ;;  %v11268_v11 = vld [vmem:[%s17543_s6 + $0xd8c] sm:$0xf0]  ;;  %v9193_v35 = vld [vmem:[%s17543_s6 + $0xc60] sm:$0xf] }
 0x46e   :  { %v988_v55 = vmul.f32 %v974_v21, %v12441_v37  ;;  %v1054_v57 = vmax.f32 %v12979_v3, %v1053_v25  ;;  %v1036_v18 = vmax.f32 %v12983_v9, %v1035_v36  ;;  %v661_v32 = vmul.f32 %v12933_v56, %v12441_v37  ;;  %v9465_v56 = vld [vmem:[%s17543_s6 + $0xe80] sm:$0xf]  ;;  %v11300_v59 = vld [vmem:[%s17543_s6 + $0xe8c] sm:$0xf0] }
 0x46f   :  { %5977 = vmatpush.bf16.msra.mxu0 %v9242_v46  ;;  %5990 = vmatpush.bf16.msra.mxu1 %v9370_v16  ;;  %v11236_v46 = vld [vmem:[%s17543_s6 + $0xc8c] sm:$0xf0]  ;;  %v989_v61 = vmul.f32 %v980_v50, %v12441_v37  ;;  %v9482_v3 = vor.u32 %v11304_v12, %v9481_v45  ;;  %v1109_v9 = vrot.slane %v987_v28, 7  ;;  %v990_v27 = vmul.f32 %v986_v6, %v12441_v37  ;;  %v9321_v40 = vld [vmem:[%s17543_s6 + $0xd60] sm:$0xf] }
 0x470   :  { %6003 = vmatpush.bf16.msra.mxu2 %v9498_v52  ;;  %v1110_v15 = vrot.slane %v988_v55, 7  ;;  %v13156_v0 = vmax.f32 %v12992_v34, %v1019_v23  ;;  %v1031_v44 = vrot.slane %v13112_v26, 1  ;;  %v1059_v5 = vrot.slane %v12989_v2, 2  ;;  %v11232_v22 = vld [vmem:[%s17543_s6 + $0xc6c] sm:$0xf0] }
 0x471   :  { %6016 = vmatpush.bf16.msra.mxu3 %v9626_v10  ;;  %v9610_v63 = vor.u32 %v11336_v14, %v9609_v58  ;;  %v9210_v34 = vor.u32 %v11236_v46, %v9209_v8  ;;  %v9338_v23 = vor.u32 %v11268_v11, %v9337_v4  ;;  %v1111_v16 = vrot.slane %v989_v61, 7  ;;  %v11264_v1 = vld [vmem:[%s17543_s6 + $0xd6c] sm:$0xf0]  ;;  %v9449_v45 = vld [vmem:[%s17543_s6 + $0xe60] sm:$0xf] }
 0x472   :  { %v1055_v41 = vrot.slane %v1054_v57, 1  ;;  %v662_v25 = vmul.f32 %v12946_v47, %v12441_v37  ;;  %v1112_v36 = vrot.slane %v990_v27, 7  ;;  %v17599_v38 = vrot.slane %v12850_v43, 1  ;;  %v11332_v47 = vld [vmem:[%s17543_s6 + $0xf8c] sm:$0xf0] }
 0x473   :  { %5978 = vmatpush.bf16.msra.mxu0 %v9226_v33  ;;  %5991 = vmatpush.bf16.msra.mxu1 %v9354_v24  ;;  %v1037_v29 = vrot.slane %v1036_v18, 1  ;;  %v1158_v52 = vsel %vm1149_vm1, %v12941_v51, %v1109_v9  ;;  %v1159_v21 = vsel %vm1149_vm1, %v12944_v48, %v1110_v15  ;;  %v9466_v20 = vor.u32 %v11300_v59, %v9465_v56  ;;  %v9593_v33 = vld [vmem:[%s17543_s6 + $0xf80] sm:$0xf]  ;;  %v11296_v12 = vld [vmem:[%s17543_s6 + $0xe6c] sm:$0xf0] }
 0x474   :  { %v13184_v19 = vmax.f32 %v12850_v43, %v17599_v38  ;;  %6004 = vmatpush.bf16.msra.mxu2 %v9482_v3  ;;  %v13199_v43 = vmax.f32 %v13017_v30, %v1043_v7  ;;  %v1026_v51 = vmax.f32 %v12996_v53, %v1025_v54  ;;  %v1032_v48 = vmax.f32 %v13112_v26, %v1031_v44  ;;  %v9177_v53 = vld [vmem:[%s17543_s6 + $0xc40] sm:$0xf]  ;;  %v11260_v58 = vld [vmem:[%s17543_s6 + $0xd4c] sm:$0xf0] }
 0x475   :  { %v1060_v10 = vmax.f32 %v12989_v2, %v1059_v5  ;;  %6017 = vmatpush.bf16.msra.mxu3 %v9610_v63  ;;  %v9194_v30 = vor.u32 %v11232_v22, %v9193_v35  ;;  %v9322_v7 = vor.u32 %v11264_v1, %v9321_v40  ;;  %v11228_v2 = vld [vmem:[%s17543_s6 + $0xc4c] sm:$0xf0]  ;;  %v1160_v54 = vsel %vm1149_vm1, %v661_v32, %v1111_v16  ;;  %v9305_v8 = vld [vmem:[%s17543_s6 + $0xd40] sm:$0xf] }
 0x476   :  { %v1117_v26 = vrot.slane %v13156_v0, 7  ;;  %v13220_v28 = vpack.c.bf16 %v1158_v52, %v1158_v52  ;;  %v13222_v50 = vpack.c.bf16 %v1159_v21, %v1159_v21  ;;  %v9594_v24 = vor.u32 %v11332_v47, %v9593_v33  ;;  %v9577_v11 = vld [vmem:[%s17543_s6 + $0xf60] sm:$0xf]  ;;  %v11328_v32 = vld [vmem:[%s17543_s6 + $0xf6c] sm:$0xf0] }
 0x477   :  { %5979 = vmatpush.bf16.msra.mxu0 %v9210_v34  ;;  %5992 = vmatpush.bf16.msra.mxu1 %v9338_v23  ;;  %v1161_v14 = vsel %vm1149_vm1, %v662_v25, %v1112_v36  ;;  %v13232_v55 = vmax.f32 %v13089_v39, %v1049_v31  ;;  %v13234_v6 = vmax.f32 %v1054_v57, %v1055_v41  ;;  %v1061_v61 = vrot.slane %v1060_v10, 1  ;;  %v9433_v57 = vld [vmem:[%s17543_s6 + $0xe40] sm:$0xf]  ;;  %v11224_v44 = vld [vmem:[%s17543_s6 + $0xc2c] sm:$0xf0] }
 0x478   :  { %v1038_v46 = vmax.f32 %v1036_v18, %v1037_v29  ;;  %6005 = vmatpush.bf16.msra.mxu2 %v9466_v20  ;;  %v9450_v4 = vor.u32 %v11296_v12, %v9449_v45  ;;  %5932 = vmatmul.bf16.vlgmr.msrb.gmra.mxu0 %v13220_v28  ;;  %v9178_v39 = vor.u32 %v11228_v2, %v9177_v53  ;;  %v11292_v18 = vld [vmem:[%s17543_s6 + $0xe4c] sm:$0xf0]  ;;  %v1118_v9 = vrot.slane %v1026_v51, 7  ;;  %v9161_v0 = vld [vmem:[%s17543_s6 + $0xc20] sm:$0xf] }
 0x479   :  { %5945 = vmatmul.bf16.vlgmr.msrb.gmra.mxu1 %v13222_v50  ;;  %v13244_v3 = vpack.c.bf16 %v1160_v54, %v1160_v54  ;;  %v9306_v15 = vor.u32 %v11260_v58, %v9305_v8  ;;  %v13252_v27 = vpack.c.bf16 %v1161_v14, %v1161_v14  ;;  %v13262_v5 = vsel %vm1149_vm1, %v12938_v49, %v1117_v26  ;;  %v17600_v56 = vld [vmem:[#allocation16_spill] sm:$0xff]  ;;  %v11256_v23 = vld [vmem:[%s17543_s6 + $0xd2c] sm:$0xf0]  ;;  %v17604_v40 = vld [vmem:[#allocation17_spill] sm:$0xff] }
 0x47a   :  { %v1119_v63 = vrot.slane %v1032_v48, 7  ;;  %v727_v59 = vrot.slane %v17600_v56, 1  ;;  %6018 = vmatpush.bf16.msra.mxu3 %v9594_v24  ;;  %v9578_v31 = vor.u32 %v11328_v32, %v9577_v11  ;;  %v9289_v34 = vld [vmem:[%s17543_s6 + $0xd20] sm:$0xf]  ;;  %v17601_v35 = vld [vmem:[#allocation18_spill] sm:$0xff]  ;;  %v17602_v49 = vld [vmem:[#allocation15_spill] sm:$0xff]  ;;  %v9434_v25 = vor.u32 %v11292_v18, %v9433_v57 }
 0x47b   :  { %5980 = vmatpush.bf16.msra.mxu0 %v9194_v30  ;;  %5993 = vmatpush.bf16.msra.mxu1 %v9322_v7  ;;  %v13274_v22 = vsel %vm1149_vm1, %v17601_v35, %v1118_v9  ;;  %v17603_v16 = vrot.slane %v17602_v49, 1  ;;  %v733_v1 = vrot.slane %v17604_v40, 1  ;;  %v9561_v36 = vld [vmem:[%s17543_s6 + $0xf40] sm:$0xf]  ;;  %v11324_v38 = vld [vmem:[%s17543_s6 + $0xf4c] sm:$0xf0]  ;;  %v1062_v33 = vmax.f32 %v1060_v10, %v1061_v61 }
 0x47c   :  { %5958 = vmatmul.bf16.vlgmr.msrb.gmra.mxu2 %v13244_v3  ;;  %5971 = vmatmul.bf16.vlgmr.msrb.gmra.mxu3 %v13252_v27  ;;  %v13289_v29 = vsel %vm1149_vm1, %v13184_v19, %v1119_v63  ;;  %v17605_v52 = vld [vmem:[#allocation13_spill] sm:$0xff]  ;;  %v9162_v47 = vor.u32 %v11224_v44, %v9161_v0  ;;  %v11220_v48 = vld [vmem:[%s17543_s6 + $0xc0c] sm:$0xf0]  ;;  %v1120_v12 = vrot.slane %v1038_v46, 7  ;;  %v9290_v53 = vor.u32 %v11256_v23, %v9289_v34 }
 0x47d   :  { %v710_v41 = vmax.f32 %v17602_v49, %v17603_v16  ;;  %6006 = vmatpush.bf16.msra.mxu2 %v9450_v4  ;;  %v17606_v21 = vrot.slane %v17605_v52, 1  ;;  %v9145_v51 = vld [vmem:[%s17543_s6 + $0xc00] sm:$0xf]  ;;  %v11288_v19 = vld [vmem:[%s17543_s6 + $0xe2c] sm:$0xf0]  ;;  %v1121_v54 = vrot.slane %v13199_v43, 7  ;;  %v9562_v8 = vor.u32 %v11324_v38, %v9561_v36 }
 0x47e   :  { %v9417_v45 = vld [vmem:[%s17543_s6 + $0xe20] sm:$0xf]  ;;  %v17607_v30 = vld [vmem:[#allocation14_spill] sm:$0xff]  ;;  %v1122_v26 = vrot.slane %v13232_v55, 7  ;;  %v1123_v24 = vrot.slane %v13234_v6, 7  ;;  %6019 = vmatpush.bf16.msra.mxu3 %v9578_v31  ;;  %v9146_v0 = vor.u32 %v11220_v48, %v9145_v51 }
 0x47f   :  { %v716_v20 = vmax.f32 %v17605_v52, %v17606_v21  ;;  %v17608_v10 = vrot.slane %v17607_v30, 1  ;;  %5981 = vmatpush.bf16.msra.mxu0 %v9178_v39  ;;  %5994 = vmatpush.bf16.msra.mxu1 %v9306_v15  ;;  %v9273_v2 = vld [vmem:[%s17543_s6 + $0xd00] sm:$0xf]  ;;  %v11252_v58 = vld [vmem:[%s17543_s6 + $0xd0c] sm:$0xf0]  ;;  %v13325_v43 = vsel %vm1149_vm1, %v710_v41, %v1120_v12  ;;  %v9418_v4 = vor.u32 %v11288_v19, %v9417_v45 }
 0x480   :  { %v9769_v14 = vld [vmem:[%s17543_s6 + $0x10e0] sm:$0xf]  ;;  %v11376_v46 = vld [vmem:[%s17543_s6 + $0x10ec] sm:$0xf0]  ;;  %v728_v39 = vmax.f32 %v17600_v56, %v727_v59  ;;  %v734_v15 = vmax.f32 %v17604_v40, %v733_v1  ;;  %v9274_v44 = vor.u32 %v11252_v58, %v9273_v2  ;;  %v1124_v56 = vrot.slane %v1062_v33, 7 }
 0x481   :  { %v722_v7 = vmax.f32 %v17607_v30, %v17608_v10  ;;  %6007 = vmatpush.bf16.msra.mxu2 %v9434_v25  ;;  %v9897_v55 = vld [vmem:[%s17543_s6 + $0x11e0] sm:$0xf]  ;;  %v11408_v6 = vld [vmem:[%s17543_s6 + $0x11ec] sm:$0xf0]  ;;  %v13337_v32 = vsel %vm1149_vm1, %v716_v20, %v1121_v54  ;;  %v9770_v59 = vor.u32 %v11376_v46, %v9769_v14 }
 0x482   :  { %v9545_v11 = vld [vmem:[%s17543_s6 + $0xf20] sm:$0xf]  ;;  %v11320_v57 = vld [vmem:[%s17543_s6 + $0xf2c] sm:$0xf0]  ;;  %v13354_v63 = vsel %vm1149_vm1, %v728_v39, %v1123_v24  ;;  %6020 = vmatpush.bf16.msra.mxu3 %v9562_v8  ;;  %v9898_v31 = vor.u32 %v11408_v6, %v9897_v55  ;;  %v13375_v25 = vsel %vm1149_vm1, %v734_v15, %v1124_v56 }
 0x483   :  { %v13340_v61 = vsel %vm1149_vm1, %v722_v7, %v1122_v26  ;;  %v9401_v18 = vld [vmem:[%s17543_s6 + $0xe00] sm:$0xf]  ;;  %v11284_v9 = vld [vmem:[%s17543_s6 + $0xe0c] sm:$0xf0]  ;;  %5982 = vmatpush.bf16.msra.mxu0 %v9162_v47  ;;  %5995 = vmatpush.bf16.msra.mxu1 %v9290_v53  ;;  %v9546_v49 = vor.u32 %v11320_v57, %v9545_v11 }
 0x484   :  { %v9753_v34 = vld [vmem:[%s17543_s6 + $0x10c0] sm:$0xf]  ;;  %v11440_v35 = vld [vmem:[%s17543_s6 + $0x12ec] sm:$0xf0]  ;;  %v9402_v1 = vor.u32 %v11284_v9, %v9401_v18 }
 0x485   :  { %v10025_v23 = vld [vmem:[%s17543_s6 + $0x12e0] sm:$0xf]  ;;  %6008 = vmatpush.bf16.msra.mxu2 %v9418_v4  ;;  %v11372_v16 = vld [vmem:[%s17543_s6 + $0x10cc] sm:$0xf0] }
 0x486   :  { %v9881_v41 = vld [vmem:[%s17543_s6 + $0x11c0] sm:$0xf]  ;;  %v11404_v40 = vld [vmem:[%s17543_s6 + $0x11cc] sm:$0xf0]  ;;  %v10026_v20 = vor.u32 %v11440_v35, %v10025_v23  ;;  %v9754_v45 = vor.u32 %v11372_v16, %v9753_v34  ;;  %6021 = vmatpush.bf16.msra.mxu3 %v9546_v49 }
 0x487   :  { %v9529_v36 = vld [vmem:[%s17543_s6 + $0xf00] sm:$0xf]  ;;  %v11316_v38 = vld [vmem:[%s17543_s6 + $0xf0c] sm:$0xf0]  ;;  %5983 = vmatpush.bf16.msra.mxu0 %v9146_v0  ;;  %5996 = vmatpush.bf16.msra.mxu1 %v9274_v44  ;;  %v9882_v19 = vor.u32 %v11404_v40, %v9881_v41 }
 0x488   :  { %v17609_v52 = vld [vmem:[#allocation5_spill] sm:$0xff]  ;;  %v11472_v47 = vld [vmem:[%s17543_s6 + $0x13ec] sm:$0xf0]  ;;  %v9530_v7 = vor.u32 %v11316_v38, %v9529_v36  ;;  %v17612_v0 = vld [vmem:[#allocation8_spill] sm:$0xff] }
 0x489   :  { %v13385_v21 = vpack.c.bf16 %v17609_v52, %v17609_v52  ;;  %v10153_v33 = vld [vmem:[%s17543_s6 + $0x13e0] sm:$0xf]  ;;  %v17610_v51 = vld [vmem:[#allocation6_spill] sm:$0xff]  ;;  %6009 = vmatpush.bf16.msra.mxu2 %v9402_v1  ;;  %v17611_v24 = vld [vmem:[#allocation7_spill] sm:$0xff]  ;;  %v13448_v44 = vpack.c.bf16 %v17612_v0, %v17612_v0 }
 0x48a   :  { %v13395_v48 = vpack.c.bf16 %v17610_v51, %v17610_v51  ;;  %v9737_v12 = vld [vmem:[%s17543_s6 + $0x10a0] sm:$0xf]  ;;  %v11436_v10 = vld [vmem:[%s17543_s6 + $0x12cc] sm:$0xf0]  ;;  %v10154_v26 = vor.u32 %v11472_v47, %v10153_v33  ;;  %v13419_v8 = vpack.c.bf16 %v17611_v24, %v17611_v24  ;;  %6022 = vmatpush.bf16.msra.mxu3 %v9530_v7 }
 0x48b   :  { %6028 = vmatpush.bf16.msrb.mxu0 %v9770_v59  ;;  %6041 = vmatpush.bf16.msrb.mxu1 %v9898_v31  ;;  %v10009_v30 = vld [vmem:[%s17543_s6 + $0x12c0] sm:$0xf]  ;;  %v11368_v53 = vld [vmem:[%s17543_s6 + $0x10ac] sm:$0xf0] }
 0x48c   :  { %v9865_v2 = vld [vmem:[%s17543_s6 + $0x11a0] sm:$0xf]  ;;  %v11400_v54 = vld [vmem:[%s17543_s6 + $0x11ac] sm:$0xf0]  ;;  %5984 = vmatmul.bf16.vlgmr.msra.gmra.mxu0 %v13385_v21  ;;  %5997 = vmatmul.bf16.vlgmr.msra.gmra.mxu1 %v13395_v48  ;;  %v10010_v58 = vor.u32 %v11436_v10, %v10009_v30  ;;  %v9738_v55 = vor.u32 %v11368_v53, %v9737_v12 }
 0x48d   :  { %6054 = vmatpush.bf16.msrb.mxu2 %v10026_v20  ;;  %v10137_v14 = vld [vmem:[%s17543_s6 + $0x13c0] sm:$0xf]  ;;  %v11468_v46 = vld [vmem:[%s17543_s6 + $0x13cc] sm:$0xf0]  ;;  %v9866_v6 = vor.u32 %v11400_v54, %v9865_v2  ;;  %6023 = vmatmul.bf16.vlgmr.msra.gmra.mxu3 %v13448_v44 }
 0x48e   :  { %v9721_v4 = vld [vmem:[%s17543_s6 + $0x1080] sm:$0xf]  ;;  %v11432_v39 = vld [vmem:[%s17543_s6 + $0x12ac] sm:$0xf0]  ;;  %6010 = vmatmul.bf16.vlgmr.msra.gmra.mxu2 %v13419_v8  ;;  %6067 = vmatpush.bf16.msrb.mxu3 %v10154_v26  ;;  %v10138_v15 = vor.u32 %v11468_v46, %v10137_v14 }
 0x48f   :  { %6029 = vmatpush.bf16.msrb.mxu0 %v9754_v45  ;;  %6042 = vmatpush.bf16.msrb.mxu1 %v9882_v19  ;;  %v9993_v11 = vld [vmem:[%s17543_s6 + $0x12a0] sm:$0xf]  ;;  %v11364_v57 = vld [vmem:[%s17543_s6 + $0x108c] sm:$0xf0] }
 0x490   :  { %v9849_v18 = vld [vmem:[%s17543_s6 + $0x1180] sm:$0xf]  ;;  %v11396_v9 = vld [vmem:[%s17543_s6 + $0x118c] sm:$0xf0]  ;;  %v9994_v56 = vor.u32 %v11432_v39, %v9993_v11  ;;  %v9722_v34 = vor.u32 %v11364_v57, %v9721_v4 }
 0x491   :  { %6055 = vmatpush.bf16.msrb.mxu2 %v10010_v58  ;;  %v10121_v59 = vld [vmem:[%s17543_s6 + $0x13a0] sm:$0xf]  ;;  %v11464_v31 = vld [vmem:[%s17543_s6 + $0x13ac] sm:$0xf0]  ;;  %v9850_v23 = vor.u32 %v11396_v9, %v9849_v18 }
 0x492   :  { %v9705_v35 = vld [vmem:[%s17543_s6 + $0x1060] sm:$0xf]  ;;  %v11428_v16 = vld [vmem:[%s17543_s6 + $0x128c] sm:$0xf0]  ;;  %6068 = vmatpush.bf16.msrb.mxu3 %v10138_v15  ;;  %v10122_v36 = vor.u32 %v11464_v31, %v10121_v59 }
 0x493   :  { %6030 = vmatpush.bf16.msrb.mxu0 %v9738_v55  ;;  %6043 = vmatpush.bf16.msrb.mxu1 %v9866_v6  ;;  %v9977_v49 = vld [vmem:[%s17543_s6 + $0x1280] sm:$0xf]  ;;  %v11360_v41 = vld [vmem:[%s17543_s6 + $0x106c] sm:$0xf0] }
 0x494   :  { %v9833_v40 = vld [vmem:[%s17543_s6 + $0x1160] sm:$0xf]  ;;  %v11392_v1 = vld [vmem:[%s17543_s6 + $0x116c] sm:$0xf0]  ;;  %v9978_v38 = vor.u32 %v11428_v16, %v9977_v49  ;;  %v9706_v33 = vor.u32 %v11360_v41, %v9705_v35 }
 0x495   :  { %6056 = vmatpush.bf16.msrb.mxu2 %v9994_v56  ;;  %v10105_v52 = vld [vmem:[%s17543_s6 + $0x1380] sm:$0xf]  ;;  %v11460_v20 = vld [vmem:[%s17543_s6 + $0x138c] sm:$0xf0]  ;;  %v9834_v47 = vor.u32 %v11392_v1, %v9833_v40 }
 0x496   :  { %v9689_v51 = vld [vmem:[%s17543_s6 + $0x1040] sm:$0xf]  ;;  %v11424_v19 = vld [vmem:[%s17543_s6 + $0x126c] sm:$0xf0]  ;;  %6069 = vmatpush.bf16.msrb.mxu3 %v10122_v36  ;;  %v10106_v7 = vor.u32 %v11460_v20, %v10105_v52 }
 0x497   :  { %6031 = vmatpush.bf16.msrb.mxu0 %v9722_v34  ;;  %6044 = vmatpush.bf16.msrb.mxu1 %v9850_v23  ;;  %v9961_v45 = vld [vmem:[%s17543_s6 + $0x1260] sm:$0xf]  ;;  %v11356_v12 = vld [vmem:[%s17543_s6 + $0x104c] sm:$0xf0] }
 0x498   :  { %v9817_v30 = vld [vmem:[%s17543_s6 + $0x1140] sm:$0xf]  ;;  %v11388_v10 = vld [vmem:[%s17543_s6 + $0x114c] sm:$0xf0]  ;;  %v9962_v53 = vor.u32 %v11424_v19, %v9961_v45  ;;  %v9690_v26 = vor.u32 %v11356_v12, %v9689_v51 }
 0x499   :  { %6057 = vmatpush.bf16.msrb.mxu2 %v9978_v38  ;;  %v10089_v2 = vld [vmem:[%s17543_s6 + $0x1360] sm:$0xf]  ;;  %v11456_v54 = vld [vmem:[%s17543_s6 + $0x136c] sm:$0xf0]  ;;  %v9818_v24 = vor.u32 %v11388_v10, %v9817_v30 }
 0x49a   :  { %v9673_v58 = vld [vmem:[%s17543_s6 + $0x1020] sm:$0xf]  ;;  %v11420_v46 = vld [vmem:[%s17543_s6 + $0x124c] sm:$0xf0]  ;;  %6070 = vmatpush.bf16.msrb.mxu3 %v10106_v7  ;;  %v10090_v11 = vor.u32 %v11456_v54, %v10089_v2 }
 0x49b   :  { %6032 = vmatpush.bf16.msrb.mxu0 %v9706_v33  ;;  %6045 = vmatpush.bf16.msrb.mxu1 %v9834_v47  ;;  %v9945_v14 = vld [vmem:[%s17543_s6 + $0x1240] sm:$0xf]  ;;  %v11352_v55 = vld [vmem:[%s17543_s6 + $0x102c] sm:$0xf0] }
 0x49c   :  { %v9801_v6 = vld [vmem:[%s17543_s6 + $0x1120] sm:$0xf]  ;;  %v11384_v4 = vld [vmem:[%s17543_s6 + $0x112c] sm:$0xf0]  ;;  %v9946_v39 = vor.u32 %v11420_v46, %v9945_v14  ;;  %v9674_v15 = vor.u32 %v11352_v55, %v9673_v58  ;;  %v13607_v55 = vpack.c.bf16 %v13274_v22, %v13274_v22 }
 0x49d   :  { %6058 = vmatpush.bf16.msrb.mxu2 %v9962_v53  ;;  %v10073_v57 = vld [vmem:[%s17543_s6 + $0x1340] sm:$0xf]  ;;  %v11452_v18 = vld [vmem:[%s17543_s6 + $0x134c] sm:$0xf0]  ;;  %v9802_v0 = vor.u32 %v11384_v4, %v9801_v6 }
 0x49e   :  { %v9657_v9 = vld [vmem:[%s17543_s6 + $0x1000] sm:$0xf]  ;;  %v11348_v56 = vld [vmem:[%s17543_s6 + $0x100c] sm:$0xf0]  ;;  %6071 = vmatpush.bf16.msrb.mxu3 %v10090_v11  ;;  %v10074_v49 = vor.u32 %v11452_v18, %v10073_v57 }
 0x49f   :  { %6033 = vmatpush.bf16.msrb.mxu0 %v9690_v26  ;;  %6046 = vmatpush.bf16.msrb.mxu1 %v9818_v24  ;;  %v9929_v59 = vld [vmem:[%s17543_s6 + $0x1220] sm:$0xf]  ;;  %v11416_v31 = vld [vmem:[%s17543_s6 + $0x122c] sm:$0xf0]  ;;  %v9658_v52 = vor.u32 %v11348_v56, %v9657_v9  ;;  %v13597_v24 = vpack.c.bf16 %v13262_v5, %v13262_v5 }
 0x4a0   :  { %v9785_v34 = vld [vmem:[%s17543_s6 + $0x1100] sm:$0xf]  ;;  %v11380_v23 = vld [vmem:[%s17543_s6 + $0x110c] sm:$0xf0]  ;;  %v9930_v1 = vor.u32 %v11416_v31, %v9929_v59  ;;  %v13637_v31 = vpack.c.bf16 %v13289_v29, %v13289_v29  ;;  %v13651_v29 = vpack.c.bf16 %v13325_v43, %v13325_v43 }
 0x4a1   :  { %v10281_v35 = vld [vmem:[%s17543_s6 + $0x14e0] sm:$0xf]  ;;  %v11504_v16 = vld [vmem:[%s17543_s6 + $0x14ec] sm:$0xf0]  ;;  %6059 = vmatpush.bf16.msrb.mxu2 %v9946_v39  ;;  %v9786_v20 = vor.u32 %v11380_v23, %v9785_v34 }
 0x4a2   :  { %v10409_v41 = vld [vmem:[%s17543_s6 + $0x15e0] sm:$0xf]  ;;  %v11536_v40 = vld [vmem:[%s17543_s6 + $0x15ec] sm:$0xf0]  ;;  %v10282_v47 = vor.u32 %v11504_v16, %v10281_v35  ;;  %6072 = vmatpush.bf16.msrb.mxu3 %v10074_v49 }
 0x4a3   :  { %v10057_v36 = vld [vmem:[%s17543_s6 + $0x1320] sm:$0xf]  ;;  %v11448_v38 = vld [vmem:[%s17543_s6 + $0x132c] sm:$0xf0]  ;;  %6034 = vmatpush.bf16.msrb.mxu0 %v9674_v15  ;;  %6047 = vmatpush.bf16.msrb.mxu1 %v9802_v0  ;;  %v10410_v51 = vor.u32 %v11536_v40, %v10409_v41 }
 0x4a4   :  { %v10265_v33 = vld [vmem:[%s17543_s6 + $0x14c0] sm:$0xf]  ;;  %v11500_v45 = vld [vmem:[%s17543_s6 + $0x14cc] sm:$0xf0]  ;;  %v10058_v30 = vor.u32 %v11448_v38, %v10057_v36 }
 0x4a5   :  { %v9913_v19 = vld [vmem:[%s17543_s6 + $0x1200] sm:$0xf]  ;;  %v11412_v12 = vld [vmem:[%s17543_s6 + $0x120c] sm:$0xf0]  ;;  %6060 = vmatpush.bf16.msrb.mxu2 %v9930_v1  ;;  %v10266_v6 = vor.u32 %v11500_v45, %v10265_v33 }
 0x4a6   :  { %v10393_v10 = vld [vmem:[%s17543_s6 + $0x15c0] sm:$0xf]  ;;  %v11532_v7 = vld [vmem:[%s17543_s6 + $0x15cc] sm:$0xf0]  ;;  %v9914_v58 = vor.u32 %v11412_v12, %v9913_v19  ;;  %6073 = vmatpush.bf16.msrb.mxu3 %v10058_v30 }
 0x4a7   :  { %v10041_v53 = vld [vmem:[%s17543_s6 + $0x1300] sm:$0xf]  ;;  %v11444_v2 = vld [vmem:[%s17543_s6 + $0x130c] sm:$0xf0]  ;;  %6035 = vmatpush.bf16.msrb.mxu0 %v9658_v52  ;;  %6048 = vmatpush.bf16.msrb.mxu1 %v9786_v20  ;;  %v10394_v4 = vor.u32 %v11532_v7, %v10393_v10 }
 0x4a8   :  { %v10537_v54 = vld [vmem:[%s17543_s6 + $0x16e0] sm:$0xf]  ;;  %v11568_v26 = vld [vmem:[%s17543_s6 + $0x16ec] sm:$0xf0]  ;;  %v10042_v5 = vor.u32 %v11444_v2, %v10041_v53 }
 0x4a9   :  { %v10665_v14 = vld [vmem:[%s17543_s6 + $0x17e0] sm:$0xf]  ;;  %v11600_v46 = vld [vmem:[%s17543_s6 + $0x17ec] sm:$0xf0]  ;;  %v10538_v11 = vor.u32 %v11568_v26, %v10537_v54  ;;  %6061 = vmatpush.bf16.msrb.mxu2 %v9914_v58 }
 0x4aa   :  { %v10249_v39 = vld [vmem:[%s17543_s6 + $0x14a0] sm:$0xf]  ;;  %v11496_v57 = vld [vmem:[%s17543_s6 + $0x14ac] sm:$0xf0]  ;;  %6036 = vmatmul.bf16.vlgmr.msrb.gmra.mxu0 %v13597_v24  ;;  %6049 = vmatmul.bf16.vlgmr.msrb.gmra.mxu1 %v13607_v55  ;;  %v10666_v22 = vor.u32 %v11600_v46, %v10665_v14 }
 0x4ab   :  { %6080 = vmatpush.bf16.msra.mxu0 %v10282_v47  ;;  %6093 = vmatpush.bf16.msra.mxu1 %v10410_v51  ;;  %v10377_v18 = vld [vmem:[%s17543_s6 + $0x15a0] sm:$0xf]  ;;  %v11528_v9 = vld [vmem:[%s17543_s6 + $0x15ac] sm:$0xf0]  ;;  %v10250_v34 = vor.u32 %v11496_v57, %v10249_v39 }
 0x4ac   :  { %v10521_v15 = vld [vmem:[%s17543_s6 + $0x16c0] sm:$0xf]  ;;  %v11564_v0 = vld [vmem:[%s17543_s6 + $0x16cc] sm:$0xf0]  ;;  %6074 = vmatpush.bf16.msrb.mxu3 %v10042_v5  ;;  %v10378_v23 = vor.u32 %v11528_v9, %v10377_v18  ;;  %6062 = vmatmul.bf16.vlgmr.msrb.gmra.mxu2 %v13637_v31 }
 0x4ad   :  { %v10649_v56 = vld [vmem:[%s17543_s6 + $0x17c0] sm:$0xf]  ;;  %v11596_v59 = vld [vmem:[%s17543_s6 + $0x17cc] sm:$0xf0]  ;;  %6106 = vmatpush.bf16.msra.mxu2 %v10538_v11  ;;  %v10522_v35 = vor.u32 %v11564_v0, %v10521_v15 }
 0x4ae   :  { %v10233_v49 = vld [vmem:[%s17543_s6 + $0x1480] sm:$0xf]  ;;  %v11492_v16 = vld [vmem:[%s17543_s6 + $0x148c] sm:$0xf0]  ;;  %v10650_v40 = vor.u32 %v11596_v59, %v10649_v56 }
 0x4af   :  { %6081 = vmatpush.bf16.msra.mxu0 %v10266_v6  ;;  %6094 = vmatpush.bf16.msra.mxu1 %v10394_v4  ;;  %v10361_v41 = vld [vmem:[%s17543_s6 + $0x1580] sm:$0xf]  ;;  %v11524_v1 = vld [vmem:[%s17543_s6 + $0x158c] sm:$0xf0]  ;;  %v10234_v20 = vor.u32 %v11492_v16, %v10233_v49 }
 0x4b0   :  { %6119 = vmatpush.bf16.msra.mxu3 %v10666_v22  ;;  %v10505_v36 = vld [vmem:[%s17543_s6 + $0x16a0] sm:$0xf]  ;;  %v11560_v38 = vld [vmem:[%s17543_s6 + $0x16ac] sm:$0xf0]  ;;  %v10362_v33 = vor.u32 %v11524_v1, %v10361_v41 }
 0x4b1   :  { %v10633_v52 = vld [vmem:[%s17543_s6 + $0x17a0] sm:$0xf]  ;;  %v11592_v43 = vld [vmem:[%s17543_s6 + $0x17ac] sm:$0xf0]  ;;  %6075 = vmatmul.bf16.vlgmr.msrb.gmra.mxu3 %v13651_v29  ;;  %6107 = vmatpush.bf16.msra.mxu2 %v10522_v35  ;;  %v10506_v47 = vor.u32 %v11560_v38, %v10505_v36 }
 0x4b2   :  { %v10217_v51 = vld [vmem:[%s17543_s6 + $0x1460] sm:$0xf]  ;;  %v11488_v45 = vld [vmem:[%s17543_s6 + $0x146c] sm:$0xf0]  ;;  %v10634_v12 = vor.u32 %v11592_v43, %v10633_v52 }
 0x4b3   :  { %6082 = vmatpush.bf16.msra.mxu0 %v10250_v34  ;;  %6095 = vmatpush.bf16.msra.mxu1 %v10378_v23  ;;  %v10345_v19 = vld [vmem:[%s17543_s6 + $0x1560] sm:$0xf]  ;;  %v11520_v30 = vld [vmem:[%s17543_s6 + $0x156c] sm:$0xf0]  ;;  %v10218_v54 = vor.u32 %v11488_v45, %v10217_v51  ;;  %v7723_v51 = vld [vmem:[%s17543_s6 + $0xf0] sm:$0xf0] }
 0x4b4   :  { %6120 = vmatpush.bf16.msra.mxu3 %v10650_v40  ;;  %v10489_v10 = vld [vmem:[%s17543_s6 + $0x1680] sm:$0xf]  ;;  %v11556_v7 = vld [vmem:[%s17543_s6 + $0x168c] sm:$0xf0]  ;;  %v10346_v26 = vor.u32 %v11520_v30, %v10345_v19  ;;  %v10894_v45 = vld [vmem:[%s17543_s6 + $0x1e4] sm:$0xf] }
 0x4b5   :  { %v10617_v53 = vld [vmem:[%s17543_s6 + $0x1780] sm:$0xf]  ;;  %v11588_v2 = vld [vmem:[%s17543_s6 + $0x178c] sm:$0xf0]  ;;  %6108 = vmatpush.bf16.msra.mxu2 %v10506_v47  ;;  %v10490_v58 = vor.u32 %v11556_v7, %v10489_v10  ;;  %v10862_v47 = vld [vmem:[%s17543_s6 + $0xe4] sm:$0xf] }
 0x4b6   :  { %v10201_v14 = vld [vmem:[%s17543_s6 + $0x1440] sm:$0xf]  ;;  %v11484_v46 = vld [vmem:[%s17543_s6 + $0x144c] sm:$0xf0]  ;;  %v10618_v4 = vor.u32 %v11588_v2, %v10617_v53  ;;  %v7851_v19 = vld [vmem:[%s17543_s6 + $0x1f0] sm:$0xf0] }
 0x4b7   :  { %6083 = vmatpush.bf16.msra.mxu0 %v10234_v20  ;;  %6096 = vmatpush.bf16.msra.mxu1 %v10362_v33  ;;  %v10329_v6 = vld [vmem:[%s17543_s6 + $0x1540] sm:$0xf]  ;;  %v11516_v5 = vld [vmem:[%s17543_s6 + $0x154c] sm:$0xf0]  ;;  %v10202_v22 = vor.u32 %v11484_v46, %v10201_v14  ;;  %v7707_v46 = vld [vmem:[%s17543_s6 + $0xd0] sm:$0xf0] }
 0x4b8   :  { %6121 = vmatpush.bf16.msra.mxu3 %v10634_v12  ;;  %v10473_v11 = vld [vmem:[%s17543_s6 + $0x1660] sm:$0xf]  ;;  %v11552_v39 = vld [vmem:[%s17543_s6 + $0x166c] sm:$0xf0]  ;;  %v10330_v9 = vor.u32 %v11516_v5, %v10329_v6  ;;  %v10890_v6 = vld [vmem:[%s17543_s6 + $0x1c4] sm:$0xf] }
 0x4b9   :  { %v10601_v57 = vld [vmem:[%s17543_s6 + $0x1760] sm:$0xf]  ;;  %v11584_v18 = vld [vmem:[%s17543_s6 + $0x176c] sm:$0xf0]  ;;  %6109 = vmatpush.bf16.msra.mxu2 %v10490_v58  ;;  %v10474_v15 = vor.u32 %v11552_v39, %v10473_v11  ;;  %v7854_v58 = vor.u32 %v10894_v45, %v7851_v19  ;;  %v13855_v45 = vpack.c.bf16 %v13354_v63, %v13354_v63  ;;  %v10918_v63 = vld [vmem:[%s17543_s6 + $0x2a4] sm:$0xf] }
 0x4ba   :  { %v10185_v0 = vld [vmem:[%s17543_s6 + $0x1420] sm:$0xf]  ;;  %v11480_v56 = vld [vmem:[%s17543_s6 + $0x142c] sm:$0xf0]  ;;  %v10602_v34 = vor.u32 %v11584_v18, %v10601_v57 }
 0x4bb   :  { %6084 = vmatpush.bf16.msra.mxu0 %v10218_v54  ;;  %6097 = vmatpush.bf16.msra.mxu1 %v10346_v26  ;;  %v10313_v59 = vld [vmem:[%s17543_s6 + $0x1520] sm:$0xf]  ;;  %v11512_v23 = vld [vmem:[%s17543_s6 + $0x152c] sm:$0xf0]  ;;  %v10186_v40 = vor.u32 %v11480_v56, %v10185_v0  ;;  %v7726_v54 = vor.u32 %v10862_v47, %v7723_v51  ;;  %v10858_v26 = vld [vmem:[%s17543_s6 + $0xc4] sm:$0xf] }
 0x4bc   :  { %6122 = vmatpush.bf16.msra.mxu3 %v10618_v4  ;;  %v10457_v35 = vld [vmem:[%s17543_s6 + $0x1640] sm:$0xf]  ;;  %v11548_v49 = vld [vmem:[%s17543_s6 + $0x164c] sm:$0xf0]  ;;  %v10314_v36 = vor.u32 %v11512_v23, %v10313_v59  ;;  %v7835_v4 = vld [vmem:[%s17543_s6 + $0x1d0] sm:$0xf0]  ;;  %v7710_v0 = vor.u32 %v10858_v26, %v7707_v46 }
 0x4bd   :  { %v10585_v16 = vld [vmem:[%s17543_s6 + $0x1740] sm:$0xf]  ;;  %v11580_v41 = vld [vmem:[%s17543_s6 + $0x174c] sm:$0xf0]  ;;  %6110 = vmatpush.bf16.msra.mxu2 %v10474_v15  ;;  %v10458_v38 = vor.u32 %v11548_v49, %v10457_v35  ;;  %v13809_v15 = vpack.c.bf16 %v13337_v32, %v13337_v32  ;;  %v10958_v56 = vld [vmem:[%s17543_s6 + $0x3e4] sm:$0xf]  ;;  %v7838_v23 = vor.u32 %v10890_v6, %v7835_v4 }
 0x4be   :  { %v10169_v1 = vld [vmem:[%s17543_s6 + $0x1400] sm:$0xf]  ;;  %v11476_v52 = vld [vmem:[%s17543_s6 + $0x140c] sm:$0xf0]  ;;  %v10586_v33 = vor.u32 %v11580_v41, %v10585_v16  ;;  %v8107_v59 = vld [vmem:[%s17543_s6 + $0x3f0] sm:$0xf0] }
 0x4bf   :  { %6085 = vmatpush.bf16.msra.mxu0 %v10202_v22  ;;  %6098 = vmatpush.bf16.msra.mxu1 %v10330_v9  ;;  %v10297_v43 = vld [vmem:[%s17543_s6 + $0x1500] sm:$0xf]  ;;  %v11508_v20 = vld [vmem:[%s17543_s6 + $0x150c] sm:$0xf0]  ;;  %v10170_v10 = vor.u32 %v11476_v52, %v10169_v1  ;;  %v10926_v22 = vld [vmem:[%s17543_s6 + $0x2e4] sm:$0xf]  ;;  %v8110_v1 = vor.u32 %v10958_v56, %v8107_v59 }
 0x4c0   :  { %6123 = vmatpush.bf16.msra.mxu3 %v10602_v34  ;;  %v10441_v12 = vld [vmem:[%s17543_s6 + $0x1620] sm:$0xf]  ;;  %v11544_v30 = vld [vmem:[%s17543_s6 + $0x162c] sm:$0xf0]  ;;  %v10298_v2 = vor.u32 %v11508_v20, %v10297_v43  ;;  %v7979_v9 = vld [vmem:[%s17543_s6 + $0x2f0] sm:$0xf0]  ;;  %v13819_v34 = vpack.c.bf16 %v13340_v61, %v13340_v61 }
 0x4c1   :  { %v10569_v7 = vld [vmem:[%s17543_s6 + $0x1720] sm:$0xf]  ;;  %v11576_v53 = vld [vmem:[%s17543_s6 + $0x172c] sm:$0xf0]  ;;  %6111 = vmatpush.bf16.msra.mxu2 %v10458_v38  ;;  %v10442_v14 = vor.u32 %v11544_v30, %v10441_v12  ;;  %v10854_v32 = vld [vmem:[%s17543_s6 + $0xa4] sm:$0xf]  ;;  %v7982_v41 = vor.u32 %v10926_v22, %v7979_v9 }
 0x4c2   :  { %v10570_v5 = vor.u32 %v11576_v53, %v10569_v7  ;;  %v10425_v11 = vld [vmem:[%s17543_s6 + $0x1600] sm:$0xf]  ;;  %v11540_v39 = vld [vmem:[%s17543_s6 + $0x160c] sm:$0xf0]  ;;  %v7691_v49 = vld [vmem:[%s17543_s6 + $0xb0] sm:$0xf0] }
 0x4c3   :  { %6086 = vmatpush.bf16.msra.mxu0 %v10186_v40  ;;  %6099 = vmatpush.bf16.msra.mxu1 %v10314_v36  ;;  %v10553_v57 = vld [vmem:[%s17543_s6 + $0x1700] sm:$0xf]  ;;  %v11572_v18 = vld [vmem:[%s17543_s6 + $0x170c] sm:$0xf0]  ;;  %v10426_v35 = vor.u32 %v11540_v39, %v10425_v11  ;;  %v10886_v61 = vld [vmem:[%s17543_s6 + $0x1a4] sm:$0xf]  ;;  %v7694_v52 = vor.u32 %v10854_v32, %v7691_v49 }
 0x4c4   :  { %6124 = vmatpush.bf16.msra.mxu3 %v10586_v33  ;;  %v10554_v16 = vor.u32 %v11572_v18, %v10553_v57  ;;  %v7819_v40 = vld [vmem:[%s17543_s6 + $0x1b0] sm:$0xf0]  ;;  %v10922_v36 = vld [vmem:[%s17543_s6 + $0x2c4] sm:$0xf] }
 0x4c5   :  { %6112 = vmatpush.bf16.msra.mxu2 %v10442_v14  ;;  %v7963_v38 = vld [vmem:[%s17543_s6 + $0x2d0] sm:$0xf0]  ;;  %v10954_v43 = vld [vmem:[%s17543_s6 + $0x3c4] sm:$0xf]  ;;  %v7822_v33 = vor.u32 %v10886_v61, %v7819_v40 }
 0x4c6   :  { %v8091_v20 = vld [vmem:[%s17543_s6 + $0x3d0] sm:$0xf0]  ;;  %v10850_v47 = vld [vmem:[%s17543_s6 + $0x84] sm:$0xf]  ;;  %v7966_v19 = vor.u32 %v10922_v36, %v7963_v38 }
 0x4c7   :  { %6087 = vmatpush.bf16.msra.mxu0 %v10170_v10  ;;  %6100 = vmatpush.bf16.msra.mxu1 %v10298_v2  ;;  %v7675_v51 = vld [vmem:[%s17543_s6 + $0x90] sm:$0xf0]  ;;  %v10882_v12 = vld [vmem:[%s17543_s6 + $0x184] sm:$0xf]  ;;  %v13865_v10 = vpack.c.bf16 %v13375_v25, %v13375_v25  ;;  %v8094_v7 = vor.u32 %v10954_v43, %v8091_v20 }
 0x4c8   :  { %6125 = vmatpush.bf16.msra.mxu3 %v10570_v5  ;;  %v7803_v30 = vld [vmem:[%s17543_s6 + $0x190] sm:$0xf0]  ;;  %v7678_v2 = vor.u32 %v10850_v47, %v7675_v51  ;;  %v10878_v6 = vld [vmem:[%s17543_s6 + $0x164] sm:$0xf] }
 0x4c9   :  { %6113 = vmatpush.bf16.msra.mxu2 %v10426_v35  ;;  %v7947_v53 = vld [vmem:[%s17543_s6 + $0x2b0] sm:$0xf0]  ;;  %v7806_v26 = vor.u32 %v10882_v12, %v7803_v30  ;;  %v10914_v11 = vld [vmem:[%s17543_s6 + $0x284] sm:$0xf] }
 0x4ca   :  { %6088 = vmatmul.bf16.vlgmr.msra.gmra.mxu0 %v13809_v15  ;;  %6101 = vmatmul.bf16.vlgmr.msra.gmra.mxu1 %v13819_v34  ;;  %v8075_v25 = vld [vmem:[%s17543_s6 + $0x3b0] sm:$0xf0]  ;;  %v7950_v46 = vor.u32 %v10918_v63, %v7947_v53  ;;  %v10946_v18 = vld [vmem:[%s17543_s6 + $0x384] sm:$0xf] }
 0x4cb   :  { %6132 = vmatpush.bf16.msrb.mxu0 %v7726_v54  ;;  %6145 = vmatpush.bf16.msrb.mxu1 %v7854_v58  ;;  %v10950_v54 = vld [vmem:[%s17543_s6 + $0x3a4] sm:$0xf]  ;;  %v7659_v14 = vld [vmem:[%s17543_s6 + $0x70] sm:$0xf0] }
 0x4cc   :  { %6126 = vmatpush.bf16.msra.mxu3 %v10554_v16  ;;  %6114 = vmatmul.bf16.vlgmr.msra.gmra.mxu2 %v13855_v45  ;;  %v10846_v58 = vld [vmem:[%s17543_s6 + $0x64] sm:$0xf]  ;;  %v7787_v4 = vld [vmem:[%s17543_s6 + $0x170] sm:$0xf0]  ;;  %v8078_v5 = vor.u32 %v10950_v54, %v8075_v25 }
 0x4cd   :  { %6158 = vmatpush.bf16.msrb.mxu2 %v7982_v41  ;;  %v7931_v39 = vld [vmem:[%s17543_s6 + $0x290] sm:$0xf0]  ;;  %v7662_v57 = vor.u32 %v10846_v58, %v7659_v14  ;;  %v7790_v9 = vor.u32 %v10878_v6, %v7787_v4  ;;  %v10910_v49 = vld [vmem:[%s17543_s6 + $0x264] sm:$0xf]  ;;  %v11689_v4 = vmov 1  }
 0x4ce   :  { %v8059_v22 = vld [vmem:[%s17543_s6 + $0x390] sm:$0xf0]  ;;  %v7934_v59 = vor.u32 %v10914_v11, %v7931_v39  ;;  %v10942_v61 = vld [vmem:[%s17543_s6 + $0x364] sm:$0xf]  ;;  %11639 = vset.pattern.permute.xlu1 %v11689_v4 }
 0x4cf   :  { %6133 = vmatpush.bf16.msrb.mxu0 %v7710_v0  ;;  %6146 = vmatpush.bf16.msrb.mxu1 %v7838_v23  ;;  %v10842_v0 = vld [vmem:[%s17543_s6 + $0x44] sm:$0xf]  ;;  %v7643_v56 = vld [vmem:[%s17543_s6 + $0x50] sm:$0xf0]  ;;  %v8062_v32 = vor.u32 %v10946_v18, %v8059_v22  ;;  %v11690_v18 = vmov 0  }
 0x4d0   :  { %6171 = vmatpush.bf16.msrb.mxu3 %v8110_v1  ;;  %v10874_v23 = vld [vmem:[%s17543_s6 + $0x144] sm:$0xf]  ;;  %v7771_v35 = vld [vmem:[%s17543_s6 + $0x150] sm:$0xf0]  ;;  %v7646_v41 = vor.u32 %v10842_v0, %v7643_v56  ;;  %11638 = vset.pattern.permute.xlu0 %v11690_v18 }
 0x4d1   :  { %6127 = vmatmul.bf16.vlgmr.msra.gmra.mxu3 %v13865_v10  ;;  %6159 = vmatpush.bf16.msrb.mxu2 %v7966_v19  ;;  %v7915_v16 = vld [vmem:[%s17543_s6 + $0x270] sm:$0xf0]  ;;  %v7774_v1 = vor.u32 %v10874_v23, %v7771_v35  ;;  %v10838_v36 = vld [vmem:[%s17543_s6 + $0x24] sm:$0xf] }
 0x4d2   :  { %v8043_v40 = vld [vmem:[%s17543_s6 + $0x370] sm:$0xf0]  ;;  %v10870_v43 = vld [vmem:[%s17543_s6 + $0x124] sm:$0xf] }
 0x4d3   :  { %6134 = vmatpush.bf16.msrb.mxu0 %v7694_v52  ;;  %6147 = vmatpush.bf16.msrb.mxu1 %v7822_v33  ;;  %v7627_v38 = vld [vmem:[%s17543_s6 + $0x30] sm:$0xf0]  ;;  %v7918_v52 = vor.u32 %v10910_v49, %v7915_v16  ;;  %v10906_v33 = vld [vmem:[%s17543_s6 + $0x244] sm:$0xf]  ;;  %v8046_v47 = vor.u32 %v10942_v61, %v8043_v40 }
 0x4d4   :  { %6172 = vmatpush.bf16.msrb.mxu3 %v8094_v7  ;;  %v7755_v20 = vld [vmem:[%s17543_s6 + $0x130] sm:$0xf0]  ;;  %v10938_v19 = vld [vmem:[%s17543_s6 + $0x344] sm:$0xf]  ;;  %v7630_v30 = vor.u32 %v10838_v36, %v7627_v38 }
 0x4d5   :  { %6160 = vmatpush.bf16.msrb.mxu2 %v7950_v46  ;;  %v7899_v51 = vld [vmem:[%s17543_s6 + $0x250] sm:$0xf0]  ;;  %v10834_v7 = vld [vmem:[%s17543_s6 + $0x4] sm:$0xf]  ;;  %v7758_v54 = vor.u32 %v10870_v43, %v7755_v20 }
 0x4d6   :  { %v8027_v12 = vld [vmem:[%s17543_s6 + $0x350] sm:$0xf0]  ;;  %v10866_v53 = vld [vmem:[%s17543_s6 + $0x104] sm:$0xf]  ;;  %v7902_v14 = vor.u32 %v10906_v33, %v7899_v51 }
 0x4d7   :  { %6135 = vmatpush.bf16.msrb.mxu0 %v7678_v2  ;;  %6148 = vmatpush.bf16.msrb.mxu1 %v7806_v26  ;;  %v7611_v63 = vld [vmem:[%s17543_s6 + $0x10] sm:$0xf0]  ;;  %v906_v2 = vpop.xlane.xlu2 %905  ;;  %v11022_v26 = vld [vmem:[%s17543_s6 + $0x5e4] sm:$0xf] }
 0x4d8   :  { %6173 = vmatpush.bf16.msrb.mxu3 %v8078_v5  ;;  %v7739_v25 = vld [vmem:[%s17543_s6 + $0x110] sm:$0xf0]  ;;  %v1063_v58 = vrot.slane %v906_v2, 4  ;;  %v10990_v46 = vld [vmem:[%s17543_s6 + $0x4e4] sm:$0xf]  ;;  %v8030_v5 = vor.u32 %v10938_v19, %v8027_v12  ;;  %v7614_v0 = vor.u32 %v10834_v7, %v7611_v63 }
 0x4d9   :  { %6161 = vmatpush.bf16.msrb.mxu2 %v7934_v59  ;;  %v8235_v6 = vld [vmem:[%s17543_s6 + $0x4f0] sm:$0xf0]  ;;  %v10902_v39 = vld [vmem:[%s17543_s6 + $0x224] sm:$0xf]  ;;  %v7742_v23 = vor.u32 %v10866_v53, %v7739_v25 }
 0x4da   :  { %v8363_v11 = vld [vmem:[%s17543_s6 + $0x5f0] sm:$0xf0]  ;;  %v1064_v22 = vadd.f32 %v1063_v58, %v906_v2  ;;  %v10934_v56 = vld [vmem:[%s17543_s6 + $0x324] sm:$0xf]  ;;  %v8238_v35 = vor.u32 %v10990_v46, %v8235_v6 }
 0x4db   :  { %6136 = vmatpush.bf16.msrb.mxu0 %v7662_v57  ;;  %6149 = vmatpush.bf16.msrb.mxu1 %v7790_v9  ;;  %v7883_v57 = vld [vmem:[%s17543_s6 + $0x230] sm:$0xf0]  ;;  %v1071_v9 = vmax.f32 %v906_v2, %v1063_v58  ;;  %v8366_v61 = vor.u32 %v11022_v26, %v8363_v11  ;;  %v10930_v20 = vld [vmem:[%s17543_s6 + $0x304] sm:$0xf] }
 0x4dc   :  { %6174 = vmatpush.bf16.msrb.mxu3 %v8062_v32  ;;  %v8011_v59 = vld [vmem:[%s17543_s6 + $0x330] sm:$0xf0]  ;;  %v10986_v32 = vld [vmem:[%s17543_s6 + $0x4c4] sm:$0xf]  ;;  %v1065_v16 = vrot.slane %v1064_v22, 2  ;;  %v7886_v40 = vor.u32 %v10902_v39, %v7883_v57 }
 0x4dd   :  { %6162 = vmatpush.bf16.msrb.mxu2 %v7918_v52  ;;  %v8219_v49 = vld [vmem:[%s17543_s6 + $0x4d0] sm:$0xf0]  ;;  %v8014_v38 = vor.u32 %v10934_v56, %v8011_v59  ;;  %v10898_v52 = vld [vmem:[%s17543_s6 + $0x204] sm:$0xf] }
 0x4de   :  { %v8347_v36 = vld [vmem:[%s17543_s6 + $0x5d0] sm:$0xf0]  ;;  %v1066_v33 = vadd.f32 %v1065_v16, %v1064_v22  ;;  %v11054_v51 = vld [vmem:[%s17543_s6 + $0x6e4] sm:$0xf] }
 0x4df   :  { %6137 = vmatpush.bf16.msrb.mxu0 %v7646_v41  ;;  %6150 = vmatpush.bf16.msrb.mxu1 %v7774_v1  ;;  %v1072_v41 = vrot.slane %v1071_v9, 2  ;;  %v11018_v1 = vld [vmem:[%s17543_s6 + $0x5c4] sm:$0xf]  ;;  %v7867_v43 = vld [vmem:[%s17543_s6 + $0x210] sm:$0xf0]  ;;  %v571_v12 = vpop.xlane.xlu2 %570 }
 0x4e0   :  { %6175 = vmatpush.bf16.msrb.mxu3 %v8046_v47  ;;  %v7995_v47 = vld [vmem:[%s17543_s6 + $0x310] sm:$0xf0]  ;;  %v8350_v7 = vor.u32 %v11018_v1, %v8347_v36  ;;  %v11086_v63 = vld [vmem:[%s17543_s6 + $0x7e4] sm:$0xf]  ;;  %v1067_v2 = vrot.slane %v1066_v33, 1  ;;  %v735_v25 = vrot.slane %v571_v12, 4  ;;  %v7870_v26 = vor.u32 %v10898_v52, %v7867_v43 }
 0x4e1   :  { %6163 = vmatpush.bf16.msrb.mxu2 %v7902_v14  ;;  %v8491_v19 = vld [vmem:[%s17543_s6 + $0x6f0] sm:$0xf0]  ;;  %v10982_v58 = vld [vmem:[%s17543_s6 + $0x4a4] sm:$0xf]  ;;  %v7998_v6 = vor.u32 %v10930_v20, %v7995_v47 }
 0x4e2   :  { %v8619_v53 = vld [vmem:[%s17543_s6 + $0x7f0] sm:$0xf0]  ;;  %v17613_v46 = vld [vmem:[#allocation9_spill] sm:$0xff]  ;;  %v1068_v18 = vadd.f32 %v1067_v2, %v1066_v33  ;;  %v736_v22 = vadd.f32 %v735_v25, %v571_v12 }
 0x4e3   :  { %6138 = vmatpush.bf16.msrb.mxu0 %v7630_v30  ;;  %6151 = vmatpush.bf16.msrb.mxu1 %v7758_v54  ;;  %v8222_v30 = vor.u32 %v10986_v32, %v8219_v49  ;;  %v1073_v54 = vmax.f32 %v1071_v9, %v1072_v41  ;;  %v8203_v14 = vld [vmem:[%s17543_s6 + $0x4b0] sm:$0xf0]  ;;  %v11014_v11 = vld [vmem:[%s17543_s6 + $0x5a4] sm:$0xf]  ;;  %v743_v9 = vmax.f32 %v571_v12, %v735_v25 }
 0x4e4   :  { %6176 = vmatpush.bf16.msrb.mxu3 %v8030_v5  ;;  %v8494_v5 = vor.u32 %v11054_v51, %v8491_v19  ;;  %v8331_v39 = vld [vmem:[%s17543_s6 + $0x5b0] sm:$0xf0]  ;;  %v11050_v57 = vld [vmem:[%s17543_s6 + $0x6c4] sm:$0xf]  ;;  %v8622_v56 = vor.u32 %v11086_v63, %v8619_v53  ;;  %v8206_v32 = vor.u32 %v10982_v58, %v8203_v14  ;;  %v1069_v43 = vmul.f32 %v1068_v18, %v12441_v37 }
 0x4e5   :  { %6164 = vmatpush.bf16.msrb.mxu2 %v7886_v40  ;;  %v8475_v59 = vld [vmem:[%s17543_s6 + $0x6d0] sm:$0xf0]  ;;  %v10978_v49 = vld [vmem:[%s17543_s6 + $0x484] sm:$0xf]  ;;  %v737_v40 = vrot.slane %v736_v22, 2  ;;  %v744_v1 = vrot.slane %v743_v9, 2  ;;  %v8334_v36 = vor.u32 %v11014_v11, %v8331_v39 }
 0x4e6   :  { %v8187_v16 = vld [vmem:[%s17543_s6 + $0x490] sm:$0xf0]  ;;  %v11010_v41 = vld [vmem:[%s17543_s6 + $0x584] sm:$0xf]  ;;  %v8478_v52 = vor.u32 %v11050_v57, %v8475_v59 }
 0x4e7   :  { %6139 = vmatpush.bf16.msrb.mxu0 %v7614_v0  ;;  %6152 = vmatpush.bf16.msrb.mxu1 %v7742_v23  ;;  %v17614_v0 = vld [vmem:[#allocation10_spill] sm:$0xff]  ;;  %v11082_v23 = vld [vmem:[%s17543_s6 + $0x7c4] sm:$0xf]  ;;  %v738_v20 = vadd.f32 %v737_v40, %v736_v22  ;;  %v745_v33 = vmax.f32 %v743_v9, %v744_v1  ;;  %v8459_v19 = vld [vmem:[%s17543_s6 + $0x6b0] sm:$0xf0]  ;;  %v8190_v63 = vor.u32 %v10978_v49, %v8187_v16 }
 0x4e8   :  { %6177 = vmatpush.bf16.msrb.mxu3 %v8014_v38  ;;  %v8315_v38 = vld [vmem:[%s17543_s6 + $0x590] sm:$0xf0]  ;;  %v11046_v51 = vld [vmem:[%s17543_s6 + $0x6a4] sm:$0xf] }
 0x4e9   :  { %6165 = vmatpush.bf16.msrb.mxu2 %v7870_v26  ;;  %v17615_v12 = vld [vmem:[#allocation11_spill] sm:$0xff]  ;;  %v8318_v53 = vor.u32 %v11010_v41, %v8315_v38  ;;  %v11078_v2 = vld [vmem:[%s17543_s6 + $0x7a4] sm:$0xf]  ;;  %v739_v58 = vrot.slane %v738_v20, 1  ;;  %v746_v14 = vrot.slane %v745_v33, 1  ;;  %v8462_v57 = vor.u32 %v11046_v51, %v8459_v19 }
 0x4ea   :  { %6140 = vmatmul.bf16.vlgmr.msrb.gmra.mxu0 %v17613_v46  ;;  %6153 = vmatmul.bf16.vlgmr.msrb.gmra.mxu1 %v17614_v0  ;;  %v8587_v25 = vld [vmem:[%s17543_s6 + $0x7b0] sm:$0xf0]  ;;  %v10974_v11 = vld [vmem:[%s17543_s6 + $0x464] sm:$0xf] }
 0x4eb   :  { %6184 = vmatpush.bf16.msra.mxu0 %v8238_v35  ;;  %6197 = vmatpush.bf16.msra.mxu1 %v8366_v61  ;;  %v8603_v35 = vld [vmem:[%s17543_s6 + $0x7d0] sm:$0xf0]  ;;  %v1074_v61 = vrot.slane %v1073_v54, 1  ;;  %v740_v22 = vadd.f32 %v739_v58, %v738_v20  ;;  %v8590_v9 = vor.u32 %v11078_v2, %v8587_v25  ;;  %v11042_v59 = vld [vmem:[%s17543_s6 + $0x684] sm:$0xf]  ;;  %v747_v41 = vmax.f32 %v745_v33, %v746_v14 }
 0x4ec   :  { %6178 = vmatpush.bf16.msrb.mxu3 %v7998_v6  ;;  %v8606_v47 = vor.u32 %v11082_v23, %v8603_v35  ;;  %6166 = vmatmul.bf16.vlgmr.msrb.gmra.mxu2 %v17615_v12  ;;  %v17616_v6 = vld [vmem:[#allocation12_spill] sm:$0xff]  ;;  %v8171_v39 = vld [vmem:[%s17543_s6 + $0x470] sm:$0xf0]  ;;  %v10970_v40 = vld [vmem:[%s17543_s6 + $0x444] sm:$0xf] }
 0x4ed   :  { %6210 = vmatpush.bf16.msra.mxu2 %v8494_v5  ;;  %v1075_v26 = vmax.f32 %v1073_v54, %v1074_v61  ;;  %v11006_v54 = vld [vmem:[%s17543_s6 + $0x564] sm:$0xf]  ;;  %v8299_v18 = vld [vmem:[%s17543_s6 + $0x570] sm:$0xf0]  ;;  %v8174_v35 = vor.u32 %v10974_v11, %v8171_v39  ;;  %v741_v16 = vmul.f32 %v740_v22, %v12441_v37  ;;  %v5907_v25 = vpop.f32.mrf.mxu2 }
 0x4ee   :  { %v8443_v23 = vld [vmem:[%s17543_s6 + $0x690] sm:$0xf0]  ;;  %v8302_v61 = vor.u32 %v11006_v54, %v8299_v18  ;;  %v11038_v33 = vld [vmem:[%s17543_s6 + $0x664] sm:$0xf] }
 0x4ef   :  { %6185 = vmatpush.bf16.msra.mxu0 %v8222_v30  ;;  %6198 = vmatpush.bf16.msra.mxu1 %v8350_v7  ;;  %v5881_v30 = vpop.f32.mrf.mxu0  ;;  %v5894_v7 = vpop.f32.mrf.mxu1  ;;  %v8571_v49 = vld [vmem:[%s17543_s6 + $0x790] sm:$0xf0]  ;;  %v8446_v38 = vor.u32 %v11042_v59, %v8443_v23  ;;  %v10966_v58 = vld [vmem:[%s17543_s6 + $0x424] sm:$0xf] }
 0x4f0   :  { %6223 = vmatpush.bf16.msra.mxu3 %v8622_v56  ;;  %v5882_v5 = vadd.f32 %v5881_v30, %v13044_v62  ;;  %v1076_v56 = vsel %vm748_vm5, %v1069_v43, %v1075_v26  ;;  %v8155_v1 = vld [vmem:[%s17543_s6 + $0x450] sm:$0xf0]  ;;  %v749_v43 = vsel %vm748_vm5, %v741_v16, %v747_v41  ;;  %v5920_v26 = vpop.f32.mrf.mxu3  ;;  %v10998_v39 = vld [vmem:[%s17543_s6 + $0x524] sm:$0xf] }
 0x4f1   :  { %6179 = vmatmul.bf16.vlgmr.msrb.gmra.mxu3 %v17616_v6  ;;  %6211 = vmatpush.bf16.msra.mxu2 %v8478_v52  ;;  %v11002_v52 = vld [vmem:[%s17543_s6 + $0x544] sm:$0xf]  ;;  %v8283_v37 = vld [vmem:[%s17543_s6 + $0x550] sm:$0xf0] }
 0x4f2   :  { %v5895_v62 = vadd.f32 %v5894_v7, %v5882_v5  ;;  %v8158_v7 = vor.u32 %v10970_v40, %v8155_v1  ;;  %v8286_v2 = vor.u32 %v11002_v52, %v8283_v37  ;;  %v8139_v14 = vld [vmem:[%s17543_s6 + $0x430] sm:$0xf0]  ;;  %v11034_v18 = vld [vmem:[%s17543_s6 + $0x644] sm:$0xf] }
 0x4f3   :  { %6186 = vmatpush.bf16.msra.mxu0 %v8206_v32  ;;  %6199 = vmatpush.bf16.msra.mxu1 %v8334_v36  ;;  %v11074_v32 = vld [vmem:[%s17543_s6 + $0x784] sm:$0xf]  ;;  %v1175_v36 = vrot.slane %v1076_v56, 7  ;;  %v8411_v22 = vld [vmem:[%s17543_s6 + $0x650] sm:$0xf0] }
 0x4f4   :  { %6224 = vmatpush.bf16.msra.mxu3 %v8606_v47  ;;  %v8574_v20 = vor.u32 %v11074_v32, %v8571_v49  ;;  %v8427_v47 = vld [vmem:[%s17543_s6 + $0x670] sm:$0xf0]  ;;  %v5908_v5 = vadd.f32 %v5907_v25, %v5895_v62  ;;  %v11066_v56 = vld [vmem:[%s17543_s6 + $0x744] sm:$0xf]  ;;  %v8414_v41 = vor.u32 %v11034_v18, %v8411_v22 }
 0x4f5   :  { %6212 = vmatpush.bf16.msra.mxu2 %v8462_v57  ;;  %v1177_v19 = vsel %vm1149_vm1, %v749_v43, %v1175_v36  ;;  %v8430_v11 = vor.u32 %v11038_v33, %v8427_v47  ;;  %v8267_v57 = vld [vmem:[%s17543_s6 + $0x530] sm:$0xf0]  ;;  %v10962_v23 = vld [vmem:[%s17543_s6 + $0x404] sm:$0xf] }
 0x4f6   :  { %7094 = vperm.xlu1 %11639, %v1177_v19   ;;  %7071 = vperm.xlu0 %11638, %v1177_v19   ;;  %v5921_v62 = vadd.f32 %v5920_v26, %v5908_v5  ;;  %v8539_v59 = vld [vmem:[%s17543_s6 + $0x750] sm:$0xf0]  ;;  %v10994_v49 = vld [vmem:[%s17543_s6 + $0x504] sm:$0xf] }
 0x4f7   :  { %6187 = vmatpush.bf16.msra.mxu0 %v8190_v63  ;;  %6200 = vmatpush.bf16.msra.mxu1 %v8318_v53  ;;  %v5896_v51 = vpop.f32.mrf.mxu1  ;;  %v5883_v30 = vpop.f32.mrf.mxu0  ;;  %v11070_v63 = vld [vmem:[%s17543_s6 + $0x764] sm:$0xf]  ;;  %v8555_v53 = vld [vmem:[%s17543_s6 + $0x770] sm:$0xf0]  ;;  %v8542_v36 = vor.u32 %v11066_v56, %v8539_v59 }
 0x4f8   :  { %6225 = vmatpush.bf16.msra.mxu3 %v8590_v9  ;;  %v8558_v54 = vor.u32 %v11070_v63, %v8555_v53  ;;  %v8142_v9 = vor.u32 %v10966_v58, %v8139_v14  ;;  %v8123_v32 = vld [vmem:[%s17543_s6 + $0x410] sm:$0xf0]  ;;  %v11150_v1 = vld [vmem:[%s17543_s6 + $0x9e4] sm:$0xf]  ;;  %v5922_v63 = vpop.f32.mrf.mxu3 }
 0x4f9   :  { %6213 = vmatpush.bf16.msra.mxu2 %v8446_v38  ;;  %v8251_v16 = vld [vmem:[%s17543_s6 + $0x510] sm:$0xf0]  ;;  %v11030_v52 = vld [vmem:[%s17543_s6 + $0x624] sm:$0xf]  ;;  %v8126_v33 = vor.u32 %v10962_v23, %v8123_v32 }
 0x4fa   :  { %v8747_v40 = vld [vmem:[%s17543_s6 + $0x8f0] sm:$0xf0]  ;;  %v11062_v47 = vld [vmem:[%s17543_s6 + $0x724] sm:$0xf]  ;;  %v8254_v30 = vor.u32 %v10994_v49, %v8251_v16 }
 0x4fb   :  { %6188 = vmatpush.bf16.msra.mxu0 %v8174_v35  ;;  %6201 = vmatpush.bf16.msra.mxu1 %v8302_v61  ;;  %v8270_v35 = vor.u32 %v10998_v39, %v8267_v57  ;;  %v11118_v61 = vld [vmem:[%s17543_s6 + $0x8e4] sm:$0xf]  ;;  %v8875_v38 = vld [vmem:[%s17543_s6 + $0x9f0] sm:$0xf0] }
 0x4fc   :  { %6226 = vmatpush.bf16.msra.mxu3 %v8574_v20  ;;  %v8395_v37 = vld [vmem:[%s17543_s6 + $0x630] sm:$0xf0]  ;;  %v8750_v53 = vor.u32 %v11118_v61, %v8747_v40  ;;  %v8878_v25 = vor.u32 %v11150_v1, %v8875_v38  ;;  %v11146_v14 = vld [vmem:[%s17543_s6 + $0x9c4] sm:$0xf] }
 0x4fd   :  { %6214 = vmatpush.bf16.msra.mxu2 %v8430_v11  ;;  %v8523_v51 = vld [vmem:[%s17543_s6 + $0x730] sm:$0xf0]  ;;  %v8398_v26 = vor.u32 %v11030_v52, %v8395_v37  ;;  %v11026_v57 = vld [vmem:[%s17543_s6 + $0x604] sm:$0xf] }
 0x4fe   :  { %v8731_v58 = vld [vmem:[%s17543_s6 + $0x8d0] sm:$0xf0]  ;;  %11640 = vset.pattern.permute.xlu0 %v11689_v4  ;;  %v8526_v39 = vor.u32 %v11062_v47, %v8523_v51  ;;  %v11058_v18 = vld [vmem:[%s17543_s6 + $0x704] sm:$0xf] }
 0x4ff   :  { %6189 = vmatpush.bf16.msra.mxu0 %v8158_v7  ;;  %6202 = vmatpush.bf16.msra.mxu1 %v8286_v2  ;;  %v5933_v43 = vpop.f32.mrf.mxu0  ;;  %v5946_v20 = vpop.f32.mrf.mxu1  ;;  %v11114_v2 = vld [vmem:[%s17543_s6 + $0x8c4] sm:$0xf]  ;;  %v8859_v5 = vld [vmem:[%s17543_s6 + $0x9d0] sm:$0xf0] }
 0x500   :  { %6227 = vmatpush.bf16.msra.mxu3 %v8558_v54  ;;  %v5934_v19 = vadd.f32 %v5933_v43, %v5921_v62  ;;  %v5909_v7 = vpop.f32.mrf.mxu2  ;;  %v8379_v54 = vld [vmem:[%s17543_s6 + $0x610] sm:$0xf0]  ;;  %v11182_v22 = vld [vmem:[%s17543_s6 + $0xae4] sm:$0xf]  ;;  %v8862_v23 = vor.u32 %v11146_v14, %v8859_v5 }
 0x501   :  { %6215 = vmatpush.bf16.msra.mxu2 %v8414_v41  ;;  %v8507_v4 = vld [vmem:[%s17543_s6 + $0x710] sm:$0xf0]  ;;  %v11214_v56 = vld [vmem:[%s17543_s6 + $0xbe4] sm:$0xf] }
 0x502   :  { %v5947_v11 = vadd.f32 %v5946_v20, %v5934_v19  ;;  %v9003_v62 = vld [vmem:[%s17543_s6 + $0xaf0] sm:$0xf0]  ;;  %v11110_v32 = vld [vmem:[%s17543_s6 + $0x8a4] sm:$0xf]  ;;  %v8510_v16 = vor.u32 %v11058_v18, %v8507_v4  ;;  %v5972_v20 = vpop.f32.mrf.mxu3 }
 0x503   :  { %6190 = vmatpush.bf16.msra.mxu0 %v8142_v9  ;;  %6203 = vmatpush.bf16.msra.mxu1 %v8270_v35  ;;  %v8734_v9 = vor.u32 %v11114_v2, %v8731_v58  ;;  %v9131_v59 = vld [vmem:[%s17543_s6 + $0xbf0] sm:$0xf0]  ;;  %v8382_v35 = vor.u32 %v11026_v57, %v8379_v54  ;;  %v9006_v41 = vor.u32 %v11182_v22, %v9003_v62  ;;  %v11142_v61 = vld [vmem:[%s17543_s6 + $0x9a4] sm:$0xf] }
 0x504   :  { %6228 = vmatpush.bf16.msra.mxu3 %v8542_v36  ;;  %v8715_v49 = vld [vmem:[%s17543_s6 + $0x8b0] sm:$0xf0]  ;;  %v9134_v38 = vor.u32 %v11214_v56, %v9131_v59  ;;  %v11178_v52 = vld [vmem:[%s17543_s6 + $0xac4] sm:$0xf] }
 0x505   :  { %6216 = vmatpush.bf16.msra.mxu2 %v8398_v26  ;;  %v8843_v40 = vld [vmem:[%s17543_s6 + $0x9b0] sm:$0xf0]  ;;  %v11210_v47 = vld [vmem:[%s17543_s6 + $0xbc4] sm:$0xf] }
 0x506   :  { %v8987_v37 = vld [vmem:[%s17543_s6 + $0xad0] sm:$0xf0]  ;;  %v11106_v7 = vld [vmem:[%s17543_s6 + $0x884] sm:$0xf] }
 0x507   :  { %6191 = vmatpush.bf16.msra.mxu0 %v8126_v33  ;;  %6204 = vmatpush.bf16.msra.mxu1 %v8254_v30  ;;  %v5935_v1 = vpop.f32.mrf.mxu0  ;;  %v5948_v36 = vpop.f32.mrf.mxu1  ;;  %v8718_v33 = vor.u32 %v11110_v32, %v8715_v49  ;;  %v9115_v51 = vld [vmem:[%s17543_s6 + $0xbd0] sm:$0xf0]  ;;  %v8846_v30 = vor.u32 %v11142_v61, %v8843_v40  ;;  %v11138_v2 = vld [vmem:[%s17543_s6 + $0x984] sm:$0xf] }
 0x508   :  { %6229 = vmatpush.bf16.msra.mxu3 %v8526_v39  ;;  %v5959_v43 = vpop.f32.mrf.mxu2  ;;  %v8699_v63 = vld [vmem:[%s17543_s6 + $0x890] sm:$0xf0]  ;;  %v9118_v58 = vor.u32 %v11210_v47, %v9115_v51  ;;  %v11174_v14 = vld [vmem:[%s17543_s6 + $0xaa4] sm:$0xf] }
 0x509   :  { %6217 = vmatpush.bf16.msra.mxu2 %v8382_v35  ;;  %v5960_v19 = vadd.f32 %v5959_v43, %v5947_v11  ;;  %v8971_v5 = vld [vmem:[%s17543_s6 + $0xab0] sm:$0xf0]  ;;  %v8702_v11 = vor.u32 %v11106_v7, %v8699_v63  ;;  %v11206_v39 = vld [vmem:[%s17543_s6 + $0xba4] sm:$0xf] }
 0x50a   :  { %6192 = vmatmul.bf16.vlgmr.msra.gmra.mxu0 %v13040_v42  ;;  %6205 = vmatmul.bf16.vlgmr.msra.gmra.mxu1 %v13042_v13  ;;  %v9099_v57 = vld [vmem:[%s17543_s6 + $0xbb0] sm:$0xf0]  ;;  %v11102_v18 = vld [vmem:[%s17543_s6 + $0x864] sm:$0xf]  ;;  %v8974_v22 = vor.u32 %v11174_v14, %v8971_v5 }
 0x50b   :  { %6236 = vmatpush.bf16.msrb.mxu0 %v8750_v53  ;;  %6249 = vmatpush.bf16.msrb.mxu1 %v8878_v25  ;;  %v8990_v53 = vor.u32 %v11178_v52, %v8987_v37  ;;  %v8827_v25 = vld [vmem:[%s17543_s6 + $0x990] sm:$0xf0]  ;;  %v5973_v26 = vadd.f32 %v5972_v20, %v5960_v19  ;;  %v11134_v62 = vld [vmem:[%s17543_s6 + $0x964] sm:$0xf] }
 0x50c   :  { %6230 = vmatpush.bf16.msra.mxu3 %v8510_v16  ;;  %6218 = vmatmul.bf16.vlgmr.msra.gmra.mxu2 %v13054_v60  ;;  %v8830_v54 = vor.u32 %v11138_v2, %v8827_v25  ;;  %v8683_v4 = vld [vmem:[%s17543_s6 + $0x870] sm:$0xf0]  ;;  %v11170_v35 = vld [vmem:[%s17543_s6 + $0xa84] sm:$0xf] }
 0x50d   :  { %6262 = vmatpush.bf16.msrb.mxu2 %v9006_v41  ;;  %v8955_v32 = vld [vmem:[%s17543_s6 + $0xa90] sm:$0xf0]  ;;  %v5974_v41 = vpop.f32.mrf.mxu3  ;;  %v8686_v61 = vor.u32 %v11102_v18, %v8683_v4  ;;  %v11202_v40 = vld [vmem:[%s17543_s6 + $0xb84] sm:$0xf] }
 0x50e   :  { %v9083_v1 = vld [vmem:[%s17543_s6 + $0xb90] sm:$0xf0]  ;;  %v8958_v43 = vor.u32 %v11170_v35, %v8955_v32  ;;  %v11130_v20 = vld [vmem:[%s17543_s6 + $0x944] sm:$0xf] }
 0x50f   :  { %6237 = vmatpush.bf16.msrb.mxu0 %v8734_v9  ;;  %6250 = vmatpush.bf16.msrb.mxu1 %v8862_v23  ;;  %v8811_v9 = vld [vmem:[%s17543_s6 + $0x970] sm:$0xf0]  ;;  %v5985_v56 = vpop.f32.mrf.mxu0  ;;  %v5998_v59 = vpop.f32.mrf.mxu1  ;;  %v9102_v23 = vor.u32 %v11206_v39, %v9099_v57  ;;  %v9086_v47 = vor.u32 %v11202_v40, %v9083_v1  ;;  %v11166_v51 = vld [vmem:[%s17543_s6 + $0xa64] sm:$0xf] }
 0x510   :  { %6275 = vmatpush.bf16.msrb.mxu3 %v9134_v38  ;;  %v5986_v49 = vadd.f32 %v5985_v56, %v5973_v26  ;;  %v5961_v16 = vpop.f32.mrf.mxu2  ;;  %v8814_v36 = vor.u32 %v11134_v62, %v8811_v9  ;;  %v11098_v38 = vld [vmem:[%s17543_s6 + $0x844] sm:$0xf]  ;;  %v8667_v52 = vld [vmem:[%s17543_s6 + $0x850] sm:$0xf0] }
 0x511   :  { %6231 = vmatmul.bf16.vlgmr.msra.gmra.mxu3 %v13071_v17  ;;  %6263 = vmatpush.bf16.msrb.mxu2 %v8990_v53  ;;  %v8939_v19 = vld [vmem:[%s17543_s6 + $0xa70] sm:$0xf0]  ;;  %v11198_v7 = vld [vmem:[%s17543_s6 + $0xb64] sm:$0xf] }
 0x512   :  { %v5999_v37 = vadd.f32 %v5998_v59, %v5986_v49  ;;  %v9067_v63 = vld [vmem:[%s17543_s6 + $0xb70] sm:$0xf0]  ;;  %v11094_v2 = vld [vmem:[%s17543_s6 + $0x824] sm:$0xf]  ;;  %v8942_v26 = vor.u32 %v11166_v51, %v8939_v19 }
 0x513   :  { %6238 = vmatpush.bf16.msrb.mxu0 %v8718_v33  ;;  %6251 = vmatpush.bf16.msrb.mxu1 %v8846_v30  ;;  %v8795_v33 = vld [vmem:[%s17543_s6 + $0x950] sm:$0xf0]  ;;  %v8670_v30 = vor.u32 %v11098_v38, %v8667_v52  ;;  %v9070_v39 = vor.u32 %v11198_v7, %v9067_v63  ;;  %v11162_v57 = vld [vmem:[%s17543_s6 + $0xa44] sm:$0xf] }
 0x514   :  { %6276 = vmatpush.bf16.msrb.mxu3 %v9118_v58  ;;  %v8798_v53 = vor.u32 %v11130_v20, %v8795_v33  ;;  %v8651_v25 = vld [vmem:[%s17543_s6 + $0x830] sm:$0xf0]  ;;  %v11126_v58 = vld [vmem:[%s17543_s6 + $0x924] sm:$0xf] }
 0x515   :  { %6264 = vmatpush.bf16.msrb.mxu2 %v8974_v22  ;;  %v8779_v14 = vld [vmem:[%s17543_s6 + $0x930] sm:$0xf0]  ;;  %v8654_v4 = vor.u32 %v11094_v2, %v8651_v25  ;;  %v11194_v22 = vld [vmem:[%s17543_s6 + $0xb44] sm:$0xf]  ;;  %v6024_v52 = vpop.f32.mrf.mxu3 }
 0x516   :  { %v9051_v62 = vld [vmem:[%s17543_s6 + $0xb50] sm:$0xf0]  ;;  %v11090_v9 = vld [vmem:[%s17543_s6 + $0x804] sm:$0xf]  ;;  %v8782_v59 = vor.u32 %v11126_v58, %v8779_v14 }
 0x517   :  { %6239 = vmatpush.bf16.msrb.mxu0 %v8702_v11  ;;  %6252 = vmatpush.bf16.msrb.mxu1 %v8830_v54  ;;  %v5987_v5 = vpop.f32.mrf.mxu0  ;;  %v6000_v11 = vpop.f32.mrf.mxu1  ;;  %v8923_v54 = vld [vmem:[%s17543_s6 + $0xa50] sm:$0xf0]  ;;  %v11122_v35 = vld [vmem:[%s17543_s6 + $0x904] sm:$0xf]  ;;  %v9054_v40 = vor.u32 %v11194_v22, %v9051_v62 }
 0x518   :  { %6277 = vmatpush.bf16.msrb.mxu3 %v9102_v23  ;;  %v6011_v18 = vpop.f32.mrf.mxu2  ;;  %v8635_v23 = vld [vmem:[%s17543_s6 + $0x810] sm:$0xf0]  ;;  %v8926_v49 = vor.u32 %v11162_v57, %v8923_v54  ;;  %v11246_v16 = vld [vmem:[%s17543_s6 + $0xce4] sm:$0xf] }
 0x519   :  { %6265 = vmatpush.bf16.msrb.mxu2 %v8958_v43  ;;  %v6012_v56 = vadd.f32 %v6011_v18, %v5999_v37  ;;  %v8763_v32 = vld [vmem:[%s17543_s6 + $0x910] sm:$0xf0]  ;;  %v8638_v37 = vor.u32 %v11090_v9, %v8635_v23  ;;  %v11190_v43 = vld [vmem:[%s17543_s6 + $0xb24] sm:$0xf] }
 0x51a   :  { %v9259_v41 = vld [vmem:[%s17543_s6 + $0xcf0] sm:$0xf0]  ;;  %v11242_v19 = vld [vmem:[%s17543_s6 + $0xcc4] sm:$0xf] }
 0x51b   :  { %6240 = vmatpush.bf16.msrb.mxu0 %v8686_v61  ;;  %6253 = vmatpush.bf16.msrb.mxu1 %v8814_v36  ;;  %v11278_v61 = vld [vmem:[%s17543_s6 + $0xde4] sm:$0xf]  ;;  %v9387_v1 = vld [vmem:[%s17543_s6 + $0xdf0] sm:$0xf0]  ;;  %v14389_v33 = vadd.f32 %v6024_v52, %v6012_v56  ;;  %v9262_v51 = vor.u32 %v11246_v16, %v9259_v41 }
 0x51c   :  { %6278 = vmatpush.bf16.msrb.mxu3 %v9086_v47  ;;  %v11158_v36 = vld [vmem:[%s17543_s6 + $0xa24] sm:$0xf]  ;;  %v8907_v38 = vld [vmem:[%s17543_s6 + $0xa30] sm:$0xf0]  ;;  %v8766_v47 = vor.u32 %v11122_v35, %v8763_v32 }
 0x51d   :  { %6266 = vmatpush.bf16.msrb.mxu2 %v8942_v26  ;;  %v9035_v20 = vld [vmem:[%s17543_s6 + $0xb30] sm:$0xf0]  ;;  %v8910_v7 = vor.u32 %v11158_v36, %v8907_v38  ;;  %v11154_v26 = vld [vmem:[%s17543_s6 + $0xa04] sm:$0xf] }
 0x51e   :  { %v9243_v63 = vld [vmem:[%s17543_s6 + $0xcd0] sm:$0xf0]  ;;  %v9038_v25 = vor.u32 %v11190_v43, %v9035_v20  ;;  %v11186_v14 = vld [vmem:[%s17543_s6 + $0xb04] sm:$0xf] }
 0x51f   :  { %6241 = vmatpush.bf16.msrb.mxu0 %v8670_v30  ;;  %6254 = vmatpush.bf16.msrb.mxu1 %v8798_v53  ;;  %v9390_v30 = vor.u32 %v11278_v61, %v9387_v1  ;;  %v11274_v53 = vld [vmem:[%s17543_s6 + $0xdc4] sm:$0xf]  ;;  %v9371_v2 = vld [vmem:[%s17543_s6 + $0xdd0] sm:$0xf0]  ;;  %v9246_v54 = vor.u32 %v11242_v19, %v9243_v63 }
 0x520   :  { %6279 = vmatpush.bf16.msrb.mxu3 %v9070_v39  ;;  %v8891_v58 = vld [vmem:[%s17543_s6 + $0xa10] sm:$0xf0]  ;;  %v6013_v5 = vpop.f32.mrf.mxu2  ;;  %v11310_v39 = vld [vmem:[%s17543_s6 + $0xee4] sm:$0xf]  ;;  %v9374_v22 = vor.u32 %v11274_v53, %v9371_v2 }
 0x521   :  { %6267 = vmatpush.bf16.msrb.mxu2 %v8926_v49  ;;  %v9019_v11 = vld [vmem:[%s17543_s6 + $0xb10] sm:$0xf0]  ;;  %v11342_v18 = vld [vmem:[%s17543_s6 + $0xfe4] sm:$0xf]  ;;  %v8894_v62 = vor.u32 %v11154_v26, %v8891_v58  ;;  %v6026_v49 = vpop.f32.mrf.mxu3 }
 0x522   :  { %v9515_v57 = vld [vmem:[%s17543_s6 + $0xef0] sm:$0xf0]  ;;  %v11238_v9 = vld [vmem:[%s17543_s6 + $0xca4] sm:$0xf] }
 0x523   :  { %6242 = vmatpush.bf16.msrb.mxu0 %v8654_v4  ;;  %6255 = vmatpush.bf16.msrb.mxu1 %v8782_v59  ;;  %v9643_v4 = vld [vmem:[%s17543_s6 + $0xff0] sm:$0xf0]  ;;  %v9022_v59 = vor.u32 %v11186_v14, %v9019_v11  ;;  %v9518_v23 = vor.u32 %v11310_v39, %v9515_v57  ;;  %v11270_v35 = vld [vmem:[%s17543_s6 + $0xda4] sm:$0xf] }
 0x524   :  { %6280 = vmatpush.bf16.msrb.mxu3 %v9054_v40  ;;  %v9227_v56 = vld [vmem:[%s17543_s6 + $0xcb0] sm:$0xf0]  ;;  %v9646_v16 = vor.u32 %v11342_v18, %v9643_v4  ;;  %v11306_v41 = vld [vmem:[%s17543_s6 + $0xec4] sm:$0xf] }
 0x525   :  { %6268 = vmatpush.bf16.msrb.mxu2 %v8910_v7  ;;  %v9355_v32 = vld [vmem:[%s17543_s6 + $0xdb0] sm:$0xf0]  ;;  %v9230_v40 = vor.u32 %v11238_v9, %v9227_v56  ;;  %v11338_v1 = vld [vmem:[%s17543_s6 + $0xfc4] sm:$0xf] }
 0x526   :  { %v9499_v61 = vld [vmem:[%s17543_s6 + $0xed0] sm:$0xf0]  ;;  %v9358_v38 = vor.u32 %v11270_v35, %v9355_v32  ;;  %v11234_v52 = vld [vmem:[%s17543_s6 + $0xc84] sm:$0xf] }
 0x527   :  { %6243 = vmatpush.bf16.msrb.mxu0 %v8638_v37  ;;  %6256 = vmatpush.bf16.msrb.mxu1 %v8766_v47  ;;  %v9627_v36 = vld [vmem:[%s17543_s6 + $0xfd0] sm:$0xf0]  ;;  %v9502_v43 = vor.u32 %v11306_v41, %v9499_v61  ;;  %v11266_v20 = vld [vmem:[%s17543_s6 + $0xd84] sm:$0xf]  ;;  %v6037_v11 = vpop.f32.mrf.mxu0  ;;  %v6050_v39 = vpop.f32.mrf.mxu1 }
 0x528   :  { %6281 = vmatpush.bf16.msrb.mxu3 %v9038_v25  ;;  %v9211_v37 = vld [vmem:[%s17543_s6 + $0xc90] sm:$0xf0]  ;;  %v11302_v19 = vld [vmem:[%s17543_s6 + $0xea4] sm:$0xf]  ;;  %v6038_v4 = vadd.f32 %v6037_v11, %v14389_v33 }
 0x529   :  { %6269 = vmatpush.bf16.msrb.mxu2 %v8894_v62  ;;  %v9339_v47 = vld [vmem:[%s17543_s6 + $0xd90] sm:$0xf0]  ;;  %v9214_v7 = vor.u32 %v11234_v52, %v9211_v37  ;;  %v11334_v63 = vld [vmem:[%s17543_s6 + $0xfa4] sm:$0xf] }
 0x52a   :  { %6244 = vmatmul.bf16.vlgmr.msrb.gmra.mxu0 %v13220_v28  ;;  %6257 = vmatmul.bf16.vlgmr.msrb.gmra.mxu1 %v13222_v50  ;;  %v9611_v53 = vld [vmem:[%s17543_s6 + $0xfb0] sm:$0xf0]  ;;  %v9342_v2 = vor.u32 %v11266_v20, %v9339_v47  ;;  %v11230_v25 = vld [vmem:[%s17543_s6 + $0xc64] sm:$0xf] }
 0x52b   :  { %6288 = vmatpush.bf16.msra.mxu0 %v9262_v51  ;;  %6301 = vmatpush.bf16.msra.mxu1 %v9390_v30  ;;  %v9630_v51 = vor.u32 %v11338_v1, %v9627_v36  ;;  %v9483_v30 = vld [vmem:[%s17543_s6 + $0xeb0] sm:$0xf0]  ;;  %v11262_v14 = vld [vmem:[%s17543_s6 + $0xd64] sm:$0xf]  ;;  %v9614_v57 = vor.u32 %v11334_v63, %v9611_v53 }
 0x52c   :  { %6282 = vmatpush.bf16.msrb.mxu3 %v9022_v59  ;;  %6270 = vmatmul.bf16.vlgmr.msrb.gmra.mxu2 %v13244_v3  ;;  %v9195_v26 = vld [vmem:[%s17543_s6 + $0xc70] sm:$0xf0]  ;;  %v9486_v58 = vor.u32 %v11302_v19, %v9483_v30  ;;  %v11330_v62 = vld [vmem:[%s17543_s6 + $0xf84] sm:$0xf] }
 0x52d   :  { %6314 = vmatpush.bf16.msra.mxu2 %v9518_v23  ;;  %v9323_v5 = vld [vmem:[%s17543_s6 + $0xd70] sm:$0xf0]  ;;  %v11226_v59 = vld [vmem:[%s17543_s6 + $0xc44] sm:$0xf]  ;;  %v6051_v23 = vadd.f32 %v6050_v39, %v6038_v4 }
 0x52e   :  { %v9467_v18 = vld [vmem:[%s17543_s6 + $0xe90] sm:$0xf0]  ;;  %v9326_v56 = vor.u32 %v11262_v14, %v9323_v5  ;;  %v11258_v32 = vld [vmem:[%s17543_s6 + $0xd44] sm:$0xf] }
 0x52f   :  { %6289 = vmatpush.bf16.msra.mxu0 %v9246_v54  ;;  %6302 = vmatpush.bf16.msra.mxu1 %v9374_v22  ;;  %v11298_v54 = vld [vmem:[%s17543_s6 + $0xe84] sm:$0xf]  ;;  %v9198_v22 = vor.u32 %v11230_v25, %v9195_v26  ;;  %v9595_v9 = vld [vmem:[%s17543_s6 + $0xf90] sm:$0xf0]  ;;  %v6052_v19 = vpop.f32.mrf.mxu1 }
 0x530   :  { %6327 = vmatpush.bf16.msra.mxu3 %v9646_v16  ;;  %v9179_v33 = vld [vmem:[%s17543_s6 + $0xc50] sm:$0xf0]  ;;  %v9470_v35 = vor.u32 %v11298_v54, %v9467_v18  ;;  %v9598_v16 = vor.u32 %v11330_v62, %v9595_v9  ;;  %v11294_v41 = vld [vmem:[%s17543_s6 + $0xe64] sm:$0xf] }
 0x531   :  { %6283 = vmatmul.bf16.vlgmr.msrb.gmra.mxu3 %v13252_v27  ;;  %6315 = vmatpush.bf16.msra.mxu2 %v9502_v43  ;;  %v9307_v49 = vld [vmem:[%s17543_s6 + $0xd50] sm:$0xf0]  ;;  %v11326_v1 = vld [vmem:[%s17543_s6 + $0xf64] sm:$0xf] }
 0x532   :  { %v9451_v61 = vld [vmem:[%s17543_s6 + $0xe70] sm:$0xf0]  ;;  %v11222_v52 = vld [vmem:[%s17543_s6 + $0xc24] sm:$0xf] }
 0x533   :  { %6290 = vmatpush.bf16.msra.mxu0 %v9230_v40  ;;  %6303 = vmatpush.bf16.msra.mxu1 %v9358_v38  ;;  %v9182_v40 = vor.u32 %v11226_v59, %v9179_v33  ;;  %v9579_v36 = vld [vmem:[%s17543_s6 + $0xf70] sm:$0xf0]  ;;  %v9310_v38 = vor.u32 %v11258_v32, %v9307_v49  ;;  %v9454_v43 = vor.u32 %v11294_v41, %v9451_v61  ;;  %v11254_v20 = vld [vmem:[%s17543_s6 + $0xd24] sm:$0xf] }
 0x534   :  { %6328 = vmatpush.bf16.msra.mxu3 %v9630_v51  ;;  %v9163_v37 = vld [vmem:[%s17543_s6 + $0xc30] sm:$0xf0]  ;;  %v6039_v51 = vpop.f32.mrf.mxu0  ;;  %v9582_v30 = vor.u32 %v11326_v1, %v9579_v36  ;;  %v11218_v26 = vld [vmem:[%s17543_s6 + $0xc04] sm:$0xf]  ;;  %v6076_v62 = vpop.f32.mrf.mxu3 }
 0x535   :  { %6316 = vmatpush.bf16.msra.mxu2 %v9486_v58  ;;  %v9291_v47 = vld [vmem:[%s17543_s6 + $0xd30] sm:$0xf0]  ;;  %v9166_v53 = vor.u32 %v11222_v52, %v9163_v37  ;;  %v6063_v58 = vpop.f32.mrf.mxu2  ;;  %v11250_v11 = vld [vmem:[%s17543_s6 + $0xd04] sm:$0xf] }
 0x536   :  { %v9435_v63 = vld [vmem:[%s17543_s6 + $0xe50] sm:$0xf0]  ;;  %v9294_v14 = vor.u32 %v11254_v20, %v9291_v47  ;;  %v11374_v18 = vld [vmem:[%s17543_s6 + $0x10e4] sm:$0xf] }
 0x537   :  { %6291 = vmatpush.bf16.msra.mxu0 %v9214_v7  ;;  %6304 = vmatpush.bf16.msra.mxu1 %v9342_v2  ;;  %v11290_v7 = vld [vmem:[%s17543_s6 + $0xe44] sm:$0xf]  ;;  %v9563_v25 = vld [vmem:[%s17543_s6 + $0xf50] sm:$0xf0] }
 0x538   :  { %6329 = vmatpush.bf16.msra.mxu3 %v9614_v57  ;;  %v11322_v2 = vld [vmem:[%s17543_s6 + $0xf44] sm:$0xf]  ;;  %v9147_v5 = vld [vmem:[%s17543_s6 + $0xc10] sm:$0xf0]  ;;  %v6064_v57 = vadd.f32 %v6063_v58, %v6051_v23  ;;  %v9438_v54 = vor.u32 %v11290_v7, %v9435_v63 }
 0x539   :  { %6317 = vmatpush.bf16.msra.mxu2 %v9470_v35  ;;  %v9275_v39 = vld [vmem:[%s17543_s6 + $0xd10] sm:$0xf0]  ;;  %v9566_v9 = vor.u32 %v11322_v2, %v9563_v25  ;;  %v11286_v59 = vld [vmem:[%s17543_s6 + $0xe24] sm:$0xf]  ;;  %v9150_v35 = vor.u32 %v11218_v26, %v9147_v5 }
 0x53a   :  { %v9771_v4 = vld [vmem:[%s17543_s6 + $0x10f0] sm:$0xf0]  ;;  %v14582_v23 = vadd.f32 %v6076_v62, %v6064_v57  ;;  %v11318_v32 = vld [vmem:[%s17543_s6 + $0xf24] sm:$0xf] }
 0x53b   :  { %6292 = vmatpush.bf16.msra.mxu0 %v9198_v22  ;;  %6305 = vmatpush.bf16.msra.mxu1 %v9326_v56  ;;  %v11406_v22 = vld [vmem:[%s17543_s6 + $0x11e4] sm:$0xf]  ;;  %v9899_v56 = vld [vmem:[%s17543_s6 + $0x11f0] sm:$0xf0]  ;;  %v9774_v41 = vor.u32 %v11374_v18, %v9771_v4 }
 0x53c   :  { %6330 = vmatpush.bf16.msra.mxu3 %v9598_v16  ;;  %v9419_v33 = vld [vmem:[%s17543_s6 + $0xe30] sm:$0xf0]  ;;  %v9278_v16 = vor.u32 %v11250_v11, %v9275_v39  ;;  %v11370_v61 = vld [vmem:[%s17543_s6 + $0x10c4] sm:$0xf]  ;;  %v6078_v5 = vpop.f32.mrf.mxu3 }
 0x53d   :  { %6318 = vmatpush.bf16.msra.mxu2 %v9454_v43  ;;  %v9547_v49 = vld [vmem:[%s17543_s6 + $0xf30] sm:$0xf0]  ;;  %v9422_v1 = vor.u32 %v11286_v59, %v9419_v33  ;;  %v11282_v43 = vld [vmem:[%s17543_s6 + $0xe04] sm:$0xf]  ;;  %v6065_v7 = vpop.f32.mrf.mxu2 }
 0x53e   :  { %v9755_v36 = vld [vmem:[%s17543_s6 + $0x10d0] sm:$0xf0]  ;;  %v9550_v37 = vor.u32 %v11318_v32, %v9547_v49  ;;  %v11314_v47 = vld [vmem:[%s17543_s6 + $0xf04] sm:$0xf] }
 0x53f   :  { %6293 = vmatpush.bf16.msra.mxu0 %v9182_v40  ;;  %6306 = vmatpush.bf16.msra.mxu1 %v9310_v38  ;;  %v9902_v40 = vor.u32 %v11406_v22, %v9899_v56  ;;  %v11402_v38 = vld [vmem:[%s17543_s6 + $0x11c4] sm:$0xf]  ;;  %v9883_v52 = vld [vmem:[%s17543_s6 + $0x11d0] sm:$0xf0]  ;;  %v9758_v63 = vor.u32 %v11370_v61, %v9755_v36 }
 0x540   :  { %6331 = vmatpush.bf16.msra.mxu3 %v9582_v30  ;;  %v9403_v20 = vld [vmem:[%s17543_s6 + $0xe10] sm:$0xf0]  ;;  %v11438_v19 = vld [vmem:[%s17543_s6 + $0x12e4] sm:$0xf]  ;;  %v9886_v25 = vor.u32 %v11402_v38, %v9883_v52 }
 0x541   :  { %6319 = vmatpush.bf16.msra.mxu2 %v9438_v54  ;;  %v9531_v51 = vld [vmem:[%s17543_s6 + $0xf10] sm:$0xf0]  ;;  %v9406_v26 = vor.u32 %v11282_v43, %v9403_v20  ;;  %v11366_v58 = vld [vmem:[%s17543_s6 + $0x10a4] sm:$0xf] }
 0x542   :  { %v10027_v30 = vld [vmem:[%s17543_s6 + $0x12f0] sm:$0xf0]  ;;  %v9534_v11 = vor.u32 %v11314_v47, %v9531_v51  ;;  %v11398_v57 = vld [vmem:[%s17543_s6 + $0x11a4] sm:$0xf] }
 0x543   :  { %6294 = vmatpush.bf16.msra.mxu0 %v9166_v53  ;;  %6307 = vmatpush.bf16.msra.mxu1 %v9294_v14  ;;  %v11470_v53 = vld [vmem:[%s17543_s6 + $0x13e4] sm:$0xf]  ;;  %v10155_v2 = vld [vmem:[%s17543_s6 + $0x13f0] sm:$0xf0]  ;;  %v10030_v39 = vor.u32 %v11438_v19, %v10027_v30 }
 0x544   :  { %6332 = vmatpush.bf16.msra.mxu3 %v9566_v9  ;;  %v9739_v14 = vld [vmem:[%s17543_s6 + $0x10b0] sm:$0xf0]  ;;  %v10158_v18 = vor.u32 %v11470_v53, %v10155_v2  ;;  %v11434_v4 = vld [vmem:[%s17543_s6 + $0x12c4] sm:$0xf] }
 0x545   :  { %6320 = vmatpush.bf16.msra.mxu2 %v9422_v1  ;;  %v9867_v54 = vld [vmem:[%s17543_s6 + $0x11b0] sm:$0xf0]  ;;  %v9742_v62 = vor.u32 %v11366_v58, %v9739_v14  ;;  %v11466_v9 = vld [vmem:[%s17543_s6 + $0x13c4] sm:$0xf] }
 0x546   :  { %v10011_v22 = vld [vmem:[%s17543_s6 + $0x12d0] sm:$0xf0]  ;;  %v9870_v59 = vor.u32 %v11398_v57, %v9867_v54  ;;  %v11362_v33 = vld [vmem:[%s17543_s6 + $0x1084] sm:$0xf] }
 0x547   :  { %6295 = vmatpush.bf16.msra.mxu0 %v9150_v35  ;;  %6308 = vmatpush.bf16.msra.mxu1 %v9278_v16  ;;  %v10139_v56 = vld [vmem:[%s17543_s6 + $0x13d0] sm:$0xf0]  ;;  %v10014_v32 = vor.u32 %v11434_v4, %v10011_v22  ;;  %v11394_v49 = vld [vmem:[%s17543_s6 + $0x1184] sm:$0xf]  ;;  %v6089_v19 = vpop.f32.mrf.mxu0  ;;  %v6102_v2 = vpop.f32.mrf.mxu1 }
 0x548   :  { %6333 = vmatpush.bf16.msra.mxu3 %v9550_v37  ;;  %v9723_v35 = vld [vmem:[%s17543_s6 + $0x1090] sm:$0xf0]  ;;  %v11430_v61 = vld [vmem:[%s17543_s6 + $0x12a4] sm:$0xf]  ;;  %v6090_v53 = vadd.f32 %v6089_v19, %v14582_v23 }
 0x549   :  { %6321 = vmatpush.bf16.msra.mxu2 %v9406_v26  ;;  %v9851_v16 = vld [vmem:[%s17543_s6 + $0x1190] sm:$0xf0]  ;;  %v9726_v1 = vor.u32 %v11362_v33, %v9723_v35  ;;  %v11462_v36 = vld [vmem:[%s17543_s6 + $0x13a4] sm:$0xf] }
 0x54a   :  { %6296 = vmatmul.bf16.vlgmr.msra.gmra.mxu0 %v13385_v21  ;;  %6309 = vmatmul.bf16.vlgmr.msra.gmra.mxu1 %v13395_v48  ;;  %v10123_v38 = vld [vmem:[%s17543_s6 + $0x13b0] sm:$0xf0]  ;;  %v9854_v52 = vor.u32 %v11394_v49, %v9851_v16  ;;  %v11358_v37 = vld [vmem:[%s17543_s6 + $0x1064] sm:$0xf] }
 0x54b   :  { %6340 = vmatpush.bf16.msrb.mxu0 %v9774_v41  ;;  %6353 = vmatpush.bf16.msrb.mxu1 %v9902_v40  ;;  %v10142_v41 = vor.u32 %v11466_v9, %v10139_v56  ;;  %v9995_v40 = vld [vmem:[%s17543_s6 + $0x12b0] sm:$0xf0]  ;;  %v11390_v47 = vld [vmem:[%s17543_s6 + $0x1164] sm:$0xf]  ;;  %v10126_v30 = vor.u32 %v11462_v36, %v10123_v38 }
 0x54c   :  { %6334 = vmatpush.bf16.msra.mxu3 %v9534_v11  ;;  %6322 = vmatmul.bf16.vlgmr.msra.gmra.mxu2 %v13419_v8  ;;  %v9707_v43 = vld [vmem:[%s17543_s6 + $0x1070] sm:$0xf0]  ;;  %v9998_v20 = vor.u32 %v11430_v61, %v9995_v40  ;;  %v11426_v7 = vld [vmem:[%s17543_s6 + $0x1284] sm:$0xf]  ;;  %v6103_v11 = vadd.f32 %v6102_v2, %v6090_v53 }
 0x54d   :  { %6366 = vmatpush.bf16.msrb.mxu2 %v10030_v39  ;;  %v9835_v51 = vld [vmem:[%s17543_s6 + $0x1170] sm:$0xf0]  ;;  %v11458_v26 = vld [vmem:[%s17543_s6 + $0x1384] sm:$0xf] }
 0x54e   :  { %v10107_v58 = vld [vmem:[%s17543_s6 + $0x1390] sm:$0xf0]  ;;  %v9838_v14 = vor.u32 %v11390_v47, %v9835_v51  ;;  %v11354_v5 = vld [vmem:[%s17543_s6 + $0x1044] sm:$0xf] }
 0x54f   :  { %6341 = vmatpush.bf16.msrb.mxu0 %v9758_v63  ;;  %6354 = vmatpush.bf16.msrb.mxu1 %v9886_v25  ;;  %v9979_v63 = vld [vmem:[%s17543_s6 + $0x1290] sm:$0xf0]  ;;  %v9710_v25 = vor.u32 %v11358_v37, %v9707_v43  ;;  %v11386_v57 = vld [vmem:[%s17543_s6 + $0x1144] sm:$0xf]  ;;  %v6104_v36 = vpop.f32.mrf.mxu1  ;;  %v6115_v2 = vpop.f32.mrf.mxu2 }
 0x550   :  { %6379 = vmatpush.bf16.msrb.mxu3 %v10158_v18  ;;  %v9691_v23 = vld [vmem:[%s17543_s6 + $0x1050] sm:$0xf0]  ;;  %v9982_v39 = vor.u32 %v11426_v7, %v9979_v63  ;;  %v10110_v18 = vor.u32 %v11458_v26, %v10107_v58  ;;  %v11422_v4 = vld [vmem:[%s17543_s6 + $0x1264] sm:$0xf] }
 0x551   :  { %6335 = vmatmul.bf16.vlgmr.msra.gmra.mxu3 %v13448_v44  ;;  %6367 = vmatpush.bf16.msrb.mxu2 %v10014_v32  ;;  %v9819_v54 = vld [vmem:[%s17543_s6 + $0x1150] sm:$0xf0]  ;;  %v11454_v9 = vld [vmem:[%s17543_s6 + $0x1364] sm:$0xf] }
 0x552   :  { %v9963_v22 = vld [vmem:[%s17543_s6 + $0x1270] sm:$0xf0]  ;;  %v11350_v33 = vld [vmem:[%s17543_s6 + $0x1024] sm:$0xf] }
 0x553   :  { %6342 = vmatpush.bf16.msrb.mxu0 %v9742_v62  ;;  %6355 = vmatpush.bf16.msrb.mxu1 %v9870_v59  ;;  %v9694_v62 = vor.u32 %v11354_v5, %v9691_v23  ;;  %v10091_v56 = vld [vmem:[%s17543_s6 + $0x1370] sm:$0xf0]  ;;  %v9822_v59 = vor.u32 %v11386_v57, %v9819_v54  ;;  %v9966_v32 = vor.u32 %v11422_v4, %v9963_v22  ;;  %v11382_v49 = vld [vmem:[%s17543_s6 + $0x1124] sm:$0xf] }
 0x554   :  { %6380 = vmatpush.bf16.msrb.mxu3 %v10142_v41  ;;  %v9675_v35 = vld [vmem:[%s17543_s6 + $0x1030] sm:$0xf0]  ;;  %v6091_v41 = vpop.f32.mrf.mxu0  ;;  %v10094_v61 = vor.u32 %v11454_v9, %v10091_v56  ;;  %v11418_v40 = vld [vmem:[%s17543_s6 + $0x1244] sm:$0xf]  ;;  %v6116_v5 = vadd.f32 %v6115_v2, %v6103_v11  ;;  %v6128_v23 = vpop.f32.mrf.mxu3 }
 0x555   :  { %6368 = vmatpush.bf16.msrb.mxu2 %v9998_v20  ;;  %v9803_v16 = vld [vmem:[%s17543_s6 + $0x1130] sm:$0xf0]  ;;  %v9678_v38 = vor.u32 %v11350_v33, %v9675_v35  ;;  %v11346_v43 = vld [vmem:[%s17543_s6 + $0x1004] sm:$0xf] }
 0x556   :  { %v10075_v37 = vld [vmem:[%s17543_s6 + $0x1350] sm:$0xf0]  ;;  %v9806_v20 = vor.u32 %v11382_v49, %v9803_v16  ;;  %v11378_v51 = vld [vmem:[%s17543_s6 + $0x1104] sm:$0xf] }
 0x557   :  { %6343 = vmatpush.bf16.msrb.mxu0 %v9726_v1  ;;  %6356 = vmatpush.bf16.msrb.mxu1 %v9854_v52  ;;  %v9947_v1 = vld [vmem:[%s17543_s6 + $0x1250] sm:$0xf0]  ;;  %v11450_v52 = vld [vmem:[%s17543_s6 + $0x1344] sm:$0xf] }
 0x558   :  { %6381 = vmatpush.bf16.msrb.mxu3 %v10126_v30  ;;  %v9659_v47 = vld [vmem:[%s17543_s6 + $0x1010] sm:$0xf0]  ;;  %v9950_v30 = vor.u32 %v11418_v40, %v9947_v1  ;;  %v11502_v7 = vld [vmem:[%s17543_s6 + $0x14e4] sm:$0xf] }
 0x559   :  { %6369 = vmatpush.bf16.msrb.mxu2 %v9982_v39  ;;  %v9787_v19 = vld [vmem:[%s17543_s6 + $0x1110] sm:$0xf0]  ;;  %v11534_v53 = vld [vmem:[%s17543_s6 + $0x15e4] sm:$0xf]  ;;  %v9662_v39 = vor.u32 %v11346_v43, %v9659_v47  ;;  %v6117_v47 = vpop.f32.mrf.mxu2 }
 0x55a   :  { %v10283_v63 = vld [vmem:[%s17543_s6 + $0x14f0] sm:$0xf0]  ;;  %v11414_v58 = vld [vmem:[%s17543_s6 + $0x1224] sm:$0xf] }
 0x55b   :  { %6344 = vmatpush.bf16.msrb.mxu0 %v9710_v25  ;;  %6357 = vmatpush.bf16.msrb.mxu1 %v9838_v14  ;;  %v10078_v25 = vor.u32 %v11450_v52, %v10075_v37  ;;  %v10411_v26 = vld [vmem:[%s17543_s6 + $0x15f0] sm:$0xf0]  ;;  %v11446_v57 = vld [vmem:[%s17543_s6 + $0x1324] sm:$0xf]  ;;  %v10286_v4 = vor.u32 %v11502_v7, %v10283_v63 }
 0x55c   :  { %6382 = vmatpush.bf16.msrb.mxu3 %v10110_v18  ;;  %v9931_v14 = vld [vmem:[%s17543_s6 + $0x1230] sm:$0xf0]  ;;  %v9790_v18 = vor.u32 %v11378_v51, %v9787_v19  ;;  %v11498_v22 = vld [vmem:[%s17543_s6 + $0x14c4] sm:$0xf]  ;;  %v10414_v11 = vor.u32 %v11534_v53, %v10411_v26  ;;  %v6130_v63 = vpop.f32.mrf.mxu3 }
 0x55d   :  { %6370 = vmatpush.bf16.msrb.mxu2 %v9966_v32  ;;  %v10059_v54 = vld [vmem:[%s17543_s6 + $0x1330] sm:$0xf0]  ;;  %v9934_v9 = vor.u32 %v11414_v58, %v9931_v14  ;;  %v11410_v32 = vld [vmem:[%s17543_s6 + $0x1204] sm:$0xf] }
 0x55e   :  { %v10267_v56 = vld [vmem:[%s17543_s6 + $0x14d0] sm:$0xf0]  ;;  %v10062_v35 = vor.u32 %v11446_v57, %v10059_v54  ;;  %v11442_v16 = vld [vmem:[%s17543_s6 + $0x1304] sm:$0xf] }
 0x55f   :  { %6345 = vmatpush.bf16.msrb.mxu0 %v9694_v62  ;;  %6358 = vmatpush.bf16.msrb.mxu1 %v9822_v59  ;;  %v14790_v62 = vadd.f32 %v6128_v23, %v6116_v5  ;;  %v11530_v59 = vld [vmem:[%s17543_s6 + $0x15c4] sm:$0xf]  ;;  %v10395_v33 = vld [vmem:[%s17543_s6 + $0x15d0] sm:$0xf0]  ;;  %v10270_v1 = vor.u32 %v11498_v22, %v10267_v56  ;;  %v11657_v23 = vld [vmem:[%s17545_s8] sm:$0xf] }
 0x560   :  { %6383 = vmatpush.bf16.msrb.mxu3 %v10094_v61  ;;  %v9915_v49 = vld [vmem:[%s17543_s6 + $0x1210] sm:$0xf0]  ;;  %v11566_v61 = vld [vmem:[%s17543_s6 + $0x16e4] sm:$0xf]  ;;  %v10398_v52 = vor.u32 %v11530_v59, %v10395_v33 }
 0x561   :  { %6371 = vmatpush.bf16.msrb.mxu2 %v9950_v30  ;;  %v10043_v41 = vld [vmem:[%s17543_s6 + $0x1310] sm:$0xf0]  ;;  %v11598_v36 = vld [vmem:[%s17543_s6 + $0x17e4] sm:$0xf]  ;;  %v9918_v37 = vor.u32 %v11410_v32, %v9915_v49 }
 0x562   :  { %v10539_v40 = vld [vmem:[%s17543_s6 + $0x16f0] sm:$0xf0]  ;;  %v11494_v43 = vld [vmem:[%s17543_s6 + $0x14a4] sm:$0xf]  ;;  %v10046_v51 = vor.u32 %v11442_v16, %v10043_v41 }
 0x563   :  { %6346 = vmatpush.bf16.msrb.mxu0 %v9678_v38  ;;  %6359 = vmatpush.bf16.msrb.mxu1 %v9806_v20  ;;  %v10667_v38 = vld [vmem:[%s17543_s6 + $0x17f0] sm:$0xf0]  ;;  %v10542_v19 = vor.u32 %v11566_v61, %v10539_v40  ;;  %v11526_v30 = vld [vmem:[%s17543_s6 + $0x15a4] sm:$0xf] }
 0x564   :  { %6384 = vmatpush.bf16.msrb.mxu3 %v10078_v25  ;;  %v10251_v20 = vld [vmem:[%s17543_s6 + $0x14b0] sm:$0xf0]  ;;  %v10670_v53 = vor.u32 %v11598_v36, %v10667_v38  ;;  %v11562_v2 = vld [vmem:[%s17543_s6 + $0x16c4] sm:$0xf] }
 0x565   :  { %6372 = vmatpush.bf16.msrb.mxu2 %v9934_v9  ;;  %v10379_v7 = vld [vmem:[%s17543_s6 + $0x15b0] sm:$0xf0]  ;;  %v10254_v26 = vor.u32 %v11494_v43, %v10251_v20  ;;  %v11594_v58 = vld [vmem:[%s17543_s6 + $0x17c4] sm:$0xf] }
 0x566   :  { %v10523_v25 = vld [vmem:[%s17543_s6 + $0x16d0] sm:$0xf0]  ;;  %v10382_v5 = vor.u32 %v11526_v30, %v10379_v7  ;;  %v11490_v57 = vld [vmem:[%s17543_s6 + $0x1484] sm:$0xf] }
 0x567   :  { %6347 = vmatpush.bf16.msrb.mxu0 %v9662_v39  ;;  %6360 = vmatpush.bf16.msrb.mxu1 %v9790_v18  ;;  %v10651_v14 = vld [vmem:[%s17543_s6 + $0x17d0] sm:$0xf0]  ;;  %v1973_v39 = vperm.slane %v11657_v23, 1  ;;  %v10526_v18 = vor.u32 %v11562_v2, %v10523_v25  ;;  %v11590_v59 = vld [vmem:[%s17543_s6 + $0x17a4] sm:$0xf]  ;;  %v6141_v38 = vpop.f32.mrf.mxu0  ;;  %v6154_v47 = vpop.f32.mrf.mxu1 }
 0x568   :  { %6385 = vmatpush.bf16.msrb.mxu3 %v10062_v35  ;;  %v10235_v54 = vld [vmem:[%s17543_s6 + $0x1490] sm:$0xf0]  ;;  %v10654_v9 = vor.u32 %v11594_v58, %v10651_v14  ;;  %v10679_v32 = vld [vmem:[%s17544_s7 + $0x1] ss:$2 sm:$0xf]  ;;  %v14922_v23 = vpop.permute.xlu1 %7094 }
 0x569   :  { %6373 = vmatpush.bf16.msrb.mxu2 %v9918_v37  ;;  %v10363_v22 = vld [vmem:[%s17543_s6 + $0x1590] sm:$0xf0]  ;;  %v10238_v35 = vor.u32 %v11490_v57, %v10235_v54  ;;  %v7068_v49 = vld [vmem:[%s17544_s7] ss:$2 sm:$0xf]  ;;  %v6142_v20 = vadd.f32 %v6141_v38, %v1973_v39 }
 0x56a   :  { %6348 = vmatmul.bf16.vlgmr.msrb.gmra.mxu0 %v13597_v24  ;;  %6361 = vmatmul.bf16.vlgmr.msrb.gmra.mxu1 %v13607_v55  ;;  %v10507_v56 = vld [vmem:[%s17543_s6 + $0x16b0] sm:$0xf0]  ;;  %v11486_v41 = vld [vmem:[%s17543_s6 + $0x1464] sm:$0xf]  ;;  %v7078_v63 = vperm.slane %v7068_v49, 3 }
 0x56b   :  { %6392 = vmatpush.bf16.msra.mxu0 %v10286_v4  ;;  %6405 = vmatpush.bf16.msra.mxu1 %v10414_v11  ;;  %v11522_v4 = vld [vmem:[%s17543_s6 + $0x1584] sm:$0xf]  ;;  %v10635_v33 = vld [vmem:[%s17543_s6 + $0x17b0] sm:$0xf0] }
 0x56c   :  { %6386 = vmatpush.bf16.msrb.mxu3 %v10046_v51  ;;  %v11558_v11 = vld [vmem:[%s17543_s6 + $0x16a4] sm:$0xf]  ;;  %6374 = vmatmul.bf16.vlgmr.msrb.gmra.mxu2 %v13637_v31  ;;  %v10366_v16 = vor.u32 %v11522_v4, %v10363_v22  ;;  %v10219_v61 = vld [vmem:[%s17543_s6 + $0x1470] sm:$0xf0]  ;;  %v7101_v51 = vperm.slane %v10679_v32, 3  ;;  %v14933_v4 = vpop.permute.xlu0 %7071 }
 0x56d   :  { %6418 = vmatpush.bf16.msra.mxu2 %v10542_v19  ;;  %v10510_v40 = vor.u32 %v11558_v11, %v10507_v56  ;;  %v10347_v36 = vld [vmem:[%s17543_s6 + $0x1570] sm:$0xf0]  ;;  %v11554_v37 = vld [vmem:[%s17543_s6 + $0x1684] sm:$0xf]  ;;  %v10222_v19 = vor.u32 %v11486_v41, %v10219_v61  ;;  %v14942_v56 = vmul.f32 %v7078_v63, %v14933_v4  ;;  %v10865_v63 = vld [vmem:[%s17543_s6 + $0xf4] sm:$0xf0] }
 0x56e   :  { %v10491_v43 = vld [vmem:[%s17543_s6 + $0x1690] sm:$0xf0]  ;;  %v11586_v30 = vld [vmem:[%s17543_s6 + $0x1784] sm:$0xf] }
 0x56f   :  { %6393 = vmatpush.bf16.msra.mxu0 %v10270_v1  ;;  %6406 = vmatpush.bf16.msra.mxu1 %v10398_v52  ;;  %v11518_v1 = vld [vmem:[%s17543_s6 + $0x1564] sm:$0xf]  ;;  %v10638_v52 = vor.u32 %v11590_v59, %v10635_v33  ;;  %v10619_v7 = vld [vmem:[%s17543_s6 + $0x1790] sm:$0xf0]  ;;  %v10494_v58 = vor.u32 %v11554_v37, %v10491_v43  ;;  %v6143_v41 = vpop.f32.mrf.mxu0 }
 0x570   :  { %6431 = vmatpush.bf16.msra.mxu3 %v10670_v53  ;;  %v10350_v53 = vor.u32 %v11518_v1, %v10347_v36  ;;  %v11482_v2 = vld [vmem:[%s17543_s6 + $0x1444] sm:$0xf]  ;;  %v10203_v25 = vld [vmem:[%s17543_s6 + $0x1450] sm:$0xf0]  ;;  %v10622_v39 = vor.u32 %v11586_v30, %v10619_v7  ;;  %v6156_v36 = vpop.f32.mrf.mxu1  ;;  %v7729_v7 = vld [vmem:[%s17543_s6 + $0xe8] sm:$0xf] }
 0x571   :  { %6387 = vmatmul.bf16.vlgmr.msrb.gmra.mxu3 %v13651_v29  ;;  %6419 = vmatpush.bf16.msra.mxu2 %v10526_v18  ;;  %v11514_v14 = vld [vmem:[%s17543_s6 + $0x1544] sm:$0xf]  ;;  %v10475_v54 = vld [vmem:[%s17543_s6 + $0x1670] sm:$0xf0]  ;;  %v14931_v18 = vmul.f32 %v7101_v51, %v14922_v23  ;;  %v10206_v22 = vor.u32 %v11482_v2, %v10203_v25  ;;  %v6167_v2 = vpop.f32.mrf.mxu2  ;;  %v10893_v41 = vld [vmem:[%s17543_s6 + $0x1d4] sm:$0xf0] }
 0x572   :  { %v11550_v57 = vld [vmem:[%s17543_s6 + $0x1664] sm:$0xf]  ;;  %v10459_v1 = vld [vmem:[%s17543_s6 + $0x1650] sm:$0xf0] }
 0x573   :  { %6394 = vmatpush.bf16.msra.mxu0 %v10254_v26  ;;  %6407 = vmatpush.bf16.msra.mxu1 %v10382_v5  ;;  %v6155_v26 = vadd.f32 %v6154_v47, %v6142_v20  ;;  %v10331_v5 = vld [vmem:[%s17543_s6 + $0x1550] sm:$0xf0]  ;;  %v11582_v11 = vld [vmem:[%s17543_s6 + $0x1764] sm:$0xf]  ;;  %v10478_v32 = vor.u32 %v11550_v57, %v10475_v54 }
 0x574   :  { %6432 = vmatpush.bf16.msra.mxu3 %v10654_v9  ;;  %v10603_v9 = vld [vmem:[%s17543_s6 + $0x1770] sm:$0xf0]  ;;  %v10334_v59 = vor.u32 %v11514_v14, %v10331_v5  ;;  %v11478_v33 = vld [vmem:[%s17543_s6 + $0x1424] sm:$0xf]  ;;  %v6180_v57 = vpop.f32.mrf.mxu3 }
 0x575   :  { %6420 = vmatpush.bf16.msra.mxu2 %v10510_v40  ;;  %v11510_v49 = vld [vmem:[%s17543_s6 + $0x1524] sm:$0xf]  ;;  %v10606_v61 = vor.u32 %v11582_v11, %v10603_v9  ;;  %v10587_v37 = vld [vmem:[%s17543_s6 + $0x1750] sm:$0xf0] }
 0x576   :  { %v11546_v40 = vld [vmem:[%s17543_s6 + $0x1644] sm:$0xf]  ;;  %v10171_v47 = vld [vmem:[%s17543_s6 + $0x1410] sm:$0xf0] }
 0x577   :  { %6395 = vmatpush.bf16.msra.mxu0 %v10238_v35  ;;  %6408 = vmatpush.bf16.msra.mxu1 %v10366_v16  ;;  %v10187_v35 = vld [vmem:[%s17543_s6 + $0x1430] sm:$0xf0]  ;;  %v11474_v43 = vld [vmem:[%s17543_s6 + $0x1404] sm:$0xf]  ;;  %v10462_v30 = vor.u32 %v11546_v40, %v10459_v1 }
 0x578   :  { %6433 = vmatpush.bf16.msra.mxu3 %v10638_v52  ;;  %v10315_v16 = vld [vmem:[%s17543_s6 + $0x1530] sm:$0xf0]  ;;  %v10190_v38 = vor.u32 %v11478_v33, %v10187_v35  ;;  %v11578_v52 = vld [vmem:[%s17543_s6 + $0x1744] sm:$0xf]  ;;  %v10174_v54 = vor.u32 %v11474_v43, %v10171_v47  ;;  %v7713_v33 = vld [vmem:[%s17543_s6 + $0xc8] sm:$0xf] }
 0x579   :  { %6421 = vmatpush.bf16.msra.mxu2 %v10494_v58  ;;  %v10318_v20 = vor.u32 %v11510_v49, %v10315_v16  ;;  %v11506_v51 = vld [vmem:[%s17543_s6 + $0x1504] sm:$0xf]  ;;  %v10590_v25 = vor.u32 %v11578_v52, %v10587_v37  ;;  %v10897_v58 = vld [vmem:[%s17543_s6 + $0x1f4] sm:$0xf0]  ;;  %v10443_v5 = vld [vmem:[%s17543_s6 + $0x1630] sm:$0xf0] }
 0x57a   :  { %v11542_v14 = vld [vmem:[%s17543_s6 + $0x1624] sm:$0xf]  ;;  %v10571_v11 = vld [vmem:[%s17543_s6 + $0x1730] sm:$0xf0]  ;;  %v10861_v49 = vld [vmem:[%s17543_s6 + $0xd4] sm:$0xf0] }
 0x57b   :  { %6396 = vmatpush.bf16.msra.mxu0 %v10222_v19  ;;  %6409 = vmatpush.bf16.msra.mxu1 %v10350_v53  ;;  %v10299_v19 = vld [vmem:[%s17543_s6 + $0x1510] sm:$0xf0]  ;;  %v7857_v53 = vld [vmem:[%s17543_s6 + $0x1e8] sm:$0xf]  ;;  %v11538_v40 = vld [vmem:[%s17543_s6 + $0x1604] sm:$0xf]  ;;  %v7714_v43 = vor.u32 %v10861_v49, %v7713_v33 }
 0x57c   :  { %6434 = vmatpush.bf16.msra.mxu3 %v10622_v39  ;;  %v6168_v39 = vadd.f32 %v6167_v2, %v6155_v26  ;;  %v10302_v9 = vor.u32 %v11506_v51, %v10299_v19  ;;  %v7858_v26 = vor.u32 %v10897_v58, %v7857_v53  ;;  %v7841_v16 = vld [vmem:[%s17543_s6 + $0x1c8] sm:$0xf]  ;;  %v10427_v1 = vld [vmem:[%s17543_s6 + $0x1610] sm:$0xf0]  ;;  %v11570_v36 = vld [vmem:[%s17543_s6 + $0x1704] sm:$0xf] }
 0x57d   :  { %6422 = vmatpush.bf16.msra.mxu2 %v10478_v32  ;;  %v10446_v32 = vor.u32 %v11542_v14, %v10443_v5  ;;  %v7985_v52 = vld [vmem:[%s17543_s6 + $0x2e8] sm:$0xf]  ;;  %v10929_v37 = vld [vmem:[%s17543_s6 + $0x2f4] sm:$0xf0]  ;;  %v7842_v51 = vor.u32 %v10893_v41, %v7841_v16  ;;  %v10430_v19 = vor.u32 %v11538_v40, %v10427_v1  ;;  %v6182_v14 = vpop.f32.mrf.mxu3 }
 0x57e   :  { %v15007_v35 = vadd.f32 %v6180_v57, %v6168_v39  ;;  %v10961_v47 = vld [vmem:[%s17543_s6 + $0x3f4] sm:$0xf0]  ;;  %v7986_v2 = vor.u32 %v10929_v37, %v7985_v52  ;;  %v7969_v39 = vld [vmem:[%s17543_s6 + $0x2c8] sm:$0xf] }
 0x57f   :  { %6397 = vmatpush.bf16.msra.mxu0 %v10206_v22  ;;  %6410 = vmatpush.bf16.msra.mxu1 %v10334_v59  ;;  %v11574_v22 = vld [vmem:[%s17543_s6 + $0x1724] sm:$0xf]  ;;  %v7730_v59 = vor.u32 %v10865_v63, %v7729_v7  ;;  %v10857_v7 = vld [vmem:[%s17543_s6 + $0xb4] sm:$0xf0]  ;;  %v6169_v63 = vpop.f32.mrf.mxu2  ;;  %v7953_v41 = vld [vmem:[%s17543_s6 + $0x2a8] sm:$0xf] }
 0x580   :  { %6435 = vmatpush.bf16.msra.mxu3 %v10606_v61  ;;  %v10574_v61 = vor.u32 %v11574_v22, %v10571_v11  ;;  %v10889_v58 = vld [vmem:[%s17543_s6 + $0x1b4] sm:$0xf0]  ;;  %v8097_v22 = vld [vmem:[%s17543_s6 + $0x3c8] sm:$0xf] }
 0x581   :  { %6423 = vmatpush.bf16.msra.mxu2 %v10462_v30  ;;  %v7697_v30 = vld [vmem:[%s17543_s6 + $0xa8] sm:$0xf]  ;;  %v10925_v57 = vld [vmem:[%s17543_s6 + $0x2d4] sm:$0xf0] }
 0x582   :  { %v10957_v11 = vld [vmem:[%s17543_s6 + $0x3d4] sm:$0xf0]  ;;  %v8081_v1 = vld [vmem:[%s17543_s6 + $0x3a8] sm:$0xf] }
 0x583   :  { %6398 = vmatpush.bf16.msra.mxu0 %v10190_v38  ;;  %6411 = vmatpush.bf16.msra.mxu1 %v10318_v20  ;;  %v10555_v38 = vld [vmem:[%s17543_s6 + $0x1710] sm:$0xf0]  ;;  %v8113_v20 = vld [vmem:[%s17543_s6 + $0x3e8] sm:$0xf]  ;;  %v10853_v33 = vld [vmem:[%s17543_s6 + $0x94] sm:$0xf0]  ;;  %v8098_v16 = vor.u32 %v10957_v11, %v8097_v22 }
 0x584   :  { %6436 = vmatpush.bf16.msra.mxu3 %v10590_v25  ;;  %v10558_v53 = vor.u32 %v11570_v36, %v10555_v38  ;;  %v7825_v25 = vld [vmem:[%s17543_s6 + $0x1a8] sm:$0xf]  ;;  %v8114_v5 = vor.u32 %v10961_v47, %v8113_v20  ;;  %v10885_v49 = vld [vmem:[%s17543_s6 + $0x194] sm:$0xf0] }
 0x585   :  { %6424 = vmatpush.bf16.msra.mxu2 %v10446_v32  ;;  %v7809_v32 = vld [vmem:[%s17543_s6 + $0x188] sm:$0xf]  ;;  %v10953_v36 = vld [vmem:[%s17543_s6 + $0x3b4] sm:$0xf0] }
 0x586   :  { %v7810_v38 = vor.u32 %v10885_v49, %v7809_v32  ;;  %v7665_v52 = vld [vmem:[%s17543_s6 + $0x68] sm:$0xf]  ;;  %v10849_v37 = vld [vmem:[%s17543_s6 + $0x74] sm:$0xf0] }
 0x587   :  { %6399 = vmatpush.bf16.msra.mxu0 %v10174_v54  ;;  %6412 = vmatpush.bf16.msra.mxu1 %v10302_v9  ;;  %v7698_v54 = vor.u32 %v10857_v7, %v7697_v30  ;;  %v7826_v9 = vor.u32 %v10889_v58, %v7825_v25  ;;  %v7793_v20 = vld [vmem:[%s17543_s6 + $0x168] sm:$0xf]  ;;  %v10881_v47 = vld [vmem:[%s17543_s6 + $0x174] sm:$0xf0] }
 0x588   :  { %6437 = vmatpush.bf16.msra.mxu3 %v10574_v61  ;;  %v10921_v61 = vld [vmem:[%s17543_s6 + $0x2b4] sm:$0xf0]  ;;  %v7937_v30 = vld [vmem:[%s17543_s6 + $0x288] sm:$0xf]  ;;  %v7794_v14 = vor.u32 %v10881_v47, %v7793_v20 }
 0x589   :  { %6425 = vmatpush.bf16.msra.mxu2 %v10430_v19  ;;  %v8082_v19 = vor.u32 %v10953_v36, %v8081_v1  ;;  %v10917_v7 = vld [vmem:[%s17543_s6 + $0x294] sm:$0xf0]  ;;  %v8065_v25 = vld [vmem:[%s17543_s6 + $0x388] sm:$0xf] }
 0x58a   :  { %6400 = vmatmul.bf16.vlgmr.msra.gmra.mxu0 %v13809_v15  ;;  %6413 = vmatmul.bf16.vlgmr.msra.gmra.mxu1 %v13819_v34  ;;  %v10949_v58 = vld [vmem:[%s17543_s6 + $0x394] sm:$0xf0]  ;;  %v8033_v47 = vld [vmem:[%s17543_s6 + $0x348] sm:$0xf] }
 0x58b   :  { %6444 = vmatpush.bf16.msrb.mxu0 %v7730_v59  ;;  %6457 = vmatpush.bf16.msrb.mxu1 %v7858_v26  ;;  %v7681_v59 = vld [vmem:[%s17543_s6 + $0x88] sm:$0xf]  ;;  %v7970_v26 = vor.u32 %v10925_v57, %v7969_v39  ;;  %v7938_v57 = vor.u32 %v10917_v7, %v7937_v30  ;;  %v10877_v22 = vld [vmem:[%s17543_s6 + $0x154] sm:$0xf0]  ;;  %v8066_v11 = vor.u32 %v10949_v58, %v8065_v25 }
 0x58c   :  { %6438 = vmatpush.bf16.msra.mxu3 %v10558_v53  ;;  %6426 = vmatmul.bf16.vlgmr.msra.gmra.mxu2 %v13855_v45  ;;  %v7682_v40 = vor.u32 %v10853_v33, %v7681_v59  ;;  %v6206_v53 = vpop.f32.mrf.mxu1  ;;  %v10913_v59 = vld [vmem:[%s17543_s6 + $0x274] sm:$0xf0]  ;;  %v8241_v25 = vld [vmem:[%s17543_s6 + $0x4e8] sm:$0xf] }
 0x58d   :  { %6470 = vmatpush.bf16.msrb.mxu2 %v7986_v2  ;;  %v7666_v2 = vor.u32 %v10849_v37, %v7665_v52  ;;  %v10945_v32 = vld [vmem:[%s17543_s6 + $0x374] sm:$0xf0]  ;;  %v7905_v52 = vld [vmem:[%s17543_s6 + $0x248] sm:$0xf] }
 0x58e   :  { %v10873_v1 = vld [vmem:[%s17543_s6 + $0x134] sm:$0xf0] }
 0x58f   :  { %6445 = vmatpush.bf16.msrb.mxu0 %v7714_v43  ;;  %6458 = vmatpush.bf16.msrb.mxu1 %v7842_v51  ;;  %v7954_v43 = vor.u32 %v10921_v61, %v7953_v41  ;;  %v6193_v51 = vpop.f32.mrf.mxu0  ;;  %v10841_v41 = vld [vmem:[%s17543_s6 + $0x34] sm:$0xf0] }
 0x590   :  { %6483 = vmatpush.bf16.msrb.mxu3 %v8114_v5  ;;  %v6194_v63 = vadd.f32 %v6193_v51, %v15007_v35  ;;  %v7649_v5 = vld [vmem:[%s17543_s6 + $0x48] sm:$0xf]  ;;  %v10845_v35 = vld [vmem:[%s17543_s6 + $0x54] sm:$0xf0] }
 0x591   :  { %6439 = vmatmul.bf16.vlgmr.msra.gmra.mxu3 %v13865_v10  ;;  %6471 = vmatpush.bf16.msrb.mxu2 %v7970_v26  ;;  %v7650_v33 = vor.u32 %v10845_v35, %v7649_v5  ;;  %v8049_v26 = vld [vmem:[%s17543_s6 + $0x368] sm:$0xf]  ;;  %v10909_v37 = vld [vmem:[%s17543_s6 + $0x254] sm:$0xf0]  ;;  %v6219_v5 = vpop.f32.mrf.mxu2 }
 0x592   :  { %v6207_v39 = vadd.f32 %v6206_v53, %v6194_v63  ;;  %v10941_v51 = vld [vmem:[%s17543_s6 + $0x354] sm:$0xf0]  ;;  %v7745_v63 = vld [vmem:[%s17543_s6 + $0x108] sm:$0xf] }
 0x593   :  { %6446 = vmatpush.bf16.msrb.mxu0 %v7698_v54  ;;  %6459 = vmatpush.bf16.msrb.mxu1 %v7826_v9  ;;  %v7777_v54 = vld [vmem:[%s17543_s6 + $0x148] sm:$0xf]  ;;  %v10837_v7 = vld [vmem:[%s17543_s6 + $0x14] sm:$0xf0]  ;;  %v8034_v35 = vor.u32 %v10941_v51, %v8033_v47 }
 0x594   :  { %6484 = vmatpush.bf16.msrb.mxu3 %v8098_v16  ;;  %v7921_v9 = vld [vmem:[%s17543_s6 + $0x268] sm:$0xf]  ;;  %v7778_v49 = vor.u32 %v10877_v22, %v7777_v54  ;;  %v10869_v53 = vld [vmem:[%s17543_s6 + $0x114] sm:$0xf0] }
 0x595   :  { %6472 = vmatpush.bf16.msrb.mxu2 %v7954_v43  ;;  %v7633_v16 = vld [vmem:[%s17543_s6 + $0x28] sm:$0xf]  ;;  %v7922_v61 = vor.u32 %v10913_v59, %v7921_v9  ;;  %v6208_v43 = vpop.f32.mrf.mxu1  ;;  %v10993_v58 = vld [vmem:[%s17543_s6 + $0x4f4] sm:$0xf0]  ;;  %v6232_v9 = vpop.f32.mrf.mxu3 }
 0x596   :  { %v7634_v20 = vor.u32 %v10841_v41, %v7633_v16  ;;  %v7889_v54 = vld [vmem:[%s17543_s6 + $0x228] sm:$0xf]  ;;  %v10905_v22 = vld [vmem:[%s17543_s6 + $0x234] sm:$0xf0] }
 0x597   :  { %6447 = vmatpush.bf16.msrb.mxu0 %v7682_v40  ;;  %6460 = vmatpush.bf16.msrb.mxu1 %v7810_v38  ;;  %v7761_v40 = vld [vmem:[%s17543_s6 + $0x128] sm:$0xf]  ;;  %v6195_v36 = vpop.f32.mrf.mxu0  ;;  %v8050_v38 = vor.u32 %v10945_v32, %v8049_v26  ;;  %v10937_v26 = vld [vmem:[%s17543_s6 + $0x334] sm:$0xf0]  ;;  %v7746_v32 = vor.u32 %v10869_v53, %v7745_v63 }
 0x598   :  { %6485 = vmatpush.bf16.msrb.mxu3 %v8082_v19  ;;  %v7617_v19 = vld [vmem:[%s17543_s6 + $0x8] sm:$0xf]  ;;  %v7762_v30 = vor.u32 %v10873_v1, %v7761_v40  ;;  %v10989_v40 = vld [vmem:[%s17543_s6 + $0x4d4] sm:$0xf0] }
 0x599   :  { %6473 = vmatpush.bf16.msrb.mxu2 %v7938_v57  ;;  %v11025_v57 = vld [vmem:[%s17543_s6 + $0x5f4] sm:$0xf0]  ;;  %v7618_v59 = vor.u32 %v10837_v7, %v7617_v19  ;;  %v8225_v16 = vld [vmem:[%s17543_s6 + $0x4c8] sm:$0xf] }
 0x59a   :  { %v8353_v1 = vld [vmem:[%s17543_s6 + $0x5c8] sm:$0xf]  ;;  %v11021_v36 = vld [vmem:[%s17543_s6 + $0x5d4] sm:$0xf0]  ;;  %v8226_v19 = vor.u32 %v10989_v40, %v8225_v16 }
 0x59b   :  { %6448 = vmatpush.bf16.msrb.mxu0 %v7666_v2  ;;  %6461 = vmatpush.bf16.msrb.mxu1 %v7794_v14  ;;  %v7906_v2 = vor.u32 %v10909_v37, %v7905_v52  ;;  %v8369_v14 = vld [vmem:[%s17543_s6 + $0x5e8] sm:$0xf]  ;;  %v10901_v37 = vld [vmem:[%s17543_s6 + $0x214] sm:$0xf0]  ;;  %v8354_v63 = vor.u32 %v11021_v36, %v8353_v1 }
 0x59c   :  { %6486 = vmatpush.bf16.msrb.mxu3 %v8066_v11  ;;  %v6220_v11 = vadd.f32 %v6219_v5, %v6207_v39  ;;  %v8370_v39 = vor.u32 %v11025_v57, %v8369_v14  ;;  %v7873_v52 = vld [vmem:[%s17543_s6 + $0x208] sm:$0xf]  ;;  %v11057_v51 = vld [vmem:[%s17543_s6 + $0x6f4] sm:$0xf0] }
 0x59d   :  { %6474 = vmatpush.bf16.msrb.mxu2 %v7922_v61  ;;  %v7890_v61 = vor.u32 %v10905_v22, %v7889_v54  ;;  %v8001_v43 = vld [vmem:[%s17543_s6 + $0x308] sm:$0xf]  ;;  %v11089_v7 = vld [vmem:[%s17543_s6 + $0x7f4] sm:$0xf0]  ;;  %v7874_v53 = vor.u32 %v10901_v37, %v7873_v52  ;;  %v6234_v54 = vpop.f32.mrf.mxu3 }
 0x59e   :  { %v15206_v41 = vadd.f32 %v6232_v9, %v6220_v11  ;;  %v8497_v47 = vld [vmem:[%s17543_s6 + $0x6e8] sm:$0xf]  ;;  %v11017_v57 = vld [vmem:[%s17543_s6 + $0x5b4] sm:$0xf0] }
 0x59f   :  { %6449 = vmatpush.bf16.msrb.mxu0 %v7650_v33  ;;  %6462 = vmatpush.bf16.msrb.mxu1 %v7778_v49  ;;  %v8017_v33 = vld [vmem:[%s17543_s6 + $0x328] sm:$0xf]  ;;  %v8242_v49 = vor.u32 %v10993_v58, %v8241_v25  ;;  %v10985_v25 = vld [vmem:[%s17543_s6 + $0x4b4] sm:$0xf0]  ;;  %v6221_v58 = vpop.f32.mrf.mxu2  ;;  %v8498_v5 = vor.u32 %v11057_v51, %v8497_v47 }
 0x5a0   :  { %6487 = vmatpush.bf16.msrb.mxu3 %v8050_v38  ;;  %v8018_v38 = vor.u32 %v10937_v26, %v8017_v33  ;;  %v8481_v11 = vld [vmem:[%s17543_s6 + $0x6c8] sm:$0xf]  ;;  %v11053_v9 = vld [vmem:[%s17543_s6 + $0x6d4] sm:$0xf0] }
 0x5a1   :  { %6475 = vmatpush.bf16.msrb.mxu2 %v7906_v2  ;;  %v8209_v2 = vld [vmem:[%s17543_s6 + $0x4a8] sm:$0xf]  ;;  %v11085_v26 = vld [vmem:[%s17543_s6 + $0x7d4] sm:$0xf0] }
 0x5a2   :  { %v8609_v33 = vld [vmem:[%s17543_s6 + $0x7c8] sm:$0xf]  ;;  %v10981_v16 = vld [vmem:[%s17543_s6 + $0x494] sm:$0xf0] }
 0x5a3   :  { %6450 = vmatpush.bf16.msrb.mxu0 %v7634_v20  ;;  %6463 = vmatpush.bf16.msrb.mxu1 %v7762_v30  ;;  %v10933_v20 = vld [vmem:[%s17543_s6 + $0x314] sm:$0xf0]  ;;  %v8625_v30 = vld [vmem:[%s17543_s6 + $0x7e8] sm:$0xf]  ;;  %v8610_v1 = vor.u32 %v11085_v26, %v8609_v33 }
 0x5a4   :  { %6488 = vmatpush.bf16.msrb.mxu3 %v8034_v35  ;;  %v8002_v14 = vor.u32 %v10933_v20, %v8001_v43  ;;  %v8337_v35 = vld [vmem:[%s17543_s6 + $0x5a8] sm:$0xf]  ;;  %v8626_v22 = vor.u32 %v11089_v7, %v8625_v30  ;;  %v11013_v40 = vld [vmem:[%s17543_s6 + $0x594] sm:$0xf0] }
 0x5a5   :  { %6476 = vmatpush.bf16.msrb.mxu2 %v7890_v61  ;;  %v8321_v61 = vld [vmem:[%s17543_s6 + $0x588] sm:$0xf]  ;;  %v11081_v43 = vld [vmem:[%s17543_s6 + $0x7b4] sm:$0xf0] }
 0x5a6   :  { %v8465_v36 = vld [vmem:[%s17543_s6 + $0x6a8] sm:$0xf]  ;;  %v8322_v20 = vor.u32 %v11013_v40, %v8321_v61  ;;  %v10977_v51 = vld [vmem:[%s17543_s6 + $0x474] sm:$0xf0] }
 0x5a7   :  { %6451 = vmatpush.bf16.msrb.mxu0 %v7618_v59  ;;  %6464 = vmatpush.bf16.msrb.mxu1 %v7746_v32  ;;  %v8210_v59 = vor.u32 %v10985_v25, %v8209_v2  ;;  %v8338_v32 = vor.u32 %v11017_v57, %v8337_v35  ;;  %v8593_v37 = vld [vmem:[%s17543_s6 + $0x7a8] sm:$0xf]  ;;  %v11009_v7 = vld [vmem:[%s17543_s6 + $0x574] sm:$0xf0] }
 0x5a8   :  { %6489 = vmatpush.bf16.msrb.mxu3 %v8018_v38  ;;  %v11049_v38 = vld [vmem:[%s17543_s6 + $0x6b4] sm:$0xf0]  ;;  %v8177_v47 = vld [vmem:[%s17543_s6 + $0x468] sm:$0xf] }
 0x5a9   :  { %6477 = vmatpush.bf16.msrb.mxu2 %v7874_v53  ;;  %v8305_v30 = vld [vmem:[%s17543_s6 + $0x568] sm:$0xf]  ;;  %v8594_v53 = vor.u32 %v11081_v43, %v8593_v37  ;;  %v11045_v25 = vld [vmem:[%s17543_s6 + $0x694] sm:$0xf0] }
 0x5aa   :  { %6452 = vmatmul.bf16.vlgmr.msrb.gmra.mxu0 %v17613_v46  ;;  %6465 = vmatmul.bf16.vlgmr.msrb.gmra.mxu1 %v17614_v0  ;;  %v8449_v2 = vld [vmem:[%s17543_s6 + $0x688] sm:$0xf]  ;;  %v11077_v57 = vld [vmem:[%s17543_s6 + $0x794] sm:$0xf0]  ;;  %v8306_v54 = vor.u32 %v11009_v7, %v8305_v30 }
 0x5ab   :  { %6496 = vmatpush.bf16.msra.mxu0 %v8242_v49  ;;  %6509 = vmatpush.bf16.msra.mxu1 %v8370_v39  ;;  %v8193_v49 = vld [vmem:[%s17543_s6 + $0x488] sm:$0xf]  ;;  %v8482_v39 = vor.u32 %v11053_v9, %v8481_v11  ;;  %v8450_v9 = vor.u32 %v11045_v25, %v8449_v2  ;;  %v11005_v33 = vld [vmem:[%s17543_s6 + $0x554] sm:$0xf0] }
 0x5ac   :  { %6490 = vmatpush.bf16.msrb.mxu3 %v8002_v14  ;;  %6478 = vmatmul.bf16.vlgmr.msrb.gmra.mxu2 %v17615_v12  ;;  %v8194_v52 = vor.u32 %v10981_v16, %v8193_v49  ;;  %v6258_v14 = vpop.f32.mrf.mxu1  ;;  %v8577_v35 = vld [vmem:[%s17543_s6 + $0x788] sm:$0xf]  ;;  %v11041_v49 = vld [vmem:[%s17543_s6 + $0x674] sm:$0xf0] }
 0x5ad   :  { %6522 = vmatpush.bf16.msra.mxu2 %v8498_v5  ;;  %v8178_v5 = vor.u32 %v10977_v51, %v8177_v47  ;;  %v8578_v26 = vor.u32 %v11077_v57, %v8577_v35  ;;  %v11073_v61 = vld [vmem:[%s17543_s6 + $0x774] sm:$0xf0]  ;;  %v8417_v47 = vld [vmem:[%s17543_s6 + $0x648] sm:$0xf] }
 0x5ae   :  { %v11001_v37 = vld [vmem:[%s17543_s6 + $0x534] sm:$0xf0]  ;;  %v8545_v7 = vld [vmem:[%s17543_s6 + $0x748] sm:$0xf] }
 0x5af   :  { %6497 = vmatpush.bf16.msra.mxu0 %v8226_v19  ;;  %6510 = vmatpush.bf16.msra.mxu1 %v8354_v63  ;;  %v8466_v19 = vor.u32 %v11049_v38, %v8465_v36  ;;  %v6245_v63 = vpop.f32.mrf.mxu0  ;;  %v10969_v36 = vld [vmem:[%s17543_s6 + $0x434] sm:$0xf0]  ;;  %v8753_v35 = vld [vmem:[%s17543_s6 + $0x8e8] sm:$0xf] }
 0x5b0   :  { %6535 = vmatpush.bf16.msra.mxu3 %v8626_v22  ;;  %v6246_v58 = vadd.f32 %v6245_v63, %v15206_v41  ;;  %v8161_v22 = vld [vmem:[%s17543_s6 + $0x448] sm:$0xf]  ;;  %v10973_v41 = vld [vmem:[%s17543_s6 + $0x454] sm:$0xf0] }
 0x5b1   :  { %6491 = vmatmul.bf16.vlgmr.msrb.gmra.mxu3 %v17616_v6  ;;  %6523 = vmatpush.bf16.msra.mxu2 %v8482_v39  ;;  %v8162_v16 = vor.u32 %v10973_v41, %v8161_v22  ;;  %v8561_v39 = vld [vmem:[%s17543_s6 + $0x768] sm:$0xf]  ;;  %v11037_v51 = vld [vmem:[%s17543_s6 + $0x654] sm:$0xf0]  ;;  %v6271_v22 = vpop.f32.mrf.mxu2 }
 0x5b2   :  { %v6259_v11 = vadd.f32 %v6258_v14, %v6246_v58  ;;  %v11069_v63 = vld [vmem:[%s17543_s6 + $0x754] sm:$0xf0]  ;;  %v8257_v58 = vld [vmem:[%s17543_s6 + $0x508] sm:$0xf] }
 0x5b3   :  { %6498 = vmatpush.bf16.msra.mxu0 %v8210_v59  ;;  %6511 = vmatpush.bf16.msra.mxu1 %v8338_v32  ;;  %v8289_v59 = vld [vmem:[%s17543_s6 + $0x548] sm:$0xf]  ;;  %v10965_v25 = vld [vmem:[%s17543_s6 + $0x414] sm:$0xf0]  ;;  %v8546_v41 = vor.u32 %v11069_v63, %v8545_v7 }
 0x5b4   :  { %6536 = vmatpush.bf16.msra.mxu3 %v8610_v1  ;;  %v8433_v32 = vld [vmem:[%s17543_s6 + $0x668] sm:$0xf]  ;;  %v8290_v40 = vor.u32 %v11005_v33, %v8289_v59  ;;  %v10997_v14 = vld [vmem:[%s17543_s6 + $0x514] sm:$0xf0] }
 0x5b5   :  { %6524 = vmatpush.bf16.msra.mxu2 %v8466_v19  ;;  %v8145_v1 = vld [vmem:[%s17543_s6 + $0x428] sm:$0xf]  ;;  %v8434_v38 = vor.u32 %v11041_v49, %v8433_v32  ;;  %v6260_v19 = vpop.f32.mrf.mxu1  ;;  %v11121_v57 = vld [vmem:[%s17543_s6 + $0x8f4] sm:$0xf0]  ;;  %v6284_v32 = vpop.f32.mrf.mxu3 }
 0x5b6   :  { %v8146_v30 = vor.u32 %v10969_v36, %v8145_v1  ;;  %v8401_v59 = vld [vmem:[%s17543_s6 + $0x628] sm:$0xf]  ;;  %v11033_v33 = vld [vmem:[%s17543_s6 + $0x634] sm:$0xf0] }
 0x5b7   :  { %6499 = vmatpush.bf16.msra.mxu0 %v8194_v52  ;;  %6512 = vmatpush.bf16.msra.mxu1 %v8322_v20  ;;  %v8273_v52 = vld [vmem:[%s17543_s6 + $0x528] sm:$0xf]  ;;  %v6247_v43 = vpop.f32.mrf.mxu0  ;;  %v8562_v20 = vor.u32 %v11073_v61, %v8561_v39  ;;  %v11065_v39 = vld [vmem:[%s17543_s6 + $0x734] sm:$0xf0]  ;;  %v8258_v61 = vor.u32 %v10997_v14, %v8257_v58 }
 0x5b8   :  { %6537 = vmatpush.bf16.msra.mxu3 %v8594_v53  ;;  %v8129_v53 = vld [vmem:[%s17543_s6 + $0x408] sm:$0xf]  ;;  %v8274_v2 = vor.u32 %v11001_v37, %v8273_v52  ;;  %v11117_v52 = vld [vmem:[%s17543_s6 + $0x8d4] sm:$0xf0] }
 0x5b9   :  { %6525 = vmatpush.bf16.msra.mxu2 %v8450_v9  ;;  %v11153_v9 = vld [vmem:[%s17543_s6 + $0x9f4] sm:$0xf0]  ;;  %v8130_v49 = vor.u32 %v10965_v25, %v8129_v53  ;;  %v8737_v1 = vld [vmem:[%s17543_s6 + $0x8c8] sm:$0xf] }
 0x5ba   :  { %v8865_v37 = vld [vmem:[%s17543_s6 + $0x9c8] sm:$0xf]  ;;  %v11149_v43 = vld [vmem:[%s17543_s6 + $0x9d4] sm:$0xf0]  ;;  %v8738_v53 = vor.u32 %v11117_v52, %v8737_v1 }
 0x5bb   :  { %6500 = vmatpush.bf16.msra.mxu0 %v8178_v5  ;;  %6513 = vmatpush.bf16.msra.mxu1 %v8306_v54  ;;  %v8418_v5 = vor.u32 %v11037_v51, %v8417_v47  ;;  %v8881_v54 = vld [vmem:[%s17543_s6 + $0x9e8] sm:$0xf]  ;;  %v11029_v51 = vld [vmem:[%s17543_s6 + $0x614] sm:$0xf0]  ;;  %v8866_v58 = vor.u32 %v11149_v43, %v8865_v37 }
 0x5bc   :  { %6538 = vmatpush.bf16.msra.mxu3 %v8578_v26  ;;  %v6272_v26 = vadd.f32 %v6271_v22, %v6259_v11  ;;  %v8882_v11 = vor.u32 %v11153_v9, %v8881_v54  ;;  %v8385_v47 = vld [vmem:[%s17543_s6 + $0x608] sm:$0xf]  ;;  %v11185_v63 = vld [vmem:[%s17543_s6 + $0xaf4] sm:$0xf0] }
 0x5bd   :  { %6526 = vmatpush.bf16.msra.mxu2 %v8434_v38  ;;  %v8402_v38 = vor.u32 %v11033_v33, %v8401_v59  ;;  %v8513_v19 = vld [vmem:[%s17543_s6 + $0x708] sm:$0xf]  ;;  %v11217_v25 = vld [vmem:[%s17543_s6 + $0xbf4] sm:$0xf0]  ;;  %v8386_v14 = vor.u32 %v11029_v51, %v8385_v47  ;;  %v6286_v59 = vpop.f32.mrf.mxu3 }
 0x5be   :  { %v15405_v36 = vadd.f32 %v6284_v32, %v6272_v26  ;;  %v9009_v7 = vld [vmem:[%s17543_s6 + $0xae8] sm:$0xf]  ;;  %v11145_v9 = vld [vmem:[%s17543_s6 + $0x9b4] sm:$0xf0] }
 0x5bf   :  { %6501 = vmatpush.bf16.msra.mxu0 %v8162_v16  ;;  %6514 = vmatpush.bf16.msra.mxu1 %v8290_v40  ;;  %v8529_v16 = vld [vmem:[%s17543_s6 + $0x728] sm:$0xf]  ;;  %v8754_v40 = vor.u32 %v11121_v57, %v8753_v35  ;;  %v11113_v35 = vld [vmem:[%s17543_s6 + $0x8b4] sm:$0xf0]  ;;  %v6273_v57 = vpop.f32.mrf.mxu2  ;;  %v9010_v22 = vor.u32 %v11185_v63, %v9009_v7 }
 0x5c0   :  { %6539 = vmatpush.bf16.msra.mxu3 %v8562_v20  ;;  %v8530_v20 = vor.u32 %v11065_v39, %v8529_v16  ;;  %v8993_v26 = vld [vmem:[%s17543_s6 + $0xac8] sm:$0xf]  ;;  %v11181_v32 = vld [vmem:[%s17543_s6 + $0xad4] sm:$0xf0] }
 0x5c1   :  { %6527 = vmatpush.bf16.msra.mxu2 %v8418_v5  ;;  %v8721_v5 = vld [vmem:[%s17543_s6 + $0x8a8] sm:$0xf]  ;;  %v11213_v39 = vld [vmem:[%s17543_s6 + $0xbd4] sm:$0xf0] }
 0x5c2   :  { %v9121_v16 = vld [vmem:[%s17543_s6 + $0xbc8] sm:$0xf]  ;;  %v11109_v1 = vld [vmem:[%s17543_s6 + $0x894] sm:$0xf0] }
 0x5c3   :  { %6502 = vmatpush.bf16.msra.mxu0 %v8146_v30  ;;  %6515 = vmatpush.bf16.msra.mxu1 %v8274_v2  ;;  %v11061_v30 = vld [vmem:[%s17543_s6 + $0x714] sm:$0xf0]  ;;  %v9137_v2 = vld [vmem:[%s17543_s6 + $0xbe8] sm:$0xf]  ;;  %v9122_v37 = vor.u32 %v11213_v39, %v9121_v16 }
 0x5c4   :  { %6540 = vmatpush.bf16.msra.mxu3 %v8546_v41  ;;  %v8514_v54 = vor.u32 %v11061_v30, %v8513_v19  ;;  %v8849_v41 = vld [vmem:[%s17543_s6 + $0x9a8] sm:$0xf]  ;;  %v9138_v33 = vor.u32 %v11217_v25, %v9137_v2  ;;  %v11141_v52 = vld [vmem:[%s17543_s6 + $0x994] sm:$0xf0] }
 0x5c5   :  { %6528 = vmatpush.bf16.msra.mxu2 %v8402_v38  ;;  %v8833_v38 = vld [vmem:[%s17543_s6 + $0x988] sm:$0xf]  ;;  %v11209_v19 = vld [vmem:[%s17543_s6 + $0xbb4] sm:$0xf0] }
 0x5c6   :  { %v8977_v43 = vld [vmem:[%s17543_s6 + $0xaa8] sm:$0xf]  ;;  %v8834_v30 = vor.u32 %v11141_v52, %v8833_v38  ;;  %v11105_v63 = vld [vmem:[%s17543_s6 + $0x874] sm:$0xf0] }
 0x5c7   :  { %6503 = vmatpush.bf16.msra.mxu0 %v8130_v49  ;;  %6516 = vmatpush.bf16.msra.mxu1 %v8258_v61  ;;  %v8722_v49 = vor.u32 %v11113_v35, %v8721_v5  ;;  %v8850_v61 = vor.u32 %v11145_v9, %v8849_v41  ;;  %v9105_v51 = vld [vmem:[%s17543_s6 + $0xba8] sm:$0xf]  ;;  %v11137_v25 = vld [vmem:[%s17543_s6 + $0x974] sm:$0xf0] }
 0x5c8   :  { %6541 = vmatpush.bf16.msra.mxu3 %v8530_v20  ;;  %v11177_v20 = vld [vmem:[%s17543_s6 + $0xab4] sm:$0xf0]  ;;  %v8689_v7 = vld [vmem:[%s17543_s6 + $0x868] sm:$0xf] }
 0x5c9   :  { %6529 = vmatpush.bf16.msra.mxu2 %v8386_v14  ;;  %v8817_v2 = vld [vmem:[%s17543_s6 + $0x968] sm:$0xf]  ;;  %v9106_v14 = vor.u32 %v11209_v19, %v9105_v51  ;;  %v11173_v35 = vld [vmem:[%s17543_s6 + $0xa94] sm:$0xf0] }
 0x5ca   :  { %6504 = vmatmul.bf16.vlgmr.msra.gmra.mxu0 %v13040_v42  ;;  %6517 = vmatmul.bf16.vlgmr.msra.gmra.mxu1 %v13042_v13  ;;  %v8961_v5 = vld [vmem:[%s17543_s6 + $0xa88] sm:$0xf]  ;;  %v11205_v9 = vld [vmem:[%s17543_s6 + $0xb94] sm:$0xf0]  ;;  %v8818_v59 = vor.u32 %v11137_v25, %v8817_v2 }
 0x5cb   :  { %6548 = vmatpush.bf16.msrb.mxu0 %v8754_v40  ;;  %6561 = vmatpush.bf16.msrb.mxu1 %v8882_v11  ;;  %v8705_v40 = vld [vmem:[%s17543_s6 + $0x888] sm:$0xf]  ;;  %v8994_v11 = vor.u32 %v11181_v32, %v8993_v26  ;;  %v8962_v32 = vor.u32 %v11173_v35, %v8961_v5  ;;  %v11133_v16 = vld [vmem:[%s17543_s6 + $0x954] sm:$0xf0] }
 0x5cc   :  { %6542 = vmatpush.bf16.msra.mxu3 %v8514_v54  ;;  %6530 = vmatmul.bf16.vlgmr.msra.gmra.mxu2 %v13054_v60  ;;  %v8706_v47 = vor.u32 %v11109_v1, %v8705_v40  ;;  %v6310_v54 = vpop.f32.mrf.mxu1  ;;  %v9089_v41 = vld [vmem:[%s17543_s6 + $0xb88] sm:$0xf]  ;;  %v11169_v40 = vld [vmem:[%s17543_s6 + $0xa74] sm:$0xf0] }
 0x5cd   :  { %6574 = vmatpush.bf16.msrb.mxu2 %v9010_v22  ;;  %v8690_v22 = vor.u32 %v11105_v63, %v8689_v7  ;;  %v9090_v39 = vor.u32 %v11205_v9, %v9089_v41  ;;  %v11201_v38 = vld [vmem:[%s17543_s6 + $0xb74] sm:$0xf0]  ;;  %v8929_v7 = vld [vmem:[%s17543_s6 + $0xa48] sm:$0xf] }
 0x5ce   :  { %v11129_v51 = vld [vmem:[%s17543_s6 + $0x934] sm:$0xf0]  ;;  %v9057_v25 = vld [vmem:[%s17543_s6 + $0xb48] sm:$0xf] }
 0x5cf   :  { %6549 = vmatpush.bf16.msrb.mxu0 %v8738_v53  ;;  %6562 = vmatpush.bf16.msrb.mxu1 %v8866_v58  ;;  %v8978_v53 = vor.u32 %v11177_v20, %v8977_v43  ;;  %v6297_v58 = vpop.f32.mrf.mxu0  ;;  %v11097_v43 = vld [vmem:[%s17543_s6 + $0x834] sm:$0xf0]  ;;  %v9265_v41 = vld [vmem:[%s17543_s6 + $0xce8] sm:$0xf] }
 0x5d0   :  { %6587 = vmatpush.bf16.msrb.mxu3 %v9138_v33  ;;  %v6298_v57 = vadd.f32 %v6297_v58, %v15405_v36  ;;  %v8673_v33 = vld [vmem:[%s17543_s6 + $0x848] sm:$0xf]  ;;  %v11101_v36 = vld [vmem:[%s17543_s6 + $0x854] sm:$0xf0] }
 0x5d1   :  { %6543 = vmatmul.bf16.vlgmr.msra.gmra.mxu3 %v13071_v17  ;;  %6575 = vmatpush.bf16.msrb.mxu2 %v8994_v11  ;;  %v8674_v1 = vor.u32 %v11101_v36, %v8673_v33  ;;  %v9073_v11 = vld [vmem:[%s17543_s6 + $0xb68] sm:$0xf]  ;;  %v11165_v63 = vld [vmem:[%s17543_s6 + $0xa54] sm:$0xf0]  ;;  %v6323_v33 = vpop.f32.mrf.mxu2 }
 0x5d2   :  { %v6311_v26 = vadd.f32 %v6310_v54, %v6298_v57  ;;  %v11197_v58 = vld [vmem:[%s17543_s6 + $0xb54] sm:$0xf0]  ;;  %v8769_v57 = vld [vmem:[%s17543_s6 + $0x908] sm:$0xf] }
 0x5d3   :  { %6550 = vmatpush.bf16.msrb.mxu0 %v8722_v49  ;;  %6563 = vmatpush.bf16.msrb.mxu1 %v8850_v61  ;;  %v8801_v49 = vld [vmem:[%s17543_s6 + $0x948] sm:$0xf]  ;;  %v11093_v35 = vld [vmem:[%s17543_s6 + $0x814] sm:$0xf0]  ;;  %v9058_v36 = vor.u32 %v11197_v58, %v9057_v25 }
 0x5d4   :  { %6588 = vmatpush.bf16.msrb.mxu3 %v9122_v37  ;;  %v8945_v61 = vld [vmem:[%s17543_s6 + $0xa68] sm:$0xf]  ;;  %v8802_v52 = vor.u32 %v11133_v16, %v8801_v49  ;;  %v11125_v54 = vld [vmem:[%s17543_s6 + $0x914] sm:$0xf0] }
 0x5d5   :  { %6576 = vmatpush.bf16.msrb.mxu2 %v8978_v53  ;;  %v8657_v37 = vld [vmem:[%s17543_s6 + $0x828] sm:$0xf]  ;;  %v8946_v20 = vor.u32 %v11169_v40, %v8945_v61  ;;  %v6312_v53 = vpop.f32.mrf.mxu1  ;;  %v11249_v9 = vld [vmem:[%s17543_s6 + $0xcf4] sm:$0xf0]  ;;  %v6336_v61 = vpop.f32.mrf.mxu3 }
 0x5d6   :  { %v8658_v2 = vor.u32 %v11097_v43, %v8657_v37  ;;  %v8913_v49 = vld [vmem:[%s17543_s6 + $0xa28] sm:$0xf]  ;;  %v11161_v16 = vld [vmem:[%s17543_s6 + $0xa34] sm:$0xf0] }
 0x5d7   :  { %6551 = vmatpush.bf16.msrb.mxu0 %v8706_v47  ;;  %6564 = vmatpush.bf16.msrb.mxu1 %v8834_v30  ;;  %v8785_v47 = vld [vmem:[%s17543_s6 + $0x928] sm:$0xf]  ;;  %v6299_v19 = vpop.f32.mrf.mxu0  ;;  %v9074_v30 = vor.u32 %v11201_v38, %v9073_v11  ;;  %v11193_v11 = vld [vmem:[%s17543_s6 + $0xb34] sm:$0xf0]  ;;  %v8770_v38 = vor.u32 %v11125_v54, %v8769_v57 }
 0x5d8   :  { %6589 = vmatpush.bf16.msrb.mxu3 %v9106_v14  ;;  %v8641_v14 = vld [vmem:[%s17543_s6 + $0x808] sm:$0xf]  ;;  %v8786_v5 = vor.u32 %v11129_v51, %v8785_v47  ;;  %v11245_v47 = vld [vmem:[%s17543_s6 + $0xcd4] sm:$0xf0] }
 0x5d9   :  { %6577 = vmatpush.bf16.msrb.mxu2 %v8962_v32  ;;  %v11281_v32 = vld [vmem:[%s17543_s6 + $0xdf4] sm:$0xf0]  ;;  %v8642_v40 = vor.u32 %v11093_v35, %v8641_v14  ;;  %v9249_v37 = vld [vmem:[%s17543_s6 + $0xcc8] sm:$0xf] }
 0x5da   :  { %v9377_v51 = vld [vmem:[%s17543_s6 + $0xdc8] sm:$0xf]  ;;  %v11277_v19 = vld [vmem:[%s17543_s6 + $0xdd4] sm:$0xf0]  ;;  %v9250_v14 = vor.u32 %v11245_v47, %v9249_v37 }
 0x5db   :  { %6552 = vmatpush.bf16.msrb.mxu0 %v8690_v22  ;;  %6565 = vmatpush.bf16.msrb.mxu1 %v8818_v59  ;;  %v8930_v22 = vor.u32 %v11165_v63, %v8929_v7  ;;  %v9393_v59 = vld [vmem:[%s17543_s6 + $0xde8] sm:$0xf]  ;;  %v11157_v63 = vld [vmem:[%s17543_s6 + $0xa14] sm:$0xf0]  ;;  %v9378_v57 = vor.u32 %v11277_v19, %v9377_v51 }
 0x5dc   :  { %6590 = vmatpush.bf16.msrb.mxu3 %v9090_v39  ;;  %v6324_v39 = vadd.f32 %v6323_v33, %v6311_v26  ;;  %v9394_v26 = vor.u32 %v11281_v32, %v9393_v59  ;;  %v8897_v7 = vld [vmem:[%s17543_s6 + $0xa08] sm:$0xf]  ;;  %v11313_v58 = vld [vmem:[%s17543_s6 + $0xef4] sm:$0xf0] }
 0x5dd   :  { %6578 = vmatpush.bf16.msrb.mxu2 %v8946_v20  ;;  %v8914_v20 = vor.u32 %v11161_v16, %v8913_v49  ;;  %v9025_v53 = vld [vmem:[%s17543_s6 + $0xb08] sm:$0xf]  ;;  %v11345_v35 = vld [vmem:[%s17543_s6 + $0xff4] sm:$0xf0]  ;;  %v8898_v54 = vor.u32 %v11157_v63, %v8897_v7  ;;  %v6338_v49 = vpop.f32.mrf.mxu3 }
 0x5de   :  { %v15604_v43 = vadd.f32 %v6336_v61, %v6324_v39  ;;  %v9521_v25 = vld [vmem:[%s17543_s6 + $0xee8] sm:$0xf]  ;;  %v11273_v32 = vld [vmem:[%s17543_s6 + $0xdb4] sm:$0xf0] }
 0x5df   :  { %6553 = vmatpush.bf16.msrb.mxu0 %v8674_v1  ;;  %6566 = vmatpush.bf16.msrb.mxu1 %v8802_v52  ;;  %v9041_v1 = vld [vmem:[%s17543_s6 + $0xb28] sm:$0xf]  ;;  %v9266_v52 = vor.u32 %v11249_v9, %v9265_v41  ;;  %v11241_v41 = vld [vmem:[%s17543_s6 + $0xcb4] sm:$0xf0]  ;;  %v6325_v9 = vpop.f32.mrf.mxu2  ;;  %v9522_v33 = vor.u32 %v11313_v58, %v9521_v25 }
 0x5e0   :  { %6591 = vmatpush.bf16.msrb.mxu3 %v9074_v30  ;;  %v9042_v30 = vor.u32 %v11193_v11, %v9041_v1  ;;  %v9505_v39 = vld [vmem:[%s17543_s6 + $0xec8] sm:$0xf]  ;;  %v11309_v61 = vld [vmem:[%s17543_s6 + $0xed4] sm:$0xf0] }
 0x5e1   :  { %6579 = vmatpush.bf16.msrb.mxu2 %v8930_v22  ;;  %v9233_v22 = vld [vmem:[%s17543_s6 + $0xca8] sm:$0xf]  ;;  %v11341_v11 = vld [vmem:[%s17543_s6 + $0xfd4] sm:$0xf0] }
 0x5e2   :  { %v9633_v1 = vld [vmem:[%s17543_s6 + $0xfc8] sm:$0xf]  ;;  %v11237_v37 = vld [vmem:[%s17543_s6 + $0xc94] sm:$0xf0] }
 0x5e3   :  { %6554 = vmatpush.bf16.msrb.mxu0 %v8658_v2  ;;  %6567 = vmatpush.bf16.msrb.mxu1 %v8786_v5  ;;  %v11189_v2 = vld [vmem:[%s17543_s6 + $0xb14] sm:$0xf0]  ;;  %v9649_v5 = vld [vmem:[%s17543_s6 + $0xfe8] sm:$0xf]  ;;  %v9634_v51 = vor.u32 %v11341_v11, %v9633_v1 }
 0x5e4   :  { %6592 = vmatpush.bf16.msrb.mxu3 %v9058_v36  ;;  %v9026_v59 = vor.u32 %v11189_v2, %v9025_v53  ;;  %v9361_v36 = vld [vmem:[%s17543_s6 + $0xda8] sm:$0xf]  ;;  %v9650_v16 = vor.u32 %v11345_v35, %v9649_v5  ;;  %v11269_v47 = vld [vmem:[%s17543_s6 + $0xd94] sm:$0xf0] }
 0x5e5   :  { %6580 = vmatpush.bf16.msrb.mxu2 %v8914_v20  ;;  %v9345_v20 = vld [vmem:[%s17543_s6 + $0xd88] sm:$0xf]  ;;  %v11337_v53 = vld [vmem:[%s17543_s6 + $0xfb4] sm:$0xf0] }
 0x5e6   :  { %v9489_v19 = vld [vmem:[%s17543_s6 + $0xea8] sm:$0xf]  ;;  %v9346_v2 = vor.u32 %v11269_v47, %v9345_v20  ;;  %v11233_v58 = vld [vmem:[%s17543_s6 + $0xc74] sm:$0xf0] }
 0x5e7   :  { %6555 = vmatpush.bf16.msrb.mxu0 %v8642_v40  ;;  %6568 = vmatpush.bf16.msrb.mxu1 %v8770_v38  ;;  %v9234_v40 = vor.u32 %v11241_v41, %v9233_v22  ;;  %v9362_v38 = vor.u32 %v11273_v32, %v9361_v36  ;;  %v9617_v63 = vld [vmem:[%s17543_s6 + $0xfa8] sm:$0xf]  ;;  %v11265_v35 = vld [vmem:[%s17543_s6 + $0xd74] sm:$0xf0] }
 0x5e8   :  { %6593 = vmatpush.bf16.msrb.mxu3 %v9042_v30  ;;  %v11305_v30 = vld [vmem:[%s17543_s6 + $0xeb4] sm:$0xf0]  ;;  %v9201_v25 = vld [vmem:[%s17543_s6 + $0xc68] sm:$0xf] }
 0x5e9   :  { %6581 = vmatpush.bf16.msrb.mxu2 %v8898_v54  ;;  %v9329_v5 = vld [vmem:[%s17543_s6 + $0xd68] sm:$0xf]  ;;  %v9618_v54 = vor.u32 %v11337_v53, %v9617_v63  ;;  %v11301_v41 = vld [vmem:[%s17543_s6 + $0xe94] sm:$0xf0] }
 0x5ea   :  { %6556 = vmatmul.bf16.vlgmr.msrb.gmra.mxu0 %v13220_v28  ;;  %6569 = vmatmul.bf16.vlgmr.msrb.gmra.mxu1 %v13222_v50  ;;  %v9473_v22 = vld [vmem:[%s17543_s6 + $0xe88] sm:$0xf]  ;;  %v11333_v32 = vld [vmem:[%s17543_s6 + $0xf94] sm:$0xf0]  ;;  %v9330_v49 = vor.u32 %v11265_v35, %v9329_v5 }
 0x5eb   :  { %6600 = vmatpush.bf16.msra.mxu0 %v9266_v52  ;;  %6613 = vmatpush.bf16.msra.mxu1 %v9394_v26  ;;  %v9217_v52 = vld [vmem:[%s17543_s6 + $0xc88] sm:$0xf]  ;;  %v9506_v26 = vor.u32 %v11309_v61, %v9505_v39  ;;  %v9474_v61 = vor.u32 %v11301_v41, %v9473_v22  ;;  %v11261_v1 = vld [vmem:[%s17543_s6 + $0xd54] sm:$0xf0] }
 0x5ec   :  { %6594 = vmatpush.bf16.msrb.mxu3 %v9026_v59  ;;  %6582 = vmatmul.bf16.vlgmr.msrb.gmra.mxu2 %v13244_v3  ;;  %v9218_v7 = vor.u32 %v11237_v37, %v9217_v52  ;;  %v6362_v59 = vpop.f32.mrf.mxu1  ;;  %v9601_v36 = vld [vmem:[%s17543_s6 + $0xf88] sm:$0xf]  ;;  %v11297_v52 = vld [vmem:[%s17543_s6 + $0xe74] sm:$0xf0] }
 0x5ed   :  { %6626 = vmatpush.bf16.msra.mxu2 %v9522_v33  ;;  %v9202_v33 = vor.u32 %v11233_v58, %v9201_v25  ;;  %v9602_v11 = vor.u32 %v11333_v32, %v9601_v36  ;;  %v11329_v20 = vld [vmem:[%s17543_s6 + $0xf74] sm:$0xf0]  ;;  %v9441_v25 = vld [vmem:[%s17543_s6 + $0xe48] sm:$0xf] }
 0x5ee   :  { %v11257_v63 = vld [vmem:[%s17543_s6 + $0xd34] sm:$0xf0]  ;;  %v9569_v35 = vld [vmem:[%s17543_s6 + $0xf48] sm:$0xf] }
 0x5ef   :  { %6601 = vmatpush.bf16.msra.mxu0 %v9250_v14  ;;  %6614 = vmatpush.bf16.msra.mxu1 %v9378_v57  ;;  %v9490_v14 = vor.u32 %v11305_v30, %v9489_v19  ;;  %v6349_v57 = vpop.f32.mrf.mxu0  ;;  %v11225_v19 = vld [vmem:[%s17543_s6 + $0xc34] sm:$0xf0]  ;;  %v9777_v36 = vld [vmem:[%s17543_s6 + $0x10e8] sm:$0xf] }
 0x5f0   :  { %6639 = vmatpush.bf16.msra.mxu3 %v9650_v16  ;;  %v6350_v9 = vadd.f32 %v6349_v57, %v15604_v43  ;;  %v9185_v16 = vld [vmem:[%s17543_s6 + $0xc48] sm:$0xf]  ;;  %v11229_v43 = vld [vmem:[%s17543_s6 + $0xc54] sm:$0xf0] }
 0x5f1   :  { %6595 = vmatmul.bf16.vlgmr.msrb.gmra.mxu3 %v13252_v27  ;;  %6627 = vmatpush.bf16.msra.mxu2 %v9506_v26  ;;  %v9186_v37 = vor.u32 %v11229_v43, %v9185_v16  ;;  %v9585_v26 = vld [vmem:[%s17543_s6 + $0xf68] sm:$0xf]  ;;  %v11293_v58 = vld [vmem:[%s17543_s6 + $0xe54] sm:$0xf0]  ;;  %v6375_v16 = vpop.f32.mrf.mxu2 }
 0x5f2   :  { %v6363_v39 = vadd.f32 %v6362_v59, %v6350_v9  ;;  %v11325_v57 = vld [vmem:[%s17543_s6 + $0xf54] sm:$0xf0]  ;;  %v9281_v9 = vld [vmem:[%s17543_s6 + $0xd08] sm:$0xf] }
 0x5f3   :  { %6602 = vmatpush.bf16.msra.mxu0 %v9234_v40  ;;  %6615 = vmatpush.bf16.msra.mxu1 %v9362_v38  ;;  %v9313_v40 = vld [vmem:[%s17543_s6 + $0xd48] sm:$0xf]  ;;  %v11221_v41 = vld [vmem:[%s17543_s6 + $0xc14] sm:$0xf0]  ;;  %v9570_v43 = vor.u32 %v11325_v57, %v9569_v35 }
 0x5f4   :  { %6640 = vmatpush.bf16.msra.mxu3 %v9634_v51  ;;  %v9457_v38 = vld [vmem:[%s17543_s6 + $0xe68] sm:$0xf]  ;;  %v9314_v47 = vor.u32 %v11261_v1, %v9313_v40  ;;  %v11253_v59 = vld [vmem:[%s17543_s6 + $0xd14] sm:$0xf0] }
 0x5f5   :  { %6628 = vmatpush.bf16.msra.mxu2 %v9490_v14  ;;  %v9169_v51 = vld [vmem:[%s17543_s6 + $0xc28] sm:$0xf]  ;;  %v9458_v30 = vor.u32 %v11297_v52, %v9457_v38  ;;  %v6364_v14 = vpop.f32.mrf.mxu1  ;;  %v11377_v32 = vld [vmem:[%s17543_s6 + $0x10f4] sm:$0xf0]  ;;  %v6388_v38 = vpop.f32.mrf.mxu3 }
 0x5f6   :  { %v9170_v5 = vor.u32 %v11225_v19, %v9169_v51  ;;  %v9425_v40 = vld [vmem:[%s17543_s6 + $0xe28] sm:$0xf]  ;;  %v11289_v1 = vld [vmem:[%s17543_s6 + $0xe34] sm:$0xf0] }
 0x5f7   :  { %6603 = vmatpush.bf16.msra.mxu0 %v9218_v7  ;;  %6616 = vmatpush.bf16.msra.mxu1 %v9346_v2  ;;  %v9297_v7 = vld [vmem:[%s17543_s6 + $0xd28] sm:$0xf]  ;;  %v6351_v53 = vpop.f32.mrf.mxu0  ;;  %v9586_v2 = vor.u32 %v11329_v20, %v9585_v26  ;;  %v11321_v26 = vld [vmem:[%s17543_s6 + $0xf34] sm:$0xf0]  ;;  %v9282_v20 = vor.u32 %v11253_v59, %v9281_v9 }
 0x5f8   :  { %6641 = vmatpush.bf16.msra.mxu3 %v9618_v54  ;;  %v9153_v54 = vld [vmem:[%s17543_s6 + $0xc08] sm:$0xf]  ;;  %v9298_v22 = vor.u32 %v11257_v63, %v9297_v7  ;;  %v11373_v7 = vld [vmem:[%s17543_s6 + $0x10d4] sm:$0xf0] }
 0x5f9   :  { %6629 = vmatpush.bf16.msra.mxu2 %v9474_v61  ;;  %v11409_v61 = vld [vmem:[%s17543_s6 + $0x11f4] sm:$0xf0]  ;;  %v9154_v52 = vor.u32 %v11221_v41, %v9153_v54  ;;  %v9761_v51 = vld [vmem:[%s17543_s6 + $0x10c8] sm:$0xf] }
 0x5fa   :  { %v9889_v63 = vld [vmem:[%s17543_s6 + $0x11c8] sm:$0xf]  ;;  %v11405_v53 = vld [vmem:[%s17543_s6 + $0x11d4] sm:$0xf0]  ;;  %v9762_v54 = vor.u32 %v11373_v7, %v9761_v51 }
 0x5fb   :  { %6604 = vmatpush.bf16.msra.mxu0 %v9202_v33  ;;  %6617 = vmatpush.bf16.msra.mxu1 %v9330_v49  ;;  %v9442_v33 = vor.u32 %v11293_v58, %v9441_v25  ;;  %v9905_v49 = vld [vmem:[%s17543_s6 + $0x11e8] sm:$0xf]  ;;  %v11285_v58 = vld [vmem:[%s17543_s6 + $0xe14] sm:$0xf0]  ;;  %v9890_v9 = vor.u32 %v11405_v53, %v9889_v63 }
 0x5fc   :  { %6642 = vmatpush.bf16.msra.mxu3 %v9602_v11  ;;  %v6376_v11 = vadd.f32 %v6375_v16, %v6363_v39  ;;  %v9906_v39 = vor.u32 %v11409_v61, %v9905_v49  ;;  %v9409_v25 = vld [vmem:[%s17543_s6 + $0xe08] sm:$0xf]  ;;  %v11441_v57 = vld [vmem:[%s17543_s6 + $0x12f4] sm:$0xf0] }
 0x5fd   :  { %6630 = vmatpush.bf16.msra.mxu2 %v9458_v30  ;;  %v9426_v30 = vor.u32 %v11289_v1, %v9425_v40  ;;  %v9537_v14 = vld [vmem:[%s17543_s6 + $0xf08] sm:$0xf]  ;;  %v11473_v41 = vld [vmem:[%s17543_s6 + $0x13f4] sm:$0xf0]  ;;  %v9410_v59 = vor.u32 %v11285_v58, %v9409_v25  ;;  %v6390_v40 = vpop.f32.mrf.mxu3 }
 0x5fe   :  { %v15803_v19 = vadd.f32 %v6388_v38, %v6376_v11  ;;  %v10033_v35 = vld [vmem:[%s17543_s6 + $0x12e8] sm:$0xf]  ;;  %v11401_v61 = vld [vmem:[%s17543_s6 + $0x11b4] sm:$0xf0] }
 0x5ff   :  { %6605 = vmatpush.bf16.msra.mxu0 %v9186_v37  ;;  %6618 = vmatpush.bf16.msra.mxu1 %v9314_v47  ;;  %v9553_v37 = vld [vmem:[%s17543_s6 + $0xf28] sm:$0xf]  ;;  %v9778_v47 = vor.u32 %v11377_v32, %v9777_v36  ;;  %v11369_v36 = vld [vmem:[%s17543_s6 + $0x10b4] sm:$0xf0]  ;;  %v6377_v32 = vpop.f32.mrf.mxu2  ;;  %v10034_v16 = vor.u32 %v11441_v57, %v10033_v35 }
 0x600   :  { %6643 = vmatpush.bf16.msra.mxu3 %v9586_v2  ;;  %v9554_v2 = vor.u32 %v11321_v26, %v9553_v37  ;;  %v10017_v11 = vld [vmem:[%s17543_s6 + $0x12c8] sm:$0xf]  ;;  %v11437_v38 = vld [vmem:[%s17543_s6 + $0x12d4] sm:$0xf0] }
 0x601   :  { %6631 = vmatpush.bf16.msra.mxu2 %v9442_v33  ;;  %v9745_v33 = vld [vmem:[%s17543_s6 + $0x10a8] sm:$0xf]  ;;  %v11469_v26 = vld [vmem:[%s17543_s6 + $0x13d4] sm:$0xf0] }
 0x602   :  { %v10145_v37 = vld [vmem:[%s17543_s6 + $0x13c8] sm:$0xf]  ;;  %v11365_v51 = vld [vmem:[%s17543_s6 + $0x1094] sm:$0xf0] }
 0x603   :  { %6606 = vmatpush.bf16.msra.mxu0 %v9170_v5  ;;  %6619 = vmatpush.bf16.msra.mxu1 %v9298_v22  ;;  %v11317_v5 = vld [vmem:[%s17543_s6 + $0xf14] sm:$0xf0]  ;;  %v10161_v22 = vld [vmem:[%s17543_s6 + $0x13e8] sm:$0xf]  ;;  %v10146_v63 = vor.u32 %v11469_v26, %v10145_v37 }
 0x604   :  { %6644 = vmatpush.bf16.msra.mxu3 %v9570_v43  ;;  %v9538_v49 = vor.u32 %v11317_v5, %v9537_v14  ;;  %v9873_v43 = vld [vmem:[%s17543_s6 + $0x11a8] sm:$0xf]  ;;  %v10162_v1 = vor.u32 %v11473_v41, %v10161_v22  ;;  %v11397_v7 = vld [vmem:[%s17543_s6 + $0x1194] sm:$0xf0] }
 0x605   :  { %6632 = vmatpush.bf16.msra.mxu2 %v9426_v30  ;;  %v9857_v30 = vld [vmem:[%s17543_s6 + $0x1188] sm:$0xf]  ;;  %v11465_v14 = vld [vmem:[%s17543_s6 + $0x13b4] sm:$0xf0] }
 0x606   :  { %v10001_v53 = vld [vmem:[%s17543_s6 + $0x12a8] sm:$0xf]  ;;  %v9858_v5 = vor.u32 %v11397_v7, %v9857_v30  ;;  %v11361_v57 = vld [vmem:[%s17543_s6 + $0x1074] sm:$0xf0] }
 0x607   :  { %6607 = vmatpush.bf16.msra.mxu0 %v9154_v52  ;;  %6620 = vmatpush.bf16.msra.mxu1 %v9282_v20  ;;  %v9746_v52 = vor.u32 %v11369_v36, %v9745_v33  ;;  %v9874_v20 = vor.u32 %v11401_v61, %v9873_v43  ;;  %v10129_v58 = vld [vmem:[%s17543_s6 + $0x13a8] sm:$0xf]  ;;  %v11393_v41 = vld [vmem:[%s17543_s6 + $0x1174] sm:$0xf0] }
 0x608   :  { %6645 = vmatpush.bf16.msra.mxu3 %v9554_v2  ;;  %v11433_v2 = vld [vmem:[%s17543_s6 + $0x12b4] sm:$0xf0]  ;;  %v9713_v35 = vld [vmem:[%s17543_s6 + $0x1068] sm:$0xf] }
 0x609   :  { %6633 = vmatpush.bf16.msra.mxu2 %v9410_v59  ;;  %v9841_v22 = vld [vmem:[%s17543_s6 + $0x1168] sm:$0xf]  ;;  %v10130_v59 = vor.u32 %v11465_v14, %v10129_v58  ;;  %v11429_v36 = vld [vmem:[%s17543_s6 + $0x1294] sm:$0xf0] }
 0x60a   :  { %6608 = vmatmul.bf16.vlgmr.msra.gmra.mxu0 %v13385_v21  ;;  %6621 = vmatmul.bf16.vlgmr.msra.gmra.mxu1 %v13395_v48  ;;  %v9985_v33 = vld [vmem:[%s17543_s6 + $0x1288] sm:$0xf]  ;;  %v11461_v61 = vld [vmem:[%s17543_s6 + $0x1394] sm:$0xf0]  ;;  %v9842_v40 = vor.u32 %v11393_v41, %v9841_v22 }
 0x60b   :  { %6652 = vmatpush.bf16.msrb.mxu0 %v9778_v47  ;;  %6665 = vmatpush.bf16.msrb.mxu1 %v9906_v39  ;;  %v9729_v47 = vld [vmem:[%s17543_s6 + $0x1088] sm:$0xf]  ;;  %v10018_v39 = vor.u32 %v11437_v38, %v10017_v11  ;;  %v9986_v38 = vor.u32 %v11429_v36, %v9985_v33  ;;  %v11389_v37 = vld [vmem:[%s17543_s6 + $0x1154] sm:$0xf0] }
 0x60c   :  { %6646 = vmatpush.bf16.msra.mxu3 %v9538_v49  ;;  %6634 = vmatmul.bf16.vlgmr.msra.gmra.mxu2 %v13419_v8  ;;  %v9730_v25 = vor.u32 %v11365_v51, %v9729_v47  ;;  %v6414_v49 = vpop.f32.mrf.mxu1  ;;  %v10113_v43 = vld [vmem:[%s17543_s6 + $0x1388] sm:$0xf]  ;;  %v11425_v47 = vld [vmem:[%s17543_s6 + $0x1274] sm:$0xf0] }
 0x60d   :  { %6678 = vmatpush.bf16.msrb.mxu2 %v10034_v16  ;;  %v9714_v16 = vor.u32 %v11361_v57, %v9713_v35  ;;  %v10114_v26 = vor.u32 %v11461_v61, %v10113_v43  ;;  %v11457_v30 = vld [vmem:[%s17543_s6 + $0x1374] sm:$0xf0]  ;;  %v9953_v35 = vld [vmem:[%s17543_s6 + $0x1248] sm:$0xf] }
 0x60e   :  { %v11385_v58 = vld [vmem:[%s17543_s6 + $0x1134] sm:$0xf0]  ;;  %v10081_v41 = vld [vmem:[%s17543_s6 + $0x1348] sm:$0xf] }
 0x60f   :  { %6653 = vmatpush.bf16.msrb.mxu0 %v9762_v54  ;;  %6666 = vmatpush.bf16.msrb.mxu1 %v9890_v9  ;;  %v10002_v54 = vor.u32 %v11433_v2, %v10001_v53  ;;  %v6401_v9 = vpop.f32.mrf.mxu0  ;;  %v11353_v53 = vld [vmem:[%s17543_s6 + $0x1034] sm:$0xf0]  ;;  %v10289_v43 = vld [vmem:[%s17543_s6 + $0x14e8] sm:$0xf] }
 0x610   :  { %6691 = vmatpush.bf16.msrb.mxu3 %v10162_v1  ;;  %v6402_v32 = vadd.f32 %v6401_v9, %v15803_v19  ;;  %v9697_v1 = vld [vmem:[%s17543_s6 + $0x1048] sm:$0xf]  ;;  %v11357_v19 = vld [vmem:[%s17543_s6 + $0x1054] sm:$0xf0] }
 0x611   :  { %6647 = vmatmul.bf16.vlgmr.msra.gmra.mxu3 %v13448_v44  ;;  %6679 = vmatpush.bf16.msrb.mxu2 %v10018_v39  ;;  %v9698_v51 = vor.u32 %v11357_v19, %v9697_v1  ;;  %v10097_v39 = vld [vmem:[%s17543_s6 + $0x1368] sm:$0xf]  ;;  %v11421_v57 = vld [vmem:[%s17543_s6 + $0x1254] sm:$0xf0]  ;;  %v6427_v1 = vpop.f32.mrf.mxu2 }
 0x612   :  { %v6415_v11 = vadd.f32 %v6414_v49, %v6402_v32  ;;  %v11453_v9 = vld [vmem:[%s17543_s6 + $0x1354] sm:$0xf0]  ;;  %v9793_v32 = vld [vmem:[%s17543_s6 + $0x1108] sm:$0xf] }
 0x613   :  { %6654 = vmatpush.bf16.msrb.mxu0 %v9746_v52  ;;  %6667 = vmatpush.bf16.msrb.mxu1 %v9874_v20  ;;  %v9825_v52 = vld [vmem:[%s17543_s6 + $0x1148] sm:$0xf]  ;;  %v11349_v36 = vld [vmem:[%s17543_s6 + $0x1014] sm:$0xf0]  ;;  %v10082_v19 = vor.u32 %v11453_v9, %v10081_v41 }
 0x614   :  { %6692 = vmatpush.bf16.msrb.mxu3 %v10146_v63  ;;  %v9969_v20 = vld [vmem:[%s17543_s6 + $0x1268] sm:$0xf]  ;;  %v9826_v7 = vor.u32 %v11389_v37, %v9825_v52  ;;  %v11381_v49 = vld [vmem:[%s17543_s6 + $0x1114] sm:$0xf0] }
 0x615   :  { %6680 = vmatpush.bf16.msrb.mxu2 %v10002_v54  ;;  %v9681_v63 = vld [vmem:[%s17543_s6 + $0x1028] sm:$0xf]  ;;  %v9970_v2 = vor.u32 %v11425_v47, %v9969_v20  ;;  %v6416_v54 = vpop.f32.mrf.mxu1  ;;  %v11505_v61 = vld [vmem:[%s17543_s6 + $0x14f4] sm:$0xf0]  ;;  %v6440_v20 = vpop.f32.mrf.mxu3 }
 0x616   :  { %v9682_v22 = vor.u32 %v11353_v53, %v9681_v63  ;;  %v9937_v52 = vld [vmem:[%s17543_s6 + $0x1228] sm:$0xf]  ;;  %v11417_v37 = vld [vmem:[%s17543_s6 + $0x1234] sm:$0xf0] }
 0x617   :  { %6655 = vmatpush.bf16.msrb.mxu0 %v9730_v25  ;;  %6668 = vmatpush.bf16.msrb.mxu1 %v9858_v5  ;;  %v9809_v25 = vld [vmem:[%s17543_s6 + $0x1128] sm:$0xf]  ;;  %v6403_v14 = vpop.f32.mrf.mxu0  ;;  %v10098_v5 = vor.u32 %v11457_v30, %v10097_v39  ;;  %v11449_v39 = vld [vmem:[%s17543_s6 + $0x1334] sm:$0xf0]  ;;  %v9794_v30 = vor.u32 %v11381_v49, %v9793_v32 }
 0x618   :  { %6693 = vmatpush.bf16.msrb.mxu3 %v10130_v59  ;;  %v9665_v59 = vld [vmem:[%s17543_s6 + $0x1008] sm:$0xf]  ;;  %v9810_v33 = vor.u32 %v11385_v58, %v9809_v25  ;;  %v11501_v25 = vld [vmem:[%s17543_s6 + $0x14d4] sm:$0xf0] }
 0x619   :  { %6681 = vmatpush.bf16.msrb.mxu2 %v9986_v38  ;;  %v11537_v38 = vld [vmem:[%s17543_s6 + $0x15f4] sm:$0xf0]  ;;  %v9666_v47 = vor.u32 %v11349_v36, %v9665_v59  ;;  %v10273_v63 = vld [vmem:[%s17543_s6 + $0x14c8] sm:$0xf] }
 0x61a   :  { %v10401_v58 = vld [vmem:[%s17543_s6 + $0x15c8] sm:$0xf]  ;;  %v11533_v14 = vld [vmem:[%s17543_s6 + $0x15d4] sm:$0xf0]  ;;  %v10274_v59 = vor.u32 %v11501_v25, %v10273_v63 }
 0x61b   :  { %6656 = vmatpush.bf16.msrb.mxu0 %v9714_v16  ;;  %6669 = vmatpush.bf16.msrb.mxu1 %v9842_v40  ;;  %v9954_v16 = vor.u32 %v11421_v57, %v9953_v35  ;;  %v10417_v40 = vld [vmem:[%s17543_s6 + $0x15e8] sm:$0xf]  ;;  %v11413_v57 = vld [vmem:[%s17543_s6 + $0x1214] sm:$0xf0]  ;;  %v10402_v32 = vor.u32 %v11533_v14, %v10401_v58 }
 0x61c   :  { %6694 = vmatpush.bf16.msrb.mxu3 %v10114_v26  ;;  %v6428_v26 = vadd.f32 %v6427_v1, %v6415_v11  ;;  %v10418_v11 = vor.u32 %v11537_v38, %v10417_v40  ;;  %v9921_v35 = vld [vmem:[%s17543_s6 + $0x1208] sm:$0xf]  ;;  %v11569_v9 = vld [vmem:[%s17543_s6 + $0x16f4] sm:$0xf0] }
 0x61d   :  { %6682 = vmatpush.bf16.msrb.mxu2 %v9970_v2  ;;  %v9938_v2 = vor.u32 %v11417_v37, %v9937_v52  ;;  %v10049_v54 = vld [vmem:[%s17543_s6 + $0x1308] sm:$0xf]  ;;  %v11601_v36 = vld [vmem:[%s17543_s6 + $0x17f4] sm:$0xf0]  ;;  %v9922_v49 = vor.u32 %v11413_v57, %v9921_v35  ;;  %v6442_v52 = vpop.f32.mrf.mxu3  ;;  %v11658_v35 = vld [vmem:[%s17545_s8] sm:$0xf] }
 0x61e   :  { %v16002_v53 = vadd.f32 %v6440_v20, %v6428_v26  ;;  %v10545_v41 = vld [vmem:[%s17543_s6 + $0x16e8] sm:$0xf]  ;;  %v11529_v38 = vld [vmem:[%s17543_s6 + $0x15b4] sm:$0xf0]  ;;  %v1974_v57 = vperm.slane %v11658_v35, 2 }
 0x61f   :  { %6657 = vmatpush.bf16.msrb.mxu0 %v9698_v51  ;;  %6670 = vmatpush.bf16.msrb.mxu1 %v9826_v7  ;;  %v10065_v51 = vld [vmem:[%s17543_s6 + $0x1328] sm:$0xf]  ;;  %v10290_v7 = vor.u32 %v11505_v61, %v10289_v43  ;;  %v11497_v43 = vld [vmem:[%s17543_s6 + $0x14b4] sm:$0xf0]  ;;  %v6429_v61 = vpop.f32.mrf.mxu2  ;;  %v10546_v1 = vor.u32 %v11569_v9, %v10545_v41 }
 0x620   :  { %6695 = vmatpush.bf16.msrb.mxu3 %v10098_v5  ;;  %v10066_v5 = vor.u32 %v11449_v39, %v10065_v51  ;;  %v10529_v26 = vld [vmem:[%s17543_s6 + $0x16c8] sm:$0xf]  ;;  %v11565_v20 = vld [vmem:[%s17543_s6 + $0x16d4] sm:$0xf0] }
 0x621   :  { %6683 = vmatpush.bf16.msrb.mxu2 %v9954_v16  ;;  %v10257_v16 = vld [vmem:[%s17543_s6 + $0x14a8] sm:$0xf]  ;;  %v11597_v39 = vld [vmem:[%s17543_s6 + $0x17d4] sm:$0xf0] }
 0x622   :  { %v10657_v51 = vld [vmem:[%s17543_s6 + $0x17c8] sm:$0xf]  ;;  %v11493_v63 = vld [vmem:[%s17543_s6 + $0x1494] sm:$0xf0] }
 0x623   :  { %6658 = vmatpush.bf16.msrb.mxu0 %v9682_v22  ;;  %6671 = vmatpush.bf16.msrb.mxu1 %v9810_v33  ;;  %v11445_v22 = vld [vmem:[%s17543_s6 + $0x1314] sm:$0xf0]  ;;  %v10673_v33 = vld [vmem:[%s17543_s6 + $0x17e8] sm:$0xf]  ;;  %v10658_v58 = vor.u32 %v11597_v39, %v10657_v51 }
 0x624   :  { %6696 = vmatpush.bf16.msrb.mxu3 %v10082_v19  ;;  %v10050_v40 = vor.u32 %v11445_v22, %v10049_v54  ;;  %v10385_v19 = vld [vmem:[%s17543_s6 + $0x15a8] sm:$0xf]  ;;  %v10674_v37 = vor.u32 %v11601_v36, %v10673_v33  ;;  %v11525_v25 = vld [vmem:[%s17543_s6 + $0x1594] sm:$0xf0] }
 0x625   :  { %6684 = vmatpush.bf16.msrb.mxu2 %v9938_v2  ;;  %v10369_v2 = vld [vmem:[%s17543_s6 + $0x1588] sm:$0xf]  ;;  %v11593_v41 = vld [vmem:[%s17543_s6 + $0x17b4] sm:$0xf0] }
 0x626   :  { %v10513_v14 = vld [vmem:[%s17543_s6 + $0x16a8] sm:$0xf]  ;;  %v10370_v9 = vor.u32 %v11525_v25, %v10369_v2  ;;  %v11489_v33 = vld [vmem:[%s17543_s6 + $0x1474] sm:$0xf0] }
 0x627   :  { %6659 = vmatpush.bf16.msrb.mxu0 %v9666_v47  ;;  %6672 = vmatpush.bf16.msrb.mxu1 %v9794_v30  ;;  %v10258_v47 = vor.u32 %v11497_v43, %v10257_v16  ;;  %v10386_v30 = vor.u32 %v11529_v38, %v10385_v19  ;;  %v10641_v22 = vld [vmem:[%s17543_s6 + $0x17a8] sm:$0xf]  ;;  %v6453_v16 = vpop.f32.mrf.mxu0  ;;  %v6466_v19 = vpop.f32.mrf.mxu1  ;;  %v11553_v2 = vld [vmem:[%s17543_s6 + $0x1674] sm:$0xf0] }
 0x628   :  { %6697 = vmatpush.bf16.msrb.mxu3 %v10066_v5  ;;  %v11561_v5 = vld [vmem:[%s17543_s6 + $0x16b4] sm:$0xf0]  ;;  %v10642_v43 = vor.u32 %v11593_v41, %v10641_v22  ;;  %v10497_v61 = vld [vmem:[%s17543_s6 + $0x1688] sm:$0xf] }
 0x629   :  { %6685 = vmatpush.bf16.msrb.mxu2 %v9922_v49  ;;  %v10514_v36 = vor.u32 %v11561_v5, %v10513_v14  ;;  %v11521_v49 = vld [vmem:[%s17543_s6 + $0x1574] sm:$0xf0]  ;;  %v10625_v52 = vld [vmem:[%s17543_s6 + $0x1788] sm:$0xf] }
 0x62a   :  { %6660 = vmatmul.bf16.vlgmr.msrb.gmra.mxu0 %v13597_v24  ;;  %6673 = vmatmul.bf16.vlgmr.msrb.gmra.mxu1 %v13607_v55  ;;  %v11585_v14 = vld [vmem:[%s17543_s6 + $0x1774] sm:$0xf0]  ;;  %v10193_v35 = vld [vmem:[%s17543_s6 + $0x1428] sm:$0xf] }
 0x62b   :  { %6704 = vmatpush.bf16.msra.mxu0 %v10290_v7  ;;  %6717 = vmatpush.bf16.msra.mxu1 %v10418_v11  ;;  %v10241_v7 = vld [vmem:[%s17543_s6 + $0x1488] sm:$0xf]  ;;  %v10530_v11 = vor.u32 %v11565_v20, %v10529_v26  ;;  %v11513_v41 = vld [vmem:[%s17543_s6 + $0x1534] sm:$0xf0] }
 0x62c   :  { %6698 = vmatpush.bf16.msrb.mxu3 %v10050_v40  ;;  %6686 = vmatmul.bf16.vlgmr.msrb.gmra.mxu2 %v13637_v31  ;;  %v10242_v54 = vor.u32 %v11493_v63, %v10241_v7  ;;  %v11557_v40 = vld [vmem:[%s17543_s6 + $0x1694] sm:$0xf0]  ;;  %v10209_v20 = vld [vmem:[%s17543_s6 + $0x1448] sm:$0xf] }
 0x62d   :  { %6730 = vmatpush.bf16.msra.mxu2 %v10546_v1  ;;  %v6454_v1 = vadd.f32 %v6453_v16, %v1974_v57  ;;  %v10498_v39 = vor.u32 %v11557_v40, %v10497_v61  ;;  %v11517_v7 = vld [vmem:[%s17543_s6 + $0x1554] sm:$0xf0]  ;;  %v10321_v22 = vld [vmem:[%s17543_s6 + $0x1528] sm:$0xf] }
 0x62e   :  { %v11481_v57 = vld [vmem:[%s17543_s6 + $0x1434] sm:$0xf0]  ;;  %v10593_v16 = vld [vmem:[%s17543_s6 + $0x1748] sm:$0xf]  ;;  %v10322_v40 = vor.u32 %v11513_v41, %v10321_v22  ;;  %v7715_v41 = vld [vmem:[%s17543_s6 + $0xd8] sm:$0xf0] }
 0x62f   :  { %6705 = vmatpush.bf16.msra.mxu0 %v10274_v59  ;;  %6718 = vmatpush.bf16.msra.mxu1 %v10402_v32  ;;  %v10225_v59 = vld [vmem:[%s17543_s6 + $0x1468] sm:$0xf]  ;;  %v6467_v51 = vadd.f32 %v6466_v19, %v6454_v1  ;;  %v11477_v1 = vld [vmem:[%s17543_s6 + $0x1414] sm:$0xf0] }
 0x630   :  { %6743 = vmatpush.bf16.msra.mxu3 %v10674_v37  ;;  %v10353_v32 = vld [vmem:[%s17543_s6 + $0x1568] sm:$0xf]  ;;  %v10226_v38 = vor.u32 %v11489_v33, %v10225_v59  ;;  %v11589_v37 = vld [vmem:[%s17543_s6 + $0x1794] sm:$0xf0] }
 0x631   :  { %6699 = vmatmul.bf16.vlgmr.msrb.gmra.mxu3 %v13651_v29  ;;  %6731 = vmatpush.bf16.msra.mxu2 %v10530_v11  ;;  %v10354_v26 = vor.u32 %v11521_v49, %v10353_v32  ;;  %v10626_v63 = vor.u32 %v11589_v37, %v10625_v52  ;;  %v10481_v11 = vld [vmem:[%s17543_s6 + $0x1668] sm:$0xf]  ;;  %v6468_v32 = vpop.f32.mrf.mxu1  ;;  %v10194_v49 = vor.u32 %v11481_v57, %v10193_v35  ;;  %v10863_v37 = vld [vmem:[%s17543_s6 + $0xec] sm:$0xf] }
 0x632   :  { %v10465_v33 = vld [vmem:[%s17543_s6 + $0x1648] sm:$0xf]  ;;  %v10859_v57 = vld [vmem:[%s17543_s6 + $0xcc] sm:$0xf]  ;;  %v11541_v32 = vld [vmem:[%s17543_s6 + $0x1614] sm:$0xf0] }
 0x633   :  { %6706 = vmatpush.bf16.msra.mxu0 %v10258_v47  ;;  %6719 = vmatpush.bf16.msra.mxu1 %v10386_v30  ;;  %v11485_v47 = vld [vmem:[%s17543_s6 + $0x1454] sm:$0xf0]  ;;  %v10337_v30 = vld [vmem:[%s17543_s6 + $0x1548] sm:$0xf] }
 0x634   :  { %6744 = vmatpush.bf16.msra.mxu3 %v10658_v58  ;;  %v10210_v25 = vor.u32 %v11485_v47, %v10209_v20  ;;  %v10609_v58 = vld [vmem:[%s17543_s6 + $0x1768] sm:$0xf]  ;;  %v10338_v5 = vor.u32 %v11517_v7, %v10337_v30  ;;  %v10895_v20 = vld [vmem:[%s17543_s6 + $0x1ec] sm:$0xf]  ;;  %v6479_v47 = vpop.f32.mrf.mxu2  ;;  %v7859_v30 = vld [vmem:[%s17543_s6 + $0x1f8] sm:$0xf0] }
 0x635   :  { %6732 = vmatpush.bf16.msra.mxu2 %v10514_v36  ;;  %v10610_v59 = vor.u32 %v11585_v14, %v10609_v58  ;;  %v11549_v36 = vld [vmem:[%s17543_s6 + $0x1654] sm:$0xf0]  ;;  %v10177_v61 = vld [vmem:[%s17543_s6 + $0x1408] sm:$0xf] }
 0x636   :  { %v10305_v19 = vld [vmem:[%s17543_s6 + $0x1508] sm:$0xf]  ;;  %v10466_v52 = vor.u32 %v11549_v36, %v10465_v33  ;;  %v11577_v14 = vld [vmem:[%s17543_s6 + $0x1734] sm:$0xf0] }
 0x637   :  { %6707 = vmatpush.bf16.msra.mxu0 %v10242_v54  ;;  %6720 = vmatpush.bf16.msra.mxu1 %v10370_v9  ;;  %v10482_v54 = vor.u32 %v11553_v2, %v10481_v11  ;;  %v6455_v9 = vpop.f32.mrf.mxu0  ;;  %v10449_v7 = vld [vmem:[%s17543_s6 + $0x1628] sm:$0xf]  ;;  %v6480_v11 = vadd.f32 %v6479_v47, %v6467_v51  ;;  %v6492_v2 = vpop.f32.mrf.mxu3  ;;  %v7862_v51 = vor.u32 %v10895_v20, %v7859_v30  ;;  %v10887_v30 = vld [vmem:[%s17543_s6 + $0x1ac] sm:$0xf] }
 0x638   :  { %6745 = vmatpush.bf16.msra.mxu3 %v10642_v43  ;;  %v11581_v43 = vld [vmem:[%s17543_s6 + $0x1754] sm:$0xf0]  ;;  %v10577_v58 = vld [vmem:[%s17543_s6 + $0x1728] sm:$0xf]  ;;  %v10891_v9 = vld [vmem:[%s17543_s6 + $0x1cc] sm:$0xf] }
 0x639   :  { %6733 = vmatpush.bf16.msra.mxu2 %v10498_v39  ;;  %v10594_v39 = vor.u32 %v11581_v43, %v10593_v16  ;;  %v10578_v33 = vor.u32 %v11577_v14, %v10577_v58  ;;  %v10433_v36 = vld [vmem:[%s17543_s6 + $0x1608] sm:$0xf]  ;;  %v11573_v16 = vld [vmem:[%s17543_s6 + $0x1714] sm:$0xf0]  ;;  %v10927_v43 = vld [vmem:[%s17543_s6 + $0x2ec] sm:$0xf] }
 0x63a   :  { %v10955_v14 = vld [vmem:[%s17543_s6 + $0x3cc] sm:$0xf] }
 0x63b   :  { %6708 = vmatpush.bf16.msra.mxu0 %v10226_v38  ;;  %6721 = vmatpush.bf16.msra.mxu1 %v10354_v26  ;;  %v11509_v38 = vld [vmem:[%s17543_s6 + $0x1514] sm:$0xf0]  ;;  %v7731_v26 = vld [vmem:[%s17543_s6 + $0xf8] sm:$0xf0] }
 0x63c   :  { %6746 = vmatpush.bf16.msra.mxu3 %v10626_v63  ;;  %v11545_v63 = vld [vmem:[%s17543_s6 + $0x1634] sm:$0xf0]  ;;  %v7734_v35 = vor.u32 %v10863_v37, %v7731_v26  ;;  %v10855_v37 = vld [vmem:[%s17543_s6 + $0xac] sm:$0xf]  ;;  %v7699_v26 = vld [vmem:[%s17543_s6 + $0xb8] sm:$0xf0]  ;;  %v6481_v20 = vpop.f32.mrf.mxu2 }
 0x63d   :  { %6734 = vmatpush.bf16.msra.mxu2 %v10482_v54  ;;  %v16203_v54 = vadd.f32 %v6492_v2, %v6480_v11  ;;  %v10450_v22 = vor.u32 %v11545_v63, %v10449_v7  ;;  %v7827_v7 = vld [vmem:[%s17543_s6 + $0x1b8] sm:$0xf0]  ;;  %v10923_v2 = vld [vmem:[%s17543_s6 + $0x2cc] sm:$0xf]  ;;  %v7702_v58 = vor.u32 %v10855_v37, %v7699_v26 }
 0x63e   :  { %v10915_v26 = vld [vmem:[%s17543_s6 + $0x28c] sm:$0xf]  ;;  %v7939_v20 = vld [vmem:[%s17543_s6 + $0x298] sm:$0xf0] }
 0x63f   :  { %6709 = vmatpush.bf16.msra.mxu0 %v10210_v25  ;;  %6722 = vmatpush.bf16.msra.mxu1 %v10338_v5  ;;  %v10178_v25 = vor.u32 %v11477_v1, %v10177_v61  ;;  %v10306_v5 = vor.u32 %v11509_v38, %v10305_v19  ;;  %v7987_v61 = vld [vmem:[%s17543_s6 + $0x2f8] sm:$0xf0]  ;;  %v10959_v1 = vld [vmem:[%s17543_s6 + $0x3ec] sm:$0xf]  ;;  %v6494_v63 = vpop.f32.mrf.mxu3 }
 0x640   :  { %6747 = vmatpush.bf16.msra.mxu3 %v10610_v59  ;;  %v7843_v59 = vld [vmem:[%s17543_s6 + $0x1d8] sm:$0xf0] }
 0x641   :  { %6735 = vmatpush.bf16.msra.mxu2 %v10466_v52  ;;  %v8115_v19 = vld [vmem:[%s17543_s6 + $0x3f8] sm:$0xf0]  ;;  %v7846_v38 = vor.u32 %v10891_v9, %v7843_v59  ;;  %v10434_v52 = vor.u32 %v11541_v32, %v10433_v36 }
 0x642   :  { %v8118_v11 = vor.u32 %v10959_v1, %v8115_v19  ;;  %v7811_v9 = vld [vmem:[%s17543_s6 + $0x198] sm:$0xf0]  ;;  %v10879_v19 = vld [vmem:[%s17543_s6 + $0x16c] sm:$0xf] }
 0x643   :  { %6710 = vmatpush.bf16.msra.mxu0 %v10194_v49  ;;  %6723 = vmatpush.bf16.msra.mxu1 %v10322_v40  ;;  %v10561_v49 = vld [vmem:[%s17543_s6 + $0x1708] sm:$0xf]  ;;  %v7718_v40 = vor.u32 %v10859_v57, %v7715_v41  ;;  %v10851_v57 = vld [vmem:[%s17543_s6 + $0x8c] sm:$0xf]  ;;  %v7955_v36 = vld [vmem:[%s17543_s6 + $0x2b8] sm:$0xf0] }
 0x644   :  { %6748 = vmatpush.bf16.msra.mxu3 %v10594_v39  ;;  %v10562_v47 = vor.u32 %v11573_v16, %v10561_v49  ;;  %v7990_v39 = vor.u32 %v10927_v43, %v7987_v61  ;;  %v10883_v41 = vld [vmem:[%s17543_s6 + $0x18c] sm:$0xf]  ;;  %v8083_v16 = vld [vmem:[%s17543_s6 + $0x3b8] sm:$0xf0] }
 0x645   :  { %6736 = vmatpush.bf16.msra.mxu2 %v10450_v22  ;;  %v10951_v49 = vld [vmem:[%s17543_s6 + $0x3ac] sm:$0xf]  ;;  %v7814_v43 = vor.u32 %v10883_v41, %v7811_v9  ;;  %v8067_v63 = vld [vmem:[%s17543_s6 + $0x398] sm:$0xf0] }
 0x646   :  { %v10847_v61 = vld [vmem:[%s17543_s6 + $0x6c] sm:$0xf]  ;;  %v8086_v37 = vor.u32 %v10951_v49, %v8083_v16  ;;  %v8051_v9 = vld [vmem:[%s17543_s6 + $0x378] sm:$0xf0] }
 0x647   :  { %6711 = vmatpush.bf16.msra.mxu0 %v10178_v25  ;;  %6724 = vmatpush.bf16.msra.mxu1 %v10306_v5  ;;  %v7971_v25 = vld [vmem:[%s17543_s6 + $0x2d8] sm:$0xf0]  ;;  %v10943_v41 = vld [vmem:[%s17543_s6 + $0x36c] sm:$0xf] }
 0x648   :  { %6749 = vmatpush.bf16.msra.mxu3 %v10578_v33  ;;  %v8099_v5 = vld [vmem:[%s17543_s6 + $0x3d8] sm:$0xf0]  ;;  %v7974_v22 = vor.u32 %v10923_v2, %v7971_v25  ;;  %v10919_v33 = vld [vmem:[%s17543_s6 + $0x2ac] sm:$0xf] }
 0x649   :  { %6737 = vmatpush.bf16.msra.mxu2 %v10434_v52  ;;  %v8102_v59 = vor.u32 %v10955_v14, %v8099_v5  ;;  %v7958_v1 = vor.u32 %v10919_v33, %v7955_v36  ;;  %v6505_v52 = vpop.f32.mrf.mxu0  ;;  %v10843_v2 = vld [vmem:[%s17543_s6 + $0x4c] sm:$0xf]  ;;  %v7779_v5 = vld [vmem:[%s17543_s6 + $0x158] sm:$0xf0] }
 0x64a   :  { %6712 = vmatmul.bf16.vlgmr.msra.gmra.mxu0 %v13809_v15  ;;  %6725 = vmatmul.bf16.vlgmr.msra.gmra.mxu1 %v13819_v34  ;;  %v10875_v14 = vld [vmem:[%s17543_s6 + $0x14c] sm:$0xf]  ;;  %v7635_v36 = vld [vmem:[%s17543_s6 + $0x38] sm:$0xf0] }
 0x64b   :  { %6756 = vmatpush.bf16.msrb.mxu0 %v7734_v35  ;;  %6769 = vmatpush.bf16.msrb.mxu1 %v7862_v51  ;;  %v7830_v35 = vor.u32 %v10887_v30, %v7827_v7  ;;  %v7683_v51 = vld [vmem:[%s17543_s6 + $0x98] sm:$0xf0]  ;;  %v10947_v7 = vld [vmem:[%s17543_s6 + $0x38c] sm:$0xf] }
 0x64c   :  { %6750 = vmatpush.bf16.msra.mxu3 %v10562_v47  ;;  %6738 = vmatmul.bf16.vlgmr.msra.gmra.mxu2 %v13855_v45  ;;  %v7686_v32 = vor.u32 %v10851_v57, %v7683_v51  ;;  %v6506_v47 = vadd.f32 %v6505_v52, %v16203_v54  ;;  %v7651_v54 = vld [vmem:[%s17543_s6 + $0x58] sm:$0xf0]  ;;  %v10911_v57 = vld [vmem:[%s17543_s6 + $0x26c] sm:$0xf] }
 0x64d   :  { %6782 = vmatpush.bf16.msrb.mxu2 %v7990_v39  ;;  %v6518_v39 = vpop.f32.mrf.mxu1  ;;  %v7923_v51 = vld [vmem:[%s17543_s6 + $0x278] sm:$0xf0]  ;;  %v10839_v33 = vld [vmem:[%s17543_s6 + $0x2c] sm:$0xf] }
 0x64e   :  { %v6519_v25 = vadd.f32 %v6518_v39, %v6506_v47  ;;  %v10871_v49 = vld [vmem:[%s17543_s6 + $0x12c] sm:$0xf]  ;;  %v7763_v16 = vld [vmem:[%s17543_s6 + $0x138] sm:$0xf0] }
 0x64f   :  { %6757 = vmatpush.bf16.msrb.mxu0 %v7718_v40  ;;  %6770 = vmatpush.bf16.msrb.mxu1 %v7846_v38  ;;  %v7667_v40 = vld [vmem:[%s17543_s6 + $0x78] sm:$0xf0]  ;;  %v10939_v52 = vld [vmem:[%s17543_s6 + $0x34c] sm:$0xf] }
 0x650   :  { %6795 = vmatpush.bf16.msrb.mxu3 %v8118_v11  ;;  %v7795_v38 = vld [vmem:[%s17543_s6 + $0x178] sm:$0xf0]  ;;  %v7670_v30 = vor.u32 %v10847_v61, %v7667_v40  ;;  %v8054_v61 = vor.u32 %v10943_v41, %v8051_v9  ;;  %v10907_v40 = vld [vmem:[%s17543_s6 + $0x24c] sm:$0xf] }
 0x651   :  { %6751 = vmatmul.bf16.vlgmr.msra.gmra.mxu3 %v13865_v10  ;;  %6783 = vmatpush.bf16.msrb.mxu2 %v7974_v22  ;;  %v7798_v11 = vor.u32 %v10879_v19, %v7795_v38  ;;  %v7654_v22 = vor.u32 %v10843_v2, %v7651_v54  ;;  %v7638_v38 = vor.u32 %v10839_v33, %v7635_v36  ;;  %v7619_v47 = vld [vmem:[%s17543_s6 + $0x18] sm:$0xf0]  ;;  %v10867_v39 = vld [vmem:[%s17543_s6 + $0x10c] sm:$0xf]  ;;  %v6531_v54 = vpop.f32.mrf.mxu2 }
 0x652   :  { %v11023_v2 = vld [vmem:[%s17543_s6 + $0x5ec] sm:$0xf]  ;;  %v8019_v9 = vld [vmem:[%s17543_s6 + $0x338] sm:$0xf0] }
 0x653   :  { %6758 = vmatpush.bf16.msrb.mxu0 %v7702_v58  ;;  %6771 = vmatpush.bf16.msrb.mxu1 %v7830_v35  ;;  %v7942_v58 = vor.u32 %v10915_v26, %v7939_v20  ;;  %v8070_v35 = vor.u32 %v10947_v7, %v8067_v63  ;;  %v10835_v26 = vld [vmem:[%s17543_s6 + $0xc] sm:$0xf]  ;;  %v7766_v20 = vor.u32 %v10871_v49, %v7763_v16  ;;  %v8227_v16 = vld [vmem:[%s17543_s6 + $0x4d8] sm:$0xf0] }
 0x654   :  { %6796 = vmatpush.bf16.msrb.mxu3 %v8102_v59  ;;  %v7782_v59 = vor.u32 %v10875_v14, %v7779_v5  ;;  %v10991_v63 = vld [vmem:[%s17543_s6 + $0x4ec] sm:$0xf]  ;;  %v8371_v14 = vld [vmem:[%s17543_s6 + $0x5f8] sm:$0xf0] }
 0x655   :  { %6784 = vmatpush.bf16.msrb.mxu2 %v7958_v1  ;;  %v7907_v1 = vld [vmem:[%s17543_s6 + $0x258] sm:$0xf0]  ;;  %v6520_v19 = vpop.f32.mrf.mxu1  ;;  %v10903_v5 = vld [vmem:[%s17543_s6 + $0x22c] sm:$0xf] }
 0x656   :  { %v7910_v7 = vor.u32 %v10907_v40, %v7907_v1  ;;  %v10935_v41 = vld [vmem:[%s17543_s6 + $0x32c] sm:$0xf]  ;;  %v7875_v19 = vld [vmem:[%s17543_s6 + $0x218] sm:$0xf0] }
 0x657   :  { %6759 = vmatpush.bf16.msrb.mxu0 %v7686_v32  ;;  %6772 = vmatpush.bf16.msrb.mxu1 %v7814_v43  ;;  %v7926_v32 = vor.u32 %v10911_v57, %v7923_v51  ;;  %v6507_v43 = vpop.f32.mrf.mxu0  ;;  %v6532_v57 = vadd.f32 %v6531_v54, %v6519_v25  ;;  %v6544_v51 = vpop.f32.mrf.mxu3  ;;  %v10987_v36 = vld [vmem:[%s17543_s6 + $0x4cc] sm:$0xf]  ;;  %v8374_v25 = vor.u32 %v11023_v2, %v8371_v14 }
 0x658   :  { %6797 = vmatpush.bf16.msrb.mxu3 %v8086_v37  ;;  %v8035_v37 = vld [vmem:[%s17543_s6 + $0x358] sm:$0xf0]  ;;  %v11019_v43 = vld [vmem:[%s17543_s6 + $0x5cc] sm:$0xf]  ;;  %v8022_v40 = vor.u32 %v10935_v41, %v8019_v9 }
 0x659   :  { %6785 = vmatpush.bf16.msrb.mxu2 %v7942_v58  ;;  %v8038_v58 = vor.u32 %v10939_v52, %v8035_v37  ;;  %v10899_v1 = vld [vmem:[%s17543_s6 + $0x20c] sm:$0xf]  ;;  %v8003_v52 = vld [vmem:[%s17543_s6 + $0x318] sm:$0xf0]  ;;  %v6533_v2 = vpop.f32.mrf.mxu2 }
 0x65a   :  { %v11055_v37 = vld [vmem:[%s17543_s6 + $0x6ec] sm:$0xf]  ;;  %v8611_v9 = vld [vmem:[%s17543_s6 + $0x7d8] sm:$0xf0] }
 0x65b   :  { %6760 = vmatpush.bf16.msrb.mxu0 %v7670_v30  ;;  %6773 = vmatpush.bf16.msrb.mxu1 %v7798_v11  ;;  %v7747_v30 = vld [vmem:[%s17543_s6 + $0x118] sm:$0xf0]  ;;  %v11015_v14 = vld [vmem:[%s17543_s6 + $0x5ac] sm:$0xf] }
 0x65c   :  { %6798 = vmatpush.bf16.msrb.mxu3 %v8070_v35  ;;  %v8243_v11 = vld [vmem:[%s17543_s6 + $0x4f8] sm:$0xf0]  ;;  %v11083_v41 = vld [vmem:[%s17543_s6 + $0x7cc] sm:$0xf] }
 0x65d   :  { %6786 = vmatpush.bf16.msrb.mxu2 %v7926_v32  ;;  %v7891_v35 = vld [vmem:[%s17543_s6 + $0x238] sm:$0xf0]  ;;  %v8246_v33 = vor.u32 %v10991_v63, %v8243_v11  ;;  %v16402_v32 = vadd.f32 %v6544_v51, %v6532_v57  ;;  %v10983_v63 = vld [vmem:[%s17543_s6 + $0x4ac] sm:$0xf] }
 0x65e   :  { %v7894_v49 = vor.u32 %v10903_v5, %v7891_v35  ;;  %v8211_v11 = vld [vmem:[%s17543_s6 + $0x4b8] sm:$0xf0]  ;;  %v11051_v51 = vld [vmem:[%s17543_s6 + $0x6cc] sm:$0xf] }
 0x65f   :  { %6761 = vmatpush.bf16.msrb.mxu0 %v7654_v22  ;;  %6774 = vmatpush.bf16.msrb.mxu1 %v7782_v59  ;;  %v7622_v22 = vor.u32 %v10835_v26, %v7619_v47  ;;  %v7750_v59 = vor.u32 %v10867_v39, %v7747_v30  ;;  %v8499_v26 = vld [vmem:[%s17543_s6 + $0x6f8] sm:$0xf0]  ;;  %v11087_v47 = vld [vmem:[%s17543_s6 + $0x7ec] sm:$0xf]  ;;  %v6546_v35 = vpop.f32.mrf.mxu3 }
 0x660   :  { %6799 = vmatpush.bf16.msrb.mxu3 %v8054_v61  ;;  %v8355_v61 = vld [vmem:[%s17543_s6 + $0x5d8] sm:$0xf0]  ;;  %v11075_v2 = vld [vmem:[%s17543_s6 + $0x78c] sm:$0xf] }
 0x661   :  { %6787 = vmatpush.bf16.msrb.mxu2 %v7910_v7  ;;  %v8627_v39 = vld [vmem:[%s17543_s6 + $0x7f8] sm:$0xf0]  ;;  %v8358_v30 = vor.u32 %v11019_v43, %v8355_v61  ;;  %v7878_v7 = vor.u32 %v10899_v1, %v7875_v19  ;;  %v11047_v43 = vld [vmem:[%s17543_s6 + $0x6ac] sm:$0xf] }
 0x662   :  { %v8339_v5 = vld [vmem:[%s17543_s6 + $0x5b8] sm:$0xf0]  ;;  %v8630_v57 = vor.u32 %v11087_v47, %v8627_v39  ;;  %v11079_v1 = vld [vmem:[%s17543_s6 + $0x7ac] sm:$0xf] }
 0x663   :  { %6762 = vmatpush.bf16.msrb.mxu0 %v7638_v38  ;;  %6775 = vmatpush.bf16.msrb.mxu1 %v7766_v20  ;;  %v10931_v38 = vld [vmem:[%s17543_s6 + $0x30c] sm:$0xf]  ;;  %v8230_v20 = vor.u32 %v10987_v36, %v8227_v16  ;;  %v8614_v16 = vor.u32 %v11083_v41, %v8611_v9  ;;  %v8467_v61 = vld [vmem:[%s17543_s6 + $0x6b8] sm:$0xf0] }
 0x664   :  { %6800 = vmatpush.bf16.msrb.mxu3 %v8038_v58  ;;  %v8006_v54 = vor.u32 %v10931_v38, %v8003_v52  ;;  %v8502_v58 = vor.u32 %v11055_v37, %v8499_v26  ;;  %v8595_v19 = vld [vmem:[%s17543_s6 + $0x7b8] sm:$0xf0]  ;;  %v10975_v52 = vld [vmem:[%s17543_s6 + $0x46c] sm:$0xf]  ;;  %v8470_v37 = vor.u32 %v11047_v43, %v8467_v61 }
 0x665   :  { %6788 = vmatpush.bf16.msrb.mxu2 %v7894_v49  ;;  %v8323_v49 = vld [vmem:[%s17543_s6 + $0x598] sm:$0xf0]  ;;  %v11007_v26 = vld [vmem:[%s17543_s6 + $0x56c] sm:$0xf]  ;;  %v8598_v47 = vor.u32 %v11079_v1, %v8595_v19 }
 0x666   :  { %v11043_v39 = vld [vmem:[%s17543_s6 + $0x68c] sm:$0xf]  ;;  %v8435_v41 = vld [vmem:[%s17543_s6 + $0x678] sm:$0xf0] }
 0x667   :  { %6763 = vmatpush.bf16.msrb.mxu0 %v7622_v22  ;;  %6776 = vmatpush.bf16.msrb.mxu1 %v7750_v59  ;;  %v8214_v22 = vor.u32 %v10983_v63, %v8211_v11  ;;  %v10979_v59 = vld [vmem:[%s17543_s6 + $0x48c] sm:$0xf]  ;;  %v6570_v63 = vpop.f32.mrf.mxu1  ;;  %v8275_v43 = vld [vmem:[%s17543_s6 + $0x538] sm:$0xf0] }
 0x668   :  { %6801 = vmatpush.bf16.msrb.mxu3 %v8022_v40  ;;  %v11035_v1 = vld [vmem:[%s17543_s6 + $0x64c] sm:$0xf]  ;;  %v8419_v19 = vld [vmem:[%s17543_s6 + $0x658] sm:$0xf0] }
 0x669   :  { %6789 = vmatpush.bf16.msrb.mxu2 %v7878_v7 }
 0x66a   :  { %6764 = vmatmul.bf16.vlgmr.msrb.gmra.mxu0 %v17613_v46  ;;  %6777 = vmatmul.bf16.vlgmr.msrb.gmra.mxu1 %v17614_v0  ;;  %v8483_v46 = vld [vmem:[%s17543_s6 + $0x6d8] sm:$0xf0]  ;;  %v8342_v0 = vor.u32 %v11015_v14, %v8339_v5  ;;  %v10971_v14 = vld [vmem:[%s17543_s6 + $0x44c] sm:$0xf] }
 0x66b   :  { %6808 = vmatpush.bf16.msra.mxu0 %v8246_v33  ;;  %6821 = vmatpush.bf16.msra.mxu1 %v8374_v25  ;;  %v8195_v33 = vld [vmem:[%s17543_s6 + $0x498] sm:$0xf0]  ;;  %v8486_v36 = vor.u32 %v11051_v51, %v8483_v46  ;;  %v11011_v25 = vld [vmem:[%s17543_s6 + $0x58c] sm:$0xf] }
 0x66c   :  { %6802 = vmatpush.bf16.msrb.mxu3 %v8006_v54  ;;  %6790 = vmatmul.bf16.vlgmr.msrb.gmra.mxu2 %v17615_v12  ;;  %v8198_v40 = vor.u32 %v10979_v59, %v8195_v33  ;;  %v8326_v38 = vor.u32 %v11011_v25, %v8323_v49  ;;  %v8179_v12 = vld [vmem:[%s17543_s6 + $0x478] sm:$0xf0] }
 0x66d   :  { %6834 = vmatpush.bf16.msra.mxu2 %v8502_v58  ;;  %v8182_v11 = vor.u32 %v10975_v52, %v8179_v12  ;;  %v8579_v54 = vld [vmem:[%s17543_s6 + $0x798] sm:$0xf0]  ;;  %v11067_v12 = vld [vmem:[%s17543_s6 + $0x74c] sm:$0xf] }
 0x66e   :  { %v8291_v51 = vld [vmem:[%s17543_s6 + $0x558] sm:$0xf0]  ;;  %v8582_v46 = vor.u32 %v11075_v2, %v8579_v54 }
 0x66f   :  { %6809 = vmatpush.bf16.msra.mxu0 %v8230_v20  ;;  %6822 = vmatpush.bf16.msra.mxu1 %v8358_v30  ;;  %v6557_v20 = vpop.f32.mrf.mxu0  ;;  %v8451_v30 = vld [vmem:[%s17543_s6 + $0x698] sm:$0xf0]  ;;  %v6583_v2 = vpop.f32.mrf.mxu2 }
 0x670   :  { %6847 = vmatpush.bf16.msra.mxu3 %v8630_v57  ;;  %v6558_v7 = vadd.f32 %v6557_v20, %v16402_v32  ;;  %v8163_v32 = vld [vmem:[%s17543_s6 + $0x458] sm:$0xf0]  ;;  %v8454_v35 = vor.u32 %v11043_v39, %v8451_v30  ;;  %v11003_v57 = vld [vmem:[%s17543_s6 + $0x54c] sm:$0xf]  ;;  %v8422_v30 = vor.u32 %v11035_v1, %v8419_v19 }
 0x671   :  { %6803 = vmatmul.bf16.vlgmr.msrb.gmra.mxu3 %v17616_v6  ;;  %6835 = vmatpush.bf16.msra.mxu2 %v8486_v36  ;;  %v8307_v6 = vld [vmem:[%s17543_s6 + $0x578] sm:$0xf0]  ;;  %v8166_v9 = vor.u32 %v10971_v14, %v8163_v32  ;;  %v8294_v33 = vor.u32 %v11003_v57, %v8291_v51  ;;  %v10967_v36 = vld [vmem:[%s17543_s6 + $0x42c] sm:$0xf] }
 0x672   :  { %v8310_v58 = vor.u32 %v11007_v26, %v8307_v6  ;;  %v6571_v5 = vadd.f32 %v6570_v63, %v6558_v7  ;;  %v8563_v59 = vld [vmem:[%s17543_s6 + $0x778] sm:$0xf0]  ;;  %v10963_v26 = vld [vmem:[%s17543_s6 + $0x40c] sm:$0xf] }
 0x673   :  { %6810 = vmatpush.bf16.msra.mxu0 %v8214_v22  ;;  %6823 = vmatpush.bf16.msra.mxu1 %v8342_v0  ;;  %v11039_v22 = vld [vmem:[%s17543_s6 + $0x66c] sm:$0xf]  ;;  %v8147_v25 = vld [vmem:[%s17543_s6 + $0x438] sm:$0xf0] }
 0x674   :  { %6848 = vmatpush.bf16.msra.mxu3 %v8614_v16  ;;  %v11071_v0 = vld [vmem:[%s17543_s6 + $0x76c] sm:$0xf]  ;;  %v8438_v49 = vor.u32 %v11039_v22, %v8435_v41  ;;  %v8150_v52 = vor.u32 %v10967_v36, %v8147_v25  ;;  %v8131_v20 = vld [vmem:[%s17543_s6 + $0x418] sm:$0xf0]  ;;  %v6596_v57 = vpop.f32.mrf.mxu3 }
 0x675   :  { %6836 = vmatpush.bf16.msra.mxu2 %v8470_v37  ;;  %v10999_v16 = vld [vmem:[%s17543_s6 + $0x52c] sm:$0xf]  ;;  %v8547_v37 = vld [vmem:[%s17543_s6 + $0x758] sm:$0xf0]  ;;  %v8134_v51 = vor.u32 %v10963_v26, %v8131_v20 }
 0x676   :  { %v8278_v6 = vor.u32 %v10999_v16, %v8275_v43  ;;  %v8259_v39 = vld [vmem:[%s17543_s6 + $0x518] sm:$0xf0]  ;;  %v11119_v7 = vld [vmem:[%s17543_s6 + $0x8ec] sm:$0xf]  ;;  %v8550_v54 = vor.u32 %v11067_v12, %v8547_v37 }
 0x677   :  { %6811 = vmatpush.bf16.msra.mxu0 %v8198_v40  ;;  %6824 = vmatpush.bf16.msra.mxu1 %v8326_v38  ;;  %v6559_v61 = vpop.f32.mrf.mxu0  ;;  %v8566_v40 = vor.u32 %v11071_v0, %v8563_v59  ;;  %v6572_v38 = vpop.f32.mrf.mxu1  ;;  %v8755_v63 = vld [vmem:[%s17543_s6 + $0x8f8] sm:$0xf0]  ;;  %v11031_v14 = vld [vmem:[%s17543_s6 + $0x62c] sm:$0xf] }
 0x678   :  { %6849 = vmatpush.bf16.msra.mxu3 %v8598_v47  ;;  %v10995_v47 = vld [vmem:[%s17543_s6 + $0x50c] sm:$0xf]  ;;  %v8403_v32 = vld [vmem:[%s17543_s6 + $0x638] sm:$0xf0] }
 0x679   :  { %6837 = vmatpush.bf16.msra.mxu2 %v8454_v35  ;;  %v6584_v35 = vadd.f32 %v6583_v2, %v6571_v5  ;;  %v8531_v22 = vld [vmem:[%s17543_s6 + $0x738] sm:$0xf0]  ;;  %v8262_v41 = vor.u32 %v10995_v47, %v8259_v39  ;;  %v11115_v0 = vld [vmem:[%s17543_s6 + $0x8cc] sm:$0xf]  ;;  %v6585_v39 = vpop.f32.mrf.mxu2 }
 0x67a   :  { %v8739_v36 = vld [vmem:[%s17543_s6 + $0x8d8] sm:$0xf0]  ;;  %v11147_v25 = vld [vmem:[%s17543_s6 + $0x9cc] sm:$0xf] }
 0x67b   :  { %6812 = vmatpush.bf16.msra.mxu0 %v8182_v11  ;;  %6825 = vmatpush.bf16.msra.mxu1 %v8310_v58  ;;  %v11151_v11 = vld [vmem:[%s17543_s6 + $0x9ec] sm:$0xf]  ;;  %v8883_v58 = vld [vmem:[%s17543_s6 + $0x9f8] sm:$0xf0]  ;;  %v16601_v59 = vadd.f32 %v6596_v57, %v6584_v35 }
 0x67c   :  { %6850 = vmatpush.bf16.msra.mxu3 %v8582_v46  ;;  %v11063_v46 = vld [vmem:[%s17543_s6 + $0x72c] sm:$0xf]  ;;  %v8886_v5 = vor.u32 %v11151_v11, %v8883_v58  ;;  %v8387_v61 = vld [vmem:[%s17543_s6 + $0x618] sm:$0xf0]  ;;  %v6598_v2 = vpop.f32.mrf.mxu3 }
 0x67d   :  { %6838 = vmatpush.bf16.msra.mxu2 %v8438_v49  ;;  %v8867_v49 = vld [vmem:[%s17543_s6 + $0x9d8] sm:$0xf0]  ;;  %v8534_v16 = vor.u32 %v11063_v46, %v8531_v22  ;;  %v11027_v43 = vld [vmem:[%s17543_s6 + $0x60c] sm:$0xf] }
 0x67e   :  { %v8515_v1 = vld [vmem:[%s17543_s6 + $0x718] sm:$0xf0]  ;;  %v11183_v19 = vld [vmem:[%s17543_s6 + $0xaec] sm:$0xf]  ;;  %v8870_v26 = vor.u32 %v11147_v25, %v8867_v49 }
 0x67f   :  { %6813 = vmatpush.bf16.msra.mxu0 %v8166_v9  ;;  %6826 = vmatpush.bf16.msra.mxu1 %v8294_v33  ;;  %v8758_v9 = vor.u32 %v11119_v7, %v8755_v63  ;;  %v8406_v33 = vor.u32 %v11031_v14, %v8403_v32  ;;  %v9011_v38 = vld [vmem:[%s17543_s6 + $0xaf8] sm:$0xf0]  ;;  %v11215_v12 = vld [vmem:[%s17543_s6 + $0xbec] sm:$0xf] }
 0x680   :  { %6851 = vmatpush.bf16.msra.mxu3 %v8566_v40  ;;  %v11059_v40 = vld [vmem:[%s17543_s6 + $0x70c] sm:$0xf]  ;;  %v9139_v37 = vld [vmem:[%s17543_s6 + $0xbf8] sm:$0xf0]  ;;  %v9014_v7 = vor.u32 %v11183_v19, %v9011_v38 }
 0x681   :  { %6839 = vmatpush.bf16.msra.mxu2 %v8422_v30  ;;  %v11111_v20 = vld [vmem:[%s17543_s6 + $0x8ac] sm:$0xf]  ;;  %v8723_v47 = vld [vmem:[%s17543_s6 + $0x8b8] sm:$0xf0]  ;;  %v8518_v30 = vor.u32 %v11059_v40, %v8515_v1 }
 0x682   :  { %v11143_v63 = vld [vmem:[%s17543_s6 + $0x9ac] sm:$0xf]  ;;  %v8851_v11 = vld [vmem:[%s17543_s6 + $0x9b8] sm:$0xf0]  ;;  %v8726_v14 = vor.u32 %v11111_v20, %v8723_v47 }
 0x683   :  { %6814 = vmatpush.bf16.msra.mxu0 %v8150_v52  ;;  %6827 = vmatpush.bf16.msra.mxu1 %v8278_v6  ;;  %v8742_v52 = vor.u32 %v11115_v0, %v8739_v36  ;;  %v8390_v6 = vor.u32 %v11027_v43, %v8387_v61  ;;  %v11179_v58 = vld [vmem:[%s17543_s6 + $0xacc] sm:$0xf]  ;;  %v9123_v35 = vld [vmem:[%s17543_s6 + $0xbd8] sm:$0xf0] }
 0x684   :  { %6852 = vmatpush.bf16.msra.mxu3 %v8550_v54  ;;  %v9142_v54 = vor.u32 %v11215_v12, %v9139_v37  ;;  %v11211_v32 = vld [vmem:[%s17543_s6 + $0xbcc] sm:$0xf]  ;;  %v9107_v25 = vld [vmem:[%s17543_s6 + $0xbb8] sm:$0xf0] }
 0x685   :  { %6840 = vmatpush.bf16.msra.mxu2 %v8406_v33  ;;  %v11107_v57 = vld [vmem:[%s17543_s6 + $0x88c] sm:$0xf]  ;;  %v8963_v38 = vld [vmem:[%s17543_s6 + $0xa98] sm:$0xf0] }
 0x686   :  { %v11139_v22 = vld [vmem:[%s17543_s6 + $0x98c] sm:$0xf] }
 0x687   :  { %6815 = vmatpush.bf16.msra.mxu0 %v8134_v51  ;;  %6828 = vmatpush.bf16.msra.mxu1 %v8262_v41  ;;  %v8707_v51 = vld [vmem:[%s17543_s6 + $0x898] sm:$0xf0]  ;;  %v11175_v0 = vld [vmem:[%s17543_s6 + $0xaac] sm:$0xf]  ;;  %v6609_v40 = vpop.f32.mrf.mxu0  ;;  %v6622_v12 = vpop.f32.mrf.mxu1 }
 0x688   :  { %6853 = vmatpush.bf16.msra.mxu3 %v8534_v16  ;;  %v8835_v41 = vld [vmem:[%s17543_s6 + $0x998] sm:$0xf0]  ;;  %v8710_v33 = vor.u32 %v11107_v57, %v8707_v51  ;;  %v11207_v36 = vld [vmem:[%s17543_s6 + $0xbac] sm:$0xf] }
 0x689   :  { %6841 = vmatpush.bf16.msra.mxu2 %v8390_v6  ;;  %v8838_v49 = vor.u32 %v11139_v22, %v8835_v41  ;;  %v11103_v16 = vld [vmem:[%s17543_s6 + $0x86c] sm:$0xf]  ;;  %v9110_v1 = vor.u32 %v11207_v36, %v9107_v25  ;;  %v9091_v6 = vld [vmem:[%s17543_s6 + $0xb98] sm:$0xf0] }
 0x68a   :  { %6816 = vmatmul.bf16.vlgmr.msra.gmra.mxu0 %v13040_v42  ;;  %6829 = vmatmul.bf16.vlgmr.msra.gmra.mxu1 %v13042_v13  ;;  %v8995_v42 = vld [vmem:[%s17543_s6 + $0xad8] sm:$0xf0]  ;;  %v8854_v13 = vor.u32 %v11143_v63, %v8851_v11  ;;  %v11135_v61 = vld [vmem:[%s17543_s6 + $0x96c] sm:$0xf] }
 0x68b   :  { %6860 = vmatpush.bf16.msrb.mxu0 %v8758_v9  ;;  %6873 = vmatpush.bf16.msrb.mxu1 %v8886_v5  ;;  %v8998_v46 = vor.u32 %v11179_v58, %v8995_v42  ;;  %v9126_v9 = vor.u32 %v11211_v32, %v9123_v35  ;;  %v8979_v5 = vld [vmem:[%s17543_s6 + $0xab8] sm:$0xf0]  ;;  %v11171_v19 = vld [vmem:[%s17543_s6 + $0xa8c] sm:$0xf] }
 0x68c   :  { %6854 = vmatpush.bf16.msra.mxu3 %v8518_v30  ;;  %6842 = vmatmul.bf16.vlgmr.msra.gmra.mxu2 %v13054_v60  ;;  %v8691_v60 = vld [vmem:[%s17543_s6 + $0x878] sm:$0xf0]  ;;  %v8982_v43 = vor.u32 %v11175_v0, %v8979_v5  ;;  %v11099_v47 = vld [vmem:[%s17543_s6 + $0x84c] sm:$0xf]  ;;  %v8966_v30 = vor.u32 %v11171_v19, %v8963_v38 }
 0x68d   :  { %6886 = vmatpush.bf16.msrb.mxu2 %v9014_v7  ;;  %v8694_v37 = vor.u32 %v11103_v16, %v8691_v60  ;;  %v11131_v7 = vld [vmem:[%s17543_s6 + $0x94c] sm:$0xf]  ;;  %v8803_v63 = vld [vmem:[%s17543_s6 + $0x958] sm:$0xf0] }
 0x68e   :  { %v11167_v2 = vld [vmem:[%s17543_s6 + $0xa6c] sm:$0xf]  ;;  %v8806_v32 = vor.u32 %v11131_v7, %v8803_v63  ;;  %v8931_v0 = vld [vmem:[%s17543_s6 + $0xa58] sm:$0xf0] }
 0x68f   :  { %6861 = vmatpush.bf16.msrb.mxu0 %v8742_v52  ;;  %6874 = vmatpush.bf16.msrb.mxu1 %v8870_v26  ;;  %v6610_v52 = vadd.f32 %v6609_v40, %v16601_v59  ;;  %v11203_v26 = vld [vmem:[%s17543_s6 + $0xb8c] sm:$0xf]  ;;  %v8675_v59 = vld [vmem:[%s17543_s6 + $0x858] sm:$0xf0]  ;;  %v6611_v22 = vpop.f32.mrf.mxu0  ;;  %v6624_v5 = vpop.f32.mrf.mxu1 }
 0x690   :  { %6899 = vmatpush.bf16.msrb.mxu3 %v9142_v54  ;;  %v9094_v11 = vor.u32 %v11203_v26, %v9091_v6  ;;  %v8947_v54 = vld [vmem:[%s17543_s6 + $0xa78] sm:$0xf0]  ;;  %v8678_v58 = vor.u32 %v11099_v47, %v8675_v59  ;;  %v11199_v42 = vld [vmem:[%s17543_s6 + $0xb6c] sm:$0xf]  ;;  %v6635_v38 = vpop.f32.mrf.mxu2 }
 0x691   :  { %6855 = vmatmul.bf16.vlgmr.msra.gmra.mxu3 %v13071_v17  ;;  %6887 = vmatpush.bf16.msrb.mxu2 %v8998_v46  ;;  %v8819_v17 = vld [vmem:[%s17543_s6 + $0x978] sm:$0xf0]  ;;  %v6623_v39 = vadd.f32 %v6622_v12, %v6610_v52  ;;  %v11095_v35 = vld [vmem:[%s17543_s6 + $0x82c] sm:$0xf]  ;;  %v8950_v57 = vor.u32 %v11167_v2, %v8947_v54 }
 0x692   :  { %v8822_v20 = vor.u32 %v11135_v61, %v8819_v17  ;;  %v11127_v51 = vld [vmem:[%s17543_s6 + $0x92c] sm:$0xf]  ;;  %v8787_v46 = vld [vmem:[%s17543_s6 + $0x938] sm:$0xf0] }
 0x693   :  { %6862 = vmatpush.bf16.msrb.mxu0 %v8726_v14  ;;  %6875 = vmatpush.bf16.msrb.mxu1 %v8854_v13  ;;  %v9075_v14 = vld [vmem:[%s17543_s6 + $0xb78] sm:$0xf0]  ;;  %v11195_v36 = vld [vmem:[%s17543_s6 + $0xb4c] sm:$0xf]  ;;  %v8790_v16 = vor.u32 %v11127_v51, %v8787_v46  ;;  %v6636_v6 = vadd.f32 %v6635_v38, %v6623_v39 }
 0x694   :  { %6900 = vmatpush.bf16.msrb.mxu3 %v9126_v9  ;;  %v8659_v13 = vld [vmem:[%s17543_s6 + $0x838] sm:$0xf0]  ;;  %v9078_v41 = vor.u32 %v11199_v42, %v9075_v14  ;;  %v11163_v9 = vld [vmem:[%s17543_s6 + $0xa4c] sm:$0xf] }
 0x695   :  { %6888 = vmatpush.bf16.msrb.mxu2 %v8982_v43  ;;  %v9059_v25 = vld [vmem:[%s17543_s6 + $0xb58] sm:$0xf0]  ;;  %v11123_v43 = vld [vmem:[%s17543_s6 + $0x90c] sm:$0xf]  ;;  %v8934_v17 = vor.u32 %v11163_v9, %v8931_v0 }
 0x696   :  { %v8643_v60 = vld [vmem:[%s17543_s6 + $0x818] sm:$0xf0]  ;;  %v11247_v40 = vld [vmem:[%s17543_s6 + $0xcec] sm:$0xf]  ;;  %v9062_v52 = vor.u32 %v11195_v36, %v9059_v25 }
 0x697   :  { %6863 = vmatpush.bf16.msrb.mxu0 %v8710_v33  ;;  %6876 = vmatpush.bf16.msrb.mxu1 %v8838_v49  ;;  %v8662_v33 = vor.u32 %v11095_v35, %v8659_v13  ;;  %v11091_v49 = vld [vmem:[%s17543_s6 + $0x80c] sm:$0xf]  ;;  %v8771_v61 = vld [vmem:[%s17543_s6 + $0x918] sm:$0xf0] }
 0x698   :  { %6901 = vmatpush.bf16.msrb.mxu3 %v9110_v1  ;;  %v9267_v1 = vld [vmem:[%s17543_s6 + $0xcf8] sm:$0xf0]  ;;  %v11279_v19 = vld [vmem:[%s17543_s6 + $0xdec] sm:$0xf]  ;;  %v8646_v47 = vor.u32 %v11091_v49, %v8643_v60  ;;  %v8774_v7 = vor.u32 %v11123_v43, %v8771_v61  ;;  %v6637_v49 = vpop.f32.mrf.mxu2 }
 0x699   :  { %6889 = vmatpush.bf16.msrb.mxu2 %v8966_v30  ;;  %v9395_v12 = vld [vmem:[%s17543_s6 + $0xdf8] sm:$0xf0]  ;;  %v11191_v59 = vld [vmem:[%s17543_s6 + $0xb2c] sm:$0xf]  ;;  %v9270_v63 = vor.u32 %v11247_v40, %v9267_v1 }
 0x69a   :  { %v8915_v26 = vld [vmem:[%s17543_s6 + $0xa38] sm:$0xf0]  ;;  %v9398_v39 = vor.u32 %v11279_v19, %v9395_v12  ;;  %v11275_v42 = vld [vmem:[%s17543_s6 + $0xdcc] sm:$0xf] }
 0x69b   :  { %6864 = vmatpush.bf16.msrb.mxu0 %v8694_v37  ;;  %6877 = vmatpush.bf16.msrb.mxu1 %v8822_v20  ;;  %v11159_v37 = vld [vmem:[%s17543_s6 + $0xa2c] sm:$0xf]  ;;  %v6648_v20 = vpop.f32.mrf.mxu3  ;;  %v9043_v30 = vld [vmem:[%s17543_s6 + $0xb38] sm:$0xf0] }
 0x69c   :  { %6902 = vmatpush.bf16.msrb.mxu3 %v9094_v11  ;;  %v11243_v11 = vld [vmem:[%s17543_s6 + $0xccc] sm:$0xf]  ;;  %v16800_v2 = vadd.f32 %v6648_v20, %v6636_v6  ;;  %v8918_v54 = vor.u32 %v11159_v37, %v8915_v26  ;;  %v9379_v14 = vld [vmem:[%s17543_s6 + $0xdd8] sm:$0xf0] }
 0x69d   :  { %6890 = vmatpush.bf16.msrb.mxu2 %v8950_v57  ;;  %v11155_v35 = vld [vmem:[%s17543_s6 + $0xa0c] sm:$0xf]  ;;  %v8899_v13 = vld [vmem:[%s17543_s6 + $0xa18] sm:$0xf0]  ;;  %v9382_v5 = vor.u32 %v11275_v42, %v9379_v14 }
 0x69e   :  { %v11187_v57 = vld [vmem:[%s17543_s6 + $0xb0c] sm:$0xf]  ;;  %v9027_v51 = vld [vmem:[%s17543_s6 + $0xb18] sm:$0xf0] }
 0x69f   :  { %6865 = vmatpush.bf16.msrb.mxu0 %v8678_v58  ;;  %6878 = vmatpush.bf16.msrb.mxu1 %v8806_v32  ;;  %v9251_v58 = vld [vmem:[%s17543_s6 + $0xcd8] sm:$0xf0]  ;;  %v9046_v32 = vor.u32 %v11191_v59, %v9043_v30  ;;  %v11311_v46 = vld [vmem:[%s17543_s6 + $0xeec] sm:$0xf] }
 0x6a0   :  { %6903 = vmatpush.bf16.msrb.mxu3 %v9078_v41  ;;  %v9523_v22 = vld [vmem:[%s17543_s6 + $0xef8] sm:$0xf0]  ;;  %v9254_v41 = vor.u32 %v11243_v11, %v9251_v58  ;;  %v11343_v9 = vld [vmem:[%s17543_s6 + $0xfec] sm:$0xf] }
 0x6a1   :  { %6891 = vmatpush.bf16.msrb.mxu2 %v8934_v17  ;;  %v9651_v0 = vld [vmem:[%s17543_s6 + $0xff8] sm:$0xf0]  ;;  %v11239_v36 = vld [vmem:[%s17543_s6 + $0xcac] sm:$0xf]  ;;  %v9526_v60 = vor.u32 %v11311_v46, %v9523_v22 }
 0x6a2   :  { %v9235_v25 = vld [vmem:[%s17543_s6 + $0xcb8] sm:$0xf0]  ;;  %v11271_v43 = vld [vmem:[%s17543_s6 + $0xdac] sm:$0xf]  ;;  %v9654_v40 = vor.u32 %v11343_v9, %v9651_v0 }
 0x6a3   :  { %6866 = vmatpush.bf16.msrb.mxu0 %v8662_v33  ;;  %6879 = vmatpush.bf16.msrb.mxu1 %v8790_v16  ;;  %v8902_v33 = vor.u32 %v11155_v35, %v8899_v13  ;;  %v9030_v16 = vor.u32 %v11187_v57, %v9027_v51  ;;  %v9363_v61 = vld [vmem:[%s17543_s6 + $0xdb8] sm:$0xf0]  ;;  %v6650_v17 = vpop.f32.mrf.mxu3  ;;  %v11307_v1 = vld [vmem:[%s17543_s6 + $0xecc] sm:$0xf]  ;;  %v9238_v19 = vor.u32 %v11239_v36, %v9235_v25 }
 0x6a4   :  { %6904 = vmatpush.bf16.msrb.mxu3 %v9062_v52  ;;  %v11339_v38 = vld [vmem:[%s17543_s6 + $0xfcc] sm:$0xf]  ;;  %v9635_v52 = vld [vmem:[%s17543_s6 + $0xfd8] sm:$0xf0] }
 0x6a5   :  { %6892 = vmatpush.bf16.msrb.mxu2 %v8918_v54  ;;  %v11235_v12 = vld [vmem:[%s17543_s6 + $0xc8c] sm:$0xf]  ;;  %v9219_v37 = vld [vmem:[%s17543_s6 + $0xc98] sm:$0xf0] }
 0x6a6   :  { %v11267_v6 = vld [vmem:[%s17543_s6 + $0xd8c] sm:$0xf]  ;;  %v9347_v20 = vld [vmem:[%s17543_s6 + $0xd98] sm:$0xf0] }
 0x6a7   :  { %6867 = vmatpush.bf16.msrb.mxu0 %v8646_v47  ;;  %6880 = vmatpush.bf16.msrb.mxu1 %v8774_v7  ;;  %v9638_v47 = vor.u32 %v11339_v38, %v9635_v52  ;;  %v11303_v59 = vld [vmem:[%s17543_s6 + $0xeac] sm:$0xf]  ;;  %v9491_v30 = vld [vmem:[%s17543_s6 + $0xeb8] sm:$0xf0]  ;;  %v9222_v7 = vor.u32 %v11235_v12, %v9219_v37  ;;  %v6661_v14 = vpop.f32.mrf.mxu0  ;;  %v6674_v51 = vpop.f32.mrf.mxu1 }
 0x6a8   :  { %6905 = vmatpush.bf16.msrb.mxu3 %v9046_v32  ;;  %v9619_v11 = vld [vmem:[%s17543_s6 + $0xfb8] sm:$0xf0]  ;;  %v11231_v54 = vld [vmem:[%s17543_s6 + $0xc6c] sm:$0xf]  ;;  %v9494_v58 = vor.u32 %v11303_v59, %v9491_v30  ;;  %v6662_v57 = vadd.f32 %v6661_v14, %v16800_v2 }
 0x6a9   :  { %6893 = vmatpush.bf16.msrb.mxu2 %v8902_v33  ;;  %v11263_v42 = vld [vmem:[%s17543_s6 + $0xd6c] sm:$0xf]  ;;  %v9475_v13 = vld [vmem:[%s17543_s6 + $0xe98] sm:$0xf0] }
 0x6aa   :  { %6868 = vmatmul.bf16.vlgmr.msrb.gmra.mxu0 %v13220_v28  ;;  %6881 = vmatmul.bf16.vlgmr.msrb.gmra.mxu1 %v13222_v50  ;;  %v9507_v28 = vld [vmem:[%s17543_s6 + $0xed8] sm:$0xf0]  ;;  %v9366_v50 = vor.u32 %v11271_v43, %v9363_v61  ;;  %v11299_v35 = vld [vmem:[%s17543_s6 + $0xe8c] sm:$0xf] }
 0x6ab   :  { %6912 = vmatpush.bf16.msra.mxu0 %v9270_v63  ;;  %6925 = vmatpush.bf16.msra.mxu1 %v9398_v39  ;;  %v9510_v26 = vor.u32 %v11307_v1, %v9507_v28  ;;  %v11335_v63 = vld [vmem:[%s17543_s6 + $0xfac] sm:$0xf]  ;;  %v9350_v39 = vor.u32 %v11267_v6, %v9347_v20  ;;  %v9187_v2 = vld [vmem:[%s17543_s6 + $0xc58] sm:$0xf0]  ;;  %v9478_v33 = vor.u32 %v11299_v35, %v9475_v13 }
 0x6ac   :  { %6906 = vmatpush.bf16.msrb.mxu3 %v9030_v16  ;;  %6894 = vmatmul.bf16.vlgmr.msrb.gmra.mxu2 %v13244_v3  ;;  %v9203_v3 = vld [vmem:[%s17543_s6 + $0xc78] sm:$0xf0]  ;;  %v9622_v32 = vor.u32 %v11335_v63, %v9619_v11  ;;  %v11331_v22 = vld [vmem:[%s17543_s6 + $0xf8c] sm:$0xf] }
 0x6ad   :  { %6938 = vmatpush.bf16.msra.mxu2 %v9526_v60  ;;  %v9206_v46 = vor.u32 %v11231_v54, %v9203_v3  ;;  %v11227_v0 = vld [vmem:[%s17543_s6 + $0xc4c] sm:$0xf]  ;;  %v9315_v25 = vld [vmem:[%s17543_s6 + $0xd58] sm:$0xf0] }
 0x6ae   :  { %v11259_v36 = vld [vmem:[%s17543_s6 + $0xd4c] sm:$0xf]  ;;  %v9459_v60 = vld [vmem:[%s17543_s6 + $0xe78] sm:$0xf0]  ;;  %v9190_v43 = vor.u32 %v11227_v0, %v9187_v2 }
 0x6af   :  { %6913 = vmatpush.bf16.msra.mxu0 %v9254_v41  ;;  %6926 = vmatpush.bf16.msra.mxu1 %v9382_v5  ;;  %v9603_v41 = vld [vmem:[%s17543_s6 + $0xf98] sm:$0xf0]  ;;  %v6675_v5 = vadd.f32 %v6674_v51, %v6662_v57  ;;  %v11295_v16 = vld [vmem:[%s17543_s6 + $0xe6c] sm:$0xf]  ;;  %v6676_v6 = vpop.f32.mrf.mxu1 }
 0x6b0   :  { %6951 = vmatpush.bf16.msra.mxu3 %v9654_v40  ;;  %v9606_v49 = vor.u32 %v11331_v22, %v9603_v41  ;;  %v11327_v61 = vld [vmem:[%s17543_s6 + $0xf6c] sm:$0xf]  ;;  %v9587_v17 = vld [vmem:[%s17543_s6 + $0xf78] sm:$0xf0]  ;;  %v9318_v40 = vor.u32 %v11259_v36, %v9315_v25 }
 0x6b1   :  { %6907 = vmatmul.bf16.vlgmr.msrb.gmra.mxu3 %v13252_v27  ;;  %6939 = vmatpush.bf16.msra.mxu2 %v9510_v26  ;;  %v9331_v27 = vld [vmem:[%s17543_s6 + $0xd78] sm:$0xf0]  ;;  %v11223_v1 = vld [vmem:[%s17543_s6 + $0xc2c] sm:$0xf]  ;;  %v9590_v12 = vor.u32 %v11327_v61, %v9587_v17 }
 0x6b2   :  { %v9334_v9 = vor.u32 %v11263_v42, %v9331_v27  ;;  %v9171_v28 = vld [vmem:[%s17543_s6 + $0xc38] sm:$0xf0]  ;;  %v11255_v38 = vld [vmem:[%s17543_s6 + $0xd2c] sm:$0xf]  ;;  %v6687_v27 = vpop.f32.mrf.mxu2 }
 0x6b3   :  { %6914 = vmatpush.bf16.msra.mxu0 %v9238_v19  ;;  %6927 = vmatpush.bf16.msra.mxu1 %v9366_v50  ;;  %v9462_v19 = vor.u32 %v11295_v16, %v9459_v60  ;;  %v9299_v52 = vld [vmem:[%s17543_s6 + $0xd38] sm:$0xf0]  ;;  %v6663_v50 = vpop.f32.mrf.mxu0  ;;  %v11291_v37 = vld [vmem:[%s17543_s6 + $0xe4c] sm:$0xf]  ;;  %v9174_v20 = vor.u32 %v11223_v1, %v9171_v28  ;;  %v6688_v57 = vadd.f32 %v6687_v27, %v6675_v5 }
 0x6b4   :  { %6952 = vmatpush.bf16.msra.mxu3 %v9638_v47  ;;  %v9443_v26 = vld [vmem:[%s17543_s6 + $0xe58] sm:$0xf0]  ;;  %v11323_v47 = vld [vmem:[%s17543_s6 + $0xf4c] sm:$0xf]  ;;  %v6700_v51 = vpop.f32.mrf.mxu3 }
 0x6b5   :  { %6940 = vmatpush.bf16.msra.mxu2 %v9494_v58  ;;  %v9571_v59 = vld [vmem:[%s17543_s6 + $0xf58] sm:$0xf0]  ;;  %v11219_v30 = vld [vmem:[%s17543_s6 + $0xc0c] sm:$0xf]  ;;  %v9446_v54 = vor.u32 %v11291_v37, %v9443_v26 }
 0x6b6   :  { %v9155_v63 = vld [vmem:[%s17543_s6 + $0xc18] sm:$0xf0]  ;;  %v11251_v11 = vld [vmem:[%s17543_s6 + $0xd0c] sm:$0xf]  ;;  %v9574_v14 = vor.u32 %v11323_v47, %v9571_v59 }
 0x6b7   :  { %6915 = vmatpush.bf16.msra.mxu0 %v9222_v7  ;;  %6928 = vmatpush.bf16.msra.mxu1 %v9350_v39  ;;  %v9302_v7 = vor.u32 %v11255_v38, %v9299_v52  ;;  %v9283_v39 = vld [vmem:[%s17543_s6 + $0xd18] sm:$0xf0]  ;;  %v11375_v3 = vld [vmem:[%s17543_s6 + $0x10ec] sm:$0xf] }
 0x6b8   :  { %6953 = vmatpush.bf16.msra.mxu3 %v9622_v32  ;;  %v9779_v58 = vld [vmem:[%s17543_s6 + $0x10f8] sm:$0xf0]  ;;  %v11407_v42 = vld [vmem:[%s17543_s6 + $0x11ec] sm:$0xf] }
 0x6b9   :  { %6941 = vmatpush.bf16.msra.mxu2 %v9478_v33  ;;  %v9907_v32 = vld [vmem:[%s17543_s6 + $0x11f8] sm:$0xf0]  ;;  %v11287_v35 = vld [vmem:[%s17543_s6 + $0xe2c] sm:$0xf]  ;;  %v9782_v0 = vor.u32 %v11375_v3, %v9779_v58  ;;  %v16999_v33 = vadd.f32 %v6700_v51, %v6688_v57 }
 0x6ba   :  { %v9427_v13 = vld [vmem:[%s17543_s6 + $0xe38] sm:$0xf0]  ;;  %v11319_v22 = vld [vmem:[%s17543_s6 + $0xf2c] sm:$0xf]  ;;  %v9910_v5 = vor.u32 %v11407_v42, %v9907_v32  ;;  %v6689_v6 = vpop.f32.mrf.mxu2 }
 0x6bb   :  { %6916 = vmatpush.bf16.msra.mxu0 %v9206_v46  ;;  %6929 = vmatpush.bf16.msra.mxu1 %v9334_v9  ;;  %v9158_v46 = vor.u32 %v11219_v30, %v9155_v63  ;;  %v9555_v41 = vld [vmem:[%s17543_s6 + $0xf38] sm:$0xf0]  ;;  %v9286_v9 = vor.u32 %v11251_v11, %v9283_v39  ;;  %v11371_v2 = vld [vmem:[%s17543_s6 + $0x10cc] sm:$0xf]  ;;  %v9430_v36 = vor.u32 %v11287_v35, %v9427_v13 }
 0x6bc   :  { %6954 = vmatpush.bf16.msra.mxu3 %v9606_v49  ;;  %v9763_v25 = vld [vmem:[%s17543_s6 + $0x10d8] sm:$0xf0]  ;;  %v11403_v49 = vld [vmem:[%s17543_s6 + $0x11cc] sm:$0xf]  ;;  %v9558_v60 = vor.u32 %v11319_v22, %v9555_v41 }
 0x6bd   :  { %6942 = vmatpush.bf16.msra.mxu2 %v9462_v19  ;;  %v9891_v16 = vld [vmem:[%s17543_s6 + $0x11d8] sm:$0xf0]  ;;  %v11315_v17 = vld [vmem:[%s17543_s6 + $0xf0c] sm:$0xf]  ;;  %v9766_v19 = vor.u32 %v11371_v2, %v9763_v25 }
 0x6be   :  { %v9411_v61 = vld [vmem:[%s17543_s6 + $0xe18] sm:$0xf0]  ;;  %v11439_v1 = vld [vmem:[%s17543_s6 + $0x12ec] sm:$0xf]  ;;  %v9894_v50 = vor.u32 %v11403_v49, %v9891_v16 }
 0x6bf   :  { %6917 = vmatpush.bf16.msra.mxu0 %v9190_v43  ;;  %6930 = vmatpush.bf16.msra.mxu1 %v9318_v40  ;;  %v11283_v43 = vld [vmem:[%s17543_s6 + $0xe0c] sm:$0xf]  ;;  %v9539_v40 = vld [vmem:[%s17543_s6 + $0xf18] sm:$0xf0] }
 0x6c0   :  { %6955 = vmatpush.bf16.msra.mxu3 %v9590_v12  ;;  %v10035_v28 = vld [vmem:[%s17543_s6 + $0x12f8] sm:$0xf0]  ;;  %v11471_v38 = vld [vmem:[%s17543_s6 + $0x13ec] sm:$0xf]  ;;  %v9414_v12 = vor.u32 %v11283_v43, %v9411_v61 }
 0x6c1   :  { %6943 = vmatpush.bf16.msra.mxu2 %v9446_v54  ;;  %v10163_v52 = vld [vmem:[%s17543_s6 + $0x13f8] sm:$0xf0]  ;;  %v11367_v37 = vld [vmem:[%s17543_s6 + $0x10ac] sm:$0xf]  ;;  %v10038_v47 = vor.u32 %v11439_v1, %v10035_v28 }
 0x6c2   :  { %v9747_v26 = vld [vmem:[%s17543_s6 + $0x10b8] sm:$0xf0]  ;;  %v11399_v59 = vld [vmem:[%s17543_s6 + $0x11ac] sm:$0xf]  ;;  %v10166_v63 = vor.u32 %v11471_v38, %v10163_v52 }
 0x6c3   :  { %6918 = vmatpush.bf16.msra.mxu0 %v9174_v20  ;;  %6931 = vmatpush.bf16.msra.mxu1 %v9302_v7  ;;  %v9542_v20 = vor.u32 %v11315_v17, %v9539_v40  ;;  %v9875_v30 = vld [vmem:[%s17543_s6 + $0x11b8] sm:$0xf0]  ;;  %v6702_v7 = vpop.f32.mrf.mxu3  ;;  %v11435_v11 = vld [vmem:[%s17543_s6 + $0x12cc] sm:$0xf]  ;;  %v9750_v39 = vor.u32 %v11367_v37, %v9747_v26 }
 0x6c4   :  { %6956 = vmatpush.bf16.msra.mxu3 %v9574_v14  ;;  %v11467_v54 = vld [vmem:[%s17543_s6 + $0x13cc] sm:$0xf]  ;;  %v10147_v3 = vld [vmem:[%s17543_s6 + $0x13d8] sm:$0xf0] }
 0x6c5   :  { %6944 = vmatpush.bf16.msra.mxu2 %v9430_v36  ;;  %v11363_v58 = vld [vmem:[%s17543_s6 + $0x108c] sm:$0xf]  ;;  %v9731_v42 = vld [vmem:[%s17543_s6 + $0x1098] sm:$0xf0]  ;;  %v10150_v35 = vor.u32 %v11467_v54, %v10147_v3 }
 0x6c6   :  { %v11395_v14 = vld [vmem:[%s17543_s6 + $0x118c] sm:$0xf]  ;;  %v9859_v32 = vld [vmem:[%s17543_s6 + $0x1198] sm:$0xf0]  ;;  %v9734_v51 = vor.u32 %v11363_v58, %v9731_v42 }
 0x6c7   :  { %6919 = vmatpush.bf16.msra.mxu0 %v9158_v46  ;;  %6932 = vmatpush.bf16.msra.mxu1 %v9286_v9  ;;  %v11431_v13 = vld [vmem:[%s17543_s6 + $0x12ac] sm:$0xf]  ;;  %v10003_v57 = vld [vmem:[%s17543_s6 + $0x12b8] sm:$0xf0]  ;;  %v9862_v41 = vor.u32 %v11395_v14, %v9859_v32 }
 0x6c8   :  { %6957 = vmatpush.bf16.msra.mxu3 %v9558_v60  ;;  %v11463_v46 = vld [vmem:[%s17543_s6 + $0x13ac] sm:$0xf]  ;;  %v10131_v22 = vld [vmem:[%s17543_s6 + $0x13b8] sm:$0xf0]  ;;  %v6726_v60 = vpop.f32.mrf.mxu1 }
 0x6c9   :  { %6945 = vmatpush.bf16.msra.mxu2 %v9414_v12  ;;  %v11359_v9 = vld [vmem:[%s17543_s6 + $0x106c] sm:$0xf]  ;;  %v10134_v36 = vor.u32 %v11463_v46, %v10131_v22  ;;  %v9987_v49 = vld [vmem:[%s17543_s6 + $0x1298] sm:$0xf0] }
 0x6ca   :  { %6920 = vmatmul.bf16.vlgmr.msra.gmra.mxu0 %v13385_v21  ;;  %6933 = vmatmul.bf16.vlgmr.msra.gmra.mxu1 %v13395_v48  ;;  %v10019_v21 = vld [vmem:[%s17543_s6 + $0x12d8] sm:$0xf0]  ;;  %v9878_v48 = vor.u32 %v11399_v59, %v9875_v30  ;;  %v11391_v2 = vld [vmem:[%s17543_s6 + $0x116c] sm:$0xf] }
 0x6cb   :  { %6964 = vmatpush.bf16.msrb.mxu0 %v9782_v0  ;;  %6977 = vmatpush.bf16.msrb.mxu1 %v9910_v5  ;;  %v10022_v27 = vor.u32 %v11435_v11, %v10019_v21  ;;  %v10006_v0 = vor.u32 %v11431_v13, %v10003_v57  ;;  %v6713_v5 = vpop.f32.mrf.mxu0  ;;  %v11427_v25 = vld [vmem:[%s17543_s6 + $0x128c] sm:$0xf]  ;;  %v10115_v17 = vld [vmem:[%s17543_s6 + $0x1398] sm:$0xf0] }
 0x6cc   :  { %6958 = vmatpush.bf16.msra.mxu3 %v9542_v20  ;;  %6946 = vmatmul.bf16.vlgmr.msra.gmra.mxu2 %v13419_v8  ;;  %v9715_v8 = vld [vmem:[%s17543_s6 + $0x1078] sm:$0xf0]  ;;  %v6714_v16 = vadd.f32 %v6713_v5, %v16999_v33  ;;  %v11459_v61 = vld [vmem:[%s17543_s6 + $0x138c] sm:$0xf] }
 0x6cd   :  { %6990 = vmatpush.bf16.msrb.mxu2 %v10038_v47  ;;  %v9718_v43 = vor.u32 %v11359_v9, %v9715_v8  ;;  %v11355_v1 = vld [vmem:[%s17543_s6 + $0x104c] sm:$0xf]  ;;  %v9699_v33 = vld [vmem:[%s17543_s6 + $0x1058] sm:$0xf0] }
 0x6ce   :  { %v17117_v28 = vadd.f32 %v6726_v60, %v6714_v16  ;;  %v11387_v38 = vld [vmem:[%s17543_s6 + $0x114c] sm:$0xf]  ;;  %v9827_v52 = vld [vmem:[%s17543_s6 + $0x1158] sm:$0xf0]  ;;  %v9702_v26 = vor.u32 %v11355_v1, %v9699_v33 }
 0x6cf   :  { %6965 = vmatpush.bf16.msrb.mxu0 %v9766_v19  ;;  %6978 = vmatpush.bf16.msrb.mxu1 %v9894_v50  ;;  %v9990_v19 = vor.u32 %v11427_v25, %v9987_v49  ;;  %v10118_v50 = vor.u32 %v11459_v61, %v10115_v17  ;;  %v11423_v12 = vld [vmem:[%s17543_s6 + $0x126c] sm:$0xf]  ;;  %v9971_v37 = vld [vmem:[%s17543_s6 + $0x1278] sm:$0xf0]  ;;  %v9830_v47 = vor.u32 %v11387_v38, %v9827_v52  ;;  %v17182_v9 = vpop.f32.mrf.mxu2 }
 0x6d0   :  { %7003 = vmatpush.bf16.msrb.mxu3 %v10166_v63  ;;  %v11455_v6 = vld [vmem:[%s17543_s6 + $0x136c] sm:$0xf]  ;;  %v10099_v20 = vld [vmem:[%s17543_s6 + $0x1378] sm:$0xf0]  ;;  %v9974_v7 = vor.u32 %v11423_v12, %v9971_v37 }
 0x6d1   :  { %6959 = vmatmul.bf16.vlgmr.msra.gmra.mxu3 %v13448_v44  ;;  %6991 = vmatpush.bf16.msrb.mxu2 %v10022_v27  ;;  %v9843_v44 = vld [vmem:[%s17543_s6 + $0x1178] sm:$0xf0]  ;;  %v11351_v59 = vld [vmem:[%s17543_s6 + $0x102c] sm:$0xf] }
 0x6d2   :  { %v9846_v40 = vor.u32 %v11391_v2, %v9843_v44  ;;  %v9683_v30 = vld [vmem:[%s17543_s6 + $0x1038] sm:$0xf0]  ;;  %v11383_v63 = vld [vmem:[%s17543_s6 + $0x112c] sm:$0xf] }
 0x6d3   :  { %6966 = vmatpush.bf16.msrb.mxu0 %v9750_v39  ;;  %6979 = vmatpush.bf16.msrb.mxu1 %v9878_v48  ;;  %v9811_v11 = vld [vmem:[%s17543_s6 + $0x1138] sm:$0xf0]  ;;  %v6715_v21 = vpop.f32.mrf.mxu0  ;;  %v10102_v39 = vor.u32 %v11455_v6, %v10099_v20  ;;  %v11419_v54 = vld [vmem:[%s17543_s6 + $0x124c] sm:$0xf]  ;;  %v6728_v48 = vpop.f32.mrf.mxu1  ;;  %v9686_v58 = vor.u32 %v11351_v59, %v9683_v30 }
 0x6d4   :  { %7004 = vmatpush.bf16.msrb.mxu3 %v10150_v35  ;;  %v9955_v3 = vld [vmem:[%s17543_s6 + $0x1258] sm:$0xf0]  ;;  %v11451_v42 = vld [vmem:[%s17543_s6 + $0x134c] sm:$0xf]  ;;  %v9814_v32 = vor.u32 %v11383_v63, %v9811_v11  ;;  %v17193_v5 = vpop.f32.mrf.mxu3 }
 0x6d5   :  { %6992 = vmatpush.bf16.msrb.mxu2 %v10006_v0  ;;  %v10083_v27 = vld [vmem:[%s17543_s6 + $0x1358] sm:$0xf0]  ;;  %v11347_v14 = vld [vmem:[%s17543_s6 + $0x100c] sm:$0xf] }
 0x6d6   :  { %v9667_v35 = vld [vmem:[%s17543_s6 + $0x1018] sm:$0xf0]  ;;  %v11379_v13 = vld [vmem:[%s17543_s6 + $0x110c] sm:$0xf]  ;;  %v10086_v8 = vor.u32 %v11451_v42, %v10083_v27 }
 0x6d7   :  { %6967 = vmatpush.bf16.msrb.mxu0 %v9734_v51  ;;  %6980 = vmatpush.bf16.msrb.mxu1 %v9862_v41  ;;  %v9795_v57 = vld [vmem:[%s17543_s6 + $0x1118] sm:$0xf0]  ;;  %v9958_v51 = vor.u32 %v11419_v54, %v9955_v3  ;;  %v11503_v46 = vld [vmem:[%s17543_s6 + $0x14ec] sm:$0xf]  ;;  %v6741_v11 = vpop.f32.mrf.mxu2 }
 0x6d8   :  { %7005 = vmatpush.bf16.msrb.mxu3 %v10134_v36  ;;  %v10291_v22 = vld [vmem:[%s17543_s6 + $0x14f8] sm:$0xf0]  ;;  %v11535_v41 = vld [vmem:[%s17543_s6 + $0x15ec] sm:$0xf]  ;;  %v9670_v36 = vor.u32 %v11347_v14, %v9667_v35  ;;  %v9798_v16 = vor.u32 %v11379_v13, %v9795_v57 }
 0x6d9   :  { %6993 = vmatpush.bf16.msrb.mxu2 %v9990_v19  ;;  %v10419_v0 = vld [vmem:[%s17543_s6 + $0x15f8] sm:$0xf0]  ;;  %v11415_v2 = vld [vmem:[%s17543_s6 + $0x122c] sm:$0xf]  ;;  %v10294_v60 = vor.u32 %v11503_v46, %v10291_v22 }
 0x6da   :  { %v9939_v44 = vld [vmem:[%s17543_s6 + $0x1238] sm:$0xf0]  ;;  %v11447_v25 = vld [vmem:[%s17543_s6 + $0x132c] sm:$0xf]  ;;  %v10422_v61 = vor.u32 %v11535_v41, %v10419_v0  ;;  %v11659_v0 = vld [vmem:[%s17545_s8] sm:$0xf] }
 0x6db   :  { %6968 = vmatpush.bf16.msrb.mxu0 %v9718_v43  ;;  %6981 = vmatpush.bf16.msrb.mxu1 %v9846_v40  ;;  %v10067_v49 = vld [vmem:[%s17543_s6 + $0x1338] sm:$0xf0]  ;;  %v11499_v43 = vld [vmem:[%s17543_s6 + $0x14cc] sm:$0xf]  ;;  %v9942_v17 = vor.u32 %v11415_v2, %v9939_v44  ;;  %v1975_v2 = vperm.slane %v11659_v0, 3 }
 0x6dc   :  { %7006 = vmatpush.bf16.msrb.mxu3 %v10118_v50  ;;  %v10275_v40 = vld [vmem:[%s17543_s6 + $0x14d8] sm:$0xf0]  ;;  %v11531_v1 = vld [vmem:[%s17543_s6 + $0x15cc] sm:$0xf]  ;;  %v10070_v19 = vor.u32 %v11447_v25, %v10067_v49  ;;  %v6754_v48 = vpop.f32.mrf.mxu3 }
 0x6dd   :  { %6994 = vmatpush.bf16.msrb.mxu2 %v9974_v7  ;;  %v10403_v33 = vld [vmem:[%s17543_s6 + $0x15d8] sm:$0xf0]  ;;  %v11411_v38 = vld [vmem:[%s17543_s6 + $0x120c] sm:$0xf]  ;;  %v10278_v6 = vor.u32 %v11499_v43, %v10275_v40 }
 0x6de   :  { %v9923_v52 = vld [vmem:[%s17543_s6 + $0x1218] sm:$0xf0]  ;;  %v11443_v50 = vld [vmem:[%s17543_s6 + $0x130c] sm:$0xf]  ;;  %v10406_v59 = vor.u32 %v11531_v1, %v10403_v33 }
 0x6df   :  { %6969 = vmatpush.bf16.msrb.mxu0 %v9702_v26  ;;  %6982 = vmatpush.bf16.msrb.mxu1 %v9830_v47  ;;  %v10051_v12 = vld [vmem:[%s17543_s6 + $0x1318] sm:$0xf0]  ;;  %v11567_v37 = vld [vmem:[%s17543_s6 + $0x16ec] sm:$0xf]  ;;  %v9926_v30 = vor.u32 %v11411_v38, %v9923_v52 }
 0x6e0   :  { %7007 = vmatpush.bf16.msrb.mxu3 %v10102_v39  ;;  %v10547_v26 = vld [vmem:[%s17543_s6 + $0x16f8] sm:$0xf0]  ;;  %v11599_v20 = vld [vmem:[%s17543_s6 + $0x17ec] sm:$0xf]  ;;  %v10054_v21 = vor.u32 %v11443_v50, %v10051_v12 }
 0x6e1   :  { %6995 = vmatpush.bf16.msrb.mxu2 %v9958_v51  ;;  %v10675_v47 = vld [vmem:[%s17543_s6 + $0x17f8] sm:$0xf0]  ;;  %v11495_v7 = vld [vmem:[%s17543_s6 + $0x14ac] sm:$0xf]  ;;  %v10550_v39 = vor.u32 %v11567_v37, %v10547_v26 }
 0x6e2   :  { %v10259_v63 = vld [vmem:[%s17543_s6 + $0x14b8] sm:$0xf0]  ;;  %v11527_v54 = vld [vmem:[%s17543_s6 + $0x15ac] sm:$0xf] }
 0x6e3   :  { %6970 = vmatpush.bf16.msrb.mxu0 %v9686_v58  ;;  %6983 = vmatpush.bf16.msrb.mxu1 %v9814_v32  ;;  %v10387_v3 = vld [vmem:[%s17543_s6 + $0x15b8] sm:$0xf0]  ;;  %v10678_v58 = vor.u32 %v11599_v20, %v10675_v47  ;;  %v11563_v42 = vld [vmem:[%s17543_s6 + $0x16cc] sm:$0xf]  ;;  %v10262_v27 = vor.u32 %v11495_v7, %v10259_v63 }
 0x6e4   :  { %7008 = vmatpush.bf16.msrb.mxu3 %v10086_v8  ;;  %v11595_v14 = vld [vmem:[%s17543_s6 + $0x17cc] sm:$0xf]  ;;  %v10659_v32 = vld [vmem:[%s17543_s6 + $0x17d8] sm:$0xf0] }
 0x6e5   :  { %6996 = vmatpush.bf16.msrb.mxu2 %v9942_v17  ;;  %v11491_v35 = vld [vmem:[%s17543_s6 + $0x148c] sm:$0xf]  ;;  %v10243_v13 = vld [vmem:[%s17543_s6 + $0x1498] sm:$0xf0]  ;;  %v10662_v22 = vor.u32 %v11595_v14, %v10659_v32 }
 0x6e6   :  { %v11523_v51 = vld [vmem:[%s17543_s6 + $0x158c] sm:$0xf]  ;;  %v10371_v46 = vld [vmem:[%s17543_s6 + $0x1598] sm:$0xf0]  ;;  %v10246_v44 = vor.u32 %v11491_v35, %v10243_v13 }
 0x6e7   :  { %6971 = vmatpush.bf16.msrb.mxu0 %v9670_v36  ;;  %6984 = vmatpush.bf16.msrb.mxu1 %v9798_v16  ;;  %v11559_v41 = vld [vmem:[%s17543_s6 + $0x16ac] sm:$0xf]  ;;  %v10515_v8 = vld [vmem:[%s17543_s6 + $0x16b8] sm:$0xf0]  ;;  %v10374_v49 = vor.u32 %v11523_v51, %v10371_v46 }
 0x6e8   :  { %7009 = vmatpush.bf16.msrb.mxu3 %v10070_v19  ;;  %v11591_v36 = vld [vmem:[%s17543_s6 + $0x17ac] sm:$0xf]  ;;  %v10643_v25 = vld [vmem:[%s17543_s6 + $0x17b8] sm:$0xf0]  ;;  %v6778_v19 = vpop.f32.mrf.mxu1 }
 0x6e9   :  { %6997 = vmatpush.bf16.msrb.mxu2 %v9926_v30  ;;  %v10227_v16 = vld [vmem:[%s17543_s6 + $0x1478] sm:$0xf0]  ;;  %v11519_v43 = vld [vmem:[%s17543_s6 + $0x156c] sm:$0xf]  ;;  %v10646_v17 = vor.u32 %v11591_v36, %v10643_v25 }
 0x6ea   :  { %6972 = vmatmul.bf16.vlgmr.msrb.gmra.mxu0 %v13597_v24  ;;  %6985 = vmatmul.bf16.vlgmr.msrb.gmra.mxu1 %v13607_v55  ;;  %v10531_v24 = vld [vmem:[%s17543_s6 + $0x16d8] sm:$0xf0]  ;;  %v10390_v55 = vor.u32 %v11527_v54, %v10387_v3  ;;  %v11555_v40 = vld [vmem:[%s17543_s6 + $0x168c] sm:$0xf] }
 0x6eb   :  { %7016 = vmatpush.bf16.msra.mxu0 %v10294_v60  ;;  %7029 = vmatpush.bf16.msra.mxu1 %v10422_v61  ;;  %v10534_v57 = vor.u32 %v11563_v42, %v10531_v24  ;;  %v10518_v60 = vor.u32 %v11559_v41, %v10515_v8  ;;  %v6765_v61 = vpop.f32.mrf.mxu0  ;;  %v10499_v1 = vld [vmem:[%s17543_s6 + $0x1698] sm:$0xf0]  ;;  %v11587_v52 = vld [vmem:[%s17543_s6 + $0x178c] sm:$0xf] }
 0x6ec   :  { %7010 = vmatpush.bf16.msrb.mxu3 %v10054_v21  ;;  %6998 = vmatmul.bf16.vlgmr.msrb.gmra.mxu2 %v13637_v31  ;;  %v11487_v31 = vld [vmem:[%s17543_s6 + $0x146c] sm:$0xf]  ;;  %v6766_v33 = vadd.f32 %v6765_v61, %v1975_v2  ;;  %v10627_v50 = vld [vmem:[%s17543_s6 + $0x1798] sm:$0xf0]  ;;  %v10502_v20 = vor.u32 %v11555_v40, %v10499_v1 }
 0x6ed   :  { %7042 = vmatpush.bf16.msra.mxu2 %v10550_v39  ;;  %v10230_v38 = vor.u32 %v11487_v31, %v10227_v16  ;;  %v11483_v37 = vld [vmem:[%s17543_s6 + $0x144c] sm:$0xf]  ;;  %v10211_v26 = vld [vmem:[%s17543_s6 + $0x1458] sm:$0xf0]  ;;  %v10630_v30 = vor.u32 %v11587_v52, %v10627_v50 }
 0x6ee   :  { %v11515_v47 = vld [vmem:[%s17543_s6 + $0x154c] sm:$0xf]  ;;  %v10483_v63 = vld [vmem:[%s17543_s6 + $0x1678] sm:$0xf0]  ;;  %v10214_v11 = vor.u32 %v11483_v37, %v10211_v26  ;;  %v11608_v37 = vld [vmem:[%s17546_s9 + $0x30] sm:$0xff] }
 0x6ef   :  { %7017 = vmatpush.bf16.msra.mxu0 %v10278_v6  ;;  %7030 = vmatpush.bf16.msra.mxu1 %v10406_v59  ;;  %v6779_v6 = vadd.f32 %v6778_v19, %v6766_v33  ;;  %v10339_v59 = vld [vmem:[%s17543_s6 + $0x1558] sm:$0xf0]  ;;  %v11551_v7 = vld [vmem:[%s17543_s6 + $0x166c] sm:$0xf]  ;;  %v11616_v26 = vld [vmem:[%s17546_s9 + $0x70] sm:$0xff] }
 0x6f0   :  { %7055 = vmatpush.bf16.msra.mxu3 %v10678_v58  ;;  %v11583_v21 = vld [vmem:[%s17543_s6 + $0x176c] sm:$0xf]  ;;  %v10611_v39 = vld [vmem:[%s17543_s6 + $0x1778] sm:$0xf0]  ;;  %v10342_v54 = vor.u32 %v11515_v47, %v10339_v59  ;;  %v10486_v58 = vor.u32 %v11551_v7, %v10483_v63  ;;  %v6780_v35 = vpop.f32.mrf.mxu1 }
 0x6f1   :  { %7011 = vmatmul.bf16.vlgmr.msrb.gmra.mxu3 %v13651_v29  ;;  %7043 = vmatpush.bf16.msra.mxu2 %v10534_v57  ;;  %v10355_v29 = vld [vmem:[%s17543_s6 + $0x1578] sm:$0xf0]  ;;  %v11479_v3 = vld [vmem:[%s17543_s6 + $0x142c] sm:$0xf]  ;;  %v10614_v14 = vor.u32 %v11583_v21, %v10611_v39  ;;  %v11614_v39 = vld [vmem:[%s17546_s9 + $0x60] sm:$0xff]  ;;  %v6740_v35 = vadd.f32 %v17182_v9, %v17117_v28 }
 0x6f2   :  { %v10358_v12 = vor.u32 %v11519_v43, %v10355_v29  ;;  %v10195_v48 = vld [vmem:[%s17543_s6 + $0x1438] sm:$0xf0]  ;;  %v11511_v42 = vld [vmem:[%s17543_s6 + $0x152c] sm:$0xf] }
 0x6f3   :  { %7018 = vmatpush.bf16.msra.mxu0 %v10262_v27  ;;  %7031 = vmatpush.bf16.msra.mxu1 %v10390_v55  ;;  %v10323_v24 = vld [vmem:[%s17543_s6 + $0x1538] sm:$0xf0]  ;;  %v6767_v27 = vpop.f32.mrf.mxu0  ;;  %v11547_v32 = vld [vmem:[%s17543_s6 + $0x164c] sm:$0xf]  ;;  %v10198_v13 = vor.u32 %v11479_v3, %v10195_v48 }
 0x6f4   :  { %7056 = vmatpush.bf16.msra.mxu3 %v10662_v22  ;;  %v10467_v55 = vld [vmem:[%s17543_s6 + $0x1658] sm:$0xf0]  ;;  %v11579_v57 = vld [vmem:[%s17543_s6 + $0x174c] sm:$0xf]  ;;  %v10326_v46 = vor.u32 %v11511_v42, %v10323_v24  ;;  %v6804_v16 = vpop.f32.mrf.mxu3 }
 0x6f5   :  { %7044 = vmatpush.bf16.msra.mxu2 %v10518_v60  ;;  %v10595_v51 = vld [vmem:[%s17543_s6 + $0x1758] sm:$0xf0]  ;;  %v11475_v22 = vld [vmem:[%s17543_s6 + $0x140c] sm:$0xf]  ;;  %v10470_v8 = vor.u32 %v11547_v32, %v10467_v55 }
 0x6f6   :  { %v10179_v41 = vld [vmem:[%s17543_s6 + $0x1418] sm:$0xf0]  ;;  %v11507_v0 = vld [vmem:[%s17543_s6 + $0x150c] sm:$0xf]  ;;  %v10598_v36 = vor.u32 %v11579_v57, %v10595_v51  ;;  %v11604_v51 = vld [vmem:[%s17546_s9 + $0x10] sm:$0xff] }
 0x6f7   :  { %7019 = vmatpush.bf16.msra.mxu0 %v10246_v44  ;;  %7032 = vmatpush.bf16.msra.mxu1 %v10374_v49  ;;  %v10307_v2 = vld [vmem:[%s17543_s6 + $0x1518] sm:$0xf0]  ;;  %v6791_v44 = vpop.f32.mrf.mxu2  ;;  %v11543_v25 = vld [vmem:[%s17543_s6 + $0x162c] sm:$0xf]  ;;  %v10182_v60 = vor.u32 %v11475_v22, %v10179_v41  ;;  %v11612_v41 = vld [vmem:[%s17546_s9 + $0x50] sm:$0xff] }
 0x6f8   :  { %7057 = vmatpush.bf16.msra.mxu3 %v10646_v17  ;;  %v10451_v49 = vld [vmem:[%s17543_s6 + $0x1638] sm:$0xf0]  ;;  %v6792_v31 = vadd.f32 %v6791_v44, %v6779_v6  ;;  %v11575_v43 = vld [vmem:[%s17543_s6 + $0x172c] sm:$0xf]  ;;  %v10310_v61 = vor.u32 %v11507_v0, %v10307_v2  ;;  %v6753_v0 = vadd.f32 %v17193_v5, %v6740_v35  ;;  %v11620_v5 = vld [vmem:[%s17546_s9 + $0x90] sm:$0xff] }
 0x6f9   :  { %7045 = vmatpush.bf16.msra.mxu2 %v10502_v20  ;;  %v10579_v29 = vld [vmem:[%s17543_s6 + $0x1738] sm:$0xf0]  ;;  %v10454_v33 = vor.u32 %v11543_v25, %v10451_v49  ;;  %v11571_v50 = vld [vmem:[%s17543_s6 + $0x170c] sm:$0xf] }
 0x6fa   :  { %v11609_v17 = vld [vmem:[%s17546_s9 + $0x38] sm:$0xff]  ;;  %v6805_v40 = vadd.f32 %v6804_v16, %v6792_v31  ;;  %v10582_v19 = vor.u32 %v11575_v43, %v10579_v29  ;;  %v11607_v7 = vld [vmem:[%s17546_s9 + $0x28] sm:$0xff]  ;;  %v11661_v32 = vld [vmem:[%s17544_s7 + $0x1] ss:$2 sm:$0xf] }
 0x6fb   :  { %7020 = vmatpush.bf16.msra.mxu0 %v10230_v38  ;;  %7033 = vmatpush.bf16.msra.mxu1 %v10358_v12  ;;  %v11617_v1 = vld [vmem:[%s17546_s9 + $0x78] sm:$0xff]  ;;  %v11539_v38 = vld [vmem:[%s17543_s6 + $0x160c] sm:$0xf]  ;;  %v7098_v55 = vperm.slane %v11661_v32, 0  ;;  %v7100_v25 = vperm.slane %v11661_v32, 2 }
 0x6fc   :  { %7058 = vmatpush.bf16.msra.mxu3 %v10630_v30  ;;  %v10435_v52 = vld [vmem:[%s17543_s6 + $0x1618] sm:$0xf0]  ;;  %v6806_v30 = vpop.f32.mrf.mxu3  ;;  %v11615_v63 = vld [vmem:[%s17546_s9 + $0x68] sm:$0xff] }
 0x6fd   :  { %7046 = vmatpush.bf16.msra.mxu2 %v10486_v58  ;;  %v10563_v12 = vld [vmem:[%s17543_s6 + $0x1718] sm:$0xf0]  ;;  %v10438_v6 = vor.u32 %v11539_v38, %v10435_v52  ;;  %v7106_v9 = vmul.f32 %v7098_v55, %v14922_v23  ;;  %v11611_v31 = vld [vmem:[%s17546_s9 + $0x48] sm:$0xff] }
 0x6fe   :  { %v10566_v47 = vor.u32 %v11571_v50, %v10563_v12  ;;  %v11625_v59 = vld [vmem:[%s17546_s9 + $0xb8] sm:$0xff]  ;;  %v11619_v38 = vld [vmem:[%s17546_s9 + $0x88] sm:$0xff] }
 0x6ff   :  { %7021 = vmatpush.bf16.msra.mxu0 %v10214_v11  ;;  %7034 = vmatpush.bf16.msra.mxu1 %v10342_v54  ;;  %v6793_v20 = vpop.f32.mrf.mxu2  ;;  %v11660_v11 = vld [vmem:[%s17544_s7] ss:$2 sm:$0xf]  ;;  %v11605_v42 = vld [vmem:[%s17546_s9 + $0x18] sm:$0xff] }
 0x700   :  { %7059 = vmatpush.bf16.msra.mxu3 %v10614_v14  ;;  %v7075_v21 = vperm.slane %v11660_v11, 0  ;;  %v7076_v3 = vperm.slane %v11660_v11, 1  ;;  %v11613_v24 = vld [vmem:[%s17546_s9 + $0x58] sm:$0xff]  ;;  %v11622_v14 = vld [vmem:[%s17546_s9 + $0xa0] sm:$0xff] }
 0x701   :  { %7047 = vmatpush.bf16.msra.mxu2 %v10470_v8  ;;  %v11621_v28 = vld [vmem:[%s17546_s9 + $0x98] sm:$0xff] }
 0x702   :  { %v7084_v57 = vmul.f32 %v7076_v3, %v14933_v4 }
 0x703   :  { %7022 = vmatpush.bf16.msra.mxu0 %v10198_v13  ;;  %7035 = vmatpush.bf16.msra.mxu1 %v10326_v46  ;;  %v7099_v13 = vperm.slane %v11661_v32, 1  ;;  %v7077_v46 = vperm.slane %v11660_v11, 2  ;;  %v11632_v32 = vld [vmem:[%s17546_s9 + $0xf0] sm:$0xff] }
 0x704   :  { %7060 = vmatpush.bf16.msra.mxu3 %v10598_v36  ;;  %v7088_v8 = vadd.f32 %v7084_v57, %v16002_v53  ;;  %v11603_v36 = vld [vmem:[%s17546_s9 + $0x8] sm:$0xff] }
 0x705   :  { %7048 = vmatpush.bf16.msra.mxu2 %v10454_v33  ;;  %v7107_v44 = vmul.f32 %v7099_v13, %v14922_v23  ;;  %v7085_v53 = vmul.f32 %v7077_v46, %v14933_v4  ;;  %v11631_v13 = vld [vmem:[%s17546_s9 + $0xe8] sm:$0xff]  ;;  %v11629_v46 = vld [vmem:[%s17546_s9 + $0xd8] sm:$0xff] }
 0x707   :  { %7023 = vmatpush.bf16.msra.mxu0 %v10182_v60  ;;  %7036 = vmatpush.bf16.msra.mxu1 %v10310_v61  ;;  %v6817_v54 = vpop.f32.mrf.mxu0  ;;  %v6830_v58 = vpop.f32.mrf.mxu1  ;;  %v7111_v16 = vadd.f32 %v7107_v44, %v7088_v8  ;;  %v7089_v60 = vadd.f32 %v7085_v53, %v6753_v0  ;;  %v11627_v53 = vld [vmem:[%s17546_s9 + $0xc8] sm:$0xff] }
 0x708   :  { %7061 = vmatpush.bf16.msra.mxu3 %v10582_v19  ;;  %v6818_v48 = vadd.f32 %v6817_v54, %v6805_v40 }
 0x709   :  { %7049 = vmatpush.bf16.msra.mxu2 %v10438_v6  ;;  %v7115_v33 = vmax.f32 %v7111_v16, 0.0 }
 0x70a   :  { %7024 = vmatmul.bf16.vlgmr.msra.gmra.mxu0 %v13809_v15  ;;  %7037 = vmatmul.bf16.vlgmr.msra.gmra.mxu1 %v13819_v34  ;;  %v11624_v15 = vld [vmem:[%s17546_s9 + $0xb0] sm:$0xff]  ;;  %v11606_v34 = vld [vmem:[%s17546_s9 + $0x20] sm:$0xff]  ;;  %v6831_v27 = vadd.f32 %v6830_v58, %v6818_v48 }
 0x70b   :  { %7382 = vmatpush.bf16.msrb.mxu0 %v11609_v17  ;;  %7395 = vmatpush.bf16.msrb.mxu1 %v11617_v1  ;;  %v7108_v17 = vmul.f32 %v7100_v25, %v14922_v23  ;;  %v11610_v1 = vld [vmem:[%s17546_s9 + $0x40] sm:$0xff]  ;;  %v7119_v12 = vpack.c.bf16 %v7115_v33, %v7115_v33 }
 0x70c   :  { %7062 = vmatpush.bf16.msra.mxu3 %v10566_v47  ;;  %7050 = vmatmul.bf16.vlgmr.msra.gmra.mxu2 %v13855_v45  ;;  %v11623_v45 = vld [vmem:[%s17546_s9 + $0xa8] sm:$0xff]  ;;  %v11618_v23 = vld [vmem:[%s17546_s9 + $0x80] sm:$0xff] }
 0x70d   :  { %7408 = vmatpush.bf16.msrb.mxu2 %v11625_v59  ;;  %v7112_v52 = vadd.f32 %v7108_v17, %v7089_v60 }
 0x70f   :  { %7383 = vmatpush.bf16.msrb.mxu0 %v11608_v37  ;;  %7396 = vmatpush.bf16.msrb.mxu1 %v11616_v26  ;;  %v6819_v2 = vpop.f32.mrf.mxu0  ;;  %v6843_v43 = vpop.f32.mrf.mxu2  ;;  %v7116_v37 = vmax.f32 %v7112_v52, 0.0 }
 0x710   :  { %7063 = vmatmul.bf16.vlgmr.msra.gmra.mxu3 %v13865_v10  ;;  %v7083_v10 = vmul.f32 %v7075_v21, %v14933_v4  ;;  %v6844_v29 = vadd.f32 %v6843_v43, %v6831_v27  ;;  %v11602_v4 = vld [vmem:[%s17546_s9] sm:$0xff]  ;;  %v11633_v27 = vld [vmem:[%s17546_s9 + $0xf8] sm:$0xff] }
 0x711   :  { %7409 = vmatpush.bf16.msrb.mxu2 %v11624_v15  ;;  %v7120_v20 = vpack.c.bf16 %v7116_v37, %v7116_v37  ;;  %7421 = vmatpush.bf16.msrb.mxu3 %v11633_v27 }
 0x712   :  { %v7087_v22 = vadd.f32 %v7083_v10, %v14790_v62  ;;  %v6832_v62 = vpop.f32.mrf.mxu1 }
 0x713   :  { %7384 = vmatpush.bf16.msrb.mxu0 %v11607_v7  ;;  %7397 = vmatpush.bf16.msrb.mxu1 %v11615_v63  ;;  %v11628_v62 = vld [vmem:[%s17546_s9 + $0xd0] sm:$0xff] }
 0x714   :  { %v7110_v49 = vadd.f32 %v7106_v9, %v7087_v22  ;;  %v6856_v61 = vpop.f32.mrf.mxu3 }
 0x715   :  { %7410 = vmatpush.bf16.msrb.mxu2 %v11623_v45  ;;  %v6857_v19 = vadd.f32 %v6856_v61, %v6844_v29  ;;  %7422 = vmatpush.bf16.msrb.mxu3 %v11632_v32  ;;  %v11643_v32 = vld [vmem:[%s17548_s11] ss:$0 sm:$0xff] }
 0x716   :  { %v7114_v40 = vmax.f32 %v7110_v49, 0.0 }
 0x717   :  { %7385 = vmatpush.bf16.msrb.mxu0 %v11606_v34  ;;  %7398 = vmatpush.bf16.msrb.mxu1 %v11614_v39  ;;  %v6845_v26 = vpop.f32.mrf.mxu2 }
 0x718   :  { %v7118_v50 = vpack.c.bf16 %v7114_v40, %v7114_v40 }
 0x719   :  { %7411 = vmatpush.bf16.msrb.mxu2 %v11622_v14  ;;  %7423 = vmatpush.bf16.msrb.mxu3 %v11631_v13 }
 0x71b   :  { %7386 = vmatpush.bf16.msrb.mxu0 %v11605_v42  ;;  %7399 = vmatpush.bf16.msrb.mxu1 %v11613_v24 }
 0x71c   :  { %v6858_v6 = vpop.f32.mrf.mxu3 }
 0x71d   :  { %7412 = vmatpush.bf16.msrb.mxu2 %v11621_v28  ;;  %v11641_v6 = vld [vmem:[%s17547_s10] ss:$0 sm:$0xff] }
 0x71f   :  { %7387 = vmatpush.bf16.msrb.mxu0 %v11604_v51  ;;  %7400 = vmatpush.bf16.msrb.mxu1 %v11612_v41  ;;  %v11630_v51 = vld [vmem:[%s17546_s9 + $0xe0] sm:$0xff] }
 0x720   :  { %7424 = vmatpush.bf16.msrb.mxu3 %v11630_v51 }
 0x721   :  { %7413 = vmatpush.bf16.msrb.mxu2 %v11620_v5 }
 0x723   :  { %7388 = vmatpush.bf16.msrb.mxu0 %v11603_v36  ;;  %7401 = vmatpush.bf16.msrb.mxu1 %v11611_v31  ;;  %v11626_v31 = vld [vmem:[%s17546_s9 + $0xc0] sm:$0xff] }
 0x724   :  { %7425 = vmatpush.bf16.msrb.mxu3 %v11629_v46 }
 0x725   :  { %7414 = vmatpush.bf16.msrb.mxu2 %v11619_v38 }
 0x727   :  { %7389 = vmatpush.bf16.msrb.mxu0 %v11602_v4  ;;  %7402 = vmatpush.bf16.msrb.mxu1 %v11610_v1  ;;  %v6869_v47 = vpop.f32.mrf.mxu0  ;;  %v6882_v30 = vpop.f32.mrf.mxu1 }
 0x728   :  { %v6870_v59 = vadd.f32 %v6869_v47, %v6857_v19  ;;  %7426 = vmatpush.bf16.msrb.mxu3 %v11628_v62 }
 0x729   :  { %7415 = vmatpush.bf16.msrb.mxu2 %v11618_v23 }
 0x72a   :  { %7390 = vmatmul.bf16.vlgmr.msrb.gmra.mxu0 %v7118_v50  ;;  %7403 = vmatmul.bf16.vlgmr.msrb.gmra.mxu1 %v7119_v12  ;;  %v6883_v7 = vadd.f32 %v6882_v30, %v6870_v59 }
 0x72c   :  { %7416 = vmatmul.bf16.vlgmr.msrb.gmra.mxu2 %v7120_v20  ;;  %7427 = vmatpush.bf16.msrb.mxu3 %v11627_v53 }
 0x72f   :  { %v6871_v63 = vpop.f32.mrf.mxu0  ;;  %v6884_v15 = vpop.f32.mrf.mxu1 }
 0x730   :  { %v6895_v34 = vpop.f32.mrf.mxu2  ;;  %7428 = vmatpush.bf16.msrb.mxu3 %v11626_v31 }
 0x731   :  { %v6896_v11 = vadd.f32 %v6895_v34, %v6883_v7 }
 0x734   :  { %v6908_v21 = vpop.f32.mrf.mxu3 }
 0x735   :  { %v6909_v39 = vadd.f32 %v6908_v21, %v6896_v11 }
 0x738   :  { %v6897_v45 = vpop.f32.mrf.mxu2 }
 0x73c   :  { %v6910_v54 = vpop.f32.mrf.mxu3 }
 0x747   :  { %v6921_v3 = vpop.f32.mrf.mxu0  ;;  %v6934_v48 = vpop.f32.mrf.mxu1 }
 0x748   :  { %v6922_v8 = vadd.f32 %v6921_v3, %v6909_v39 }
 0x74a   :  { %v6935_v0 = vadd.f32 %v6934_v48, %v6922_v8 }
 0x74f   :  { %v6923_v58 = vpop.f32.mrf.mxu0  ;;  %v6936_v42 = vpop.f32.mrf.mxu1 }
 0x750   :  { %v6947_v10 = vpop.f32.mrf.mxu2  ;;  %v11642_v42 = vld [vmem:[%s17550_s13] ss:$0 sm:$0xff] }
 0x751   :  { %v6948_v2 = vadd.f32 %v6947_v10, %v6935_v0 }
 0x754   :  { %v6960_v24 = vpop.f32.mrf.mxu3 }
 0x755   :  { %v6961_v25 = vadd.f32 %v6960_v24, %v6948_v2 }
 0x758   :  { %v6949_v14 = vpop.f32.mrf.mxu2 }
 0x75c   :  { %v6962_v55 = vpop.f32.mrf.mxu3 }
 0x767   :  { %v6973_v35 = vpop.f32.mrf.mxu0  ;;  %v6986_v57 = vpop.f32.mrf.mxu1 }
 0x768   :  { %v6974_v49 = vadd.f32 %v6973_v35, %v6961_v25  ;;  %v11644_v35 = vld [vmem:[%s17549_s12] ss:$0 sm:$0xff] }
 0x76a   :  { %v6987_v16 = vadd.f32 %v6986_v57, %v6974_v49 }
 0x76f   :  { %v6975_v22 = vpop.f32.mrf.mxu0  ;;  %v6988_v41 = vpop.f32.mrf.mxu1 }
 0x770   :  { %v6999_v28 = vpop.f32.mrf.mxu2 }
 0x771   :  { %v7000_v60 = vadd.f32 %v6999_v28, %v6987_v16 }
 0x774   :  { %v7012_v9 = vpop.f32.mrf.mxu3 }
 0x775   :  { %v7013_v29 = vadd.f32 %v7012_v9, %v7000_v60 }
 0x778   :  { %v7001_v44 = vpop.f32.mrf.mxu2 }
 0x77c   :  { %v7014_v36 = vpop.f32.mrf.mxu3 }
 0x787   :  { %v7025_v5 = vpop.f32.mrf.mxu0  ;;  %v7038_v43 = vpop.f32.mrf.mxu1 }
 0x788   :  { %v7026_v61 = vadd.f32 %v7025_v5, %v7013_v29 }
 0x78a   :  { %v7039_v40 = vadd.f32 %v7038_v43, %v7026_v61 }
 0x78f   :  { %v7027_v4 = vpop.f32.mrf.mxu0  ;;  %v7040_v17 = vpop.f32.mrf.mxu1 }
 0x790   :  { %v7051_v1 = vpop.f32.mrf.mxu2 }
 0x791   :  { %v7052_v33 = vadd.f32 %v7051_v1, %v7039_v40 }
 0x793   :  { %v7064_v19 = vpop.f32.mrf.mxu3 }
 0x794   :  { %v7065_v38 = vadd.f32 %v7064_v19, %v7052_v33 }
 0x796   :  { %v7090_v52 = vadd.f32 %v14942_v56, %v7065_v38 }
 0x798   :  { %v7113_v50 = vadd.f32 %v14931_v18, %v7090_v52  ;;  %v7053_v12 = vpop.f32.mrf.mxu2  ;;  %v7434_v18 = vld [vmem:[%s17551_s14] sm:$0x1] }
 0x799   :  { %v7435_v11 = vadd.f32 1e-05, %v7434_v18 }
 0x79a   :  { %v7117_v23 = vmax.f32 %v7113_v50, 0.0 }
 0x79b   :  { %v7066_v37 = vpop.f32.mrf.mxu3  ;;  %11655 = vrsqrt.f32 %v7435_v11  ;;  %vm7442_vm6 = vweird.f32 %v7435_v11 }
 0x79c   :  { %v7121_v26 = vpack.c.bf16 %v7117_v23, %v7117_v23 }
 0x79e   :  { %7429 = vmatmul.bf16.vlgmr.msrb.gmra.mxu3 %v7121_v26 }
 0x7a1   :  { %v11656_v21 = vpop.eup %11655 }
 0x7a2   :  { %v7437_v39 = vmul.f32 %v11656_v21, %v7435_v11  ;;  %vm7443_vm7 = vweird.f32 %v11656_v21 }
 0x7a3   :  { %vm7444_vm8 = vmor %vm7442_vm6, %vm7443_vm7 }
 0x7a4   :  { %v7438_v45 = vmul.f32 %v11656_v21, %v7437_v39 }
 0x7a6   :  { %v7439_v54 = vmul.f32 0.5, %v7438_v45 }
 0x7a7   :  { %v7391_v20 = vpop.f32.mrf.mxu0  ;;  %v7404_v59 = vpop.f32.mrf.mxu1 }
 0x7a8   :  { %v7392_v47 = vadd.f32 %v11641_v6, %v7391_v20  ;;  %v7440_v3 = vsub.f32 1.5, %v7439_v54 }
 0x7aa   :  { %v7405_v30 = vadd.f32 %v7404_v59, %v7392_v47  ;;  %v7441_v48 = vmul.f32 %v11656_v21, %v7440_v3 }
 0x7ac   :  { %v7445_v58 = vsel %vm7444_vm8, %v11656_v21, %v7441_v48 }
 0x7ad   :  { %v7452_v27 = vperm.slane %v7445_v58, 0 }
 0x7af   :  { %v7393_v7 = vpop.f32.mrf.mxu0  ;;  %v7406_v63 = vpop.f32.mrf.mxu1 }
 0x7b0   :  { %v7417_v15 = vpop.f32.mrf.mxu2 }
 0x7b1   :  { %v7418_v34 = vadd.f32 %v7417_v15, %v7405_v30 }
 0x7b8   :  { %v7419_v56 = vpop.f32.mrf.mxu2 }
 0x821   :  { %v7430_v10 = vpop.f32.mrf.mxu3 }
 0x822   :  { %v7431_v24 = vadd.f32 %v7430_v10, %v7418_v34 }
 0x824   :  { %v7450_v14 = vsub.f32 %v7431_v24, %v11642_v42 }
 0x826   :  { %v7454_v55 = vmul.f32 %v7452_v27, %v7450_v14 }
 0x828   :  { %v7459_v13 = vmul.f32 %v11643_v32, %v7454_v55 }
 0x829   :  { %v7432_v57 = vpop.f32.mrf.mxu3 }
 0x82a   :  { %v7464_v51 = vadd.f32 %v11644_v35, %v7459_v13 }
 0x82c   :  { %7466 = vst.msk [vmem:[#allocation2] sm:$0x3] %vm7465_vm9, %v7464_v51 }
 0x82d   :  { %7477 = dma.vmem_to_hbm [thread:$0]  %s7473_s20, 32, %s7475_s5, [#allocation3]  }
 0x82e   :  { %11686 = dma.done.wait [#allocation3], 32  }
 0x82f   :  { %11687 = vsyncadd [#allocation3], 4294967264 }
 0x830   :  { %7482 = vsyncpa [#allocation3], 1 }

</bundles_post_ra>
